<compile_context>
chip_gen: v6e
topology: v6e:2x2x1
jax: 0.10.0
libtpu: 0.0.40
codegen_flags: <defaults>
</compile_context>

<pallas_src>
import functools
import math

import jax
import jax.numpy as jnp
from jax.experimental import pallas as pl
from jax.experimental.pallas import tpu as pltpu


_LPAD = 8       # left zero-pad (in sublanes) -> all scratch stores tile-aligned
_BN_EPS = 1e-5


# ----------------------------- kernel helpers -------------------------------

def _fill_padded(dst_ref, value, H, W):
    """Zero a padded VMEM scratch and place `value` (1, H, W, C) so that
    image pixel (h, w) lives at dst[0, 1 + h, _LPAD + w, :]."""
    dst_ref[...] = jnp.zeros(dst_ref.shape, dst_ref.dtype)
    dst_ref[:, 1:H + 1, _LPAD:_LPAD + W, :] = value


def _conv3x3_from_padded(src_ref, w_ref, H, W):
    """3x3, stride-1, pad-1 conv read from a `_fill_padded` scratch.

    src_ref: (1, H+2, _LPAD+W+1, Cin) f32 scratch.
    w_ref:   (3, 3, Cin, Cout) bf16.
    Returns the f32 accumulator of shape (H*W, Cout).

    For lane-aligned Cin (multiple of 128) the three horizontal taps are
    merged into one K=3*Cin matmul per row offset; otherwise one matmul per
    tap (K=Cin) is used.
    """
    Cin = src_ref.shape[3]
    Cout = w_ref.shape[3]
    acc = jnp.zeros((H * W, Cout), jnp.float32)
    for dy in range(3):
        row = src_ref[:, dy:dy + H, :, :]                       # (1, H, W+pad, Cin)
        taps = [row[:, :, _LPAD - 1 + dx:_LPAD - 1 + dx + W, :] for dx in range(3)]
        if Cin % 128 == 0:
            lhs = jnp.concatenate(taps, axis=-1).reshape(H * W, 3 * Cin)
            acc += jnp.dot(lhs.astype(jnp.bfloat16),
                           w_ref[dy].reshape(3 * Cin, Cout),
                           preferred_element_type=jnp.float32)
        else:
            for dx in range(3):
                acc += jnp.dot(
                    taps[dx].reshape(H * W, Cin).astype(jnp.bfloat16),
                    w_ref[dy, dx],
                    preferred_element_type=jnp.float32)
    return acc


# ------------------------------- kernels -------------------------------------

def _stem_kernel(cols_e_ref, cols_o_ref, w_ref, s_ref, b_ref, o_ref, pw_ref):
    """Fused stem: conv3x3(3->64, pad 1) + BN + ReLU + maxpool(3x3, s2, pad 1).

    cols_e_ref / cols_o_ref: (1, H, W//2, 27) im2col patches for even / odd
      output columns (built by XLA in the wrapper -- the 3-channel stem input
      is tiny and layout-hostile in-kernel).
    w_ref: (27, 64) bf16.  s_ref / b_ref: (1, 64) folded BN scale / bias.
    o_ref: (1, H//2, W//2, 64).   pw_ref: (1, H, _LPAD + W//2, 64) scratch.
    """
    _, H, Wo, K = cols_e_ref.shape
    C = w_ref.shape[1]
    Ho = H // 2

    def conv(cols_ref):
        lhs = cols_ref[...].reshape(H * Wo, K).astype(jnp.bfloat16)
        y = jnp.dot(lhs, w_ref[...], preferred_element_type=jnp.float32)
        return jnp.maximum(y * s_ref[...] + b_ref[...], 0.0).reshape(1, H, Wo, C)

    ye = conv(cols_e_ref)            # conv output at even columns y[:, :, 0::2, :]
    yo = conv(cols_o_ref)            # conv output at odd columns  y[:, :, 1::2, :]

    # maxpool(3x3, stride 2, pad 1): output column j covers input columns
    # {2j-1, 2j, 2j+1} = {odd[j-1], even[j], odd[j]}.  Values are post-ReLU
    # (>= 0) so zero border padding is equivalent to -inf padding.
    pw_ref[...] = jnp.zeros(pw_ref.shape, pw_ref.dtype)
    pw_ref[:, :, _LPAD:_LPAD + Wo, :] = yo
    yo_left = pw_ref[:, :, _LPAD - 1:_LPAD - 1 + Wo, :]        # odd[j-1]
    colmax = jnp.maximum(jnp.maximum(ye, yo), yo_left)         # (1, H, Wo, C)

    # Output row i covers input rows {2i-1, 2i, 2i+1}; row -1 is border pad.
    for i in range(Ho):
        rows = [r for r in (2 * i - 1, 2 * i, 2 * i + 1) if 0 <= r < H]
        acc = colmax[:, rows[0]:rows[0] + 1, :, :]
        for r in rows[1:]:
            acc = jnp.maximum(acc, colmax[:, r:r + 1, :, :])
        o_ref[:, i:i + 1, :, :] = acc


def _basic_block_kernel(x_ref, w1_ref, s1_ref, b1_ref, w2_ref, s2_ref, b2_ref,
                        o_ref, xp_ref, yp_ref, *, final_relu):
    """Fused stride-1 BasicBlock: conv3x3+BN+ReLU -> conv3x3+BN -> +x (-> ReLU).

    x_ref / o_ref: (1, H, W, C).   w1_ref / w2_ref: (3, 3, C, C) bf16.
    xp_ref / yp_ref: (1, H+2, _LPAD+W+1, C) padded-input VMEM scratch.
    """
    _, H, W, C = x_ref.shape

    # conv1 + bn1 + relu
    _fill_padded(xp_ref, x_ref[...], H, W)
    h = _conv3x3_from_padded(xp_ref, w1_ref, H, W)
    h = jnp.maximum(h * s1_ref[...] + b1_ref[...], 0.0)

    # conv2 + bn2 + residual (+ relu)
    _fill_padded(yp_ref, h.reshape(1, H, W, C), H, W)
    y = _conv3x3_from_padded(yp_ref, w2_ref, H, W)
    y = y * s2_ref[...] + b2_ref[...] + x_ref[...].reshape(H * W, C)
    if final_relu:
        y = jnp.maximum(y, 0.0)
    o_ref[...] = y.reshape(1, H, W, C)


def _down_block_kernel(xe_ref, xo_ref, w1_ref, s1_ref, b1_ref,
                       wd_ref, sd_ref, bd_ref, w2_ref, s2_ref, b2_ref,
                       o_ref, pe_ref, po_ref, yp_ref):
    """Fused layer2 block 0: conv3x3 stride-2 (Cin->Cout) + BN + ReLU,
    conv3x3 stride-1 (Cout->Cout) + BN, fused 1x1 stride-2 downsample + BN on
    the identity path, residual add, ReLU.

    The wrapper pre-splits x into its column phases (xe = x[:, :, 0::2, :],
    xo = x[:, :, 1::2, :]) so every stride-2 tap is a plain static slice
    in-kernel -- the conv is computed directly at stride 2 (no 4x
    over-compute, no strided loads).

    xe_ref / xo_ref: (1, H, W//2, Cin).  o_ref: (1, H//2, W//2, Cout).
    w1_ref: (3, 3, Cin, Cout), wd_ref: (Cin, Cout), w2_ref: (3, 3, Cout, Cout).
    pe_ref: (1, H+2, W//2, Cin), po_ref: (1, H+2, _LPAD + W//2, Cin),
    yp_ref: (1, H//2+2, _LPAD + W//2 + 1, Cout)  -- VMEM scratch.
    """
    _, H, Wo, Cin = xe_ref.shape
    Cout = w1_ref.shape[3]
    Ho = H // 2

    # Zero-padded column phases: rows padded by 1 on each side; the odd phase
    # additionally gets a zero column on the left (needed by the dx=0 tap).
    pe_ref[...] = jnp.zeros(pe_ref.shape, pe_ref.dtype)
    pe_ref[:, 1:H + 1, :, :] = xe_ref[...]
    po_ref[...] = jnp.zeros(po_ref.shape, po_ref.dtype)
    po_ref[:, 1:H + 1, _LPAD:_LPAD + Wo, :] = xo_ref[...]

    def gather_rows(src_ref, dy):
        # padded rows {dy, dy+2, ...} == input rows {2i + dy - 1}
        parts = [src_ref[:, dy + 2 * k:dy + 2 * k + 1, :, :] for k in range(Ho)]
        return jnp.concatenate(parts, axis=1)

    # conv1: 3x3 stride 2.  Output (i, j), tap (dy, dx) reads
    # x[2i+dy-1, 2j+dx-1]:  dx=1 -> even col j; dx=0 -> odd col j-1; dx=2 -> odd col j.
    acc = jnp.zeros((Ho * Wo, Cout), jnp.float32)
    center = None
    for dy in range(3):
        rows_e = gather_rows(pe_ref, dy)                        # (1, Ho, Wo, Cin)
        rows_o = gather_rows(po_ref, dy)                        # (1, Ho, LPAD+Wo, Cin)
        if dy == 1:
            center = rows_e                                     # x[2i, 2j] block
        taps = (rows_o[:, :, _LPAD - 1:_LPAD - 1 + Wo, :],      # dx = 0
                rows_e,                                         # dx = 1
                rows_o[:, :, _LPAD:_LPAD + Wo, :])              # dx = 2
        for dx in range(3):
            acc += jnp.dot(
                taps[dx].reshape(Ho * Wo, Cin).astype(jnp.bfloat16),
                w1_ref[dy, dx], preferred_element_type=jnp.float32)
    h = jnp.maximum(acc * s1_ref[...] + b1_ref[...], 0.0)

    # identity path: 1x1 stride-2 conv + BN, reusing the conv's centre tap
    # (the strided input block is already resident in registers/VMEM).
    ident = jnp.dot(center.reshape(Ho * Wo, Cin).astype(jnp.bfloat16),
                    wd_ref[...], preferred_element_type=jnp.float32)
    ident = ident * sd_ref[...] + bd_ref[...]

    # conv2: 3x3 stride 1 (Cout -> Cout), lane-aligned K = 3*Cout merge per dy.
    _fill_padded(yp_ref, h.reshape(1, Ho, Wo, Cout), Ho, Wo)
    y = _conv3x3_from_padded(yp_ref, w2_ref, Ho, Wo)
    y = jnp.maximum(y * s2_ref[...] + b2_ref[...] + ident, 0.0)
    o_ref[...] = y.reshape(1, Ho, Wo, Cout)


# ------------------------------- wrappers ------------------------------------

def _batched_spec(shape):
    """One batch element per grid step."""
    block = (1,) + tuple(shape[1:])
    return pl.BlockSpec(block, lambda b: (b,) + (0,) * (len(shape) - 1))


def _full_spec(shape):
    """Whole array resident (weights / folded BN params)."""
    return pl.BlockSpec(tuple(shape), lambda b: (0,) * len(shape))


_PARALLEL = pltpu.CompilerParams(dimension_semantics=("parallel",))


def stem(x, w, scale, bias):
    """x: (N, H, W, 3) f32.  Returns maxpooled stem output (N, H//2, W//2, 64)."""
    N, H, W, Cin = x.shape
    Cout = w.shape[3]
    Wo = W // 2
    # im2col of the tiny 3-channel stem input is left to XLA (a few KiB); it is
    # split into even/odd output-column phases so the fused maxpool can
    # subsample by 2 without strided in-kernel accesses.
    xp = jnp.pad(x, ((0, 0), (1, 1), (1, 1), (0, 0)))
    cols = jnp.concatenate(
        [xp[:, dy:dy + H, dx:dx + W, :] for dy in range(3) for dx in range(3)],
        axis=-1)                                        # (N, H, W, 27)
    cols_e = cols[:, :, 0::2, :]
    cols_o = cols[:, :, 1::2, :]
    w27 = w.reshape(9 * Cin, Cout).astype(jnp.bfloat16)
    s2 = scale.reshape(1, Cout)
    b2 = bias.reshape(1, Cout)
    return pl.pallas_call(
        _stem_kernel,
        out_shape=jax.ShapeDtypeStruct((N, H // 2, Wo, Cout), jnp.float32),
        grid=(N,),
        in_specs=[_batched_spec(cols_e.shape), _batched_spec(cols_o.shape),
                  _full_spec(w27.shape), _full_spec(s2.shape), _full_spec(b2.shape)],
        out_specs=_batched_spec((N, H // 2, Wo, Cout)),
        scratch_shapes=[pltpu.VMEM((1, H, _LPAD + Wo, Cout), jnp.float32)],
        compiler_params=_PARALLEL,
    )(cols_e, cols_o, w27, s2, b2)


def basic_block(x, w1, s1, b1, w2, s2, b2, *, final_relu=True):
    """Fused stride-1 BasicBlock.  x: (N, H, W, C); w1/w2: (3, 3, C, C) bf16."""
    N, H, W, C = x.shape
    kernel = functools.partial(_basic_block_kernel, final_relu=final_relu)
    s1r, b1r, s2r, b2r = (v.reshape(1, C) for v in (s1, b1, s2, b2))
    scratch = pltpu.VMEM((1, H + 2, _LPAD + W + 1, C), jnp.float32)
    return pl.pallas_call(
        kernel,
        out_shape=jax.ShapeDtypeStruct((N, H, W, C), jnp.float32),
        grid=(N,),
        in_specs=[_batched_spec(x.shape),
                  _full_spec(w1.shape), _full_spec((1, C)), _full_spec((1, C)),
                  _full_spec(w2.shape), _full_spec((1, C)), _full_spec((1, C))],
        out_specs=_batched_spec((N, H, W, C)),
        scratch_shapes=[scratch, scratch],
        compiler_params=_PARALLEL,
    )(x, w1, s1r, b1r, w2, s2r, b2r)


def down_block(x, w1, s1, b1, wd, sd, bd, w2, s2, b2):
    """Fused stride-2 BasicBlock with 1x1 downsample (layer2 block 0)."""
    N, H, W, Cin = x.shape
    Cout = w1.shape[3]
    Ho, Wo = H // 2, W // 2
    xe = x[:, :, 0::2, :]          # even input columns (tiny XLA strided slice)
    xo = x[:, :, 1::2, :]          # odd input columns
    s1r, b1r, sdr, bdr, s2r, b2r = (v.reshape(1, Cout)
                                    for v in (s1, b1, sd, bd, s2, b2))
    return pl.pallas_call(
        _down_block_kernel,
        out_shape=jax.ShapeDtypeStruct((N, Ho, Wo, Cout), jnp.float32),
        grid=(N,),
        in_specs=[_batched_spec(xe.shape), _batched_spec(xo.shape),
                  _full_spec(w1.shape), _full_spec((1, Cout)), _full_spec((1, Cout)),
                  _full_spec(wd.shape), _full_spec((1, Cout)), _full_spec((1, Cout)),
                  _full_spec(w2.shape), _full_spec((1, Cout)), _full_spec((1, Cout))],
        out_specs=_batched_spec((N, Ho, Wo, Cout)),
        scratch_shapes=[
            pltpu.VMEM((1, H + 2, Wo, Cin), jnp.float32),
            pltpu.VMEM((1, H + 2, _LPAD + Wo, Cin), jnp.float32),
            pltpu.VMEM((1, Ho + 2, _LPAD + Wo + 1, Cout), jnp.float32)],
        compiler_params=_PARALLEL,
    )(xe, xo, w1, s1r, b1r, wd, sdr, bdr, w2, s2r, b2r)


# ------------------------- parameter construction ---------------------------

def _kaiming_conv(key, kh, kw, cin, cout):
    # nn.init.kaiming_normal_(mode='fan_out', nonlinearity='relu')
    fan_out = kh * kw * cout
    std = math.sqrt(2.0 / fan_out)
    return std * jax.random.normal(key, (kh, kw, cin, cout), jnp.float32)


def _bn_params(c):
    # gamma=1, beta=0, running_mean=0, running_var=1 folded (inference mode)
    scale = jnp.full((c,), 1.0 / math.sqrt(1.0 + _BN_EPS), jnp.float32)
    bias = jnp.zeros((c,), jnp.float32)
    return scale, bias


def make_params(key):
    keys = iter(jax.random.split(key, 16))
    p = {}
    p['conv1_w'] = _kaiming_conv(next(keys), 3, 3, 3, 64)
    p['bn1_s'], p['bn1_b'] = _bn_params(64)

    def basic(cin, cout, downsample):
        blk = {}
        blk['conv1_w'] = _kaiming_conv(next(keys), 3, 3, cin, cout).astype(jnp.bfloat16)
        blk['bn1_s'], blk['bn1_b'] = _bn_params(cout)
        blk['conv2_w'] = _kaiming_conv(next(keys), 3, 3, cout, cout).astype(jnp.bfloat16)
        blk['bn2_s'], blk['bn2_b'] = _bn_params(cout)
        if downsample:
            blk['ds_w'] = _kaiming_conv(next(keys), 1, 1, cin, cout)[0, 0].astype(jnp.bfloat16)
            blk['ds_bn_s'], blk['ds_bn_b'] = _bn_params(cout)
        return blk

    # layers = [2, 2]
    p['layer1'] = [basic(64, 64, False), basic(64, 64, False)]
    p['layer2'] = [basic(64, 128, True), basic(128, 128, False)]
    return p


# ------------------------------- forward ------------------------------------

def resnet_front_forward(x_nchw, params):
    p = params
    x = jnp.transpose(x_nchw, (0, 2, 3, 1)).astype(jnp.float32)   # NCHW -> NHWC

    # stem: conv1 -> bn1 -> relu -> maxpool   (one fused kernel)
    x = stem(x, p['conv1_w'], p['bn1_s'], p['bn1_b'])

    # layer1: two BasicBlocks (64 -> 64), one fused kernel each
    for blk in p['layer1']:
        x = basic_block(x, blk['conv1_w'], blk['bn1_s'], blk['bn1_b'],
                        blk['conv2_w'], blk['bn2_s'], blk['bn2_b'],
                        final_relu=True)

    # layer2 block 0: stride 2 + fused 1x1 downsample on the identity path
    blk = p['layer2'][0]
    x = down_block(x, blk['conv1_w'], blk['bn1_s'], blk['bn1_b'],
                   blk['ds_w'], blk['ds_bn_s'], blk['ds_bn_b'],
                   blk['conv2_w'], blk['bn2_s'], blk['bn2_b'])

    # layer2 block 1: final_relu=0 -> no ReLU after the residual add
    blk = p['layer2'][1]
    x = basic_block(x, blk['conv1_w'], blk['bn1_s'], blk['bn1_b'],
                    blk['conv2_w'], blk['bn2_s'], blk['bn2_b'],
                    final_relu=False)

    return jnp.transpose(x, (0, 3, 1, 2))                         # NHWC -> NCHW


# --------------------------------- main --------------------------------------

if __name__ == "__main__":
    key = jax.random.PRNGKey(0)
    k_params, k_x = jax.random.split(key)
    params = make_params(k_params)

    # Small input consistent with the module: NCHW, 3 channels.
    x = jax.random.normal(k_x, (2, 3, 16, 16), jnp.float32)

    fwd = jax.jit(resnet_front_forward)
    y = fwd(x, params)
    jax.block_until_ready(y)

    assert y.shape == (2, 128, 4, 4), y.shape
    assert bool(jnp.all(jnp.isfinite(y)))
    print("KERNEL_OK")
</pallas_src>

<mosaic_0001>
module attributes {stable_mosaic.version = 11 : i64} {
  func.func @_stem_kernel(%arg0: i32, %arg1: memref<1x16x8x27xf32, #tpu.memory_space<vmem>>, %arg2: memref<1x16x8x27xf32, #tpu.memory_space<vmem>>, %arg3: memref<27x64xbf16, #tpu.memory_space<vmem>>, %arg4: memref<1x64xf32, #tpu.memory_space<vmem>>, %arg5: memref<1x64xf32, #tpu.memory_space<vmem>>, %arg6: memref<1x8x8x64xf32, #tpu.memory_space<vmem>>, %arg7: memref<1x16x16x64xf32, #tpu.memory_space<vmem>>) attributes {dimension_semantics = [#tpu.dimension_semantics<parallel>], iteration_bounds = array<i64: 2>, scalar_prefetch = 0 : i64, scratch_operands = 1 : i64, tpu.core_type = #tpu.core_type<tc>, window_params = [{transform_indices = @transform_0, window_bounds = array<i64: 1, 16, 8, 27>}, {transform_indices = @transform_1, window_bounds = array<i64: 1, 16, 8, 27>}, {pipeline_mode = #tpu.pipeline_mode<synchronous>, transform_indices = @transform_2, window_bounds = array<i64: 27, 64>}, {pipeline_mode = #tpu.pipeline_mode<synchronous>, transform_indices = @transform_3, window_bounds = array<i64: 1, 64>}, {pipeline_mode = #tpu.pipeline_mode<synchronous>, transform_indices = @transform_4, window_bounds = array<i64: 1, 64>}, {transform_indices = @transform_5, window_bounds = array<i64: 1, 8, 8, 64>}]} {
    %c0 = arith.constant 0 : index
    %c0_0 = arith.constant 0 : index
    %c0_1 = arith.constant 0 : index
    %c0_2 = arith.constant 0 : index
    %0 = vector.load %arg1[%c0, %c0_0, %c0_1, %c0_2] : memref<1x16x8x27xf32, #tpu.memory_space<vmem>>, vector<1x16x8x27xf32>
    %1 = vector.shape_cast %0 : vector<1x16x8x27xf32> to vector<128x27xf32>
    %2 = arith.truncf %1 : vector<128x27xf32> to vector<128x27xbf16>
    %c0_3 = arith.constant 0 : index
    %c0_4 = arith.constant 0 : index
    %3 = vector.load %arg3[%c0_3, %c0_4] : memref<27x64xbf16, #tpu.memory_space<vmem>>, vector<27x64xbf16>
    %cst = arith.constant dense<0.000000e+00> : vector<128x64xf32>
    %4 = tpu.matmul %2, %3, %cst {dimension_numbers = #tpu.dot_dimension_numbers<[1], [0], [0], [1], [0, 0, 1, 1], [], []>} : vector<128x27xbf16>, vector<27x64xbf16>, vector<128x64xf32> -> vector<128x64xf32>
    %c0_5 = arith.constant 0 : index
    %c0_6 = arith.constant 0 : index
    %5 = vector.load %arg4[%c0_5, %c0_6] : memref<1x64xf32, #tpu.memory_space<vmem>>, vector<1x64xf32>
    %6 = vector.broadcast %5 : vector<1x64xf32> to vector<128x64xf32>
    %7 = arith.mulf %4, %6 : vector<128x64xf32>
    %c0_7 = arith.constant 0 : index
    %c0_8 = arith.constant 0 : index
    %8 = vector.load %arg5[%c0_7, %c0_8] : memref<1x64xf32, #tpu.memory_space<vmem>>, vector<1x64xf32>
    %9 = vector.broadcast %8 : vector<1x64xf32> to vector<128x64xf32>
    %10 = arith.addf %7, %9 : vector<128x64xf32>
    %cst_9 = arith.constant 0.000000e+00 : f32
    %11 = vector.broadcast %cst_9 : f32 to vector<128x64xf32>
    %12 = arith.maximumf %10, %11 : vector<128x64xf32>
    %13 = vector.shape_cast %12 : vector<128x64xf32> to vector<1x16x8x64xf32>
    %c0_10 = arith.constant 0 : index
    %c0_11 = arith.constant 0 : index
    %c0_12 = arith.constant 0 : index
    %c0_13 = arith.constant 0 : index
    %14 = vector.load %arg2[%c0_10, %c0_11, %c0_12, %c0_13] : memref<1x16x8x27xf32, #tpu.memory_space<vmem>>, vector<1x16x8x27xf32>
    %15 = vector.shape_cast %14 : vector<1x16x8x27xf32> to vector<128x27xf32>
    %16 = arith.truncf %15 : vector<128x27xf32> to vector<128x27xbf16>
    %c0_14 = arith.constant 0 : index
    %c0_15 = arith.constant 0 : index
    %17 = vector.load %arg3[%c0_14, %c0_15] : memref<27x64xbf16, #tpu.memory_space<vmem>>, vector<27x64xbf16>
    %cst_16 = arith.constant dense<0.000000e+00> : vector<128x64xf32>
    %18 = tpu.matmul %16, %17, %cst_16 {dimension_numbers = #tpu.dot_dimension_numbers<[1], [0], [0], [1], [0, 0, 1, 1], [], []>} : vector<128x27xbf16>, vector<27x64xbf16>, vector<128x64xf32> -> vector<128x64xf32>
    %c0_17 = arith.constant 0 : index
    %c0_18 = arith.constant 0 : index
    %19 = vector.load %arg4[%c0_17, %c0_18] : memref<1x64xf32, #tpu.memory_space<vmem>>, vector<1x64xf32>
    %20 = vector.broadcast %19 : vector<1x64xf32> to vector<128x64xf32>
    %21 = arith.mulf %18, %20 : vector<128x64xf32>
    %c0_19 = arith.constant 0 : index
    %c0_20 = arith.constant 0 : index
    %22 = vector.load %arg5[%c0_19, %c0_20] : memref<1x64xf32, #tpu.memory_space<vmem>>, vector<1x64xf32>
    %23 = vector.broadcast %22 : vector<1x64xf32> to vector<128x64xf32>
    %24 = arith.addf %21, %23 : vector<128x64xf32>
    %cst_21 = arith.constant 0.000000e+00 : f32
    %25 = vector.broadcast %cst_21 : f32 to vector<128x64xf32>
    %26 = arith.maximumf %24, %25 : vector<128x64xf32>
    %27 = vector.shape_cast %26 : vector<128x64xf32> to vector<1x16x8x64xf32>
    %cst_22 = arith.constant 0.000000e+00 : f32
    %28 = vector.broadcast %cst_22 : f32 to vector<1x16x16x64xf32>
    %c0_23 = arith.constant 0 : index
    %c0_24 = arith.constant 0 : index
    %c0_25 = arith.constant 0 : index
    %c0_26 = arith.constant 0 : index
    %29 = vector.load %arg7[%c0_23, %c0_24, %c0_25, %c0_26] : memref<1x16x16x64xf32, #tpu.memory_space<vmem>>, vector<1x16x16x64xf32>
    tpu.vector_store %arg7[%c0_23, %c0_24, %c0_25, %c0_26], %28 {strides = array<i32>} : memref<1x16x16x64xf32, #tpu.memory_space<vmem>>, vector<1x16x16x64xf32>,
    %c0_27 = arith.constant 0 : index
    %c0_28 = arith.constant 0 : index
    %c8 = arith.constant 8 : index
    %c0_29 = arith.constant 0 : index
    %30 = vector.load %arg7[%c0_27, %c0_28, %c8, %c0_29] : memref<1x16x16x64xf32, #tpu.memory_space<vmem>>, vector<1x16x8x64xf32>
    tpu.vector_store %arg7[%c0_27, %c0_28, %c8, %c0_29], %27 {strides = array<i32>} : memref<1x16x16x64xf32, #tpu.memory_space<vmem>>, vector<1x16x8x64xf32>,
    %c0_30 = arith.constant 0 : index
    %c0_31 = arith.constant 0 : index
    %c7 = arith.constant 7 : index
    %c0_32 = arith.constant 0 : index
    %31 = vector.load %arg7[%c0_30, %c0_31, %c7, %c0_32] : memref<1x16x16x64xf32, #tpu.memory_space<vmem>>, vector<1x16x8x64xf32>
    %32 = arith.maximumf %13, %27 : vector<1x16x8x64xf32>
    %33 = arith.maximumf %32, %31 : vector<1x16x8x64xf32>
    %34 = vector.extract_strided_slice %33 {offsets = [0, 0, 0, 0], sizes = [1, 1, 8, 64], strides = [1, 1, 1, 1]} : vector<1x16x8x64xf32> to vector<1x1x8x64xf32>
    %35 = vector.extract_strided_slice %33 {offsets = [0, 1, 0, 0], sizes = [1, 1, 8, 64], strides = [1, 1, 1, 1]} : vector<1x16x8x64xf32> to vector<1x1x8x64xf32>
    %36 = arith.maximumf %34, %35 : vector<1x1x8x64xf32>
    %c0_33 = arith.constant 0 : index
    %c0_34 = arith.constant 0 : index
    %c0_35 = arith.constant 0 : index
    %c0_36 = arith.constant 0 : index
    %37 = vector.load %arg6[%c0_33, %c0_34, %c0_35, %c0_36] : memref<1x8x8x64xf32, #tpu.memory_space<vmem>>, vector<1x1x8x64xf32>
    tpu.vector_store %arg6[%c0_33, %c0_34, %c0_35, %c0_36], %36 {strides = array<i32>} : memref<1x8x8x64xf32, #tpu.memory_space<vmem>>, vector<1x1x8x64xf32>,
    %38 = vector.extract_strided_slice %33 {offsets = [0, 1, 0, 0], sizes = [1, 1, 8, 64], strides = [1, 1, 1, 1]} : vector<1x16x8x64xf32> to vector<1x1x8x64xf32>
    %39 = vector.extract_strided_slice %33 {offsets = [0, 2, 0, 0], sizes = [1, 1, 8, 64], strides = [1, 1, 1, 1]} : vector<1x16x8x64xf32> to vector<1x1x8x64xf32>
    %40 = arith.maximumf %38, %39 : vector<1x1x8x64xf32>
    %41 = vector.extract_strided_slice %33 {offsets = [0, 3, 0, 0], sizes = [1, 1, 8, 64], strides = [1, 1, 1, 1]} : vector<1x16x8x64xf32> to vector<1x1x8x64xf32>
    %42 = arith.maximumf %40, %41 : vector<1x1x8x64xf32>
    %c0_37 = arith.constant 0 : index
    %c1 = arith.constant 1 : index
    %c0_38 = arith.constant 0 : index
    %c0_39 = arith.constant 0 : index
    %43 = vector.load %arg6[%c0_37, %c1, %c0_38, %c0_39] : memref<1x8x8x64xf32, #tpu.memory_space<vmem>>, vector<1x1x8x64xf32>
    tpu.vector_store %arg6[%c0_37, %c1, %c0_38, %c0_39], %42 {strides = array<i32>} : memref<1x8x8x64xf32, #tpu.memory_space<vmem>>, vector<1x1x8x64xf32>,
    %44 = vector.extract_strided_slice %33 {offsets = [0, 3, 0, 0], sizes = [1, 1, 8, 64], strides = [1, 1, 1, 1]} : vector<1x16x8x64xf32> to vector<1x1x8x64xf32>
    %45 = vector.extract_strided_slice %33 {offsets = [0, 4, 0, 0], sizes = [1, 1, 8, 64], strides = [1, 1, 1, 1]} : vector<1x16x8x64xf32> to vector<1x1x8x64xf32>
    %46 = arith.maximumf %44, %45 : vector<1x1x8x64xf32>
    %47 = vector.extract_strided_slice %33 {offsets = [0, 5, 0, 0], sizes = [1, 1, 8, 64], strides = [1, 1, 1, 1]} : vector<1x16x8x64xf32> to vector<1x1x8x64xf32>
    %48 = arith.maximumf %46, %47 : vector<1x1x8x64xf32>
    %c0_40 = arith.constant 0 : index
    %c2 = arith.constant 2 : index
    %c0_41 = arith.constant 0 : index
    %c0_42 = arith.constant 0 : index
    %49 = vector.load %arg6[%c0_40, %c2, %c0_41, %c0_42] : memref<1x8x8x64xf32, #tpu.memory_space<vmem>>, vector<1x1x8x64xf32>
    tpu.vector_store %arg6[%c0_40, %c2, %c0_41, %c0_42], %48 {strides = array<i32>} : memref<1x8x8x64xf32, #tpu.memory_space<vmem>>, vector<1x1x8x64xf32>,
    %50 = vector.extract_strided_slice %33 {offsets = [0, 5, 0, 0], sizes = [1, 1, 8, 64], strides = [1, 1, 1, 1]} : vector<1x16x8x64xf32> to vector<1x1x8x64xf32>
    %51 = vector.extract_strided_slice %33 {offsets = [0, 6, 0, 0], sizes = [1, 1, 8, 64], strides = [1, 1, 1, 1]} : vector<1x16x8x64xf32> to vector<1x1x8x64xf32>
    %52 = arith.maximumf %50, %51 : vector<1x1x8x64xf32>
    %53 = vector.extract_strided_slice %33 {offsets = [0, 7, 0, 0], sizes = [1, 1, 8, 64], strides = [1, 1, 1, 1]} : vector<1x16x8x64xf32> to vector<1x1x8x64xf32>
    %54 = arith.maximumf %52, %53 : vector<1x1x8x64xf32>
    %c0_43 = arith.constant 0 : index
    %c3 = arith.constant 3 : index
    %c0_44 = arith.constant 0 : index
    %c0_45 = arith.constant 0 : index
    %55 = vector.load %arg6[%c0_43, %c3, %c0_44, %c0_45] : memref<1x8x8x64xf32, #tpu.memory_space<vmem>>, vector<1x1x8x64xf32>
    tpu.vector_store %arg6[%c0_43, %c3, %c0_44, %c0_45], %54 {strides = array<i32>} : memref<1x8x8x64xf32, #tpu.memory_space<vmem>>, vector<1x1x8x64xf32>,
    %56 = vector.extract_strided_slice %33 {offsets = [0, 7, 0, 0], sizes = [1, 1, 8, 64], strides = [1, 1, 1, 1]} : vector<1x16x8x64xf32> to vector<1x1x8x64xf32>
    %57 = vector.extract_strided_slice %33 {offsets = [0, 8, 0, 0], sizes = [1, 1, 8, 64], strides = [1, 1, 1, 1]} : vector<1x16x8x64xf32> to vector<1x1x8x64xf32>
    %58 = arith.maximumf %56, %57 : vector<1x1x8x64xf32>
    %59 = vector.extract_strided_slice %33 {offsets = [0, 9, 0, 0], sizes = [1, 1, 8, 64], strides = [1, 1, 1, 1]} : vector<1x16x8x64xf32> to vector<1x1x8x64xf32>
    %60 = arith.maximumf %58, %59 : vector<1x1x8x64xf32>
    %c0_46 = arith.constant 0 : index
    %c4 = arith.constant 4 : index
    %c0_47 = arith.constant 0 : index
    %c0_48 = arith.constant 0 : index
    %61 = vector.load %arg6[%c0_46, %c4, %c0_47, %c0_48] : memref<1x8x8x64xf32, #tpu.memory_space<vmem>>, vector<1x1x8x64xf32>
    tpu.vector_store %arg6[%c0_46, %c4, %c0_47, %c0_48], %60 {strides = array<i32>} : memref<1x8x8x64xf32, #tpu.memory_space<vmem>>, vector<1x1x8x64xf32>,
    %62 = vector.extract_strided_slice %33 {offsets = [0, 9, 0, 0], sizes = [1, 1, 8, 64], strides = [1, 1, 1, 1]} : vector<1x16x8x64xf32> to vector<1x1x8x64xf32>
    %63 = vector.extract_strided_slice %33 {offsets = [0, 10, 0, 0], sizes = [1, 1, 8, 64], strides = [1, 1, 1, 1]} : vector<1x16x8x64xf32> to vector<1x1x8x64xf32>
    %64 = arith.maximumf %62, %63 : vector<1x1x8x64xf32>
    %65 = vector.extract_strided_slice %33 {offsets = [0, 11, 0, 0], sizes = [1, 1, 8, 64], strides = [1, 1, 1, 1]} : vector<1x16x8x64xf32> to vector<1x1x8x64xf32>
    %66 = arith.maximumf %64, %65 : vector<1x1x8x64xf32>
    %c0_49 = arith.constant 0 : index
    %c5 = arith.constant 5 : index
    %c0_50 = arith.constant 0 : index
    %c0_51 = arith.constant 0 : index
    %67 = vector.load %arg6[%c0_49, %c5, %c0_50, %c0_51] : memref<1x8x8x64xf32, #tpu.memory_space<vmem>>, vector<1x1x8x64xf32>
    tpu.vector_store %arg6[%c0_49, %c5, %c0_50, %c0_51], %66 {strides = array<i32>} : memref<1x8x8x64xf32, #tpu.memory_space<vmem>>, vector<1x1x8x64xf32>,
    %68 = vector.extract_strided_slice %33 {offsets = [0, 11, 0, 0], sizes = [1, 1, 8, 64], strides = [1, 1, 1, 1]} : vector<1x16x8x64xf32> to vector<1x1x8x64xf32>
    %69 = vector.extract_strided_slice %33 {offsets = [0, 12, 0, 0], sizes = [1, 1, 8, 64], strides = [1, 1, 1, 1]} : vector<1x16x8x64xf32> to vector<1x1x8x64xf32>
    %70 = arith.maximumf %68, %69 : vector<1x1x8x64xf32>
    %71 = vector.extract_strided_slice %33 {offsets = [0, 13, 0, 0], sizes = [1, 1, 8, 64], strides = [1, 1, 1, 1]} : vector<1x16x8x64xf32> to vector<1x1x8x64xf32>
    %72 = arith.maximumf %70, %71 : vector<1x1x8x64xf32>
    %c0_52 = arith.constant 0 : index
    %c6 = arith.constant 6 : index
    %c0_53 = arith.constant 0 : index
    %c0_54 = arith.constant 0 : index
    %73 = vector.load %arg6[%c0_52, %c6, %c0_53, %c0_54] : memref<1x8x8x64xf32, #tpu.memory_space<vmem>>, vector<1x1x8x64xf32>
    tpu.vector_store %arg6[%c0_52, %c6, %c0_53, %c0_54], %72 {strides = array<i32>} : memref<1x8x8x64xf32, #tpu.memory_space<vmem>>, vector<1x1x8x64xf32>,
    %74 = vector.extract_strided_slice %33 {offsets = [0, 13, 0, 0], sizes = [1, 1, 8, 64], strides = [1, 1, 1, 1]} : vector<1x16x8x64xf32> to vector<1x1x8x64xf32>
    %75 = vector.extract_strided_slice %33 {offsets = [0, 14, 0, 0], sizes = [1, 1, 8, 64], strides = [1, 1, 1, 1]} : vector<1x16x8x64xf32> to vector<1x1x8x64xf32>
    %76 = arith.maximumf %74, %75 : vector<1x1x8x64xf32>
    %77 = vector.extract_strided_slice %33 {offsets = [0, 15, 0, 0], sizes = [1, 1, 8, 64], strides = [1, 1, 1, 1]} : vector<1x16x8x64xf32> to vector<1x1x8x64xf32>
    %78 = arith.maximumf %76, %77 : vector<1x1x8x64xf32>
    %c0_55 = arith.constant 0 : index
    %c7_56 = arith.constant 7 : index
    %c0_57 = arith.constant 0 : index
    %c0_58 = arith.constant 0 : index
    %79 = vector.load %arg6[%c0_55, %c7_56, %c0_57, %c0_58] : memref<1x8x8x64xf32, #tpu.memory_space<vmem>>, vector<1x1x8x64xf32>
    tpu.vector_store %arg6[%c0_55, %c7_56, %c0_57, %c0_58], %78 {strides = array<i32>} : memref<1x8x8x64xf32, #tpu.memory_space<vmem>>, vector<1x1x8x64xf32>,
    return
  }
  func.func @transform_0(%arg0: i32) -> (i32, i32, i32, i32) {
    %c0_i32 = arith.constant 0 : i32
    %c0_i32_0 = arith.constant 0 : i32
    %c0_i32_1 = arith.constant 0 : i32
    %c0_i32_2 = arith.constant 0 : i32
    return %arg0, %c0_i32, %c0_i32_0, %c0_i32_1 : i32, i32, i32, i32
  }
  func.func @transform_1(%arg0: i32) -> (i32, i32, i32, i32) {
    %c0_i32 = arith.constant 0 : i32
    %c0_i32_0 = arith.constant 0 : i32
    %c0_i32_1 = arith.constant 0 : i32
    %c0_i32_2 = arith.constant 0 : i32
    return %arg0, %c0_i32, %c0_i32_0, %c0_i32_1 : i32, i32, i32, i32
  }
  func.func @transform_2(%arg0: i32) -> (i32, i32) {
    %c0_i32 = arith.constant 0 : i32
    %c0_i32_0 = arith.constant 0 : i32
    %c0_i32_1 = arith.constant 0 : i32
    return %c0_i32, %c0_i32_0 : i32, i32
  }
  func.func @transform_3(%arg0: i32) -> (i32, i32) {
    %c0_i32 = arith.constant 0 : i32
    %c0_i32_0 = arith.constant 0 : i32
    %c0_i32_1 = arith.constant 0 : i32
    return %c0_i32, %c0_i32_0 : i32, i32
  }
  func.func @transform_4(%arg0: i32) -> (i32, i32) {
    %c0_i32 = arith.constant 0 : i32
    %c0_i32_0 = arith.constant 0 : i32
    %c0_i32_1 = arith.constant 0 : i32
    return %c0_i32, %c0_i32_0 : i32, i32
  }
  func.func @transform_5(%arg0: i32) -> (i32, i32, i32, i32) {
    %c0_i32 = arith.constant 0 : i32
    %c0_i32_0 = arith.constant 0 : i32
    %c0_i32_1 = arith.constant 0 : i32
    %c0_i32_2 = arith.constant 0 : i32
    return %arg0, %c0_i32, %c0_i32_0, %c0_i32_1 : i32, i32, i32, i32
  }
}

module attributes {stable_mosaic.version = 11 : i64} {
  func.func @_basic_block_kernel(%arg0: i32, %arg1: memref<1x8x8x64xf32, #tpu.memory_space<vmem>>, %arg2: memref<3x3x64x64xbf16, #tpu.memory_space<vmem>>, %arg3: memref<1x64xf32, #tpu.memory_space<vmem>>, %arg4: memref<1x64xf32, #tpu.memory_space<vmem>>, %arg5: memref<3x3x64x64xbf16, #tpu.memory_space<vmem>>, %arg6: memref<1x64xf32, #tpu.memory_space<vmem>>, %arg7: memref<1x64xf32, #tpu.memory_space<vmem>>, %arg8: memref<1x8x8x64xf32, #tpu.memory_space<vmem>>, %arg9: memref<1x10x17x64xf32, #tpu.memory_space<vmem>>, %arg10: memref<1x10x17x64xf32, #tpu.memory_space<vmem>>) attributes {dimension_semantics = [#tpu.dimension_semantics<parallel>], iteration_bounds = array<i64: 2>, scalar_prefetch = 0 : i64, scratch_operands = 2 : i64, tpu.core_type = #tpu.core_type<tc>, window_params = [{transform_indices = @transform_0, window_bounds = array<i64: 1, 8, 8, 64>}, {pipeline_mode = #tpu.pipeline_mode<synchronous>, transform_indices = @transform_1, window_bounds = array<i64: 3, 3, 64, 64>}, {pipeline_mode = #tpu.pipeline_mode<synchronous>, transform_indices = @transform_2, window_bounds = array<i64: 1, 64>}, {pipeline_mode = #tpu.pipeline_mode<synchronous>, transform_indices = @transform_3, window_bounds = array<i64: 1, 64>}, {pipeline_mode = #tpu.pipeline_mode<synchronous>, transform_indices = @transform_4, window_bounds = array<i64: 3, 3, 64, 64>}, {pipeline_mode = #tpu.pipeline_mode<synchronous>, transform_indices = @transform_5, window_bounds = array<i64: 1, 64>}, {pipeline_mode = #tpu.pipeline_mode<synchronous>, transform_indices = @transform_6, window_bounds = array<i64: 1, 64>}, {transform_indices = @transform_7, window_bounds = array<i64: 1, 8, 8, 64>}]} {
    %c0 = arith.constant 0 : index
    %c0_0 = arith.constant 0 : index
    %c0_1 = arith.constant 0 : index
    %c0_2 = arith.constant 0 : index
    %0 = vector.load %arg1[%c0, %c0_0, %c0_1, %c0_2] : memref<1x8x8x64xf32, #tpu.memory_space<vmem>>, vector<1x8x8x64xf32>
    %cst = arith.constant 0.000000e+00 : f32
    %1 = vector.broadcast %cst : f32 to vector<1x10x17x64xf32>
    %c0_3 = arith.constant 0 : index
    %c0_4 = arith.constant 0 : index
    %c0_5 = arith.constant 0 : index
    %c0_6 = arith.constant 0 : index
    %2 = vector.load %arg9[%c0_3, %c0_4, %c0_5, %c0_6] : memref<1x10x17x64xf32, #tpu.memory_space<vmem>>, vector<1x10x17x64xf32>
    tpu.vector_store %arg9[%c0_3, %c0_4, %c0_5, %c0_6], %1 {strides = array<i32>} : memref<1x10x17x64xf32, #tpu.memory_space<vmem>>, vector<1x10x17x64xf32>,
    %c0_7 = arith.constant 0 : index
    %c1 = arith.constant 1 : index
    %c8 = arith.constant 8 : index
    %c0_8 = arith.constant 0 : index
    %3 = vector.load %arg9[%c0_7, %c1, %c8, %c0_8] : memref<1x10x17x64xf32, #tpu.memory_space<vmem>>, vector<1x8x8x64xf32>
    tpu.vector_store %arg9[%c0_7, %c1, %c8, %c0_8], %0 {strides = array<i32>} : memref<1x10x17x64xf32, #tpu.memory_space<vmem>>, vector<1x8x8x64xf32>,
    %cst_9 = arith.constant 0.000000e+00 : f32
    %4 = vector.broadcast %cst_9 : f32 to vector<64x64xf32>
    %c0_10 = arith.constant 0 : index
    %c0_11 = arith.constant 0 : index
    %c0_12 = arith.constant 0 : index
    %c0_13 = arith.constant 0 : index
    %5 = vector.load %arg9[%c0_10, %c0_11, %c0_12, %c0_13] : memref<1x10x17x64xf32, #tpu.memory_space<vmem>>, vector<1x8x17x64xf32>
    %6 = vector.extract_strided_slice %5 {offsets = [0, 0, 7, 0], sizes = [1, 8, 8, 64], strides = [1, 1, 1, 1]} : vector<1x8x17x64xf32> to vector<1x8x8x64xf32>
    %7 = vector.extract_strided_slice %5 {offsets = [0, 0, 8, 0], sizes = [1, 8, 8, 64], strides = [1, 1, 1, 1]} : vector<1x8x17x64xf32> to vector<1x8x8x64xf32>
    %8 = vector.extract_strided_slice %5 {offsets = [0, 0, 9, 0], sizes = [1, 8, 8, 64], strides = [1, 1, 1, 1]} : vector<1x8x17x64xf32> to vector<1x8x8x64xf32>
    %9 = vector.shape_cast %6 : vector<1x8x8x64xf32> to vector<64x64xf32>
    %10 = arith.truncf %9 : vector<64x64xf32> to vector<64x64xbf16>
    %c0_14 = arith.constant 0 : index
    %c0_15 = arith.constant 0 : index
    %c0_16 = arith.constant 0 : index
    %c0_17 = arith.constant 0 : index
    %11 = vector.load %arg2[%c0_14, %c0_15, %c0_16, %c0_17] : memref<3x3x64x64xbf16, #tpu.memory_space<vmem>>, vector<1x1x64x64xbf16>
    %12 = vector.shape_cast %11 : vector<1x1x64x64xbf16> to vector<64x64xbf16>
    %cst_18 = arith.constant dense<0.000000e+00> : vector<64x64xf32>
    %13 = tpu.matmul %10, %12, %cst_18 {dimension_numbers = #tpu.dot_dimension_numbers<[1], [0], [0], [1], [0, 0, 1, 1], [], []>} : vector<64x64xbf16>, vector<64x64xbf16>, vector<64x64xf32> -> vector<64x64xf32>
    %14 = arith.addf %4, %13 : vector<64x64xf32>
    %15 = vector.shape_cast %7 : vector<1x8x8x64xf32> to vector<64x64xf32>
    %16 = arith.truncf %15 : vector<64x64xf32> to vector<64x64xbf16>
    %c0_19 = arith.constant 0 : index
    %c1_20 = arith.constant 1 : index
    %c0_21 = arith.constant 0 : index
    %c0_22 = arith.constant 0 : index
    %17 = vector.load %arg2[%c0_19, %c1_20, %c0_21, %c0_22] : memref<3x3x64x64xbf16, #tpu.memory_space<vmem>>, vector<1x1x64x64xbf16>
    %18 = vector.shape_cast %17 : vector<1x1x64x64xbf16> to vector<64x64xbf16>
    %cst_23 = arith.constant dense<0.000000e+00> : vector<64x64xf32>
    %19 = tpu.matmul %16, %18, %cst_23 {dimension_numbers = #tpu.dot_dimension_numbers<[1], [0], [0], [1], [0, 0, 1, 1], [], []>} : vector<64x64xbf16>, vector<64x64xbf16>, vector<64x64xf32> -> vector<64x64xf32>
    %20 = arith.addf %14, %19 : vector<64x64xf32>
    %21 = vector.shape_cast %8 : vector<1x8x8x64xf32> to vector<64x64xf32>
    %22 = arith.truncf %21 : vector<64x64xf32> to vector<64x64xbf16>
    %c0_24 = arith.constant 0 : index
    %c2 = arith.constant 2 : index
    %c0_25 = arith.constant 0 : index
    %c0_26 = arith.constant 0 : index
    %23 = vector.load %arg2[%c0_24, %c2, %c0_25, %c0_26] : memref<3x3x64x64xbf16, #tpu.memory_space<vmem>>, vector<1x1x64x64xbf16>
    %24 = vector.shape_cast %23 : vector<1x1x64x64xbf16> to vector<64x64xbf16>
    %cst_27 = arith.constant dense<0.000000e+00> : vector<64x64xf32>
    %25 = tpu.matmul %22, %24, %cst_27 {dimension_numbers = #tpu.dot_dimension_numbers<[1], [0], [0], [1], [0, 0, 1, 1], [], []>} : vector<64x64xbf16>, vector<64x64xbf16>, vector<64x64xf32> -> vector<64x64xf32>
    %26 = arith.addf %20, %25 : vector<64x64xf32>
    %c0_28 = arith.constant 0 : index
    %c1_29 = arith.constant 1 : index
    %c0_30 = arith.constant 0 : index
    %c0_31 = arith.constant 0 : index
    %27 = vector.load %arg9[%c0_28, %c1_29, %c0_30, %c0_31] : memref<1x10x17x64xf32, #tpu.memory_space<vmem>>, vector<1x8x17x64xf32>
    %28 = vector.extract_strided_slice %27 {offsets = [0, 0, 7, 0], sizes = [1, 8, 8, 64], strides = [1, 1, 1, 1]} : vector<1x8x17x64xf32> to vector<1x8x8x64xf32>
    %29 = vector.extract_strided_slice %27 {offsets = [0, 0, 8, 0], sizes = [1, 8, 8, 64], strides = [1, 1, 1, 1]} : vector<1x8x17x64xf32> to vector<1x8x8x64xf32>
    %30 = vector.extract_strided_slice %27 {offsets = [0, 0, 9, 0], sizes = [1, 8, 8, 64], strides = [1, 1, 1, 1]} : vector<1x8x17x64xf32> to vector<1x8x8x64xf32>
    %31 = vector.shape_cast %28 : vector<1x8x8x64xf32> to vector<64x64xf32>
    %32 = arith.truncf %31 : vector<64x64xf32> to vector<64x64xbf16>
    %c1_32 = arith.constant 1 : index
    %c0_33 = arith.constant 0 : index
    %c0_34 = arith.constant 0 : index
    %c0_35 = arith.constant 0 : index
    %33 = vector.load %arg2[%c1_32, %c0_33, %c0_34, %c0_35] : memref<3x3x64x64xbf16, #tpu.memory_space<vmem>>, vector<1x1x64x64xbf16>
    %34 = vector.shape_cast %33 : vector<1x1x64x64xbf16> to vector<64x64xbf16>
    %cst_36 = arith.constant dense<0.000000e+00> : vector<64x64xf32>
    %35 = tpu.matmul %32, %34, %cst_36 {dimension_numbers = #tpu.dot_dimension_numbers<[1], [0], [0], [1], [0, 0, 1, 1], [], []>} : vector<64x64xbf16>, vector<64x64xbf16>, vector<64x64xf32> -> vector<64x64xf32>
    %36 = arith.addf %26, %35 : vector<64x64xf32>
    %37 = vector.shape_cast %29 : vector<1x8x8x64xf32> to vector<64x64xf32>
    %38 = arith.truncf %37 : vector<64x64xf32> to vector<64x64xbf16>
    %c1_37 = arith.constant 1 : index
    %c1_38 = arith.constant 1 : index
    %c0_39 = arith.constant 0 : index
    %c0_40 = arith.constant 0 : index
    %39 = vector.load %arg2[%c1_37, %c1_38, %c0_39, %c0_40] : memref<3x3x64x64xbf16, #tpu.memory_space<vmem>>, vector<1x1x64x64xbf16>
    %40 = vector.shape_cast %39 : vector<1x1x64x64xbf16> to vector<64x64xbf16>
    %cst_41 = arith.constant dense<0.000000e+00> : vector<64x64xf32>
    %41 = tpu.matmul %38, %40, %cst_41 {dimension_numbers = #tpu.dot_dimension_numbers<[1], [0], [0], [1], [0, 0, 1, 1], [], []>} : vector<64x64xbf16>, vector<64x64xbf16>, vector<64x64xf32> -> vector<64x64xf32>
    %42 = arith.addf %36, %41 : vector<64x64xf32>
    %43 = vector.shape_cast %30 : vector<1x8x8x64xf32> to vector<64x64xf32>
    %44 = arith.truncf %43 : vector<64x64xf32> to vector<64x64xbf16>
    %c1_42 = arith.constant 1 : index
    %c2_43 = arith.constant 2 : index
    %c0_44 = arith.constant 0 : index
    %c0_45 = arith.constant 0 : index
    %45 = vector.load %arg2[%c1_42, %c2_43, %c0_44, %c0_45] : memref<3x3x64x64xbf16, #tpu.memory_space<vmem>>, vector<1x1x64x64xbf16>
    %46 = vector.shape_cast %45 : vector<1x1x64x64xbf16> to vector<64x64xbf16>
    %cst_46 = arith.constant dense<0.000000e+00> : vector<64x64xf32>
    %47 = tpu.matmul %44, %46, %cst_46 {dimension_numbers = #tpu.dot_dimension_numbers<[1], [0], [0], [1], [0, 0, 1, 1], [], []>} : vector<64x64xbf16>, vector<64x64xbf16>, vector<64x64xf32> -> vector<64x64xf32>
    %48 = arith.addf %42, %47 : vector<64x64xf32>
    %c0_47 = arith.constant 0 : index
    %c2_48 = arith.constant 2 : index
    %c0_49 = arith.constant 0 : index
    %c0_50 = arith.constant 0 : index
    %49 = vector.load %arg9[%c0_47, %c2_48, %c0_49, %c0_50] : memref<1x10x17x64xf32, #tpu.memory_space<vmem>>, vector<1x8x17x64xf32>
    %50 = vector.extract_strided_slice %49 {offsets = [0, 0, 7, 0], sizes = [1, 8, 8, 64], strides = [1, 1, 1, 1]} : vector<1x8x17x64xf32> to vector<1x8x8x64xf32>
    %51 = vector.extract_strided_slice %49 {offsets = [0, 0, 8, 0], sizes = [1, 8, 8, 64], strides = [1, 1, 1, 1]} : vector<1x8x17x64xf32> to vector<1x8x8x64xf32>
    %52 = vector.extract_strided_slice %49 {offsets = [0, 0, 9, 0], sizes = [1, 8, 8, 64], strides = [1, 1, 1, 1]} : vector<1x8x17x64xf32> to vector<1x8x8x64xf32>
    %53 = vector.shape_cast %50 : vector<1x8x8x64xf32> to vector<64x64xf32>
    %54 = arith.truncf %53 : vector<64x64xf32> to vector<64x64xbf16>
    %c2_51 = arith.constant 2 : index
    %c0_52 = arith.constant 0 : index
    %c0_53 = arith.constant 0 : index
    %c0_54 = arith.constant 0 : index
    %55 = vector.load %arg2[%c2_51, %c0_52, %c0_53, %c0_54] : memref<3x3x64x64xbf16, #tpu.memory_space<vmem>>, vector<1x1x64x64xbf16>
    %56 = vector.shape_cast %55 : vector<1x1x64x64xbf16> to vector<64x64xbf16>
    %cst_55 = arith.constant dense<0.000000e+00> : vector<64x64xf32>
    %57 = tpu.matmul %54, %56, %cst_55 {dimension_numbers = #tpu.dot_dimension_numbers<[1], [0], [0], [1], [0, 0, 1, 1], [], []>} : vector<64x64xbf16>, vector<64x64xbf16>, vector<64x64xf32> -> vector<64x64xf32>
    %58 = arith.addf %48, %57 : vector<64x64xf32>
    %59 = vector.shape_cast %51 : vector<1x8x8x64xf32> to vector<64x64xf32>
    %60 = arith.truncf %59 : vector<64x64xf32> to vector<64x64xbf16>
    %c2_56 = arith.constant 2 : index
    %c1_57 = arith.constant 1 : index
    %c0_58 = arith.constant 0 : index
    %c0_59 = arith.constant 0 : index
    %61 = vector.load %arg2[%c2_56, %c1_57, %c0_58, %c0_59] : memref<3x3x64x64xbf16, #tpu.memory_space<vmem>>, vector<1x1x64x64xbf16>
    %62 = vector.shape_cast %61 : vector<1x1x64x64xbf16> to vector<64x64xbf16>
    %cst_60 = arith.constant dense<0.000000e+00> : vector<64x64xf32>
    %63 = tpu.matmul %60, %62, %cst_60 {dimension_numbers = #tpu.dot_dimension_numbers<[1], [0], [0], [1], [0, 0, 1, 1], [], []>} : vector<64x64xbf16>, vector<64x64xbf16>, vector<64x64xf32> -> vector<64x64xf32>
    %64 = arith.addf %58, %63 : vector<64x64xf32>
    %65 = vector.shape_cast %52 : vector<1x8x8x64xf32> to vector<64x64xf32>
    %66 = arith.truncf %65 : vector<64x64xf32> to vector<64x64xbf16>
    %c2_61 = arith.constant 2 : index
    %c2_62 = arith.constant 2 : index
    %c0_63 = arith.constant 0 : index
    %c0_64 = arith.constant 0 : index
    %67 = vector.load %arg2[%c2_61, %c2_62, %c0_63, %c0_64] : memref<3x3x64x64xbf16, #tpu.memory_space<vmem>>, vector<1x1x64x64xbf16>
    %68 = vector.shape_cast %67 : vector<1x1x64x64xbf16> to vector<64x64xbf16>
    %cst_65 = arith.constant dense<0.000000e+00> : vector<64x64xf32>
    %69 = tpu.matmul %66, %68, %cst_65 {dimension_numbers = #tpu.dot_dimension_numbers<[1], [0], [0], [1], [0, 0, 1, 1], [], []>} : vector<64x64xbf16>, vector<64x64xbf16>, vector<64x64xf32> -> vector<64x64xf32>
    %70 = arith.addf %64, %69 : vector<64x64xf32>
    %c0_66 = arith.constant 0 : index
    %c0_67 = arith.constant 0 : index
    %71 = vector.load %arg3[%c0_66, %c0_67] : memref<1x64xf32, #tpu.memory_space<vmem>>, vector<1x64xf32>
    %72 = vector.broadcast %71 : vector<1x64xf32> to vector<64x64xf32>
    %73 = arith.mulf %70, %72 : vector<64x64xf32>
    %c0_68 = arith.constant 0 : index
    %c0_69 = arith.constant 0 : index
    %74 = vector.load %arg4[%c0_68, %c0_69] : memref<1x64xf32, #tpu.memory_space<vmem>>, vector<1x64xf32>
    %75 = vector.broadcast %74 : vector<1x64xf32> to vector<64x64xf32>
    %76 = arith.addf %73, %75 : vector<64x64xf32>
    %cst_70 = arith.constant 0.000000e+00 : f32
    %77 = vector.broadcast %cst_70 : f32 to vector<64x64xf32>
    %78 = arith.maximumf %76, %77 : vector<64x64xf32>
    %79 = vector.shape_cast %78 : vector<64x64xf32> to vector<1x8x8x64xf32>
    %cst_71 = arith.constant 0.000000e+00 : f32
    %80 = vector.broadcast %cst_71 : f32 to vector<1x10x17x64xf32>
    %c0_72 = arith.constant 0 : index
    %c0_73 = arith.constant 0 : index
    %c0_74 = arith.constant 0 : index
    %c0_75 = arith.constant 0 : index
    %81 = vector.load %arg10[%c0_72, %c0_73, %c0_74, %c0_75] : memref<1x10x17x64xf32, #tpu.memory_space<vmem>>, vector<1x10x17x64xf32>
    tpu.vector_store %arg10[%c0_72, %c0_73, %c0_74, %c0_75], %80 {strides = array<i32>} : memref<1x10x17x64xf32, #tpu.memory_space<vmem>>, vector<1x10x17x64xf32>,
    %c0_76 = arith.constant 0 : index
    %c1_77 = arith.constant 1 : index
    %c8_78 = arith.constant 8 : index
    %c0_79 = arith.constant 0 : index
    %82 = vector.load %arg10[%c0_76, %c1_77, %c8_78, %c0_79] : memref<1x10x17x64xf32, #tpu.memory_space<vmem>>, vector<1x8x8x64xf32>
    tpu.vector_store %arg10[%c0_76, %c1_77, %c8_78, %c0_79], %79 {strides = array<i32>} : memref<1x10x17x64xf32, #tpu.memory_space<vmem>>, vector<1x8x8x64xf32>,
    %cst_80 = arith.constant 0.000000e+00 : f32
    %83 = vector.broadcast %cst_80 : f32 to vector<64x64xf32>
    %c0_81 = arith.constant 0 : index
    %c0_82 = arith.constant 0 : index
    %c0_83 = arith.constant 0 : index
    %c0_84 = arith.constant 0 : index
    %84 = vector.load %arg10[%c0_81, %c0_82, %c0_83, %c0_84] : memref<1x10x17x64xf32, #tpu.memory_space<vmem>>, vector<1x8x17x64xf32>
    %85 = vector.extract_strided_slice %84 {offsets = [0, 0, 7, 0], sizes = [1, 8, 8, 64], strides = [1, 1, 1, 1]} : vector<1x8x17x64xf32> to vector<1x8x8x64xf32>
    %86 = vector.extract_strided_slice %84 {offsets = [0, 0, 8, 0], sizes = [1, 8, 8, 64], strides = [1, 1, 1, 1]} : vector<1x8x17x64xf32> to vector<1x8x8x64xf32>
    %87 = vector.extract_strided_slice %84 {offsets = [0, 0, 9, 0], sizes = [1, 8, 8, 64], strides = [1, 1, 1, 1]} : vector<1x8x17x64xf32> to vector<1x8x8x64xf32>
    %88 = vector.shape_cast %85 : vector<1x8x8x64xf32> to vector<64x64xf32>
    %89 = arith.truncf %88 : vector<64x64xf32> to vector<64x64xbf16>
    %c0_85 = arith.constant 0 : index
    %c0_86 = arith.constant 0 : index
    %c0_87 = arith.constant 0 : index
    %c0_88 = arith.constant 0 : index
    %90 = vector.load %arg5[%c0_85, %c0_86, %c0_87, %c0_88] : memref<3x3x64x64xbf16, #tpu.memory_space<vmem>>, vector<1x1x64x64xbf16>
    %91 = vector.shape_cast %90 : vector<1x1x64x64xbf16> to vector<64x64xbf16>
    %cst_89 = arith.constant dense<0.000000e+00> : vector<64x64xf32>
    %92 = tpu.matmul %89, %91, %cst_89 {dimension_numbers = #tpu.dot_dimension_numbers<[1], [0], [0], [1], [0, 0, 1, 1], [], []>} : vector<64x64xbf16>, vector<64x64xbf16>, vector<64x64xf32> -> vector<64x64xf32>
    %93 = arith.addf %83, %92 : vector<64x64xf32>
    %94 = vector.shape_cast %86 : vector<1x8x8x64xf32> to vector<64x64xf32>
    %95 = arith.truncf %94 : vector<64x64xf32> to vector<64x64xbf16>
    %c0_90 = arith.constant 0 : index
    %c1_91 = arith.constant 1 : index
    %c0_92 = arith.constant 0 : index
    %c0_93 = arith.constant 0 : index
    %96 = vector.load %arg5[%c0_90, %c1_91, %c0_92, %c0_93] : memref<3x3x64x64xbf16, #tpu.memory_space<vmem>>, vector<1x1x64x64xbf16>
    %97 = vector.shape_cast %96 : vector<1x1x64x64xbf16> to vector<64x64xbf16>
    %cst_94 = arith.constant dense<0.000000e+00> : vector<64x64xf32>
    %98 = tpu.matmul %95, %97, %cst_94 {dimension_numbers = #tpu.dot_dimension_numbers<[1], [0], [0], [1], [0, 0, 1, 1], [], []>} : vector<64x64xbf16>, vector<64x64xbf16>, vector<64x64xf32> -> vector<64x64xf32>
    %99 = arith.addf %93, %98 : vector<64x64xf32>
    %100 = vector.shape_cast %87 : vector<1x8x8x64xf32> to vector<64x64xf32>
    %101 = arith.truncf %100 : vector<64x64xf32> to vector<64x64xbf16>
    %c0_95 = arith.constant 0 : index
    %c2_96 = arith.constant 2 : index
    %c0_97 = arith.constant 0 : index
    %c0_98 = arith.constant 0 : index
    %102 = vector.load %arg5[%c0_95, %c2_96, %c0_97, %c0_98] : memref<3x3x64x64xbf16, #tpu.memory_space<vmem>>, vector<1x1x64x64xbf16>
    %103 = vector.shape_cast %102 : vector<1x1x64x64xbf16> to vector<64x64xbf16>
    %cst_99 = arith.constant dense<0.000000e+00> : vector<64x64xf32>
    %104 = tpu.matmul %101, %103, %cst_99 {dimension_numbers = #tpu.dot_dimension_numbers<[1], [0], [0], [1], [0, 0, 1, 1], [], []>} : vector<64x64xbf16>, vector<64x64xbf16>, vector<64x64xf32> -> vector<64x64xf32>
    %105 = arith.addf %99, %104 : vector<64x64xf32>
    %c0_100 = arith.constant 0 : index
    %c1_101 = arith.constant 1 : index
    %c0_102 = arith.constant 0 : index
    %c0_103 = arith.constant 0 : index
    %106 = vector.load %arg10[%c0_100, %c1_101, %c0_102, %c0_103] : memref<1x10x17x64xf32, #tpu.memory_space<vmem>>, vector<1x8x17x64xf32>
    %107 = vector.extract_strided_slice %106 {offsets = [0, 0, 7, 0], sizes = [1, 8, 8, 64], strides = [1, 1, 1, 1]} : vector<1x8x17x64xf32> to vector<1x8x8x64xf32>
    %108 = vector.extract_strided_slice %106 {offsets = [0, 0, 8, 0], sizes = [1, 8, 8, 64], strides = [1, 1, 1, 1]} : vector<1x8x17x64xf32> to vector<1x8x8x64xf32>
    %109 = vector.extract_strided_slice %106 {offsets = [0, 0, 9, 0], sizes = [1, 8, 8, 64], strides = [1, 1, 1, 1]} : vector<1x8x17x64xf32> to vector<1x8x8x64xf32>
    %110 = vector.shape_cast %107 : vector<1x8x8x64xf32> to vector<64x64xf32>
    %111 = arith.truncf %110 : vector<64x64xf32> to vector<64x64xbf16>
    %c1_104 = arith.constant 1 : index
    %c0_105 = arith.constant 0 : index
    %c0_106 = arith.constant 0 : index
    %c0_107 = arith.constant 0 : index
    %112 = vector.load %arg5[%c1_104, %c0_105, %c0_106, %c0_107] : memref<3x3x64x64xbf16, #tpu.memory_space<vmem>>, vector<1x1x64x64xbf16>
    %113 = vector.shape_cast %112 : vector<1x1x64x64xbf16> to vector<64x64xbf16>
    %cst_108 = arith.constant dense<0.000000e+00> : vector<64x64xf32>
    %114 = tpu.matmul %111, %113, %cst_108 {dimension_numbers = #tpu.dot_dimension_numbers<[1], [0], [0], [1], [0, 0, 1, 1], [], []>} : vector<64x64xbf16>, vector<64x64xbf16>, vector<64x64xf32> -> vector<64x64xf32>
    %115 = arith.addf %105, %114 : vector<64x64xf32>
    %116 = vector.shape_cast %108 : vector<1x8x8x64xf32> to vector<64x64xf32>
    %117 = arith.truncf %116 : vector<64x64xf32> to vector<64x64xbf16>
    %c1_109 = arith.constant 1 : index
    %c1_110 = arith.constant 1 : index
    %c0_111 = arith.constant 0 : index
    %c0_112 = arith.constant 0 : index
    %118 = vector.load %arg5[%c1_109, %c1_110, %c0_111, %c0_112] : memref<3x3x64x64xbf16, #tpu.memory_space<vmem>>, vector<1x1x64x64xbf16>
    %119 = vector.shape_cast %118 : vector<1x1x64x64xbf16> to vector<64x64xbf16>
    %cst_113 = arith.constant dense<0.000000e+00> : vector<64x64xf32>
    %120 = tpu.matmul %117, %119, %cst_113 {dimension_numbers = #tpu.dot_dimension_numbers<[1], [0], [0], [1], [0, 0, 1, 1], [], []>} : vector<64x64xbf16>, vector<64x64xbf16>, vector<64x64xf32> -> vector<64x64xf32>
    %121 = arith.addf %115, %120 : vector<64x64xf32>
    %122 = vector.shape_cast %109 : vector<1x8x8x64xf32> to vector<64x64xf32>
    %123 = arith.truncf %122 : vector<64x64xf32> to vector<64x64xbf16>
    %c1_114 = arith.constant 1 : index
    %c2_115 = arith.constant 2 : index
    %c0_116 = arith.constant 0 : index
    %c0_117 = arith.constant 0 : index
    %124 = vector.load %arg5[%c1_114, %c2_115, %c0_116, %c0_117] : memref<3x3x64x64xbf16, #tpu.memory_space<vmem>>, vector<1x1x64x64xbf16>
    %125 = vector.shape_cast %124 : vector<1x1x64x64xbf16> to vector<64x64xbf16>
    %cst_118 = arith.constant dense<0.000000e+00> : vector<64x64xf32>
    %126 = tpu.matmul %123, %125, %cst_118 {dimension_numbers = #tpu.dot_dimension_numbers<[1], [0], [0], [1], [0, 0, 1, 1], [], []>} : vector<64x64xbf16>, vector<64x64xbf16>, vector<64x64xf32> -> vector<64x64xf32>
    %127 = arith.addf %121, %126 : vector<64x64xf32>
    %c0_119 = arith.constant 0 : index
    %c2_120 = arith.constant 2 : index
    %c0_121 = arith.constant 0 : index
    %c0_122 = arith.constant 0 : index
    %128 = vector.load %arg10[%c0_119, %c2_120, %c0_121, %c0_122] : memref<1x10x17x64xf32, #tpu.memory_space<vmem>>, vector<1x8x17x64xf32>
    %129 = vector.extract_strided_slice %128 {offsets = [0, 0, 7, 0], sizes = [1, 8, 8, 64], strides = [1, 1, 1, 1]} : vector<1x8x17x64xf32> to vector<1x8x8x64xf32>
    %130 = vector.extract_strided_slice %128 {offsets = [0, 0, 8, 0], sizes = [1, 8, 8, 64], strides = [1, 1, 1, 1]} : vector<1x8x17x64xf32> to vector<1x8x8x64xf32>
    %131 = vector.extract_strided_slice %128 {offsets = [0, 0, 9, 0], sizes = [1, 8, 8, 64], strides = [1, 1, 1, 1]} : vector<1x8x17x64xf32> to vector<1x8x8x64xf32>
    %132 = vector.shape_cast %129 : vector<1x8x8x64xf32> to vector<64x64xf32>
    %133 = arith.truncf %132 : vector<64x64xf32> to vector<64x64xbf16>
    %c2_123 = arith.constant 2 : index
    %c0_124 = arith.constant 0 : index
    %c0_125 = arith.constant 0 : index
    %c0_126 = arith.constant 0 : index
    %134 = vector.load %arg5[%c2_123, %c0_124, %c0_125, %c0_126] : memref<3x3x64x64xbf16, #tpu.memory_space<vmem>>, vector<1x1x64x64xbf16>
    %135 = vector.shape_cast %134 : vector<1x1x64x64xbf16> to vector<64x64xbf16>
    %cst_127 = arith.constant dense<0.000000e+00> : vector<64x64xf32>
    %136 = tpu.matmul %133, %135, %cst_127 {dimension_numbers = #tpu.dot_dimension_numbers<[1], [0], [0], [1], [0, 0, 1, 1], [], []>} : vector<64x64xbf16>, vector<64x64xbf16>, vector<64x64xf32> -> vector<64x64xf32>
    %137 = arith.addf %127, %136 : vector<64x64xf32>
    %138 = vector.shape_cast %130 : vector<1x8x8x64xf32> to vector<64x64xf32>
    %139 = arith.truncf %138 : vector<64x64xf32> to vector<64x64xbf16>
    %c2_128 = arith.constant 2 : index
    %c1_129 = arith.constant 1 : index
    %c0_130 = arith.constant 0 : index
    %c0_131 = arith.constant 0 : index
    %140 = vector.load %arg5[%c2_128, %c1_129, %c0_130, %c0_131] : memref<3x3x64x64xbf16, #tpu.memory_space<vmem>>, vector<1x1x64x64xbf16>
    %141 = vector.shape_cast %140 : vector<1x1x64x64xbf16> to vector<64x64xbf16>
    %cst_132 = arith.constant dense<0.000000e+00> : vector<64x64xf32>
    %142 = tpu.matmul %139, %141, %cst_132 {dimension_numbers = #tpu.dot_dimension_numbers<[1], [0], [0], [1], [0, 0, 1, 1], [], []>} : vector<64x64xbf16>, vector<64x64xbf16>, vector<64x64xf32> -> vector<64x64xf32>
    %143 = arith.addf %137, %142 : vector<64x64xf32>
    %144 = vector.shape_cast %131 : vector<1x8x8x64xf32> to vector<64x64xf32>
    %145 = arith.truncf %144 : vector<64x64xf32> to vector<64x64xbf16>
    %c2_133 = arith.constant 2 : index
    %c2_134 = arith.constant 2 : index
    %c0_135 = arith.constant 0 : index
    %c0_136 = arith.constant 0 : index
    %146 = vector.load %arg5[%c2_133, %c2_134, %c0_135, %c0_136] : memref<3x3x64x64xbf16, #tpu.memory_space<vmem>>, vector<1x1x64x64xbf16>
    %147 = vector.shape_cast %146 : vector<1x1x64x64xbf16> to vector<64x64xbf16>
    %cst_137 = arith.constant dense<0.000000e+00> : vector<64x64xf32>
    %148 = tpu.matmul %145, %147, %cst_137 {dimension_numbers = #tpu.dot_dimension_numbers<[1], [0], [0], [1], [0, 0, 1, 1], [], []>} : vector<64x64xbf16>, vector<64x64xbf16>, vector<64x64xf32> -> vector<64x64xf32>
    %149 = arith.addf %143, %148 : vector<64x64xf32>
    %c0_138 = arith.constant 0 : index
    %c0_139 = arith.constant 0 : index
    %150 = vector.load %arg6[%c0_138, %c0_139] : memref<1x64xf32, #tpu.memory_space<vmem>>, vector<1x64xf32>
    %151 = vector.broadcast %150 : vector<1x64xf32> to vector<64x64xf32>
    %152 = arith.mulf %149, %151 : vector<64x64xf32>
    %c0_140 = arith.constant 0 : index
    %c0_141 = arith.constant 0 : index
    %153 = vector.load %arg7[%c0_140, %c0_141] : memref<1x64xf32, #tpu.memory_space<vmem>>, vector<1x64xf32>
    %154 = vector.broadcast %153 : vector<1x64xf32> to vector<64x64xf32>
    %155 = arith.addf %152, %154 : vector<64x64xf32>
    %c0_142 = arith.constant 0 : index
    %c0_143 = arith.constant 0 : index
    %c0_144 = arith.constant 0 : index
    %c0_145 = arith.constant 0 : index
    %156 = vector.load %arg1[%c0_142, %c0_143, %c0_144, %c0_145] : memref<1x8x8x64xf32, #tpu.memory_space<vmem>>, vector<1x8x8x64xf32>
    %157 = vector.shape_cast %156 : vector<1x8x8x64xf32> to vector<64x64xf32>
    %158 = arith.addf %155, %157 : vector<64x64xf32>
    %cst_146 = arith.constant 0.000000e+00 : f32
    %159 = vector.broadcast %cst_146 : f32 to vector<64x64xf32>
    %160 = arith.maximumf %158, %159 : vector<64x64xf32>
    %161 = vector.shape_cast %160 : vector<64x64xf32> to vector<1x8x8x64xf32>
    %c0_147 = arith.constant 0 : index
    %c0_148 = arith.constant 0 : index
    %c0_149 = arith.constant 0 : index
    %c0_150 = arith.constant 0 : index
    %162 = vector.load %arg8[%c0_147, %c0_148, %c0_149, %c0_150] : memref<1x8x8x64xf32, #tpu.memory_space<vmem>>, vector<1x8x8x64xf32>
    tpu.vector_store %arg8[%c0_147, %c0_148, %c0_149, %c0_150], %161 {strides = array<i32>} : memref<1x8x8x64xf32, #tpu.memory_space<vmem>>, vector<1x8x8x64xf32>,
    return
  }
  func.func @transform_0(%arg0: i32) -> (i32, i32, i32, i32) {
    %c0_i32 = arith.constant 0 : i32
    %c0_i32_0 = arith.constant 0 : i32
    %c0_i32_1 = arith.constant 0 : i32
    %c0_i32_2 = arith.constant 0 : i32
    return %arg0, %c0_i32, %c0_i32_0, %c0_i32_1 : i32, i32, i32, i32
  }
  func.func @transform_1(%arg0: i32) -> (i32, i32, i32, i32) {
    %c0_i32 = arith.constant 0 : i32
    %c0_i32_0 = arith.constant 0 : i32
    %c0_i32_1 = arith.constant 0 : i32
    %c0_i32_2 = arith.constant 0 : i32
    %c0_i32_3 = arith.constant 0 : i32
    return %c0_i32, %c0_i32_0, %c0_i32_1, %c0_i32_2 : i32, i32, i32, i32
  }
  func.func @transform_2(%arg0: i32) -> (i32, i32) {
    %c0_i32 = arith.constant 0 : i32
    %c0_i32_0 = arith.constant 0 : i32
    %c0_i32_1 = arith.constant 0 : i32
    return %c0_i32, %c0_i32_0 : i32, i32
  }
  func.func @transform_3(%arg0: i32) -> (i32, i32) {
    %c0_i32 = arith.constant 0 : i32
    %c0_i32_0 = arith.constant 0 : i32
    %c0_i32_1 = arith.constant 0 : i32
    return %c0_i32, %c0_i32_0 : i32, i32
  }
  func.func @transform_4(%arg0: i32) -> (i32, i32, i32, i32) {
    %c0_i32 = arith.constant 0 : i32
    %c0_i32_0 = arith.constant 0 : i32
    %c0_i32_1 = arith.constant 0 : i32
    %c0_i32_2 = arith.constant 0 : i32
    %c0_i32_3 = arith.constant 0 : i32
    return %c0_i32, %c0_i32_0, %c0_i32_1, %c0_i32_2 : i32, i32, i32, i32
  }
  func.func @transform_5(%arg0: i32) -> (i32, i32) {
    %c0_i32 = arith.constant 0 : i32
    %c0_i32_0 = arith.constant 0 : i32
    %c0_i32_1 = arith.constant 0 : i32
    return %c0_i32, %c0_i32_0 : i32, i32
  }
  func.func @transform_6(%arg0: i32) -> (i32, i32) {
    %c0_i32 = arith.constant 0 : i32
    %c0_i32_0 = arith.constant 0 : i32
    %c0_i32_1 = arith.constant 0 : i32
    return %c0_i32, %c0_i32_0 : i32, i32
  }
  func.func @transform_7(%arg0: i32) -> (i32, i32, i32, i32) {
    %c0_i32 = arith.constant 0 : i32
    %c0_i32_0 = arith.constant 0 : i32
    %c0_i32_1 = arith.constant 0 : i32
    %c0_i32_2 = arith.constant 0 : i32
    return %arg0, %c0_i32, %c0_i32_0, %c0_i32_1 : i32, i32, i32, i32
  }
}

module attributes {stable_mosaic.version = 11 : i64} {
  func.func @_down_block_kernel(%arg0: i32, %arg1: memref<1x8x4x64xf32, #tpu.memory_space<vmem>>, %arg2: memref<1x8x4x64xf32, #tpu.memory_space<vmem>>, %arg3: memref<3x3x64x128xbf16, #tpu.memory_space<vmem>>, %arg4: memref<1x128xf32, #tpu.memory_space<vmem>>, %arg5: memref<1x128xf32, #tpu.memory_space<vmem>>, %arg6: memref<64x128xbf16, #tpu.memory_space<vmem>>, %arg7: memref<1x128xf32, #tpu.memory_space<vmem>>, %arg8: memref<1x128xf32, #tpu.memory_space<vmem>>, %arg9: memref<3x3x128x128xbf16, #tpu.memory_space<vmem>>, %arg10: memref<1x128xf32, #tpu.memory_space<vmem>>, %arg11: memref<1x128xf32, #tpu.memory_space<vmem>>, %arg12: memref<1x4x4x128xf32, #tpu.memory_space<vmem>>, %arg13: memref<1x10x4x64xf32, #tpu.memory_space<vmem>>, %arg14: memref<1x10x12x64xf32, #tpu.memory_space<vmem>>, %arg15: memref<1x6x13x128xf32, #tpu.memory_space<vmem>>) attributes {dimension_semantics = [#tpu.dimension_semantics<parallel>], iteration_bounds = array<i64: 2>, scalar_prefetch = 0 : i64, scratch_operands = 3 : i64, tpu.core_type = #tpu.core_type<tc>, window_params = [{transform_indices = @transform_0, window_bounds = array<i64: 1, 8, 4, 64>}, {transform_indices = @transform_1, window_bounds = array<i64: 1, 8, 4, 64>}, {pipeline_mode = #tpu.pipeline_mode<synchronous>, transform_indices = @transform_2, window_bounds = array<i64: 3, 3, 64, 128>}, {pipeline_mode = #tpu.pipeline_mode<synchronous>, transform_indices = @transform_3, window_bounds = array<i64: 1, 128>}, {pipeline_mode = #tpu.pipeline_mode<synchronous>, transform_indices = @transform_4, window_bounds = array<i64: 1, 128>}, {pipeline_mode = #tpu.pipeline_mode<synchronous>, transform_indices = @transform_5, window_bounds = array<i64: 64, 128>}, {pipeline_mode = #tpu.pipeline_mode<synchronous>, transform_indices = @transform_6, window_bounds = array<i64: 1, 128>}, {pipeline_mode = #tpu.pipeline_mode<synchronous>, transform_indices = @transform_7, window_bounds = array<i64: 1, 128>}, {pipeline_mode = #tpu.pipeline_mode<synchronous>, transform_indices = @transform_8, window_bounds = array<i64: 3, 3, 128, 128>}, {pipeline_mode = #tpu.pipeline_mode<synchronous>, transform_indices = @transform_9, window_bounds = array<i64: 1, 128>}, {pipeline_mode = #tpu.pipeline_mode<synchronous>, transform_indices = @transform_10, window_bounds = array<i64: 1, 128>}, {transform_indices = @transform_11, window_bounds = array<i64: 1, 4, 4, 128>}]} {
    %cst = arith.constant 0.000000e+00 : f32
    %0 = vector.broadcast %cst : f32 to vector<1x10x4x64xf32>
    %c0 = arith.constant 0 : index
    %c0_0 = arith.constant 0 : index
    %c0_1 = arith.constant 0 : index
    %c0_2 = arith.constant 0 : index
    %1 = vector.load %arg13[%c0, %c0_0, %c0_1, %c0_2] : memref<1x10x4x64xf32, #tpu.memory_space<vmem>>, vector<1x10x4x64xf32>
    tpu.vector_store %arg13[%c0, %c0_0, %c0_1, %c0_2], %0 {strides = array<i32>} : memref<1x10x4x64xf32, #tpu.memory_space<vmem>>, vector<1x10x4x64xf32>,
    %c0_3 = arith.constant 0 : index
    %c0_4 = arith.constant 0 : index
    %c0_5 = arith.constant 0 : index
    %c0_6 = arith.constant 0 : index
    %2 = vector.load %arg1[%c0_3, %c0_4, %c0_5, %c0_6] : memref<1x8x4x64xf32, #tpu.memory_space<vmem>>, vector<1x8x4x64xf32>
    %c0_7 = arith.constant 0 : index
    %c1 = arith.constant 1 : index
    %c0_8 = arith.constant 0 : index
    %c0_9 = arith.constant 0 : index
    %3 = vector.load %arg13[%c0_7, %c1, %c0_8, %c0_9] : memref<1x10x4x64xf32, #tpu.memory_space<vmem>>, vector<1x8x4x64xf32>
    tpu.vector_store %arg13[%c0_7, %c1, %c0_8, %c0_9], %2 {strides = array<i32>} : memref<1x10x4x64xf32, #tpu.memory_space<vmem>>, vector<1x8x4x64xf32>,
    %cst_10 = arith.constant 0.000000e+00 : f32
    %4 = vector.broadcast %cst_10 : f32 to vector<1x10x12x64xf32>
    %c0_11 = arith.constant 0 : index
    %c0_12 = arith.constant 0 : index
    %c0_13 = arith.constant 0 : index
    %c0_14 = arith.constant 0 : index
    %5 = vector.load %arg14[%c0_11, %c0_12, %c0_13, %c0_14] : memref<1x10x12x64xf32, #tpu.memory_space<vmem>>, vector<1x10x12x64xf32>
    tpu.vector_store %arg14[%c0_11, %c0_12, %c0_13, %c0_14], %4 {strides = array<i32>} : memref<1x10x12x64xf32, #tpu.memory_space<vmem>>, vector<1x10x12x64xf32>,
    %c0_15 = arith.constant 0 : index
    %c0_16 = arith.constant 0 : index
    %c0_17 = arith.constant 0 : index
    %c0_18 = arith.constant 0 : index
    %6 = vector.load %arg2[%c0_15, %c0_16, %c0_17, %c0_18] : memref<1x8x4x64xf32, #tpu.memory_space<vmem>>, vector<1x8x4x64xf32>
    %c0_19 = arith.constant 0 : index
    %c1_20 = arith.constant 1 : index
    %c8 = arith.constant 8 : index
    %c0_21 = arith.constant 0 : index
    %7 = vector.load %arg14[%c0_19, %c1_20, %c8, %c0_21] : memref<1x10x12x64xf32, #tpu.memory_space<vmem>>, vector<1x8x4x64xf32>
    tpu.vector_store %arg14[%c0_19, %c1_20, %c8, %c0_21], %6 {strides = array<i32>} : memref<1x10x12x64xf32, #tpu.memory_space<vmem>>, vector<1x8x4x64xf32>,
    %cst_22 = arith.constant 0.000000e+00 : f32
    %8 = vector.broadcast %cst_22 : f32 to vector<16x128xf32>
    %c0_23 = arith.constant 0 : index
    %c0_24 = arith.constant 0 : index
    %c0_25 = arith.constant 0 : index
    %c0_26 = arith.constant 0 : index
    %9 = vector.load %arg13[%c0_23, %c0_24, %c0_25, %c0_26] : memref<1x10x4x64xf32, #tpu.memory_space<vmem>>, vector<1x1x4x64xf32>
    %c0_27 = arith.constant 0 : index
    %c2 = arith.constant 2 : index
    %c0_28 = arith.constant 0 : index
    %c0_29 = arith.constant 0 : index
    %10 = vector.load %arg13[%c0_27, %c2, %c0_28, %c0_29] : memref<1x10x4x64xf32, #tpu.memory_space<vmem>>, vector<1x1x4x64xf32>
    %c0_30 = arith.constant 0 : index
    %c4 = arith.constant 4 : index
    %c0_31 = arith.constant 0 : index
    %c0_32 = arith.constant 0 : index
    %11 = vector.load %arg13[%c0_30, %c4, %c0_31, %c0_32] : memref<1x10x4x64xf32, #tpu.memory_space<vmem>>, vector<1x1x4x64xf32>
    %c0_33 = arith.constant 0 : index
    %c6 = arith.constant 6 : index
    %c0_34 = arith.constant 0 : index
    %c0_35 = arith.constant 0 : index
    %12 = vector.load %arg13[%c0_33, %c6, %c0_34, %c0_35] : memref<1x10x4x64xf32, #tpu.memory_space<vmem>>, vector<1x1x4x64xf32>
    %13 = tpu.concatenate %9, %10, %11, %12 in 1 : vector<1x1x4x64xf32>, vector<1x1x4x64xf32>, vector<1x1x4x64xf32>, vector<1x1x4x64xf32> -> vector<1x4x4x64xf32>
    %c0_36 = arith.constant 0 : index
    %c0_37 = arith.constant 0 : index
    %c0_38 = arith.constant 0 : index
    %c0_39 = arith.constant 0 : index
    %14 = vector.load %arg14[%c0_36, %c0_37, %c0_38, %c0_39] : memref<1x10x12x64xf32, #tpu.memory_space<vmem>>, vector<1x1x12x64xf32>
    %c0_40 = arith.constant 0 : index
    %c2_41 = arith.constant 2 : index
    %c0_42 = arith.constant 0 : index
    %c0_43 = arith.constant 0 : index
    %15 = vector.load %arg14[%c0_40, %c2_41, %c0_42, %c0_43] : memref<1x10x12x64xf32, #tpu.memory_space<vmem>>, vector<1x1x12x64xf32>
    %c0_44 = arith.constant 0 : index
    %c4_45 = arith.constant 4 : index
    %c0_46 = arith.constant 0 : index
    %c0_47 = arith.constant 0 : index
    %16 = vector.load %arg14[%c0_44, %c4_45, %c0_46, %c0_47] : memref<1x10x12x64xf32, #tpu.memory_space<vmem>>, vector<1x1x12x64xf32>
    %c0_48 = arith.constant 0 : index
    %c6_49 = arith.constant 6 : index
    %c0_50 = arith.constant 0 : index
    %c0_51 = arith.constant 0 : index
    %17 = vector.load %arg14[%c0_48, %c6_49, %c0_50, %c0_51] : memref<1x10x12x64xf32, #tpu.memory_space<vmem>>, vector<1x1x12x64xf32>
    %18 = tpu.concatenate %14, %15, %16, %17 in 1 : vector<1x1x12x64xf32>, vector<1x1x12x64xf32>, vector<1x1x12x64xf32>, vector<1x1x12x64xf32> -> vector<1x4x12x64xf32>
    %19 = vector.extract_strided_slice %18 {offsets = [0, 0, 7, 0], sizes = [1, 4, 4, 64], strides = [1, 1, 1, 1]} : vector<1x4x12x64xf32> to vector<1x4x4x64xf32>
    %20 = vector.extract_strided_slice %18 {offsets = [0, 0, 8, 0], sizes = [1, 4, 4, 64], strides = [1, 1, 1, 1]} : vector<1x4x12x64xf32> to vector<1x4x4x64xf32>
    %21 = vector.shape_cast %19 : vector<1x4x4x64xf32> to vector<16x64xf32>
    %22 = arith.truncf %21 : vector<16x64xf32> to vector<16x64xbf16>
    %c0_52 = arith.constant 0 : index
    %c0_53 = arith.constant 0 : index
    %c0_54 = arith.constant 0 : index
    %c0_55 = arith.constant 0 : index
    %23 = vector.load %arg3[%c0_52, %c0_53, %c0_54, %c0_55] : memref<3x3x64x128xbf16, #tpu.memory_space<vmem>>, vector<1x1x64x128xbf16>
    %24 = vector.shape_cast %23 : vector<1x1x64x128xbf16> to vector<64x128xbf16>
    %cst_56 = arith.constant dense<0.000000e+00> : vector<16x128xf32>
    %25 = tpu.matmul %22, %24, %cst_56 {dimension_numbers = #tpu.dot_dimension_numbers<[1], [0], [0], [1], [0, 0, 1, 1], [], []>} : vector<16x64xbf16>, vector<64x128xbf16>, vector<16x128xf32> -> vector<16x128xf32>
    %26 = arith.addf %8, %25 : vector<16x128xf32>
    %27 = vector.shape_cast %13 : vector<1x4x4x64xf32> to vector<16x64xf32>
    %28 = arith.truncf %27 : vector<16x64xf32> to vector<16x64xbf16>
    %c0_57 = arith.constant 0 : index
    %c1_58 = arith.constant 1 : index
    %c0_59 = arith.constant 0 : index
    %c0_60 = arith.constant 0 : index
    %29 = vector.load %arg3[%c0_57, %c1_58, %c0_59, %c0_60] : memref<3x3x64x128xbf16, #tpu.memory_space<vmem>>, vector<1x1x64x128xbf16>
    %30 = vector.shape_cast %29 : vector<1x1x64x128xbf16> to vector<64x128xbf16>
    %cst_61 = arith.constant dense<0.000000e+00> : vector<16x128xf32>
    %31 = tpu.matmul %28, %30, %cst_61 {dimension_numbers = #tpu.dot_dimension_numbers<[1], [0], [0], [1], [0, 0, 1, 1], [], []>} : vector<16x64xbf16>, vector<64x128xbf16>, vector<16x128xf32> -> vector<16x128xf32>
    %32 = arith.addf %26, %31 : vector<16x128xf32>
    %33 = vector.shape_cast %20 : vector<1x4x4x64xf32> to vector<16x64xf32>
    %34 = arith.truncf %33 : vector<16x64xf32> to vector<16x64xbf16>
    %c0_62 = arith.constant 0 : index
    %c2_63 = arith.constant 2 : index
    %c0_64 = arith.constant 0 : index
    %c0_65 = arith.constant 0 : index
    %35 = vector.load %arg3[%c0_62, %c2_63, %c0_64, %c0_65] : memref<3x3x64x128xbf16, #tpu.memory_space<vmem>>, vector<1x1x64x128xbf16>
    %36 = vector.shape_cast %35 : vector<1x1x64x128xbf16> to vector<64x128xbf16>
    %cst_66 = arith.constant dense<0.000000e+00> : vector<16x128xf32>
    %37 = tpu.matmul %34, %36, %cst_66 {dimension_numbers = #tpu.dot_dimension_numbers<[1], [0], [0], [1], [0, 0, 1, 1], [], []>} : vector<16x64xbf16>, vector<64x128xbf16>, vector<16x128xf32> -> vector<16x128xf32>
    %38 = arith.addf %32, %37 : vector<16x128xf32>
    %c0_67 = arith.constant 0 : index
    %c1_68 = arith.constant 1 : index
    %c0_69 = arith.constant 0 : index
    %c0_70 = arith.constant 0 : index
    %39 = vector.load %arg13[%c0_67, %c1_68, %c0_69, %c0_70] : memref<1x10x4x64xf32, #tpu.memory_space<vmem>>, vector<1x1x4x64xf32>
    %c0_71 = arith.constant 0 : index
    %c3 = arith.constant 3 : index
    %c0_72 = arith.constant 0 : index
    %c0_73 = arith.constant 0 : index
    %40 = vector.load %arg13[%c0_71, %c3, %c0_72, %c0_73] : memref<1x10x4x64xf32, #tpu.memory_space<vmem>>, vector<1x1x4x64xf32>
    %c0_74 = arith.constant 0 : index
    %c5 = arith.constant 5 : index
    %c0_75 = arith.constant 0 : index
    %c0_76 = arith.constant 0 : index
    %41 = vector.load %arg13[%c0_74, %c5, %c0_75, %c0_76] : memref<1x10x4x64xf32, #tpu.memory_space<vmem>>, vector<1x1x4x64xf32>
    %c0_77 = arith.constant 0 : index
    %c7 = arith.constant 7 : index
    %c0_78 = arith.constant 0 : index
    %c0_79 = arith.constant 0 : index
    %42 = vector.load %arg13[%c0_77, %c7, %c0_78, %c0_79] : memref<1x10x4x64xf32, #tpu.memory_space<vmem>>, vector<1x1x4x64xf32>
    %43 = tpu.concatenate %39, %40, %41, %42 in 1 : vector<1x1x4x64xf32>, vector<1x1x4x64xf32>, vector<1x1x4x64xf32>, vector<1x1x4x64xf32> -> vector<1x4x4x64xf32>
    %c0_80 = arith.constant 0 : index
    %c1_81 = arith.constant 1 : index
    %c0_82 = arith.constant 0 : index
    %c0_83 = arith.constant 0 : index
    %44 = vector.load %arg14[%c0_80, %c1_81, %c0_82, %c0_83] : memref<1x10x12x64xf32, #tpu.memory_space<vmem>>, vector<1x1x12x64xf32>
    %c0_84 = arith.constant 0 : index
    %c3_85 = arith.constant 3 : index
    %c0_86 = arith.constant 0 : index
    %c0_87 = arith.constant 0 : index
    %45 = vector.load %arg14[%c0_84, %c3_85, %c0_86, %c0_87] : memref<1x10x12x64xf32, #tpu.memory_space<vmem>>, vector<1x1x12x64xf32>
    %c0_88 = arith.constant 0 : index
    %c5_89 = arith.constant 5 : index
    %c0_90 = arith.constant 0 : index
    %c0_91 = arith.constant 0 : index
    %46 = vector.load %arg14[%c0_88, %c5_89, %c0_90, %c0_91] : memref<1x10x12x64xf32, #tpu.memory_space<vmem>>, vector<1x1x12x64xf32>
    %c0_92 = arith.constant 0 : index
    %c7_93 = arith.constant 7 : index
    %c0_94 = arith.constant 0 : index
    %c0_95 = arith.constant 0 : index
    %47 = vector.load %arg14[%c0_92, %c7_93, %c0_94, %c0_95] : memref<1x10x12x64xf32, #tpu.memory_space<vmem>>, vector<1x1x12x64xf32>
    %48 = tpu.concatenate %44, %45, %46, %47 in 1 : vector<1x1x12x64xf32>, vector<1x1x12x64xf32>, vector<1x1x12x64xf32>, vector<1x1x12x64xf32> -> vector<1x4x12x64xf32>
    %49 = vector.extract_strided_slice %48 {offsets = [0, 0, 7, 0], sizes = [1, 4, 4, 64], strides = [1, 1, 1, 1]} : vector<1x4x12x64xf32> to vector<1x4x4x64xf32>
    %50 = vector.extract_strided_slice %48 {offsets = [0, 0, 8, 0], sizes = [1, 4, 4, 64], strides = [1, 1, 1, 1]} : vector<1x4x12x64xf32> to vector<1x4x4x64xf32>
    %51 = vector.shape_cast %49 : vector<1x4x4x64xf32> to vector<16x64xf32>
    %52 = arith.truncf %51 : vector<16x64xf32> to vector<16x64xbf16>
    %c1_96 = arith.constant 1 : index
    %c0_97 = arith.constant 0 : index
    %c0_98 = arith.constant 0 : index
    %c0_99 = arith.constant 0 : index
    %53 = vector.load %arg3[%c1_96, %c0_97, %c0_98, %c0_99] : memref<3x3x64x128xbf16, #tpu.memory_space<vmem>>, vector<1x1x64x128xbf16>
    %54 = vector.shape_cast %53 : vector<1x1x64x128xbf16> to vector<64x128xbf16>
    %cst_100 = arith.constant dense<0.000000e+00> : vector<16x128xf32>
    %55 = tpu.matmul %52, %54, %cst_100 {dimension_numbers = #tpu.dot_dimension_numbers<[1], [0], [0], [1], [0, 0, 1, 1], [], []>} : vector<16x64xbf16>, vector<64x128xbf16>, vector<16x128xf32> -> vector<16x128xf32>
    %56 = arith.addf %38, %55 : vector<16x128xf32>
    %57 = vector.shape_cast %43 : vector<1x4x4x64xf32> to vector<16x64xf32>
    %58 = arith.truncf %57 : vector<16x64xf32> to vector<16x64xbf16>
    %c1_101 = arith.constant 1 : index
    %c1_102 = arith.constant 1 : index
    %c0_103 = arith.constant 0 : index
    %c0_104 = arith.constant 0 : index
    %59 = vector.load %arg3[%c1_101, %c1_102, %c0_103, %c0_104] : memref<3x3x64x128xbf16, #tpu.memory_space<vmem>>, vector<1x1x64x128xbf16>
    %60 = vector.shape_cast %59 : vector<1x1x64x128xbf16> to vector<64x128xbf16>
    %cst_105 = arith.constant dense<0.000000e+00> : vector<16x128xf32>
    %61 = tpu.matmul %58, %60, %cst_105 {dimension_numbers = #tpu.dot_dimension_numbers<[1], [0], [0], [1], [0, 0, 1, 1], [], []>} : vector<16x64xbf16>, vector<64x128xbf16>, vector<16x128xf32> -> vector<16x128xf32>
    %62 = arith.addf %56, %61 : vector<16x128xf32>
    %63 = vector.shape_cast %50 : vector<1x4x4x64xf32> to vector<16x64xf32>
    %64 = arith.truncf %63 : vector<16x64xf32> to vector<16x64xbf16>
    %c1_106 = arith.constant 1 : index
    %c2_107 = arith.constant 2 : index
    %c0_108 = arith.constant 0 : index
    %c0_109 = arith.constant 0 : index
    %65 = vector.load %arg3[%c1_106, %c2_107, %c0_108, %c0_109] : memref<3x3x64x128xbf16, #tpu.memory_space<vmem>>, vector<1x1x64x128xbf16>
    %66 = vector.shape_cast %65 : vector<1x1x64x128xbf16> to vector<64x128xbf16>
    %cst_110 = arith.constant dense<0.000000e+00> : vector<16x128xf32>
    %67 = tpu.matmul %64, %66, %cst_110 {dimension_numbers = #tpu.dot_dimension_numbers<[1], [0], [0], [1], [0, 0, 1, 1], [], []>} : vector<16x64xbf16>, vector<64x128xbf16>, vector<16x128xf32> -> vector<16x128xf32>
    %68 = arith.addf %62, %67 : vector<16x128xf32>
    %c0_111 = arith.constant 0 : index
    %c2_112 = arith.constant 2 : index
    %c0_113 = arith.constant 0 : index
    %c0_114 = arith.constant 0 : index
    %69 = vector.load %arg13[%c0_111, %c2_112, %c0_113, %c0_114] : memref<1x10x4x64xf32, #tpu.memory_space<vmem>>, vector<1x1x4x64xf32>
    %c0_115 = arith.constant 0 : index
    %c4_116 = arith.constant 4 : index
    %c0_117 = arith.constant 0 : index
    %c0_118 = arith.constant 0 : index
    %70 = vector.load %arg13[%c0_115, %c4_116, %c0_117, %c0_118] : memref<1x10x4x64xf32, #tpu.memory_space<vmem>>, vector<1x1x4x64xf32>
    %c0_119 = arith.constant 0 : index
    %c6_120 = arith.constant 6 : index
    %c0_121 = arith.constant 0 : index
    %c0_122 = arith.constant 0 : index
    %71 = vector.load %arg13[%c0_119, %c6_120, %c0_121, %c0_122] : memref<1x10x4x64xf32, #tpu.memory_space<vmem>>, vector<1x1x4x64xf32>
    %c0_123 = arith.constant 0 : index
    %c8_124 = arith.constant 8 : index
    %c0_125 = arith.constant 0 : index
    %c0_126 = arith.constant 0 : index
    %72 = vector.load %arg13[%c0_123, %c8_124, %c0_125, %c0_126] : memref<1x10x4x64xf32, #tpu.memory_space<vmem>>, vector<1x1x4x64xf32>
    %73 = tpu.concatenate %69, %70, %71, %72 in 1 : vector<1x1x4x64xf32>, vector<1x1x4x64xf32>, vector<1x1x4x64xf32>, vector<1x1x4x64xf32> -> vector<1x4x4x64xf32>
    %c0_127 = arith.constant 0 : index
    %c2_128 = arith.constant 2 : index
    %c0_129 = arith.constant 0 : index
    %c0_130 = arith.constant 0 : index
    %74 = vector.load %arg14[%c0_127, %c2_128, %c0_129, %c0_130] : memref<1x10x12x64xf32, #tpu.memory_space<vmem>>, vector<1x1x12x64xf32>
    %c0_131 = arith.constant 0 : index
    %c4_132 = arith.constant 4 : index
    %c0_133 = arith.constant 0 : index
    %c0_134 = arith.constant 0 : index
    %75 = vector.load %arg14[%c0_131, %c4_132, %c0_133, %c0_134] : memref<1x10x12x64xf32, #tpu.memory_space<vmem>>, vector<1x1x12x64xf32>
    %c0_135 = arith.constant 0 : index
    %c6_136 = arith.constant 6 : index
    %c0_137 = arith.constant 0 : index
    %c0_138 = arith.constant 0 : index
    %76 = vector.load %arg14[%c0_135, %c6_136, %c0_137, %c0_138] : memref<1x10x12x64xf32, #tpu.memory_space<vmem>>, vector<1x1x12x64xf32>
    %c0_139 = arith.constant 0 : index
    %c8_140 = arith.constant 8 : index
    %c0_141 = arith.constant 0 : index
    %c0_142 = arith.constant 0 : index
    %77 = vector.load %arg14[%c0_139, %c8_140, %c0_141, %c0_142] : memref<1x10x12x64xf32, #tpu.memory_space<vmem>>, vector<1x1x12x64xf32>
    %78 = tpu.concatenate %74, %75, %76, %77 in 1 : vector<1x1x12x64xf32>, vector<1x1x12x64xf32>, vector<1x1x12x64xf32>, vector<1x1x12x64xf32> -> vector<1x4x12x64xf32>
    %79 = vector.extract_strided_slice %78 {offsets = [0, 0, 7, 0], sizes = [1, 4, 4, 64], strides = [1, 1, 1, 1]} : vector<1x4x12x64xf32> to vector<1x4x4x64xf32>
    %80 = vector.extract_strided_slice %78 {offsets = [0, 0, 8, 0], sizes = [1, 4, 4, 64], strides = [1, 1, 1, 1]} : vector<1x4x12x64xf32> to vector<1x4x4x64xf32>
    %81 = vector.shape_cast %79 : vector<1x4x4x64xf32> to vector<16x64xf32>
    %82 = arith.truncf %81 : vector<16x64xf32> to vector<16x64xbf16>
    %c2_143 = arith.constant 2 : index
    %c0_144 = arith.constant 0 : index
    %c0_145 = arith.constant 0 : index
    %c0_146 = arith.constant 0 : index
    %83 = vector.load %arg3[%c2_143, %c0_144, %c0_145, %c0_146] : memref<3x3x64x128xbf16, #tpu.memory_space<vmem>>, vector<1x1x64x128xbf16>
    %84 = vector.shape_cast %83 : vector<1x1x64x128xbf16> to vector<64x128xbf16>
    %cst_147 = arith.constant dense<0.000000e+00> : vector<16x128xf32>
    %85 = tpu.matmul %82, %84, %cst_147 {dimension_numbers = #tpu.dot_dimension_numbers<[1], [0], [0], [1], [0, 0, 1, 1], [], []>} : vector<16x64xbf16>, vector<64x128xbf16>, vector<16x128xf32> -> vector<16x128xf32>
    %86 = arith.addf %68, %85 : vector<16x128xf32>
    %87 = vector.shape_cast %73 : vector<1x4x4x64xf32> to vector<16x64xf32>
    %88 = arith.truncf %87 : vector<16x64xf32> to vector<16x64xbf16>
    %c2_148 = arith.constant 2 : index
    %c1_149 = arith.constant 1 : index
    %c0_150 = arith.constant 0 : index
    %c0_151 = arith.constant 0 : index
    %89 = vector.load %arg3[%c2_148, %c1_149, %c0_150, %c0_151] : memref<3x3x64x128xbf16, #tpu.memory_space<vmem>>, vector<1x1x64x128xbf16>
    %90 = vector.shape_cast %89 : vector<1x1x64x128xbf16> to vector<64x128xbf16>
    %cst_152 = arith.constant dense<0.000000e+00> : vector<16x128xf32>
    %91 = tpu.matmul %88, %90, %cst_152 {dimension_numbers = #tpu.dot_dimension_numbers<[1], [0], [0], [1], [0, 0, 1, 1], [], []>} : vector<16x64xbf16>, vector<64x128xbf16>, vector<16x128xf32> -> vector<16x128xf32>
    %92 = arith.addf %86, %91 : vector<16x128xf32>
    %93 = vector.shape_cast %80 : vector<1x4x4x64xf32> to vector<16x64xf32>
    %94 = arith.truncf %93 : vector<16x64xf32> to vector<16x64xbf16>
    %c2_153 = arith.constant 2 : index
    %c2_154 = arith.constant 2 : index
    %c0_155 = arith.constant 0 : index
    %c0_156 = arith.constant 0 : index
    %95 = vector.load %arg3[%c2_153, %c2_154, %c0_155, %c0_156] : memref<3x3x64x128xbf16, #tpu.memory_space<vmem>>, vector<1x1x64x128xbf16>
    %96 = vector.shape_cast %95 : vector<1x1x64x128xbf16> to vector<64x128xbf16>
    %cst_157 = arith.constant dense<0.000000e+00> : vector<16x128xf32>
    %97 = tpu.matmul %94, %96, %cst_157 {dimension_numbers = #tpu.dot_dimension_numbers<[1], [0], [0], [1], [0, 0, 1, 1], [], []>} : vector<16x64xbf16>, vector<64x128xbf16>, vector<16x128xf32> -> vector<16x128xf32>
    %98 = arith.addf %92, %97 : vector<16x128xf32>
    %c0_158 = arith.constant 0 : index
    %c0_159 = arith.constant 0 : index
    %99 = vector.load %arg4[%c0_158, %c0_159] : memref<1x128xf32, #tpu.memory_space<vmem>>, vector<1x128xf32>
    %100 = vector.broadcast %99 : vector<1x128xf32> to vector<16x128xf32>
    %101 = arith.mulf %98, %100 : vector<16x128xf32>
    %c0_160 = arith.constant 0 : index
    %c0_161 = arith.constant 0 : index
    %102 = vector.load %arg5[%c0_160, %c0_161] : memref<1x128xf32, #tpu.memory_space<vmem>>, vector<1x128xf32>
    %103 = vector.broadcast %102 : vector<1x128xf32> to vector<16x128xf32>
    %104 = arith.addf %101, %103 : vector<16x128xf32>
    %cst_162 = arith.constant 0.000000e+00 : f32
    %105 = vector.broadcast %cst_162 : f32 to vector<16x128xf32>
    %106 = arith.maximumf %104, %105 : vector<16x128xf32>
    %107 = vector.shape_cast %43 : vector<1x4x4x64xf32> to vector<16x64xf32>
    %108 = arith.truncf %107 : vector<16x64xf32> to vector<16x64xbf16>
    %c0_163 = arith.constant 0 : index
    %c0_164 = arith.constant 0 : index
    %109 = vector.load %arg6[%c0_163, %c0_164] : memref<64x128xbf16, #tpu.memory_space<vmem>>, vector<64x128xbf16>
    %cst_165 = arith.constant dense<0.000000e+00> : vector<16x128xf32>
    %110 = tpu.matmul %108, %109, %cst_165 {dimension_numbers = #tpu.dot_dimension_numbers<[1], [0], [0], [1], [0, 0, 1, 1], [], []>} : vector<16x64xbf16>, vector<64x128xbf16>, vector<16x128xf32> -> vector<16x128xf32>
    %c0_166 = arith.constant 0 : index
    %c0_167 = arith.constant 0 : index
    %111 = vector.load %arg7[%c0_166, %c0_167] : memref<1x128xf32, #tpu.memory_space<vmem>>, vector<1x128xf32>
    %112 = vector.broadcast %111 : vector<1x128xf32> to vector<16x128xf32>
    %113 = arith.mulf %110, %112 : vector<16x128xf32>
    %c0_168 = arith.constant 0 : index
    %c0_169 = arith.constant 0 : index
    %114 = vector.load %arg8[%c0_168, %c0_169] : memref<1x128xf32, #tpu.memory_space<vmem>>, vector<1x128xf32>
    %115 = vector.broadcast %114 : vector<1x128xf32> to vector<16x128xf32>
    %116 = arith.addf %113, %115 : vector<16x128xf32>
    %117 = vector.shape_cast %106 : vector<16x128xf32> to vector<1x4x4x128xf32>
    %cst_170 = arith.constant 0.000000e+00 : f32
    %118 = vector.broadcast %cst_170 : f32 to vector<1x6x13x128xf32>
    %c0_171 = arith.constant 0 : index
    %c0_172 = arith.constant 0 : index
    %c0_173 = arith.constant 0 : index
    %c0_174 = arith.constant 0 : index
    %119 = vector.load %arg15[%c0_171, %c0_172, %c0_173, %c0_174] : memref<1x6x13x128xf32, #tpu.memory_space<vmem>>, vector<1x6x13x128xf32>
    tpu.vector_store %arg15[%c0_171, %c0_172, %c0_173, %c0_174], %118 {strides = array<i32>} : memref<1x6x13x128xf32, #tpu.memory_space<vmem>>, vector<1x6x13x128xf32>,
    %c0_175 = arith.constant 0 : index
    %c1_176 = arith.constant 1 : index
    %c8_177 = arith.constant 8 : index
    %c0_178 = arith.constant 0 : index
    %120 = vector.load %arg15[%c0_175, %c1_176, %c8_177, %c0_178] : memref<1x6x13x128xf32, #tpu.memory_space<vmem>>, vector<1x4x4x128xf32>
    tpu.vector_store %arg15[%c0_175, %c1_176, %c8_177, %c0_178], %117 {strides = array<i32>} : memref<1x6x13x128xf32, #tpu.memory_space<vmem>>, vector<1x4x4x128xf32>,
    %cst_179 = arith.constant 0.000000e+00 : f32
    %121 = vector.broadcast %cst_179 : f32 to vector<16x128xf32>
    %c0_180 = arith.constant 0 : index
    %c0_181 = arith.constant 0 : index
    %c0_182 = arith.constant 0 : index
    %c0_183 = arith.constant 0 : index
    %122 = vector.load %arg15[%c0_180, %c0_181, %c0_182, %c0_183] : memref<1x6x13x128xf32, #tpu.memory_space<vmem>>, vector<1x4x13x128xf32>
    %123 = vector.extract_strided_slice %122 {offsets = [0, 0, 7, 0], sizes = [1, 4, 4, 128], strides = [1, 1, 1, 1]} : vector<1x4x13x128xf32> to vector<1x4x4x128xf32>
    %124 = vector.extract_strided_slice %122 {offsets = [0, 0, 8, 0], sizes = [1, 4, 4, 128], strides = [1, 1, 1, 1]} : vector<1x4x13x128xf32> to vector<1x4x4x128xf32>
    %125 = vector.extract_strided_slice %122 {offsets = [0, 0, 9, 0], sizes = [1, 4, 4, 128], strides = [1, 1, 1, 1]} : vector<1x4x13x128xf32> to vector<1x4x4x128xf32>
    %126 = tpu.concatenate %123, %124, %125 in 3 : vector<1x4x4x128xf32>, vector<1x4x4x128xf32>, vector<1x4x4x128xf32> -> vector<1x4x4x384xf32>
    %127 = vector.shape_cast %126 : vector<1x4x4x384xf32> to vector<16x384xf32>
    %128 = arith.truncf %127 : vector<16x384xf32> to vector<16x384xbf16>
    %c0_184 = arith.constant 0 : index
    %c0_185 = arith.constant 0 : index
    %c0_186 = arith.constant 0 : index
    %c0_187 = arith.constant 0 : index
    %129 = vector.load %arg9[%c0_184, %c0_185, %c0_186, %c0_187] : memref<3x3x128x128xbf16, #tpu.memory_space<vmem>>, vector<1x3x128x128xbf16>
    %130 = vector.shape_cast %129 : vector<1x3x128x128xbf16> to vector<3x128x128xbf16>
    %131 = vector.shape_cast %130 : vector<3x128x128xbf16> to vector<384x128xbf16>
    %cst_188 = arith.constant dense<0.000000e+00> : vector<16x128xf32>
    %132 = tpu.matmul %128, %131, %cst_188 {dimension_numbers = #tpu.dot_dimension_numbers<[1], [0], [0], [1], [0, 0, 1, 1], [], []>} : vector<16x384xbf16>, vector<384x128xbf16>, vector<16x128xf32> -> vector<16x128xf32>
    %133 = arith.addf %121, %132 : vector<16x128xf32>
    %c0_189 = arith.constant 0 : index
    %c1_190 = arith.constant 1 : index
    %c0_191 = arith.constant 0 : index
    %c0_192 = arith.constant 0 : index
    %134 = vector.load %arg15[%c0_189, %c1_190, %c0_191, %c0_192] : memref<1x6x13x128xf32, #tpu.memory_space<vmem>>, vector<1x4x13x128xf32>
    %135 = vector.extract_strided_slice %134 {offsets = [0, 0, 7, 0], sizes = [1, 4, 4, 128], strides = [1, 1, 1, 1]} : vector<1x4x13x128xf32> to vector<1x4x4x128xf32>
    %136 = vector.extract_strided_slice %134 {offsets = [0, 0, 8, 0], sizes = [1, 4, 4, 128], strides = [1, 1, 1, 1]} : vector<1x4x13x128xf32> to vector<1x4x4x128xf32>
    %137 = vector.extract_strided_slice %134 {offsets = [0, 0, 9, 0], sizes = [1, 4, 4, 128], strides = [1, 1, 1, 1]} : vector<1x4x13x128xf32> to vector<1x4x4x128xf32>
    %138 = tpu.concatenate %135, %136, %137 in 3 : vector<1x4x4x128xf32>, vector<1x4x4x128xf32>, vector<1x4x4x128xf32> -> vector<1x4x4x384xf32>
    %139 = vector.shape_cast %138 : vector<1x4x4x384xf32> to vector<16x384xf32>
    %140 = arith.truncf %139 : vector<16x384xf32> to vector<16x384xbf16>
    %c1_193 = arith.constant 1 : index
    %c0_194 = arith.constant 0 : index
    %c0_195 = arith.constant 0 : index
    %c0_196 = arith.constant 0 : index
    %141 = vector.load %arg9[%c1_193, %c0_194, %c0_195, %c0_196] : memref<3x3x128x128xbf16, #tpu.memory_space<vmem>>, vector<1x3x128x128xbf16>
    %142 = vector.shape_cast %141 : vector<1x3x128x128xbf16> to vector<3x128x128xbf16>
    %143 = vector.shape_cast %142 : vector<3x128x128xbf16> to vector<384x128xbf16>
    %cst_197 = arith.constant dense<0.000000e+00> : vector<16x128xf32>
    %144 = tpu.matmul %140, %143, %cst_197 {dimension_numbers = #tpu.dot_dimension_numbers<[1], [0], [0], [1], [0, 0, 1, 1], [], []>} : vector<16x384xbf16>, vector<384x128xbf16>, vector<16x128xf32> -> vector<16x128xf32>
    %145 = arith.addf %133, %144 : vector<16x128xf32>
    %c0_198 = arith.constant 0 : index
    %c2_199 = arith.constant 2 : index
    %c0_200 = arith.constant 0 : index
    %c0_201 = arith.constant 0 : index
    %146 = vector.load %arg15[%c0_198, %c2_199, %c0_200, %c0_201] : memref<1x6x13x128xf32, #tpu.memory_space<vmem>>, vector<1x4x13x128xf32>
    %147 = vector.extract_strided_slice %146 {offsets = [0, 0, 7, 0], sizes = [1, 4, 4, 128], strides = [1, 1, 1, 1]} : vector<1x4x13x128xf32> to vector<1x4x4x128xf32>
    %148 = vector.extract_strided_slice %146 {offsets = [0, 0, 8, 0], sizes = [1, 4, 4, 128], strides = [1, 1, 1, 1]} : vector<1x4x13x128xf32> to vector<1x4x4x128xf32>
    %149 = vector.extract_strided_slice %146 {offsets = [0, 0, 9, 0], sizes = [1, 4, 4, 128], strides = [1, 1, 1, 1]} : vector<1x4x13x128xf32> to vector<1x4x4x128xf32>
    %150 = tpu.concatenate %147, %148, %149 in 3 : vector<1x4x4x128xf32>, vector<1x4x4x128xf32>, vector<1x4x4x128xf32> -> vector<1x4x4x384xf32>
    %151 = vector.shape_cast %150 : vector<1x4x4x384xf32> to vector<16x384xf32>
    %152 = arith.truncf %151 : vector<16x384xf32> to vector<16x384xbf16>
    %c2_202 = arith.constant 2 : index
    %c0_203 = arith.constant 0 : index
    %c0_204 = arith.constant 0 : index
    %c0_205 = arith.constant 0 : index
    %153 = vector.load %arg9[%c2_202, %c0_203, %c0_204, %c0_205] : memref<3x3x128x128xbf16, #tpu.memory_space<vmem>>, vector<1x3x128x128xbf16>
    %154 = vector.shape_cast %153 : vector<1x3x128x128xbf16> to vector<3x128x128xbf16>
    %155 = vector.shape_cast %154 : vector<3x128x128xbf16> to vector<384x128xbf16>
    %cst_206 = arith.constant dense<0.000000e+00> : vector<16x128xf32>
    %156 = tpu.matmul %152, %155, %cst_206 {dimension_numbers = #tpu.dot_dimension_numbers<[1], [0], [0], [1], [0, 0, 1, 1], [], []>} : vector<16x384xbf16>, vector<384x128xbf16>, vector<16x128xf32> -> vector<16x128xf32>
    %157 = arith.addf %145, %156 : vector<16x128xf32>
    %c0_207 = arith.constant 0 : index
    %c0_208 = arith.constant 0 : index
    %158 = vector.load %arg10[%c0_207, %c0_208] : memref<1x128xf32, #tpu.memory_space<vmem>>, vector<1x128xf32>
    %159 = vector.broadcast %158 : vector<1x128xf32> to vector<16x128xf32>
    %160 = arith.mulf %157, %159 : vector<16x128xf32>
    %c0_209 = arith.constant 0 : index
    %c0_210 = arith.constant 0 : index
    %161 = vector.load %arg11[%c0_209, %c0_210] : memref<1x128xf32, #tpu.memory_space<vmem>>, vector<1x128xf32>
    %162 = vector.broadcast %161 : vector<1x128xf32> to vector<16x128xf32>
    %163 = arith.addf %160, %162 : vector<16x128xf32>
    %164 = arith.addf %163, %116 : vector<16x128xf32>
    %cst_211 = arith.constant 0.000000e+00 : f32
    %165 = vector.broadcast %cst_211 : f32 to vector<16x128xf32>
    %166 = arith.maximumf %164, %165 : vector<16x128xf32>
    %167 = vector.shape_cast %166 : vector<16x128xf32> to vector<1x4x4x128xf32>
    %c0_212 = arith.constant 0 : index
    %c0_213 = arith.constant 0 : index
    %c0_214 = arith.constant 0 : index
    %c0_215 = arith.constant 0 : index
    %168 = vector.load %arg12[%c0_212, %c0_213, %c0_214, %c0_215] : memref<1x4x4x128xf32, #tpu.memory_space<vmem>>, vector<1x4x4x128xf32>
    tpu.vector_store %arg12[%c0_212, %c0_213, %c0_214, %c0_215], %167 {strides = array<i32>} : memref<1x4x4x128xf32, #tpu.memory_space<vmem>>, vector<1x4x4x128xf32>,
    return
  }
  func.func @transform_0(%arg0: i32) -> (i32, i32, i32, i32) {
    %c0_i32 = arith.constant 0 : i32
    %c0_i32_0 = arith.constant 0 : i32
    %c0_i32_1 = arith.constant 0 : i32
    %c0_i32_2 = arith.constant 0 : i32
    return %arg0, %c0_i32, %c0_i32_0, %c0_i32_1 : i32, i32, i32, i32
  }
  func.func @transform_1(%arg0: i32) -> (i32, i32, i32, i32) {
    %c0_i32 = arith.constant 0 : i32
    %c0_i32_0 = arith.constant 0 : i32
    %c0_i32_1 = arith.constant 0 : i32
    %c0_i32_2 = arith.constant 0 : i32
    return %arg0, %c0_i32, %c0_i32_0, %c0_i32_1 : i32, i32, i32, i32
  }
  func.func @transform_2(%arg0: i32) -> (i32, i32, i32, i32) {
    %c0_i32 = arith.constant 0 : i32
    %c0_i32_0 = arith.constant 0 : i32
    %c0_i32_1 = arith.constant 0 : i32
    %c0_i32_2 = arith.constant 0 : i32
    %c0_i32_3 = arith.constant 0 : i32
    return %c0_i32, %c0_i32_0, %c0_i32_1, %c0_i32_2 : i32, i32, i32, i32
  }
  func.func @transform_3(%arg0: i32) -> (i32, i32) {
    %c0_i32 = arith.constant 0 : i32
    %c0_i32_0 = arith.constant 0 : i32
    %c0_i32_1 = arith.constant 0 : i32
    return %c0_i32, %c0_i32_0 : i32, i32
  }
  func.func @transform_4(%arg0: i32) -> (i32, i32) {
    %c0_i32 = arith.constant 0 : i32
    %c0_i32_0 = arith.constant 0 : i32
    %c0_i32_1 = arith.constant 0 : i32
    return %c0_i32, %c0_i32_0 : i32, i32
  }
  func.func @transform_5(%arg0: i32) -> (i32, i32) {
    %c0_i32 = arith.constant 0 : i32
    %c0_i32_0 = arith.constant 0 : i32
    %c0_i32_1 = arith.constant 0 : i32
    return %c0_i32, %c0_i32_0 : i32, i32
  }
  func.func @transform_6(%arg0: i32) -> (i32, i32) {
    %c0_i32 = arith.constant 0 : i32
    %c0_i32_0 = arith.constant 0 : i32
    %c0_i32_1 = arith.constant 0 : i32
    return %c0_i32, %c0_i32_0 : i32, i32
  }
  func.func @transform_7(%arg0: i32) -> (i32, i32) {
    %c0_i32 = arith.constant 0 : i32
    %c0_i32_0 = arith.constant 0 : i32
    %c0_i32_1 = arith.constant 0 : i32
    return %c0_i32, %c0_i32_0 : i32, i32
  }
  func.func @transform_8(%arg0: i32) -> (i32, i32, i32, i32) {
    %c0_i32 = arith.constant 0 : i32
    %c0_i32_0 = arith.constant 0 : i32
    %c0_i32_1 = arith.constant 0 : i32
    %c0_i32_2 = arith.constant 0 : i32
    %c0_i32_3 = arith.constant 0 : i32
    return %c0_i32, %c0_i32_0, %c0_i32_1, %c0_i32_2 : i32, i32, i32, i32
  }
  func.func @transform_9(%arg0: i32) -> (i32, i32) {
    %c0_i32 = arith.constant 0 : i32
    %c0_i32_0 = arith.constant 0 : i32
    %c0_i32_1 = arith.constant 0 : i32
    return %c0_i32, %c0_i32_0 : i32, i32
  }
  func.func @transform_10(%arg0: i32) -> (i32, i32) {
    %c0_i32 = arith.constant 0 : i32
    %c0_i32_0 = arith.constant 0 : i32
    %c0_i32_1 = arith.constant 0 : i32
    return %c0_i32, %c0_i32_0 : i32, i32
  }
  func.func @transform_11(%arg0: i32) -> (i32, i32, i32, i32) {
    %c0_i32 = arith.constant 0 : i32
    %c0_i32_0 = arith.constant 0 : i32
    %c0_i32_1 = arith.constant 0 : i32
    %c0_i32_2 = arith.constant 0 : i32
    return %arg0, %c0_i32, %c0_i32_0, %c0_i32_1 : i32, i32, i32, i32
  }
}

module attributes {stable_mosaic.version = 11 : i64} {
  func.func @_basic_block_kernel(%arg0: i32, %arg1: memref<1x4x4x128xf32, #tpu.memory_space<vmem>>, %arg2: memref<3x3x128x128xbf16, #tpu.memory_space<vmem>>, %arg3: memref<1x128xf32, #tpu.memory_space<vmem>>, %arg4: memref<1x128xf32, #tpu.memory_space<vmem>>, %arg5: memref<3x3x128x128xbf16, #tpu.memory_space<vmem>>, %arg6: memref<1x128xf32, #tpu.memory_space<vmem>>, %arg7: memref<1x128xf32, #tpu.memory_space<vmem>>, %arg8: memref<1x4x4x128xf32, #tpu.memory_space<vmem>>, %arg9: memref<1x6x13x128xf32, #tpu.memory_space<vmem>>, %arg10: memref<1x6x13x128xf32, #tpu.memory_space<vmem>>) attributes {dimension_semantics = [#tpu.dimension_semantics<parallel>], iteration_bounds = array<i64: 2>, scalar_prefetch = 0 : i64, scratch_operands = 2 : i64, tpu.core_type = #tpu.core_type<tc>, window_params = [{transform_indices = @transform_0, window_bounds = array<i64: 1, 4, 4, 128>}, {pipeline_mode = #tpu.pipeline_mode<synchronous>, transform_indices = @transform_1, window_bounds = array<i64: 3, 3, 128, 128>}, {pipeline_mode = #tpu.pipeline_mode<synchronous>, transform_indices = @transform_2, window_bounds = array<i64: 1, 128>}, {pipeline_mode = #tpu.pipeline_mode<synchronous>, transform_indices = @transform_3, window_bounds = array<i64: 1, 128>}, {pipeline_mode = #tpu.pipeline_mode<synchronous>, transform_indices = @transform_4, window_bounds = array<i64: 3, 3, 128, 128>}, {pipeline_mode = #tpu.pipeline_mode<synchronous>, transform_indices = @transform_5, window_bounds = array<i64: 1, 128>}, {pipeline_mode = #tpu.pipeline_mode<synchronous>, transform_indices = @transform_6, window_bounds = array<i64: 1, 128>}, {transform_indices = @transform_7, window_bounds = array<i64: 1, 4, 4, 128>}]} {
    %c0 = arith.constant 0 : index
    %c0_0 = arith.constant 0 : index
    %c0_1 = arith.constant 0 : index
    %c0_2 = arith.constant 0 : index
    %0 = vector.load %arg1[%c0, %c0_0, %c0_1, %c0_2] : memref<1x4x4x128xf32, #tpu.memory_space<vmem>>, vector<1x4x4x128xf32>
    %cst = arith.constant 0.000000e+00 : f32
    %1 = vector.broadcast %cst : f32 to vector<1x6x13x128xf32>
    %c0_3 = arith.constant 0 : index
    %c0_4 = arith.constant 0 : index
    %c0_5 = arith.constant 0 : index
    %c0_6 = arith.constant 0 : index
    %2 = vector.load %arg9[%c0_3, %c0_4, %c0_5, %c0_6] : memref<1x6x13x128xf32, #tpu.memory_space<vmem>>, vector<1x6x13x128xf32>
    tpu.vector_store %arg9[%c0_3, %c0_4, %c0_5, %c0_6], %1 {strides = array<i32>} : memref<1x6x13x128xf32, #tpu.memory_space<vmem>>, vector<1x6x13x128xf32>,
    %c0_7 = arith.constant 0 : index
    %c1 = arith.constant 1 : index
    %c8 = arith.constant 8 : index
    %c0_8 = arith.constant 0 : index
    %3 = vector.load %arg9[%c0_7, %c1, %c8, %c0_8] : memref<1x6x13x128xf32, #tpu.memory_space<vmem>>, vector<1x4x4x128xf32>
    tpu.vector_store %arg9[%c0_7, %c1, %c8, %c0_8], %0 {strides = array<i32>} : memref<1x6x13x128xf32, #tpu.memory_space<vmem>>, vector<1x4x4x128xf32>,
    %cst_9 = arith.constant 0.000000e+00 : f32
    %4 = vector.broadcast %cst_9 : f32 to vector<16x128xf32>
    %c0_10 = arith.constant 0 : index
    %c0_11 = arith.constant 0 : index
    %c0_12 = arith.constant 0 : index
    %c0_13 = arith.constant 0 : index
    %5 = vector.load %arg9[%c0_10, %c0_11, %c0_12, %c0_13] : memref<1x6x13x128xf32, #tpu.memory_space<vmem>>, vector<1x4x13x128xf32>
    %6 = vector.extract_strided_slice %5 {offsets = [0, 0, 7, 0], sizes = [1, 4, 4, 128], strides = [1, 1, 1, 1]} : vector<1x4x13x128xf32> to vector<1x4x4x128xf32>
    %7 = vector.extract_strided_slice %5 {offsets = [0, 0, 8, 0], sizes = [1, 4, 4, 128], strides = [1, 1, 1, 1]} : vector<1x4x13x128xf32> to vector<1x4x4x128xf32>
    %8 = vector.extract_strided_slice %5 {offsets = [0, 0, 9, 0], sizes = [1, 4, 4, 128], strides = [1, 1, 1, 1]} : vector<1x4x13x128xf32> to vector<1x4x4x128xf32>
    %9 = tpu.concatenate %6, %7, %8 in 3 : vector<1x4x4x128xf32>, vector<1x4x4x128xf32>, vector<1x4x4x128xf32> -> vector<1x4x4x384xf32>
    %10 = vector.shape_cast %9 : vector<1x4x4x384xf32> to vector<16x384xf32>
    %11 = arith.truncf %10 : vector<16x384xf32> to vector<16x384xbf16>
    %c0_14 = arith.constant 0 : index
    %c0_15 = arith.constant 0 : index
    %c0_16 = arith.constant 0 : index
    %c0_17 = arith.constant 0 : index
    %12 = vector.load %arg2[%c0_14, %c0_15, %c0_16, %c0_17] : memref<3x3x128x128xbf16, #tpu.memory_space<vmem>>, vector<1x3x128x128xbf16>
    %13 = vector.shape_cast %12 : vector<1x3x128x128xbf16> to vector<3x128x128xbf16>
    %14 = vector.shape_cast %13 : vector<3x128x128xbf16> to vector<384x128xbf16>
    %cst_18 = arith.constant dense<0.000000e+00> : vector<16x128xf32>
    %15 = tpu.matmul %11, %14, %cst_18 {dimension_numbers = #tpu.dot_dimension_numbers<[1], [0], [0], [1], [0, 0, 1, 1], [], []>} : vector<16x384xbf16>, vector<384x128xbf16>, vector<16x128xf32> -> vector<16x128xf32>
    %16 = arith.addf %4, %15 : vector<16x128xf32>
    %c0_19 = arith.constant 0 : index
    %c1_20 = arith.constant 1 : index
    %c0_21 = arith.constant 0 : index
    %c0_22 = arith.constant 0 : index
    %17 = vector.load %arg9[%c0_19, %c1_20, %c0_21, %c0_22] : memref<1x6x13x128xf32, #tpu.memory_space<vmem>>, vector<1x4x13x128xf32>
    %18 = vector.extract_strided_slice %17 {offsets = [0, 0, 7, 0], sizes = [1, 4, 4, 128], strides = [1, 1, 1, 1]} : vector<1x4x13x128xf32> to vector<1x4x4x128xf32>
    %19 = vector.extract_strided_slice %17 {offsets = [0, 0, 8, 0], sizes = [1, 4, 4, 128], strides = [1, 1, 1, 1]} : vector<1x4x13x128xf32> to vector<1x4x4x128xf32>
    %20 = vector.extract_strided_slice %17 {offsets = [0, 0, 9, 0], sizes = [1, 4, 4, 128], strides = [1, 1, 1, 1]} : vector<1x4x13x128xf32> to vector<1x4x4x128xf32>
    %21 = tpu.concatenate %18, %19, %20 in 3 : vector<1x4x4x128xf32>, vector<1x4x4x128xf32>, vector<1x4x4x128xf32> -> vector<1x4x4x384xf32>
    %22 = vector.shape_cast %21 : vector<1x4x4x384xf32> to vector<16x384xf32>
    %23 = arith.truncf %22 : vector<16x384xf32> to vector<16x384xbf16>
    %c1_23 = arith.constant 1 : index
    %c0_24 = arith.constant 0 : index
    %c0_25 = arith.constant 0 : index
    %c0_26 = arith.constant 0 : index
    %24 = vector.load %arg2[%c1_23, %c0_24, %c0_25, %c0_26] : memref<3x3x128x128xbf16, #tpu.memory_space<vmem>>, vector<1x3x128x128xbf16>
    %25 = vector.shape_cast %24 : vector<1x3x128x128xbf16> to vector<3x128x128xbf16>
    %26 = vector.shape_cast %25 : vector<3x128x128xbf16> to vector<384x128xbf16>
    %cst_27 = arith.constant dense<0.000000e+00> : vector<16x128xf32>
    %27 = tpu.matmul %23, %26, %cst_27 {dimension_numbers = #tpu.dot_dimension_numbers<[1], [0], [0], [1], [0, 0, 1, 1], [], []>} : vector<16x384xbf16>, vector<384x128xbf16>, vector<16x128xf32> -> vector<16x128xf32>
    %28 = arith.addf %16, %27 : vector<16x128xf32>
    %c0_28 = arith.constant 0 : index
    %c2 = arith.constant 2 : index
    %c0_29 = arith.constant 0 : index
    %c0_30 = arith.constant 0 : index
    %29 = vector.load %arg9[%c0_28, %c2, %c0_29, %c0_30] : memref<1x6x13x128xf32, #tpu.memory_space<vmem>>, vector<1x4x13x128xf32>
    %30 = vector.extract_strided_slice %29 {offsets = [0, 0, 7, 0], sizes = [1, 4, 4, 128], strides = [1, 1, 1, 1]} : vector<1x4x13x128xf32> to vector<1x4x4x128xf32>
    %31 = vector.extract_strided_slice %29 {offsets = [0, 0, 8, 0], sizes = [1, 4, 4, 128], strides = [1, 1, 1, 1]} : vector<1x4x13x128xf32> to vector<1x4x4x128xf32>
    %32 = vector.extract_strided_slice %29 {offsets = [0, 0, 9, 0], sizes = [1, 4, 4, 128], strides = [1, 1, 1, 1]} : vector<1x4x13x128xf32> to vector<1x4x4x128xf32>
    %33 = tpu.concatenate %30, %31, %32 in 3 : vector<1x4x4x128xf32>, vector<1x4x4x128xf32>, vector<1x4x4x128xf32> -> vector<1x4x4x384xf32>
    %34 = vector.shape_cast %33 : vector<1x4x4x384xf32> to vector<16x384xf32>
    %35 = arith.truncf %34 : vector<16x384xf32> to vector<16x384xbf16>
    %c2_31 = arith.constant 2 : index
    %c0_32 = arith.constant 0 : index
    %c0_33 = arith.constant 0 : index
    %c0_34 = arith.constant 0 : index
    %36 = vector.load %arg2[%c2_31, %c0_32, %c0_33, %c0_34] : memref<3x3x128x128xbf16, #tpu.memory_space<vmem>>, vector<1x3x128x128xbf16>
    %37 = vector.shape_cast %36 : vector<1x3x128x128xbf16> to vector<3x128x128xbf16>
    %38 = vector.shape_cast %37 : vector<3x128x128xbf16> to vector<384x128xbf16>
    %cst_35 = arith.constant dense<0.000000e+00> : vector<16x128xf32>
    %39 = tpu.matmul %35, %38, %cst_35 {dimension_numbers = #tpu.dot_dimension_numbers<[1], [0], [0], [1], [0, 0, 1, 1], [], []>} : vector<16x384xbf16>, vector<384x128xbf16>, vector<16x128xf32> -> vector<16x128xf32>
    %40 = arith.addf %28, %39 : vector<16x128xf32>
    %c0_36 = arith.constant 0 : index
    %c0_37 = arith.constant 0 : index
    %41 = vector.load %arg3[%c0_36, %c0_37] : memref<1x128xf32, #tpu.memory_space<vmem>>, vector<1x128xf32>
    %42 = vector.broadcast %41 : vector<1x128xf32> to vector<16x128xf32>
    %43 = arith.mulf %40, %42 : vector<16x128xf32>
    %c0_38 = arith.constant 0 : index
    %c0_39 = arith.constant 0 : index
    %44 = vector.load %arg4[%c0_38, %c0_39] : memref<1x128xf32, #tpu.memory_space<vmem>>, vector<1x128xf32>
    %45 = vector.broadcast %44 : vector<1x128xf32> to vector<16x128xf32>
    %46 = arith.addf %43, %45 : vector<16x128xf32>
    %cst_40 = arith.constant 0.000000e+00 : f32
    %47 = vector.broadcast %cst_40 : f32 to vector<16x128xf32>
    %48 = arith.maximumf %46, %47 : vector<16x128xf32>
    %49 = vector.shape_cast %48 : vector<16x128xf32> to vector<1x4x4x128xf32>
    %cst_41 = arith.constant 0.000000e+00 : f32
    %50 = vector.broadcast %cst_41 : f32 to vector<1x6x13x128xf32>
    %c0_42 = arith.constant 0 : index
    %c0_43 = arith.constant 0 : index
    %c0_44 = arith.constant 0 : index
    %c0_45 = arith.constant 0 : index
    %51 = vector.load %arg10[%c0_42, %c0_43, %c0_44, %c0_45] : memref<1x6x13x128xf32, #tpu.memory_space<vmem>>, vector<1x6x13x128xf32>
    tpu.vector_store %arg10[%c0_42, %c0_43, %c0_44, %c0_45], %50 {strides = array<i32>} : memref<1x6x13x128xf32, #tpu.memory_space<vmem>>, vector<1x6x13x128xf32>,
    %c0_46 = arith.constant 0 : index
    %c1_47 = arith.constant 1 : index
    %c8_48 = arith.constant 8 : index
    %c0_49 = arith.constant 0 : index
    %52 = vector.load %arg10[%c0_46, %c1_47, %c8_48, %c0_49] : memref<1x6x13x128xf32, #tpu.memory_space<vmem>>, vector<1x4x4x128xf32>
    tpu.vector_store %arg10[%c0_46, %c1_47, %c8_48, %c0_49], %49 {strides = array<i32>} : memref<1x6x13x128xf32, #tpu.memory_space<vmem>>, vector<1x4x4x128xf32>,
    %cst_50 = arith.constant 0.000000e+00 : f32
    %53 = vector.broadcast %cst_50 : f32 to vector<16x128xf32>
    %c0_51 = arith.constant 0 : index
    %c0_52 = arith.constant 0 : index
    %c0_53 = arith.constant 0 : index
    %c0_54 = arith.constant 0 : index
    %54 = vector.load %arg10[%c0_51, %c0_52, %c0_53, %c0_54] : memref<1x6x13x128xf32, #tpu.memory_space<vmem>>, vector<1x4x13x128xf32>
    %55 = vector.extract_strided_slice %54 {offsets = [0, 0, 7, 0], sizes = [1, 4, 4, 128], strides = [1, 1, 1, 1]} : vector<1x4x13x128xf32> to vector<1x4x4x128xf32>
    %56 = vector.extract_strided_slice %54 {offsets = [0, 0, 8, 0], sizes = [1, 4, 4, 128], strides = [1, 1, 1, 1]} : vector<1x4x13x128xf32> to vector<1x4x4x128xf32>
    %57 = vector.extract_strided_slice %54 {offsets = [0, 0, 9, 0], sizes = [1, 4, 4, 128], strides = [1, 1, 1, 1]} : vector<1x4x13x128xf32> to vector<1x4x4x128xf32>
    %58 = tpu.concatenate %55, %56, %57 in 3 : vector<1x4x4x128xf32>, vector<1x4x4x128xf32>, vector<1x4x4x128xf32> -> vector<1x4x4x384xf32>
    %59 = vector.shape_cast %58 : vector<1x4x4x384xf32> to vector<16x384xf32>
    %60 = arith.truncf %59 : vector<16x384xf32> to vector<16x384xbf16>
    %c0_55 = arith.constant 0 : index
    %c0_56 = arith.constant 0 : index
    %c0_57 = arith.constant 0 : index
    %c0_58 = arith.constant 0 : index
    %61 = vector.load %arg5[%c0_55, %c0_56, %c0_57, %c0_58] : memref<3x3x128x128xbf16, #tpu.memory_space<vmem>>, vector<1x3x128x128xbf16>
    %62 = vector.shape_cast %61 : vector<1x3x128x128xbf16> to vector<3x128x128xbf16>
    %63 = vector.shape_cast %62 : vector<3x128x128xbf16> to vector<384x128xbf16>
    %cst_59 = arith.constant dense<0.000000e+00> : vector<16x128xf32>
    %64 = tpu.matmul %60, %63, %cst_59 {dimension_numbers = #tpu.dot_dimension_numbers<[1], [0], [0], [1], [0, 0, 1, 1], [], []>} : vector<16x384xbf16>, vector<384x128xbf16>, vector<16x128xf32> -> vector<16x128xf32>
    %65 = arith.addf %53, %64 : vector<16x128xf32>
    %c0_60 = arith.constant 0 : index
    %c1_61 = arith.constant 1 : index
    %c0_62 = arith.constant 0 : index
    %c0_63 = arith.constant 0 : index
    %66 = vector.load %arg10[%c0_60, %c1_61, %c0_62, %c0_63] : memref<1x6x13x128xf32, #tpu.memory_space<vmem>>, vector<1x4x13x128xf32>
    %67 = vector.extract_strided_slice %66 {offsets = [0, 0, 7, 0], sizes = [1, 4, 4, 128], strides = [1, 1, 1, 1]} : vector<1x4x13x128xf32> to vector<1x4x4x128xf32>
    %68 = vector.extract_strided_slice %66 {offsets = [0, 0, 8, 0], sizes = [1, 4, 4, 128], strides = [1, 1, 1, 1]} : vector<1x4x13x128xf32> to vector<1x4x4x128xf32>
    %69 = vector.extract_strided_slice %66 {offsets = [0, 0, 9, 0], sizes = [1, 4, 4, 128], strides = [1, 1, 1, 1]} : vector<1x4x13x128xf32> to vector<1x4x4x128xf32>
    %70 = tpu.concatenate %67, %68, %69 in 3 : vector<1x4x4x128xf32>, vector<1x4x4x128xf32>, vector<1x4x4x128xf32> -> vector<1x4x4x384xf32>
    %71 = vector.shape_cast %70 : vector<1x4x4x384xf32> to vector<16x384xf32>
    %72 = arith.truncf %71 : vector<16x384xf32> to vector<16x384xbf16>
    %c1_64 = arith.constant 1 : index
    %c0_65 = arith.constant 0 : index
    %c0_66 = arith.constant 0 : index
    %c0_67 = arith.constant 0 : index
    %73 = vector.load %arg5[%c1_64, %c0_65, %c0_66, %c0_67] : memref<3x3x128x128xbf16, #tpu.memory_space<vmem>>, vector<1x3x128x128xbf16>
    %74 = vector.shape_cast %73 : vector<1x3x128x128xbf16> to vector<3x128x128xbf16>
    %75 = vector.shape_cast %74 : vector<3x128x128xbf16> to vector<384x128xbf16>
    %cst_68 = arith.constant dense<0.000000e+00> : vector<16x128xf32>
    %76 = tpu.matmul %72, %75, %cst_68 {dimension_numbers = #tpu.dot_dimension_numbers<[1], [0], [0], [1], [0, 0, 1, 1], [], []>} : vector<16x384xbf16>, vector<384x128xbf16>, vector<16x128xf32> -> vector<16x128xf32>
    %77 = arith.addf %65, %76 : vector<16x128xf32>
    %c0_69 = arith.constant 0 : index
    %c2_70 = arith.constant 2 : index
    %c0_71 = arith.constant 0 : index
    %c0_72 = arith.constant 0 : index
    %78 = vector.load %arg10[%c0_69, %c2_70, %c0_71, %c0_72] : memref<1x6x13x128xf32, #tpu.memory_space<vmem>>, vector<1x4x13x128xf32>
    %79 = vector.extract_strided_slice %78 {offsets = [0, 0, 7, 0], sizes = [1, 4, 4, 128], strides = [1, 1, 1, 1]} : vector<1x4x13x128xf32> to vector<1x4x4x128xf32>
    %80 = vector.extract_strided_slice %78 {offsets = [0, 0, 8, 0], sizes = [1, 4, 4, 128], strides = [1, 1, 1, 1]} : vector<1x4x13x128xf32> to vector<1x4x4x128xf32>
    %81 = vector.extract_strided_slice %78 {offsets = [0, 0, 9, 0], sizes = [1, 4, 4, 128], strides = [1, 1, 1, 1]} : vector<1x4x13x128xf32> to vector<1x4x4x128xf32>
    %82 = tpu.concatenate %79, %80, %81 in 3 : vector<1x4x4x128xf32>, vector<1x4x4x128xf32>, vector<1x4x4x128xf32> -> vector<1x4x4x384xf32>
    %83 = vector.shape_cast %82 : vector<1x4x4x384xf32> to vector<16x384xf32>
    %84 = arith.truncf %83 : vector<16x384xf32> to vector<16x384xbf16>
    %c2_73 = arith.constant 2 : index
    %c0_74 = arith.constant 0 : index
    %c0_75 = arith.constant 0 : index
    %c0_76 = arith.constant 0 : index
    %85 = vector.load %arg5[%c2_73, %c0_74, %c0_75, %c0_76] : memref<3x3x128x128xbf16, #tpu.memory_space<vmem>>, vector<1x3x128x128xbf16>
    %86 = vector.shape_cast %85 : vector<1x3x128x128xbf16> to vector<3x128x128xbf16>
    %87 = vector.shape_cast %86 : vector<3x128x128xbf16> to vector<384x128xbf16>
    %cst_77 = arith.constant dense<0.000000e+00> : vector<16x128xf32>
    %88 = tpu.matmul %84, %87, %cst_77 {dimension_numbers = #tpu.dot_dimension_numbers<[1], [0], [0], [1], [0, 0, 1, 1], [], []>} : vector<16x384xbf16>, vector<384x128xbf16>, vector<16x128xf32> -> vector<16x128xf32>
    %89 = arith.addf %77, %88 : vector<16x128xf32>
    %c0_78 = arith.constant 0 : index
    %c0_79 = arith.constant 0 : index
    %90 = vector.load %arg6[%c0_78, %c0_79] : memref<1x128xf32, #tpu.memory_space<vmem>>, vector<1x128xf32>
    %91 = vector.broadcast %90 : vector<1x128xf32> to vector<16x128xf32>
    %92 = arith.mulf %89, %91 : vector<16x128xf32>
    %c0_80 = arith.constant 0 : index
    %c0_81 = arith.constant 0 : index
    %93 = vector.load %arg7[%c0_80, %c0_81] : memref<1x128xf32, #tpu.memory_space<vmem>>, vector<1x128xf32>
    %94 = vector.broadcast %93 : vector<1x128xf32> to vector<16x128xf32>
    %95 = arith.addf %92, %94 : vector<16x128xf32>
    %c0_82 = arith.constant 0 : index
    %c0_83 = arith.constant 0 : index
    %c0_84 = arith.constant 0 : index
    %c0_85 = arith.constant 0 : index
    %96 = vector.load %arg1[%c0_82, %c0_83, %c0_84, %c0_85] : memref<1x4x4x128xf32, #tpu.memory_space<vmem>>, vector<1x4x4x128xf32>
    %97 = vector.shape_cast %96 : vector<1x4x4x128xf32> to vector<16x128xf32>
    %98 = arith.addf %95, %97 : vector<16x128xf32>
    %99 = vector.shape_cast %98 : vector<16x128xf32> to vector<1x4x4x128xf32>
    %c0_86 = arith.constant 0 : index
    %c0_87 = arith.constant 0 : index
    %c0_88 = arith.constant 0 : index
    %c0_89 = arith.constant 0 : index
    %100 = vector.load %arg8[%c0_86, %c0_87, %c0_88, %c0_89] : memref<1x4x4x128xf32, #tpu.memory_space<vmem>>, vector<1x4x4x128xf32>
    tpu.vector_store %arg8[%c0_86, %c0_87, %c0_88, %c0_89], %99 {strides = array<i32>} : memref<1x4x4x128xf32, #tpu.memory_space<vmem>>, vector<1x4x4x128xf32>,
    return
  }
  func.func @transform_0(%arg0: i32) -> (i32, i32, i32, i32) {
    %c0_i32 = arith.constant 0 : i32
    %c0_i32_0 = arith.constant 0 : i32
    %c0_i32_1 = arith.constant 0 : i32
    %c0_i32_2 = arith.constant 0 : i32
    return %arg0, %c0_i32, %c0_i32_0, %c0_i32_1 : i32, i32, i32, i32
  }
  func.func @transform_1(%arg0: i32) -> (i32, i32, i32, i32) {
    %c0_i32 = arith.constant 0 : i32
    %c0_i32_0 = arith.constant 0 : i32
    %c0_i32_1 = arith.constant 0 : i32
    %c0_i32_2 = arith.constant 0 : i32
    %c0_i32_3 = arith.constant 0 : i32
    return %c0_i32, %c0_i32_0, %c0_i32_1, %c0_i32_2 : i32, i32, i32, i32
  }
  func.func @transform_2(%arg0: i32) -> (i32, i32) {
    %c0_i32 = arith.constant 0 : i32
    %c0_i32_0 = arith.constant 0 : i32
    %c0_i32_1 = arith.constant 0 : i32
    return %c0_i32, %c0_i32_0 : i32, i32
  }
  func.func @transform_3(%arg0: i32) -> (i32, i32) {
    %c0_i32 = arith.constant 0 : i32
    %c0_i32_0 = arith.constant 0 : i32
    %c0_i32_1 = arith.constant 0 : i32
    return %c0_i32, %c0_i32_0 : i32, i32
  }
  func.func @transform_4(%arg0: i32) -> (i32, i32, i32, i32) {
    %c0_i32 = arith.constant 0 : i32
    %c0_i32_0 = arith.constant 0 : i32
    %c0_i32_1 = arith.constant 0 : i32
    %c0_i32_2 = arith.constant 0 : i32
    %c0_i32_3 = arith.constant 0 : i32
    return %c0_i32, %c0_i32_0, %c0_i32_1, %c0_i32_2 : i32, i32, i32, i32
  }
  func.func @transform_5(%arg0: i32) -> (i32, i32) {
    %c0_i32 = arith.constant 0 : i32
    %c0_i32_0 = arith.constant 0 : i32
    %c0_i32_1 = arith.constant 0 : i32
    return %c0_i32, %c0_i32_0 : i32, i32
  }
  func.func @transform_6(%arg0: i32) -> (i32, i32) {
    %c0_i32 = arith.constant 0 : i32
    %c0_i32_0 = arith.constant 0 : i32
    %c0_i32_1 = arith.constant 0 : i32
    return %c0_i32, %c0_i32_0 : i32, i32
  }
  func.func @transform_7(%arg0: i32) -> (i32, i32, i32, i32) {
    %c0_i32 = arith.constant 0 : i32
    %c0_i32_0 = arith.constant 0 : i32
    %c0_i32_1 = arith.constant 0 : i32
    %c0_i32_2 = arith.constant 0 : i32
    return %arg0, %c0_i32, %c0_i32_0, %c0_i32_1 : i32, i32, i32, i32
  }
}

</mosaic_0001>

<bundles_post_ra>
// kernel: resnet_front_forward.5
= control target key start
LH: loop header
LB: loop body
LE: loop exit
PB: predicated region body
PF: predicated region fallthrough
CT: control target
= control target key end

     0   :  { %s1018_s18 = smov 0   ;;  %s1273_s0 = inlined_call_operand.vmem [shape: f32[2,16,8,27], index: 0, kind: input, shape index: {}]   ;;  %s1274_s1 = inlined_call_operand.vmem [shape: f32[2,16,8,27], index: 1, kind: input, shape index: {}]   ;;  %s1275_s2 = inlined_call_operand.vmem [shape: bf16[27,64], index: 2, kind: input, shape index: {}]   ;;  %s1276_s3 = inlined_call_operand.vmem [shape: f32[1,64], index: 3, kind: input, shape index: {}]   ;;  %s1277_s4 = inlined_call_operand.vmem [shape: f32[1,64], index: 4, kind: input, shape index: {}]   ;;  %s1278_s5 = inlined_call_operand.vmem [shape: f32[2,8,8,64], index: 5, kind: output, shape index: {}]  }
   0x1 LB: > { %s863_s19 = sadd.s32 4294967295, %s984_s18   ;;  %p867_p0 = scmp.ge.s32.totalorder %s984_s18, 1  ;;  %s984_s18 = sphi %s1018_s18, %s15_s18  }
   0x2   : > { %p197_p1 = scmp.lt.s32.totalorder %s984_s18, 3 }
   0x4   : > { %p198_p2 = pnand %p867_p0, %p197_p1 }
   0x5   : > { %p230_p3 = scmp.lt.s32.totalorder (!%p198_p2), %s863_s19, 1 }
   0x6   : > { %201 = sbr.rel (%p198_p2) target bundleno = 269 (0x10d), region = 40 }
   0xb   : > { %v976_v0 = vld [vmem:[%s1275_s2 + $0x8] sm:$0x3f]   ;;  %vm310_vm0 = vcmask 1044480   ;;  %vm311_vm1 = vcmask 1045504   ;;  %v986_v1 = vmov 65535   ;;  %v977_v5 = vld [vmem:[%s1275_s2] sm:$0xff]  }
   0xc   : > { %v312_v2 = vsel %vm310_vm0, 4294967295, %v986_v1  ;;  %s1280_s19 = smov (!%p230_p3, %s863_s19), 1  ;;  %vm285_vm2 = vcmask 220160   ;;  %vm669_vm3 = vcmask 523264   ;;  %v987_v54 = vmov 0.0  }
   0xd   : > { %v313_v3 = vsel %vm311_vm1, %v312_v2, 0  ;;  %s903_s24 = sshll.u32 %s1280_s19, 7  ;;  %674 = vst.msk [vmem:[#allocation2 + $0x20] sm:$0xff] %vm669_vm3, %v987_v54  ;;  %675 = vst.msk [vmem:[#allocation2 + $0x28] sm:$0xff] %vm669_vm3, %v987_v54  ;;  %v1128_v55 = vld [vmem:[%s1276_s3] ss:$0 sm:$0xff] }
   0xe   : > { %v315_v4 = vand.u32 %v976_v0, %v313_v3  ;;  %s1038_s27 = scalar_lea.vmem %s1273_s0, %s903_s24  ;;  %s1043_s30 = scalar_lea.vmem %s1274_s1, %s903_s24  ;;  %670 = vst.msk [vmem:[#allocation2] sm:$0xff] %vm669_vm3, %v987_v54  ;;  %671 = vst.msk [vmem:[#allocation2 + $0x8] sm:$0xff] %vm669_vm3, %v987_v54  ;;  %v1133_v57 = vld [vmem:[%s1277_s4] ss:$0 sm:$0xff] }
   0xf   : > { %v246_v6 = vld [vmem:[%s1038_s27] sm:$0xff]  ;;  %v247_v7 = vld [vmem:[%s1038_s27 + $0x8] sm:$0xff]  ;;  %v248_v11 = vld [vmem:[%s1038_s27 + $0x10] sm:$0xff]  ;;  %672 = vst.msk [vmem:[#allocation2 + $0x10] sm:$0xff] %vm669_vm3, %v987_v54  ;;  %s905_s10 = sshll.u32 %s1280_s19, 6 }
  0x10   : > { %926 = vmatprep.subr.bf16.mxu0 %v315_v4  ;;  %946 = vmatprep.subr.bf16.mxu1 %v315_v4  ;;  %v476_v8 = vld [vmem:[%s1043_s30] sm:$0xff]  ;;  %v262_v9 = vpack.c.bf16 %v247_v7, %v246_v6  ;;  %v477_v10 = vld [vmem:[%s1043_s30 + $0x8] sm:$0xff]  ;;  %v249_v12 = vld [vmem:[%s1038_s27 + $0x18] sm:$0xff]  ;;  %673 = vst.msk [vmem:[#allocation2 + $0x18] sm:$0xff] %vm669_vm3, %v987_v54  ;;  %s1200_s13 = scalar_lea.vmem %s1278_s5, %s905_s10 }
  0x11   : > { %927 = vmatpush3.bf16.msra.mxu0 %v315_v4  ;;  %947 = vmatpush3.bf16.msra.mxu1 %v315_v4  ;;  %v492_v13 = vpack.c.bf16 %v477_v10, %v476_v8  ;;  %v263_v14 = vpack.c.bf16 %v249_v12, %v248_v11  ;;  %v478_v15 = vld [vmem:[%s1043_s30 + $0x10] sm:$0xff]  ;;  %v479_v16 = vld [vmem:[%s1043_s30 + $0x18] sm:$0xff]  ;;  %v250_v17 = vld [vmem:[%s1038_s27 + $0x20] sm:$0xff]  ;;  %676 = vst.msk [vmem:[#allocation2 + $0x30] sm:$0xff] %vm669_vm3, %v987_v54 }
  0x12   : > { %928 = vmatprep.subr.bf16.mxu0 %v977_v5  ;;  %948 = vmatprep.subr.bf16.mxu1 %v977_v5  ;;  %v493_v18 = vpack.c.bf16 %v479_v16, %v478_v15  ;;  %v251_v19 = vld [vmem:[%s1038_s27 + $0x28] sm:$0xff]  ;;  %v480_v20 = vld [vmem:[%s1043_s30 + $0x20] sm:$0xff]  ;;  %v252_v24 = vld [vmem:[%s1038_s27 + $0x30] sm:$0xff]  ;;  %677 = vst.msk [vmem:[#allocation2 + $0x38] sm:$0xff] %vm669_vm3, %v987_v54 }
  0x13   : > { %v481_v21 = vld [vmem:[%s1043_s30 + $0x28] sm:$0xff]  ;;  %930 = vmatprep.mubr.msk.bf16.mxu0 %vm285_vm2, %v262_v9  ;;  %950 = vmatprep.mubr.msk.bf16.mxu1 %vm285_vm2, %v492_v13  ;;  %v264_v22 = vpack.c.bf16 %v251_v19, %v250_v17  ;;  %v253_v25 = vld [vmem:[%s1038_s27 + $0x38] sm:$0xff]  ;;  %v482_v26 = vld [vmem:[%s1043_s30 + $0x30] sm:$0xff]  ;;  %678 = vst.msk [vmem:[#allocation2 + $0x40] sm:$0xff] %vm669_vm3, %v987_v54 }
  0x14   : > { %v494_v23 = vpack.c.bf16 %v481_v21, %v480_v20  ;;  %v483_v27 = vld [vmem:[%s1043_s30 + $0x38] sm:$0xff]  ;;  %v254_v28 = vld [vmem:[%s1038_s27 + $0x40] sm:$0xff]  ;;  %v255_v29 = vld [vmem:[%s1038_s27 + $0x48] sm:$0xff]  ;;  %v265_v32 = vpack.c.bf16 %v253_v25, %v252_v24  ;;  %679 = vst.msk [vmem:[#allocation2 + $0x48] sm:$0xff] %vm669_vm3, %v987_v54 }
  0x15   : > { %929 = vmatpush3.bf16.msra.mxu0 %v977_v5  ;;  %949 = vmatpush3.bf16.msra.mxu1 %v977_v5  ;;  %v484_v30 = vld [vmem:[%s1043_s30 + $0x40] sm:$0xff]  ;;  %v485_v31 = vld [vmem:[%s1043_s30 + $0x48] sm:$0xff]  ;;  %v495_v33 = vpack.c.bf16 %v483_v27, %v482_v26  ;;  %v266_v34 = vpack.c.bf16 %v255_v29, %v254_v28  ;;  %v256_v36 = vld [vmem:[%s1038_s27 + $0x50] sm:$0xff]  ;;  %680 = vst.msk [vmem:[#allocation2 + $0x50] sm:$0xff] %vm669_vm3, %v987_v54 }
  0x16   : > { %v496_v35 = vpack.c.bf16 %v485_v31, %v484_v30  ;;  %v257_v37 = vld [vmem:[%s1038_s27 + $0x58] sm:$0xff]  ;;  %v486_v38 = vld [vmem:[%s1043_s30 + $0x50] sm:$0xff]  ;;  %v258_v40 = vld [vmem:[%s1038_s27 + $0x60] sm:$0xff]  ;;  %681 = vst.msk [vmem:[#allocation2 + $0x58] sm:$0xff] %vm669_vm3, %v987_v54 }
  0x17   : > { %v487_v39 = vld [vmem:[%s1043_s30 + $0x58] sm:$0xff]  ;;  %v259_v41 = vld [vmem:[%s1038_s27 + $0x68] sm:$0xff]  ;;  %v488_v42 = vld [vmem:[%s1043_s30 + $0x60] sm:$0xff]  ;;  %v267_v44 = vpack.c.bf16 %v257_v37, %v256_v36  ;;  %682 = vst.msk [vmem:[#allocation2 + $0x60] sm:$0xff] %vm669_vm3, %v987_v54 }
  0x18   : > { %931 = vmatmul.mubr.msk.bf16.vlgmr.msra.gmra.mxu0 %vm285_vm2, %v263_v14  ;;  %951 = vmatmul.mubr.msk.bf16.vlgmr.msra.gmra.mxu1 %vm285_vm2, %v493_v18  ;;  %v489_v43 = vld [vmem:[%s1043_s30 + $0x68] sm:$0xff]  ;;  %v497_v45 = vpack.c.bf16 %v487_v39, %v486_v38  ;;  %v268_v46 = vpack.c.bf16 %v259_v41, %v258_v40  ;;  %v260_v48 = vld [vmem:[%s1038_s27 + $0x70] sm:$0xff]  ;;  %v261_v49 = vld [vmem:[%s1038_s27 + $0x78] sm:$0xff]  ;;  %683 = vst.msk [vmem:[#allocation2 + $0x68] sm:$0xff] %vm669_vm3, %v987_v54 }
  0x19   : > { %934 = vmatprep.mubr.msk.bf16.mxu0 %vm285_vm2, %v264_v22  ;;  %954 = vmatprep.mubr.msk.bf16.mxu1 %vm285_vm2, %v494_v23  ;;  %v498_v47 = vpack.c.bf16 %v489_v43, %v488_v42  ;;  %v490_v50 = vld [vmem:[%s1043_s30 + $0x70] sm:$0xff]  ;;  %v491_v51 = vld [vmem:[%s1043_s30 + $0x78] sm:$0xff]  ;;  %v269_v52 = vpack.c.bf16 %v261_v49, %v260_v48  ;;  %684 = vst.msk [vmem:[#allocation2 + $0x70] sm:$0xff] %vm669_vm3, %v987_v54  ;;  %685 = vst.msk [vmem:[#allocation2 + $0x78] sm:$0xff] %vm669_vm3, %v987_v54 }
  0x1a   : > { %v499_v53 = vpack.c.bf16 %v491_v51, %v490_v50  ;;  %686 = vst.msk [vmem:[#allocation2 + $0x80] sm:$0xff] %vm669_vm3, %v987_v54  ;;  %687 = vst.msk [vmem:[#allocation2 + $0x88] sm:$0xff] %vm669_vm3, %v987_v54 }
  0x1b   : > { %688 = vst.msk [vmem:[#allocation2 + $0x90] sm:$0xff] %vm669_vm3, %v987_v54  ;;  %689 = vst.msk [vmem:[#allocation2 + $0x98] sm:$0xff] %vm669_vm3, %v987_v54 }
  0x1c   : > { %690 = vst.msk [vmem:[#allocation2 + $0xa0] sm:$0xff] %vm669_vm3, %v987_v54  ;;  %691 = vst.msk [vmem:[#allocation2 + $0xa8] sm:$0xff] %vm669_vm3, %v987_v54 }
  0x1d   : > { %692 = vst.msk [vmem:[#allocation2 + $0xb0] sm:$0xff] %vm669_vm3, %v987_v54  ;;  %693 = vst.msk [vmem:[#allocation2 + $0xb8] sm:$0xff] %vm669_vm3, %v987_v54 }
  0x1e   : > { %694 = vst.msk [vmem:[#allocation2 + $0xc0] sm:$0xff] %vm669_vm3, %v987_v54  ;;  %695 = vst.msk [vmem:[#allocation2 + $0xc8] sm:$0xff] %vm669_vm3, %v987_v54 }
  0x1f   : > { %696 = vst.msk [vmem:[#allocation2 + $0xd0] sm:$0xff] %vm669_vm3, %v987_v54  ;;  %697 = vst.msk [vmem:[#allocation2 + $0xd8] sm:$0xff] %vm669_vm3, %v987_v54 }
  0x20   : > { %935 = vmatmul.mubr.msk.bf16.gmra.mxu0 %vm285_vm2, %v265_v32  ;;  %955 = vmatmul.mubr.msk.bf16.gmra.mxu1 %vm285_vm2, %v495_v33  ;;  %698 = vst.msk [vmem:[#allocation2 + $0xe0] sm:$0xff] %vm669_vm3, %v987_v54  ;;  %699 = vst.msk [vmem:[#allocation2 + $0xe8] sm:$0xff] %vm669_vm3, %v987_v54 }
  0x21   : > { %938 = vmatprep.mubr.msk.bf16.mxu0 %vm285_vm2, %v266_v34  ;;  %958 = vmatprep.mubr.msk.bf16.mxu1 %vm285_vm2, %v496_v35  ;;  %700 = vst.msk [vmem:[#allocation2 + $0xf0] sm:$0xff] %vm669_vm3, %v987_v54  ;;  %701 = vst.msk [vmem:[#allocation2 + $0xf8] sm:$0xff] %vm669_vm3, %v987_v54 }
  0x28   : > { %939 = vmatmul.mubr.msk.bf16.gmra.mxu0 %vm285_vm2, %v267_v44  ;;  %959 = vmatmul.mubr.msk.bf16.gmra.mxu1 %vm285_vm2, %v497_v45 }
  0x29   : > { %942 = vmatprep.mubr.msk.bf16.mxu0 %vm285_vm2, %v268_v46  ;;  %962 = vmatprep.mubr.msk.bf16.mxu1 %vm285_vm2, %v498_v47 }
  0x30   : > { %943 = vmatmul.mubr.msk.bf16.gmra.mxu0 %vm285_vm2, %v269_v52  ;;  %963 = vmatmul.mubr.msk.bf16.gmra.mxu1 %vm285_vm2, %v499_v53 }
  0xd8   : > { %v932_v56 = vpop.f32.mrf.mxu0  ;;  %v952_v58 = vpop.f32.mrf.mxu1 }
  0xd9   : > { %v623_v59 = vmul.f32 %v952_v58, %v1128_v55  ;;  %v423_v2 = vmul.f32 %v932_v56, %v1128_v55 }
  0xda   : > { %v351_v60 = vpop.f32.mrf.mxu0  ;;  %v558_v61 = vpop.f32.mrf.mxu1 }
  0xdb   : > { %v639_v62 = vadd.f32 %v1133_v57, %v623_v59  ;;  %v621_v63 = vmul.f32 %v1128_v55, %v558_v61  ;;  %v421_v4 = vmul.f32 %v1128_v55, %v351_v60  ;;  %v446_v16 = vadd.f32 %v1133_v57, %v423_v2 }
  0xdc   : > { %v933_v0 = vpop.f32.mrf.mxu0  ;;  %v953_v1 = vpop.f32.mrf.mxu1 }
  0xdd   : > { %v655_v3 = vmax.f32 %v639_v62, 0.0  ;;  %v637_v5 = vadd.f32 %v1133_v57, %v621_v63  ;;  %v424_v6 = vmul.f32 %v933_v0, %v1128_v55  ;;  %v624_v7 = vmul.f32 %v953_v1, %v1128_v55 }
  0xde   : > { %v354_v8 = vpop.f32.mrf.mxu0  ;;  %v561_v9 = vpop.f32.mrf.mxu1  ;;  %v444_v17 = vadd.f32 %v1133_v57, %v421_v4  ;;  %v462_v32 = vmax.f32 %v446_v16, 0.0 }
  0xdf   : > { %704 = vst.msk [vmem:[#allocation2 + $0x28] sm:$0xff] %vm669_vm3, %v655_v3  ;;  %v653_v10 = vmax.f32 %v637_v5, 0.0  ;;  %v422_v11 = vmul.f32 %v1128_v55, %v354_v8  ;;  %v640_v12 = vadd.f32 %v1133_v57, %v624_v7  ;;  %v622_v13 = vmul.f32 %v1128_v55, %v561_v9 }
  0xe0   : > { %v936_v14 = vpop.f32.mrf.mxu0  ;;  %v956_v15 = vpop.f32.mrf.mxu1  ;;  %v447_v18 = vadd.f32 %v1133_v57, %v424_v6  ;;  %v460_v33 = vmax.f32 %v444_v17, 0.0  ;;  %v736_v50 = vmax.f32 %v462_v32, %v655_v3 }
  0xe1   : > { %702 = vst.msk [vmem:[#allocation2 + $0x8] sm:$0xff] %vm669_vm3, %v653_v10  ;;  %v627_v19 = vmul.f32 %v956_v15, %v1128_v55  ;;  %v656_v20 = vmax.f32 %v640_v12, 0.0  ;;  %v638_v21 = vadd.f32 %v1133_v57, %v622_v13  ;;  %v445_v24 = vadd.f32 %v1133_v57, %v422_v11 }
  0xe2   : > { %v367_v22 = vpop.f32.mrf.mxu0  ;;  %v574_v23 = vpop.f32.mrf.mxu1  ;;  %v427_v25 = vmul.f32 %v936_v14, %v1128_v55  ;;  %v463_v34 = vmax.f32 %v447_v18, 0.0  ;;  %v734_v51 = vmax.f32 %v460_v33, %v653_v10 }
  0xe3   : > { %v1156_v26 = vadd.f32 %v1133_v57, %v627_v19  ;;  %v425_v27 = vmul.f32 %v1128_v55, %v367_v22  ;;  %705 = vst.msk [vmem:[#allocation2 + $0x38] sm:$0xff] %vm669_vm3, %v656_v20  ;;  %v654_v28 = vmax.f32 %v638_v21, 0.0  ;;  %v625_v29 = vmul.f32 %v1128_v55, %v574_v23 }
  0xe4   : > { %v937_v30 = vpop.f32.mrf.mxu0  ;;  %v957_v31 = vpop.f32.mrf.mxu1  ;;  %v461_v42 = vmax.f32 %v445_v24, 0.0  ;;  %v1168_v43 = vadd.f32 %v1133_v57, %v427_v25  ;;  %v737_v52 = vmax.f32 %v463_v34, %v656_v20 }
  0xe5   : > { %v659_v35 = vmax.f32 %v1156_v26, 0.0  ;;  %703 = vst.msk [vmem:[#allocation2 + $0x18] sm:$0xff] %vm669_vm3, %v654_v28  ;;  %v448_v36 = vadd.f32 %v1133_v57, %v425_v27  ;;  %v641_v37 = vadd.f32 %v1133_v57, %v625_v29  ;;  %v428_v38 = vmul.f32 %v937_v30, %v1128_v55 }
  0xe6   : > { %v628_v39 = vmul.f32 %v957_v31, %v1128_v55  ;;  %v370_v40 = vpop.f32.mrf.mxu0  ;;  %v577_v41 = vpop.f32.mrf.mxu1  ;;  %v720_v54 = vld [vmem:[#allocation2 + $0x27] sm:$0xff]  ;;  %v735_v5 = vmax.f32 %v461_v42, %v654_v28  ;;  %v466_v6 = vmax.f32 %v1168_v43, 0.0 }
  0xe7   : > { %708 = vst.msk [vmem:[#allocation2 + $0x68] sm:$0xff] %vm669_vm3, %v659_v35  ;;  %v657_v44 = vmax.f32 %v641_v37, 0.0  ;;  %v426_v46 = vmul.f32 %v1128_v55, %v370_v40  ;;  %v626_v47 = vmul.f32 %v1128_v55, %v577_v41  ;;  %v464_v58 = vmax.f32 %v448_v36, 0.0 }
  0xe8   : > { %v1174_v45 = vadd.f32 %v1133_v57, %v628_v39  ;;  %v940_v48 = vpop.f32.mrf.mxu0  ;;  %v960_v49 = vpop.f32.mrf.mxu1  ;;  %v718_v56 = vld [vmem:[#allocation2 + $0x7] sm:$0xff]  ;;  %v451_v59 = vadd.f32 %v1133_v57, %v428_v38  ;;  %v752_v11 = vmax.f32 %v736_v50, %v720_v54 }
  0xe9   : > { %v631_v53 = vmul.f32 %v960_v49, %v1128_v55  ;;  %706 = vst.msk [vmem:[#allocation2 + $0x48] sm:$0xff] %vm669_vm3, %v657_v44  ;;  %v642_v61 = vadd.f32 %v1133_v57, %v626_v47  ;;  %v431_v0 = vmul.f32 %v940_v48, %v1128_v55  ;;  %v449_v7 = vadd.f32 %v1133_v57, %v426_v46 }
  0xea   : > { %v660_v60 = vmax.f32 %v1174_v45, 0.0  ;;  %v383_v62 = vpop.f32.mrf.mxu0  ;;  %v590_v63 = vpop.f32.mrf.mxu1  ;;  %v721_v4 = vld [vmem:[#allocation2 + $0x37] sm:$0xff]  ;;  %v750_v12 = vmax.f32 %v734_v51, %v718_v56  ;;  %v738_v17 = vmax.f32 %v464_v58, %v657_v44  ;;  %v467_v18 = vmax.f32 %v451_v59, 0.0 }
  0xeb   : > { %v1185_v1 = vadd.f32 %v1133_v57, %v631_v53  ;;  %v429_v2 = vmul.f32 %v1128_v55, %v383_v62  ;;  %v629_v3 = vmul.f32 %v1128_v55, %v590_v63  ;;  %v658_v8 = vmax.f32 %v642_v61, 0.0 }
  0xec   : > { %709 = vst.msk [vmem:[#allocation2 + $0x78] sm:$0xff] %vm669_vm3, %v660_v60  ;;  %v941_v9 = vpop.f32.mrf.mxu0  ;;  %v961_v10 = vpop.f32.mrf.mxu1  ;;  %v719_v13 = vld [vmem:[#allocation2 + $0x17] sm:$0xff]  ;;  %v753_v22 = vmax.f32 %v737_v52, %v721_v4  ;;  %v1203_v23 = vadd.f32 %v1133_v57, %v431_v0  ;;  %v465_v29 = vmax.f32 %v449_v7, 0.0  ;;  %v740_v47 = vmax.f32 %v466_v6, %v659_v35 }
  0xed   : > { %v663_v14 = vmax.f32 %v1185_v1, 0.0  ;;  %v645_v15 = vadd.f32 %v1133_v57, %v629_v3  ;;  %v751_v16 = vmax.f32 %v735_v5, %v719_v13  ;;  %707 = vst.msk [vmem:[#allocation2 + $0x58] sm:$0xff] %vm669_vm3, %v658_v8  ;;  %v632_v19 = vmul.f32 %v961_v10, %v1128_v55 }
  0xee   : > { %v386_v20 = vpop.f32.mrf.mxu0  ;;  %v593_v21 = vpop.f32.mrf.mxu1  ;;  %v452_v24 = vadd.f32 %v1133_v57, %v429_v2  ;;  %v724_v42 = vld [vmem:[#allocation2 + $0x67] sm:$0xff]  ;;  %v432_v44 = vmul.f32 %v941_v9, %v1128_v55  ;;  %v741_v48 = vmax.f32 %v467_v18, %v660_v60  ;;  %v739_v49 = vmax.f32 %v465_v29, %v658_v8 }
  0xef   : > { %712 = vst.msk [vmem:[#allocation2 + $0xa8] sm:$0xff] %vm669_vm3, %v663_v14  ;;  %v661_v25 = vmax.f32 %v645_v15, 0.0  ;;  %v766_v27 = vmax.f32 %v750_v12, %v751_v16  ;;  %v768_v28 = vmax.f32 %v751_v16, %v752_v11  ;;  %v1210_v30 = vadd.f32 %v1133_v57, %v632_v19 }
  0xf0   : > { %v944_v31 = vpop.f32.mrf.mxu0  ;;  %v964_v32 = vpop.f32.mrf.mxu1  ;;  %v722_v33 = vld [vmem:[#allocation2 + $0x47] sm:$0xff]  ;;  %v430_v34 = vmul.f32 %v1128_v55, %v386_v20  ;;  %v630_v36 = vmul.f32 %v1128_v55, %v593_v21  ;;  %v468_v43 = vmax.f32 %v452_v24, 0.0  ;;  %v470_v50 = vmax.f32 %v1203_v23, 0.0 }
  0xf1   : > { %710 = vst.msk [vmem:[#allocation2 + $0x88] sm:$0xff] %vm669_vm3, %v661_v25  ;;  %767 = vst.msk [vmem:[%s1200_s13] sm:$0xff] %vm669_vm3, %v766_v27  ;;  %v769_v37 = vmax.f32 %v768_v28, %v753_v22  ;;  %v754_v38 = vmax.f32 %v738_v17, %v722_v33  ;;  %v664_v39 = vmax.f32 %v1210_v30, 0.0  ;;  %v635_v46 = vmul.f32 %v964_v32, %v1128_v55 }
  0xf2   : > { %v399_v40 = vpop.f32.mrf.mxu0  ;;  %v606_v41 = vpop.f32.mrf.mxu1  ;;  %v646_v45 = vadd.f32 %v1133_v57, %v630_v36  ;;  %v453_v56 = vadd.f32 %v1133_v57, %v430_v34  ;;  %v756_v35 = vmax.f32 %v740_v47, %v724_v42  ;;  %v742_v63 = vmax.f32 %v468_v43, %v661_v25 }
  0xf3   : > { %894 = vst.msk [vmem:[%s1200_s13 + $0x8] sm:$0xff] %vm669_vm3, %v769_v37  ;;  %713 = vst.msk [vmem:[#allocation2 + $0xb8] sm:$0xff] %vm669_vm3, %v664_v39  ;;  %v725_v53 = vld [vmem:[#allocation2 + $0x77] sm:$0xff]  ;;  %v1231_v59 = vadd.f32 %v1133_v57, %v635_v46  ;;  %v433_v26 = vmul.f32 %v1128_v55, %v399_v40  ;;  %v772_v60 = vmax.f32 %v753_v22, %v754_v38 }
  0xf4   : > { %v945_v51 = vpop.f32.mrf.mxu0  ;;  %v965_v52 = vpop.f32.mrf.mxu1  ;;  %v723_v54 = vld [vmem:[#allocation2 + $0x57] sm:$0xff]  ;;  %v662_v58 = vmax.f32 %v646_v45, 0.0  ;;  %v633_v62 = vmul.f32 %v1128_v55, %v606_v41  ;;  %v455_v0 = vadd.f32 %v1133_v57, %v432_v44  ;;  %v757_v6 = vmax.f32 %v741_v48, %v725_v53 }
  0xf5   : > { %v755_v61 = vmax.f32 %v739_v49, %v723_v54  ;;  %v667_v2 = vmax.f32 %v1231_v59, 0.0  ;;  %v636_v3 = vmul.f32 %v965_v52, %v1128_v55  ;;  %v469_v11 = vmax.f32 %v453_v56, 0.0 }
  0xf6   : > { %711 = vst.msk [vmem:[#allocation2 + $0x98] sm:$0xff] %vm669_vm3, %v662_v58  ;;  %v402_v4 = vpop.f32.mrf.mxu0  ;;  %v609_v5 = vpop.f32.mrf.mxu1  ;;  %v649_v10 = vadd.f32 %v1133_v57, %v633_v62  ;;  %v435_v12 = vmul.f32 %v944_v31, %v1128_v55  ;;  %v456_v13 = vadd.f32 %v1133_v57, %v433_v26  ;;  %v471_v21 = vmax.f32 %v455_v0, 0.0  ;;  %v728_v23 = vld [vmem:[#allocation2 + $0xa7] sm:$0xff] }
  0xf7   : > { %v773_v7 = vmax.f32 %v772_v60, %v755_v61  ;;  %v776_v8 = vmax.f32 %v755_v61, %v756_v35  ;;  %716 = vst.msk [vmem:[#allocation2 + $0xe8] sm:$0xff] %vm669_vm3, %v667_v2  ;;  %v652_v15 = vadd.f32 %v1133_v57, %v636_v3  ;;  %v434_v18 = vmul.f32 %v1128_v55, %v402_v4 }
  0xf8   : > { %v726_v9 = vld [vmem:[#allocation2 + $0x87] sm:$0xff]  ;;  %v665_v17 = vmax.f32 %v649_v10, 0.0  ;;  %v634_v19 = vmul.f32 %v1128_v55, %v609_v5  ;;  %v436_v24 = vmul.f32 %v945_v51, %v1128_v55  ;;  %v744_v27 = vmax.f32 %v470_v50, %v663_v14 }
  0xf9   : > { %895 = vst.msk [vmem:[%s1200_s13 + $0x10] sm:$0xff] %vm669_vm3, %v773_v7  ;;  %v777_v16 = vmax.f32 %v776_v8, %v757_v6  ;;  %v758_v20 = vmax.f32 %v742_v63, %v726_v9  ;;  %v668_v22 = vmax.f32 %v652_v15, 0.0  ;;  %v743_v28 = vmax.f32 %v469_v11, %v662_v58 }
  0xfa   : > { %714 = vst.msk [vmem:[#allocation2 + $0xc8] sm:$0xff] %vm669_vm3, %v665_v17  ;;  %v650_v25 = vadd.f32 %v1133_v57, %v634_v19  ;;  %v729_v29 = vld [vmem:[#allocation2 + $0xb7] sm:$0xff]  ;;  %v458_v32 = vadd.f32 %v1133_v57, %v435_v12  ;;  %v472_v33 = vmax.f32 %v456_v13, 0.0  ;;  %v457_v34 = vadd.f32 %v1133_v57, %v434_v18 }
  0xfb   : > { %896 = vst.msk [vmem:[%s1200_s13 + $0x18] sm:$0xff] %vm669_vm3, %v777_v16  ;;  %717 = vst.msk [vmem:[#allocation2 + $0xf8] sm:$0xff] %vm669_vm3, %v668_v22  ;;  %v760_v37 = vmax.f32 %v744_v27, %v728_v23  ;;  %v780_v38 = vmax.f32 %v757_v6, %v758_v20  ;;  %v745_v55 = vmax.f32 %v471_v21, %v664_v39 }
  0xfc   : > { %v666_v36 = vmax.f32 %v650_v25, 0.0  ;;  %v459_v14 = vadd.f32 %v1133_v57, %v436_v24  ;;  %v474_v43 = vmax.f32 %v458_v32, 0.0  ;;  %v746_v44 = vmax.f32 %v472_v33, %v665_v17 }
  0xfd   : > { %v727_v31 = vld [vmem:[#allocation2 + $0x97] sm:$0xff]  ;;  %v761_v40 = vmax.f32 %v745_v55, %v729_v29  ;;  %v473_v45 = vmax.f32 %v457_v34, 0.0 }
  0xfe   : > { %v759_v1 = vmax.f32 %v743_v28, %v727_v31  ;;  %715 = vst.msk [vmem:[#allocation2 + $0xd8] sm:$0xff] %vm669_vm3, %v666_v36  ;;  %v475_v30 = vmax.f32 %v459_v14, 0.0  ;;  %v732_v39 = vld [vmem:[#allocation2 + $0xe7] sm:$0xff]  ;;  %v748_v57 = vmax.f32 %v474_v43, %v667_v2 }
  0xff   : > { %v747_v49 = vmax.f32 %v473_v45, %v666_v36 }
 0x100   : > { %v781_v41 = vmax.f32 %v780_v38, %v759_v1  ;;  %v784_v42 = vmax.f32 %v759_v1, %v760_v37  ;;  %v764_v52 = vmax.f32 %v748_v57, %v732_v39  ;;  %v749_v54 = vmax.f32 %v475_v30, %v668_v22 }
 0x101   : > { %v730_v47 = vld [vmem:[#allocation2 + $0xc7] sm:$0xff] }
 0x102   : > { %897 = vst.msk [vmem:[%s1200_s13 + $0x20] sm:$0xff] %vm669_vm3, %v781_v41  ;;  %v785_v46 = vmax.f32 %v784_v42, %v761_v40  ;;  %v762_v48 = vmax.f32 %v746_v44, %v730_v47  ;;  %v733_v50 = vld [vmem:[#allocation2 + $0xf7] sm:$0xff] }
 0x103   : > { %v765_v58 = vmax.f32 %v749_v54, %v733_v50 }
 0x104   : > { %898 = vst.msk [vmem:[%s1200_s13 + $0x28] sm:$0xff] %vm669_vm3, %v785_v46  ;;  %v788_v53 = vmax.f32 %v761_v40, %v762_v48 }
 0x105   : > { %v731_v51 = vld [vmem:[#allocation2 + $0xd7] sm:$0xff] }
 0x106   : > { %v763_v56 = vmax.f32 %v747_v49, %v731_v51 }
 0x108   : > { %v789_v59 = vmax.f32 %v788_v53, %v763_v56  ;;  %v792_v26 = vmax.f32 %v763_v56, %v764_v52 }
 0x10a   : > { %899 = vst.msk [vmem:[%s1200_s13 + $0x30] sm:$0xff] %vm669_vm3, %v789_v59  ;;  %v793_v35 = vmax.f32 %v792_v26, %v765_v58 }
 0x10c   : > { %900 = vst.msk [vmem:[%s1200_s13 + $0x38] sm:$0xff] %vm669_vm3, %v793_v35 }
 0x10d PF: > { %s15_s18 = sadd.s32 1, %s984_s18  }
 0x10e   : > { %p12_p4 = scmp.ge.s32.totalorder %s15_s18, 4  }
 0x110   :  { %14 = sbr.rel (!%p12_p4) target bundleno = 1 (0x1), region = 80 }

// kernel: resnet_front_forward.6
= control target key start
LH: loop header
LB: loop body
LE: loop exit
PB: predicated region body
PF: predicated region fallthrough
CT: control target
= control target key end

     0   :  { %s4212_s24 = smov 0   ;;  %s5168_s0 = inlined_call_operand.vmem [shape: f32[2,8,8,64], index: 0, kind: input, shape index: {}]   ;;  %s5169_s1 = inlined_call_operand.vmem [shape: bf16[3,3,64,64], index: 1, kind: input, shape index: {}]   ;;  %s5170_s2 = inlined_call_operand.vmem [shape: f32[1,64], index: 2, kind: input, shape index: {}]   ;;  %s5171_s3 = inlined_call_operand.vmem [shape: f32[1,64], index: 3, kind: input, shape index: {}]   ;;  %s5172_s4 = inlined_call_operand.vmem [shape: bf16[3,3,64,64], index: 4, kind: input, shape index: {}]   ;;  %s5173_s5 = inlined_call_operand.vmem [shape: f32[1,64], index: 5, kind: input, shape index: {}]   ;;  %s5174_s6 = inlined_call_operand.vmem [shape: f32[1,64], index: 6, kind: input, shape index: {}]   ;;  %s5175_s7 = inlined_call_operand.vmem [shape: f32[2,8,8,64], index: 7, kind: output, shape index: {}]  }
   0x1 LB: > { %s3361_s25 = sadd.s32 4294967295, %s4169_s24   ;;  %p3365_p0 = scmp.ge.s32.totalorder %s4169_s24, 1  ;;  %s4169_s24 = sphi %s4212_s24, %s17_s24  }
   0x2   : > { %p237_p1 = scmp.lt.s32.totalorder %s4169_s24, 3 }
   0x4   : > { %p238_p2 = pnand %p3365_p0, %p237_p1 }
   0x6   : > { %241 = sbr.rel (%p238_p2) target bundleno = 616 (0x268), region = 48 }
   0xb   : > { %v4091_v0 = vld [vmem:[%s5169_s1 + $0x38] sm:$0xff]   ;;  %p269_p3 = scmp.lt.s32.totalorder %s3361_s25, 1  ;;  %vm288_vm0 = vcmask 523264   ;;  %v4229_v2 = vld [vmem:[%s5169_s1 + $0x30] sm:$0xff]   ;;  %v4242_v4 = vld [vmem:[%s5169_s1 + $0x28] sm:$0xff]   ;;  %v4171_v5 = vmov 0.0  }
   0xc   : > { %v4092_v1 = vld [vmem:[%s5169_s1 + $0x18] sm:$0xff]   ;;  %3794 = vmatprep.subr.bf16.mxu0 %v4091_v0  ;;  %v4236_v3 = vld [vmem:[%s5169_s1 + $0x10] sm:$0xff]   ;;  %290 = vst.msk [vmem:[#allocation2 + $0x8] sm:$0xff] %vm288_vm0, %v4171_v5  ;;  %294 = vst.msk [vmem:[#allocation2 + $0x20] sm:$0xff] %vm288_vm0, %v4171_v5  ;;  %vm291_vm1 = vcmask 516096   ;;  %vm369_vm2 = vcmask 1040384  }
   0xd   : > { %s5187_s25 = smov (!%p269_p3, %s3361_s25), 1  ;;  %3795 = vmatpush3.bf16.msra.mxu0 %v4091_v0  ;;  %3810 = vmatprep.subr.bf16.mxu1 %v4092_v1  ;;  %289 = vst.msk [vmem:[#allocation2] sm:$0xff] %vm288_vm0, %v4171_v5  ;;  %293 = vst.msk [vmem:[#allocation2 + $0x18] sm:$0xff] %vm288_vm0, %v4171_v5  ;;  %v4096_v6 = vld [vmem:[%s5169_s1 + $0x8] sm:$0xff]   ;;  %v4097_v7 = vld [vmem:[%s5169_s1 + $0x20] sm:$0xff]   ;;  %vm637_vm3 = vcmask 1046528  }
   0xe   : > { %3811 = vmatpush3.bf16.msra.mxu1 %v4092_v1  ;;  %3796 = vmatprep.subr.bf16.mxu0 %v4229_v2  ;;  %s3648_s13 = sshll.u32 %s5187_s25, 6  ;;  %296 = vst.msk [vmem:[#allocation2 + $0x30] sm:$0xff] %vm288_vm0, %v4171_v5  ;;  %297 = vst.msk [vmem:[#allocation2 + $0x38] sm:$0xff] %vm288_vm0, %v4171_v5  ;;  %v4098_v11 = vld [vmem:[%s5169_s1] sm:$0xff]   ;;  %v4099_v14 = vld [vmem:[%s5169_s1 + $0x58] sm:$0xff]  }
   0xf   : > { %299 = vst.msk [vmem:[#allocation2 + $0x48] sm:$0xff] %vm288_vm0, %v4171_v5  ;;  %300 = vst.msk [vmem:[#allocation2 + $0x50] sm:$0xff] %vm288_vm0, %v4171_v5  ;;  %3812 = vmatprep.subr.bf16.mxu1 %v4236_v3  ;;  %s4334_s18 = scalar_lea.vmem %s5168_s0, %s3648_s13  ;;  %v4100_v20 = vld [vmem:[%s5169_s1 + $0x78] sm:$0xff]   ;;  %v4101_v38 = vld [vmem:[%s5169_s1 + $0x50] sm:$0xff]   ;;  %s5130_s30 = scalar_lea.vmem %s5175_s7, %s3648_s13 }
  0x10   : > { %302 = vst.msk [vmem:[#allocation2 + $0x60] sm:$0xff] %vm288_vm0, %v4171_v5  ;;  %303 = vst.msk [vmem:[#allocation2 + $0x68] sm:$0xff] %vm288_vm0, %v4171_v5  ;;  %v280_v8 = vld [vmem:[%s4334_s18] sm:$0xff]  ;;  %v281_v9 = vld [vmem:[%s4334_s18 + $0x8] sm:$0xff] }
  0x11   : > { %305 = vst.msk [vmem:[#allocation2 + $0x78] sm:$0xff] %vm288_vm0, %v4171_v5  ;;  %306 = vst.msk [vmem:[#allocation2 + $0x80] sm:$0xff] %vm288_vm0, %v4171_v5  ;;  %3797 = vmatpush3.bf16.msra.mxu0 %v4229_v2  ;;  %v282_v10 = vld [vmem:[%s4334_s18 + $0x10] sm:$0xff]  ;;  %v283_v33 = vld [vmem:[%s4334_s18 + $0x18] sm:$0xff] }
  0x12   : > { %308 = vst.msk [vmem:[#allocation2 + $0x90] sm:$0xff] %vm288_vm0, %v4171_v5  ;;  %309 = vst.msk [vmem:[#allocation2 + $0x98] sm:$0xff] %vm288_vm0, %v4171_v5  ;;  %3813 = vmatpush3.bf16.msra.mxu1 %v4236_v3  ;;  %3798 = vmatprep.subr.bf16.mxu0 %v4242_v4  ;;  %v284_v34 = vld [vmem:[%s4334_s18 + $0x20] sm:$0xff]  ;;  %v285_v39 = vld [vmem:[%s4334_s18 + $0x28] sm:$0xff] }
  0x13   : > { %311 = vst.msk [vmem:[#allocation2 + $0xa8] sm:$0xff] %vm288_vm0, %v4171_v5  ;;  %312 = vst.msk [vmem:[#allocation2 + $0xb0] sm:$0xff] %vm288_vm0, %v4171_v5  ;;  %3814 = vmatprep.subr.bf16.mxu1 %v4096_v6  ;;  %v4392_v12 = vld [vmem:[#allocation2 + $0x8] sm:$0xff]  ;;  %v286_v40 = vld [vmem:[%s4334_s18 + $0x30] sm:$0xff] }
  0x14   : > { %314 = vst.msk [vmem:[#allocation2 + $0xc0] sm:$0xff] %vm288_vm0, %v4171_v5  ;;  %315 = vst.msk [vmem:[#allocation2 + $0xc8] sm:$0xff] %vm288_vm0, %v4171_v5  ;;  %v329_v13 = vld [vmem:[#allocation2] sm:$0xff]  ;;  %v332_v15 = vld [vmem:[#allocation2 + $0x18] sm:$0xff]  ;;  %v371_v17 = vrot.slane %v4392_v12, 7  ;;  %v638_v35 = vrot.slane %v4392_v12, 1 }
  0x15   : > { %317 = vst.msk [vmem:[#allocation2 + $0xd8] sm:$0xff] %vm288_vm0, %v4171_v5  ;;  %318 = vst.msk [vmem:[#allocation2 + $0xe0] sm:$0xff] %vm288_vm0, %v4171_v5  ;;  %3799 = vmatpush3.bf16.msra.mxu0 %v4242_v4  ;;  %v335_v16 = vld [vmem:[#allocation2 + $0x30] sm:$0xff]  ;;  %v370_v18 = vrot.slane %v329_v13, 7  ;;  %v373_v22 = vrot.slane %v332_v15, 7  ;;  %v4103_v50 = vld [vmem:[%s5169_s1 + $0x48] sm:$0xff]  }
  0x16   : > { %1787 = vst.msk [vmem:[#allocation3] sm:$0xff] %vm288_vm0, %v4171_v5  ;;  %1788 = vst.msk [vmem:[#allocation3 + $0x8] sm:$0xff] %vm288_vm0, %v4171_v5  ;;  %3815 = vmatpush3.bf16.msra.mxu1 %v4096_v6  ;;  %3800 = vmatprep.subr.bf16.mxu0 %v4097_v7  ;;  %v338_v19 = vld [vmem:[#allocation2 + $0x48] sm:$0xff]  ;;  %v376_v23 = vrot.slane %v335_v16, 7  ;;  %v4102_v49 = vld [vmem:[%s5169_s1 + $0x70] sm:$0xff]  }
  0x17   : > { %1790 = vst.msk [vmem:[#allocation3 + $0x18] sm:$0xff] %vm288_vm0, %v4171_v5  ;;  %1791 = vst.msk [vmem:[#allocation3 + $0x20] sm:$0xff] %vm288_vm0, %v4171_v5  ;;  %3816 = vmatprep.subr.bf16.mxu1 %v4098_v11  ;;  %v379_v27 = vrot.slane %v338_v19, 7  ;;  %v372_v32 = vsel %vm369_vm2, %v370_v18, %v371_v17  ;;  %v341_v44 = vld [vmem:[#allocation2 + $0x60] sm:$0xff]  ;;  %v4104_v60 = vld [vmem:[%s5169_s1 + $0x68] sm:$0xff]  }
  0x18   : > { %1793 = vst.msk [vmem:[#allocation3 + $0x30] sm:$0xff] %vm288_vm0, %v4171_v5  ;;  %1794 = vst.msk [vmem:[#allocation3 + $0x38] sm:$0xff] %vm288_vm0, %v4171_v5  ;;  %v344_v51 = vld [vmem:[#allocation2 + $0x78] sm:$0xff]  ;;  %v382_v57 = vrot.slane %v341_v44, 7 }
  0x19   : > { %1796 = vst.msk [vmem:[#allocation3 + $0x48] sm:$0xff] %vm288_vm0, %v4171_v5  ;;  %1797 = vst.msk [vmem:[#allocation3 + $0x50] sm:$0xff] %vm288_vm0, %v4171_v5  ;;  %3801 = vmatpush3.bf16.msra.mxu0 %v4097_v7  ;;  %v347_v55 = vld [vmem:[#allocation2 + $0x90] sm:$0xff]  ;;  %v385_v58 = vrot.slane %v344_v51, 7 }
  0x1a   : > { %1799 = vst.msk [vmem:[#allocation3 + $0x60] sm:$0xff] %vm288_vm0, %v4171_v5  ;;  %1800 = vst.msk [vmem:[#allocation3 + $0x68] sm:$0xff] %vm288_vm0, %v4171_v5  ;;  %3817 = vmatpush3.bf16.msra.mxu1 %v4098_v11  ;;  %3826 = vmatprep.subr.bf16.mxu0 %v4099_v14  ;;  %v350_v56 = vld [vmem:[#allocation2 + $0xa8] sm:$0xff]  ;;  %v388_v59 = vrot.slane %v347_v55, 7 }
  0x1b   : > { %1802 = vst.msk [vmem:[#allocation3 + $0x78] sm:$0xff] %vm288_vm0, %v4171_v5  ;;  %1803 = vst.msk [vmem:[#allocation3 + $0x80] sm:$0xff] %vm288_vm0, %v4171_v5  ;;  %3842 = vmatprep.subr.bf16.mxu1 %v4100_v20  ;;  %v391_v1 = vrot.slane %v350_v56, 7  ;;  %v813_v56 = vld [vmem:[#allocation2 + $0xc0] sm:$0xff] }
  0x1c   : > { %1805 = vst.msk [vmem:[#allocation3 + $0x90] sm:$0xff] %vm288_vm0, %v4171_v5  ;;  %1806 = vst.msk [vmem:[#allocation3 + $0x98] sm:$0xff] %vm288_vm0, %v4171_v5 }
  0x1d   : > { %1808 = vst.msk [vmem:[#allocation3 + $0xa8] sm:$0xff] %vm288_vm0, %v4171_v5  ;;  %1809 = vst.msk [vmem:[#allocation3 + $0xb0] sm:$0xff] %vm288_vm0, %v4171_v5 }
  0x1e   : > { %1811 = vst.msk [vmem:[#allocation3 + $0xc0] sm:$0xff] %vm288_vm0, %v4171_v5  ;;  %1812 = vst.msk [vmem:[#allocation3 + $0xc8] sm:$0xff] %vm288_vm0, %v4171_v5 }
  0x1f   : > { %1814 = vst.msk [vmem:[#allocation3 + $0xd8] sm:$0xff] %vm288_vm0, %v4171_v5  ;;  %1815 = vst.msk [vmem:[#allocation3 + $0xe0] sm:$0xff] %vm288_vm0, %v4171_v5 }
  0x20   : > { %298 = vst.msk [vmem:[#allocation2 + $0x40] sm:$0x1] %vm291_vm1, %v4171_v5  ;;  %301 = vst.msk [vmem:[#allocation2 + $0x58] sm:$0x1] %vm291_vm1, %v4171_v5 }
  0x21   : > { %292 = vst.msk [vmem:[#allocation2 + $0x10] sm:$0x1] %vm291_vm1, %v4171_v5  ;;  %295 = vst.msk [vmem:[#allocation2 + $0x28] sm:$0x1] %vm291_vm1, %v4171_v5 }
  0x22   : > { %304 = vst.msk [vmem:[#allocation2 + $0x70] sm:$0x1] %vm291_vm1, %v4171_v5  ;;  %307 = vst.msk [vmem:[#allocation2 + $0x88] sm:$0x1] %vm291_vm1, %v4171_v5 }
  0x23   : > { %310 = vst.msk [vmem:[#allocation2 + $0xa0] sm:$0x1] %vm291_vm1, %v4171_v5  ;;  %313 = vst.msk [vmem:[#allocation2 + $0xb8] sm:$0x1] %vm291_vm1, %v4171_v5 }
  0x24   : > { %316 = vst.msk [vmem:[#allocation2 + $0xd0] sm:$0x1] %vm291_vm1, %v4171_v5  ;;  %319 = vst.msk [vmem:[#allocation2 + $0xe8] sm:$0x1] %vm291_vm1, %v4171_v5 }
  0x25   : > { %1789 = vst.msk [vmem:[#allocation3 + $0x10] sm:$0x1] %vm291_vm1, %v4171_v5  ;;  %1792 = vst.msk [vmem:[#allocation3 + $0x28] sm:$0x1] %vm291_vm1, %v4171_v5 }
  0x26   : > { %1795 = vst.msk [vmem:[#allocation3 + $0x40] sm:$0x1] %vm291_vm1, %v4171_v5  ;;  %1798 = vst.msk [vmem:[#allocation3 + $0x58] sm:$0x1] %vm291_vm1, %v4171_v5 }
  0x27   : > { %1801 = vst.msk [vmem:[#allocation3 + $0x70] sm:$0x1] %vm291_vm1, %v4171_v5  ;;  %1804 = vst.msk [vmem:[#allocation3 + $0x88] sm:$0x1] %vm291_vm1, %v4171_v5  ;;  %v4401_v21 = vld [vmem:[#allocation2 + $0x40] sm:$0x1] }
  0x28   : > { %1807 = vst.msk [vmem:[#allocation3 + $0xa0] sm:$0x1] %vm291_vm1, %v4171_v5  ;;  %1810 = vst.msk [vmem:[#allocation3 + $0xb8] sm:$0x1] %vm291_vm1, %v4171_v5  ;;  %v4412_v30 = vld [vmem:[#allocation2 + $0x58] sm:$0x1] }
  0x29   : > { %1813 = vst.msk [vmem:[#allocation3 + $0xd0] sm:$0x1] %vm291_vm1, %v4171_v5  ;;  %1816 = vst.msk [vmem:[#allocation3 + $0xe8] sm:$0x1] %vm291_vm1, %v4171_v5  ;;  %v645_v41 = vrot.slane %v4401_v21, 1  ;;  %v648_v46 = vrot.slane %v4412_v30, 1 }
  0x2a   : > { %321 = vst.msk [vmem:[#allocation2 + $0x20] sm:$0xff] %vm288_vm0, %v280_v8  ;;  %322 = vst.msk [vmem:[#allocation2 + $0x38] sm:$0xff] %vm288_vm0, %v281_v9  ;;  %v331_v61 = vld [vmem:[#allocation2 + $0x10] sm:$0x1]  ;;  %v334_v62 = vld [vmem:[#allocation2 + $0x28] sm:$0x1] }
  0x2b   : > { %323 = vst.msk [vmem:[#allocation2 + $0x50] sm:$0xff] %vm288_vm0, %v282_v10  ;;  %324 = vst.msk [vmem:[#allocation2 + $0x68] sm:$0xff] %vm288_vm0, %v283_v33  ;;  %v639_v2 = vrot.slane %v331_v61, 1  ;;  %v642_v8 = vrot.slane %v334_v62, 1  ;;  %v4107_v30 = vld [vmem:[%s5169_s1 + $0x98] sm:$0xff]   ;;  %v4111_v62 = vld [vmem:[%s5169_s1 + $0x88] sm:$0xff]  }
  0x2c   : > { %325 = vst.msk [vmem:[#allocation2 + $0x80] sm:$0xff] %vm288_vm0, %v284_v34  ;;  %326 = vst.msk [vmem:[#allocation2 + $0x98] sm:$0xff] %vm288_vm0, %v285_v39  ;;  %v346_v33 = vld [vmem:[#allocation2 + $0x88] sm:$0x1]  ;;  %v349_v34 = vld [vmem:[#allocation2 + $0xa0] sm:$0x1] }
  0x2d   : > { %327 = vst.msk [vmem:[#allocation2 + $0xb0] sm:$0xff] %vm288_vm0, %v286_v40  ;;  %v654_v39 = vrot.slane %v346_v33, 1  ;;  %v352_v40 = vld [vmem:[#allocation2 + $0xb8] sm:$0x1]  ;;  %v794_v61 = vld [vmem:[#allocation2 + $0x28] sm:$0x1] }
  0x31   : > { %v4403_v24 = vld [vmem:[#allocation2 + $0x20] sm:$0xff]  ;;  %v4405_v25 = vld [vmem:[#allocation2 + $0x38] sm:$0xff] }
  0x32   : > { %v4407_v26 = vld [vmem:[#allocation2 + $0x50] sm:$0xff]  ;;  %v374_v28 = vrot.slane %v4403_v24, 7  ;;  %v414_v29 = vpack.c.bf16 %v4403_v24, %v4392_v12  ;;  %v377_v31 = vrot.slane %v4405_v25, 7  ;;  %v641_v45 = vrot.slane %v4403_v24, 1  ;;  %v4471_v63 = vld [vmem:[#allocation2 + $0x68] sm:$0xff] }
  0x33   : > { %v380_v36 = vrot.slane %v4407_v26, 7  ;;  %v4422_v37 = vpack.c.bf16 %v4407_v26, %v4405_v25  ;;  %v4456_v52 = vrot.slane %v4405_v25, 1  ;;  %v4459_v53 = vrot.slane %v4407_v26, 1  ;;  %v4473_v0 = vld [vmem:[#allocation2 + $0x80] sm:$0xff]  ;;  %v4481_v6 = vld [vmem:[#allocation2 + $0x98] sm:$0xff] }
  0x34   : > { %3802 = vmatprep.mubr.msk.bf16.mxu0 %vm288_vm0, %v414_v29  ;;  %v4434_v42 = vsel %vm369_vm2, %v373_v22, %v374_v28  ;;  %v4437_v43 = vsel %vm369_vm2, %v376_v23, %v377_v31  ;;  %v383_v3 = vrot.slane %v4471_v63, 7  ;;  %v386_v4 = vrot.slane %v4473_v0, 7  ;;  %v4483_v7 = vld [vmem:[#allocation2 + $0xb0] sm:$0xff]  ;;  %v4106_v22 = vld [vmem:[%s5169_s1 + $0x60] sm:$0xff]  }
  0x35   : > { %3803 = vmatmul.mubr.msk.bf16.vlgmr.msra.gmra.mxu0 %vm288_vm0, %v4422_v37  ;;  %v402_v47 = vpack.c.bf16 %v4434_v42, %v372_v32  ;;  %v4447_v48 = vsel %vm369_vm2, %v379_v27, %v380_v36  ;;  %v4479_v5 = vpack.c.bf16 %v4473_v0, %v4471_v63  ;;  %v646_v9 = vsel %vm637_vm3, %v4456_v52, %v645_v41  ;;  %v343_v12 = vld [vmem:[#allocation2 + $0x70] sm:$0x1]  ;;  %v4108_v36 = vld [vmem:[%s5169_s1 + $0xb8] sm:$0xff]  }
  0x36   : > { %3827 = vmatpush3.bf16.msra.mxu0 %v4099_v14  ;;  %v4463_v54 = vpack.c.bf16 %v4447_v48, %v4437_v43  ;;  %v389_v10 = vrot.slane %v4481_v6, 7  ;;  %v392_v11 = vrot.slane %v4483_v7, 7  ;;  %v4491_v13 = vpack.c.bf16 %v4483_v7, %v4481_v6  ;;  %v4105_v14 = vld [vmem:[%s5169_s1 + $0x40] sm:$0xff]  }
  0x37   : > { %3818 = vmatprep.mubr.msk.bf16.mxu1 %vm288_vm0, %v402_v47  ;;  %3828 = vmatprep.subr.bf16.mxu0 %v4101_v38  ;;  %v649_v15 = vsel %vm637_vm3, %v4459_v53, %v648_v46  ;;  %v4501_v16 = vsel %vm369_vm2, %v382_v57, %v383_v3  ;;  %v4504_v17 = vsel %vm369_vm2, %v385_v58, %v386_v4  ;;  %v4507_v18 = vrot.slane %v4471_v63, 1  ;;  %v4110_v58 = vld [vmem:[%s5169_s1 + $0xb0] sm:$0xff]   ;;  %v800_v4 = vld [vmem:[#allocation2 + $0x58] sm:$0x1] }
  0x38   : > { %3819 = vmatmul.mubr.msk.bf16.vlgmr.msra.gmra.mxu1 %vm288_vm0, %v4463_v54  ;;  %3806 = vmatprep.mubr.msk.bf16.mxu0 %vm288_vm0, %v4479_v5  ;;  %v4513_v19 = vpack.c.bf16 %v4504_v17, %v4501_v16  ;;  %v4517_v21 = vsel %vm369_vm2, %v391_v1, %v392_v11  ;;  %v4523_v23 = vrot.slane %v4473_v0, 1  ;;  %v640_v28 = vsel %vm637_vm3, %v638_v35, %v639_v2 }
  0x39   : > { %3843 = vmatpush3.bf16.msra.mxu1 %v4100_v20  ;;  %v390_v20 = vsel %vm369_vm2, %v388_v59, %v389_v10  ;;  %v643_v29 = vsel %vm637_vm3, %v641_v45, %v642_v8  ;;  %v864_v32 = vpack.c.bf16 %v4437_v43, %v4434_v42  ;;  %v4542_v35 = vrot.slane %v4481_v6, 1  ;;  %v287_v43 = vld [vmem:[%s4334_s18 + $0x38] sm:$0xff]  ;;  %v803_v10 = vld [vmem:[#allocation2 + $0x70] sm:$0x1] }
  0x3a   : > { %3829 = vmatpush3.bf16.msra.mxu0 %v4101_v38  ;;  %3844 = vmatprep.subr.bf16.mxu1 %v4102_v49  ;;  %v4526_v27 = vpack.c.bf16 %v4517_v21, %v390_v20  ;;  %v670_v31 = vpack.c.bf16 %v643_v29, %v640_v28  ;;  %v651_v38 = vrot.slane %v343_v12, 1  ;;  %v4550_v41 = vrot.slane %v4483_v7, 1  ;;  %328 = vst.msk [vmem:[#allocation2 + $0xc8] sm:$0xff] %vm288_vm0, %v287_v43  ;;  %v806_v28 = vld [vmem:[#allocation2 + $0x88] sm:$0x1] }
  0x3b   : > { %3830 = vmatprep.subr.bf16.mxu0 %v4103_v50  ;;  %3822 = vmatprep.mubr.msk.bf16.mxu1 %vm288_vm0, %v4513_v19  ;;  %v671_v42 = vpack.c.bf16 %v649_v15, %v646_v9  ;;  %v655_v46 = vsel %vm637_vm3, %v4523_v23, %v654_v39  ;;  %v657_v47 = vrot.slane %v349_v34, 1  ;;  %v865_v55 = vpack.c.bf16 %v4501_v16, %v4447_v48  ;;  %v797_v48 = vld [vmem:[#allocation2 + $0x40] sm:$0x1]  ;;  %v815_v39 = vld [vmem:[#allocation2 + $0xd0] sm:$0x1] }
  0x3c   : > { %v652_v44 = vsel %vm637_vm3, %v4507_v18, %v651_v38  ;;  %v866_v57 = vpack.c.bf16 %v390_v20, %v4504_v17  ;;  %v853_v1 = vrot.slane %v813_v56, 7  ;;  %v1117_v2 = vrot.slane %v794_v61, 1  ;;  %v4113_v17 = vld [vmem:[%s5169_s1 + $0x80] sm:$0xff]  }
  0x3d   : > { %3845 = vmatpush3.bf16.msra.mxu1 %v4102_v49  ;;  %3807 = vmatmul.mubr.msk.bf16.gmra.mxu0 %vm288_vm0, %v4491_v13  ;;  %v660_v49 = vrot.slane %v352_v40, 1  ;;  %v672_v51 = vpack.c.bf16 %v655_v46, %v652_v44  ;;  %v658_v59 = vsel %vm637_vm3, %v4542_v35, %v657_v47  ;;  %v1120_v3 = vrot.slane %v797_v48, 1  ;;  %v4116_v40 = vld [vmem:[%s5169_s1 + $0xf8] sm:$0xff]   ;;  %v4118_v47 = vld [vmem:[%s5169_s1 + $0xf0] sm:$0xff]   ;;  %v4634_v56 = vld [vmem:[#allocation2 + $0xe0] sm:$0xff] }
  0x3e   : > { %3846 = vmatprep.subr.bf16.mxu1 %v4104_v60  ;;  %3831 = vmatpush3.bf16.msra.mxu0 %v4103_v50  ;;  %v4109_v50 = vld [vmem:[%s5169_s1 + $0x90] sm:$0xff]   ;;  %v1118_v15 = vsel %vm637_vm3, %v641_v45, %v1117_v2  ;;  %v986_v20 = vpack.c.bf16 %v4405_v25, %v4403_v24  ;;  %v4114_v24 = vld [vmem:[%s5169_s1 + $0xa0] sm:$0xff]   ;;  %v4115_v25 = vld [vmem:[%s5169_s1 + $0xd8] sm:$0xff]   ;;  %v1129_v12 = vrot.slane %v806_v28, 1  ;;  %v987_v34 = vpack.c.bf16 %v4471_v63, %v4407_v26 }
  0x3f   : > { %3832 = vmatprep.subr.bf16.mxu0 %v4105_v14  ;;  %3834 = vmatprep.mubr.msk.bf16.mxu0 %vm288_vm0, %v670_v31  ;;  %v1121_v16 = vsel %vm637_vm3, %v4456_v52, %v1120_v3  ;;  %v1126_v31 = vrot.slane %v803_v10, 1  ;;  %v4117_v63 = vld [vmem:[%s5169_s1 + $0xd0] sm:$0xff]   ;;  %v988_v43 = vpack.c.bf16 %v4481_v6, %v4473_v0  ;;  %v1276_v0 = vld [vmem:[#allocation2 + $0x58] sm:$0x1]  ;;  %v4119_v6 = vld [vmem:[%s5169_s1 + $0xc8] sm:$0xff]  }
  0x40   : > { %3823 = vmatmul.mubr.msk.bf16.gmra.mxu1 %vm288_vm0, %v4526_v27  ;;  %v1148_v29 = vpack.c.bf16 %v1121_v16, %v1118_v15  ;;  %v1288_v2 = vld [vmem:[#allocation2 + $0xb8] sm:$0x1]  ;;  %v4120_v3 = vld [vmem:[%s5169_s1 + $0xe8] sm:$0xff]   ;;  %v1599_v10 = vrot.slane %v1276_v0, 1  ;;  %v4122_v28 = vld [vmem:[%s5169_s1 + $0xe0] sm:$0xff]  }
  0x41   : > { %3847 = vmatpush3.bf16.msra.mxu1 %v4104_v60  ;;  %3850 = vmatprep.mubr.msk.bf16.mxu1 %vm288_vm0, %v864_v32  ;;  %v661_v60 = vsel %vm637_vm3, %v4550_v41, %v660_v49  ;;  %v4580_v9 = vld [vmem:[#allocation2 + $0xc8] sm:$0xff]  ;;  %v809_v32 = vld [vmem:[#allocation2 + $0xa0] sm:$0x1]  ;;  %v1127_v38 = vsel %vm637_vm3, %v4507_v18, %v1126_v31 }
  0x42   : > { %3833 = vmatpush3.bf16.msra.mxu0 %v4105_v14  ;;  %3848 = vmatprep.subr.bf16.mxu1 %v4106_v22  ;;  %v673_v8 = vpack.c.bf16 %v661_v60, %v658_v59  ;;  %v854_v11 = vrot.slane %v4580_v9, 7  ;;  %v4112_v14 = vld [vmem:[%s5169_s1 + $0xa8] sm:$0xff]   ;;  %v1132_v33 = vrot.slane %v809_v32, 1  ;;  %v1137_v44 = vrot.slane %v4580_v9, 1 }
  0x43   : > { %3858 = vmatprep.subr.bf16.mxu0 %v4107_v30  ;;  %v4642_v59 = vld [vmem:[#allocation2 + $0x88] sm:$0x1]  ;;  %v989_v60 = vpack.c.bf16 %v4580_v9, %v4483_v7  ;;  %v4121_v7 = vld [vmem:[%s5169_s1 + $0xc0] sm:$0xff]   ;;  %v1600_v31 = vsel %vm637_vm3, %v4459_v53, %v1599_v10 }
  0x44   : > { %v1133_v26 = vsel %vm637_vm3, %v4542_v35, %v1132_v33  ;;  %v1605_v15 = vrot.slane %v4642_v59, 1 }
  0x45   : > { %3849 = vmatpush3.bf16.msra.mxu1 %v4106_v22  ;;  %3835 = vmatmul.mubr.msk.bf16.vlgmr.msra.gmra.mxu0 %vm288_vm0, %v671_v42  ;;  %v4597_v22 = vsel %vm369_vm2, %v853_v1, %v854_v11  ;;  %v1130_v42 = vsel %vm637_vm3, %v4523_v23, %v1129_v12  ;;  %v1285_v1 = vld [vmem:[#allocation2 + $0xa0] sm:$0x1]  ;;  %v1616_v11 = vrot.slane %v4634_v56, 1 }
  0x46   : > { %3859 = vmatpush3.bf16.msra.mxu0 %v4107_v30  ;;  %3874 = vmatprep.subr.bf16.mxu1 %v4108_v36  ;;  %v867_v45 = vpack.c.bf16 %v4597_v22, %v4517_v21  ;;  %v1123_v30 = vrot.slane %v800_v4, 1  ;;  %v812_v21 = vld [vmem:[#allocation2 + $0xb8] sm:$0x1]  ;;  %v1333_v4 = vrot.slane %v4634_v56, 7  ;;  %v1608_v16 = vrot.slane %v1285_v1, 1 }
  0x47   : > { %3860 = vmatprep.subr.bf16.mxu0 %v4109_v50  ;;  %3838 = vmatprep.mubr.msk.bf16.mxu0 %vm288_vm0, %v672_v51  ;;  %v1135_v49 = vrot.slane %v812_v21, 1  ;;  %v1150_v51 = vpack.c.bf16 %v1133_v26, %v1130_v42  ;;  %v4133_v42 = vld [vmem:[%s5172_s4 + $0x20] sm:$0xff]  }
  0x48   : > { %3851 = vmatmul.mubr.msk.bf16.vlgmr.msra.gmra.mxu1 %vm288_vm0, %v865_v55  ;;  %v1292_v55 = vld [vmem:[#allocation2 + $0xd8] sm:$0xff]  ;;  %v4134_v26 = vld [vmem:[%s5172_s4] sm:$0xff]  }
  0x49   : > { %3875 = vmatpush3.bf16.msra.mxu1 %v4108_v36  ;;  %3854 = vmatprep.mubr.msk.bf16.mxu1 %vm288_vm0, %v866_v57  ;;  %v1124_v36 = vsel %vm637_vm3, %v4459_v53, %v1123_v30  ;;  %v1273_v57 = vld [vmem:[#allocation2 + $0x40] sm:$0x1]  ;;  %v1136_v61 = vsel %vm637_vm3, %v4550_v41, %v1135_v49  ;;  %v1291_v53 = vld [vmem:[#allocation2 + $0xd0] sm:$0x1] }
  0x4a   : > { %3861 = vmatpush3.bf16.msra.mxu0 %v4109_v50  ;;  %3876 = vmatprep.subr.bf16.mxu1 %v4110_v58  ;;  %v1149_v46 = vpack.c.bf16 %v1127_v38, %v1124_v36  ;;  %v1138_v50 = vrot.slane %v815_v39, 1  ;;  %v1614_v21 = vrot.slane %v1291_v53, 1  ;;  %v4128_v36 = vld [vmem:[%s5172_s4 + $0x18] sm:$0xff]   ;;  %v4130_v38 = vld [vmem:[%s5172_s4 + $0x10] sm:$0xff]   ;;  %v4131_v39 = vld [vmem:[%s5172_s4 + $0x28] sm:$0xff]  }
  0x4b   : > { %3862 = vmatprep.subr.bf16.mxu0 %v4111_v62 }
  0x4c   : > { %v1139_v48 = vsel %vm637_vm3, %v1137_v44, %v1138_v50 }
  0x4d   : > { %3877 = vmatpush3.bf16.msra.mxu1 %v4110_v58  ;;  %3839 = vmatmul.mubr.msk.bf16.gmra.mxu0 %vm288_vm0, %v673_v8  ;;  %v4640_v58 = vld [vmem:[#allocation2 + $0x70] sm:$0x1]  ;;  %v1596_v8 = vrot.slane %v1273_v57, 1 }
  0x4e   : > { %3863 = vmatpush3.bf16.msra.mxu0 %v4111_v62  ;;  %3878 = vmatprep.subr.bf16.mxu1 %v4112_v14  ;;  %v1332_v62 = vrot.slane %v1292_v55, 7 }
  0x4f   : > { %3864 = vmatprep.subr.bf16.mxu0 %v4113_v17  ;;  %3866 = vmatprep.mubr.msk.bf16.mxu0 %vm288_vm0, %v986_v20  ;;  %v1151_v20 = vpack.c.bf16 %v1139_v48, %v1136_v61  ;;  %v1597_v30 = vsel %vm637_vm3, %v4456_v52, %v1596_v8  ;;  %v1468_v52 = vpack.c.bf16 %v4634_v56, %v4580_v9  ;;  %v4129_v9 = vld [vmem:[%s5172_s4 + $0x30] sm:$0xff]  }
  0x50   : > { %3855 = vmatmul.mubr.msk.bf16.gmra.mxu1 %vm288_vm0, %v867_v45  ;;  %v4123_v45 = vld [vmem:[%s5169_s1 + $0x118] sm:$0xff]   ;;  %v1627_v32 = vpack.c.bf16 %v1600_v31, %v1597_v30 }
  0x51   : > { %3879 = vmatpush3.bf16.msra.mxu1 %v4112_v14  ;;  %3882 = vmatprep.mubr.msk.bf16.mxu1 %vm288_vm0, %v1148_v29  ;;  %v1602_v14 = vrot.slane %v4640_v58, 1  ;;  %v4124_v29 = vld [vmem:[%s5169_s1 + $0x110] sm:$0xff]  }
  0x52   : > { %3865 = vmatpush3.bf16.msra.mxu0 %v4113_v17  ;;  %3880 = vmatprep.subr.bf16.mxu1 %v4114_v24  ;;  %v1611_v17 = vrot.slane %v1288_v2, 1 }
  0x53   : > { %3890 = vmatprep.subr.bf16.mxu0 %v4115_v25 }
  0x55   : > { %3881 = vmatpush3.bf16.msra.mxu1 %v4114_v24  ;;  %3867 = vmatmul.mubr.msk.bf16.vlgmr.msra.gmra.mxu0 %vm288_vm0, %v987_v34  ;;  %v1294_v24 = vld [vmem:[#allocation2 + $0xe8] sm:$0x1] }
  0x56   : > { %3891 = vmatpush3.bf16.msra.mxu0 %v4115_v25  ;;  %3906 = vmatprep.subr.bf16.mxu1 %v4116_v40  ;;  %v1612_v25 = vsel %vm637_vm3, %v4550_v41, %v1611_v17  ;;  %v1617_v34 = vrot.slane %v1294_v24, 1  ;;  %v4127_v41 = vld [vmem:[%s5172_s4 + $0x38] sm:$0xff]  }
  0x57   : > { %3892 = vmatprep.subr.bf16.mxu0 %v4117_v63  ;;  %3870 = vmatprep.mubr.msk.bf16.mxu0 %vm288_vm0, %v988_v43  ;;  %v4751_v43 = vld [vmem:[%s5172_s4 + $0x78] sm:$0xff]  }
  0x58   : > { %3883 = vmatmul.mubr.msk.bf16.vlgmr.msra.gmra.mxu1 %vm288_vm0, %v1149_v46  ;;  %5179 = vst [vmem:[#allocation5_spill] sm:$0xff] %v4751_v43 }
  0x59   : > { %3907 = vmatpush3.bf16.msra.mxu1 %v4116_v40  ;;  %3886 = vmatprep.mubr.msk.bf16.mxu1 %vm288_vm0, %v1150_v51  ;;  %v4132_v40 = vld [vmem:[%s5172_s4 + $0x8] sm:$0xff]  }
  0x5a   : > { %3893 = vmatpush3.bf16.msra.mxu0 %v4117_v63  ;;  %3908 = vmatprep.subr.bf16.mxu1 %v4118_v47  ;;  %v4745_v63 = vld [vmem:[%s5172_s4 + $0x58] sm:$0xff]  }
  0x5b   : > { %3894 = vmatprep.subr.bf16.mxu0 %v4119_v6  ;;  %5178 = vst [vmem:[#allocation4_spill] sm:$0xff] %v4745_v63 }
  0x5d   : > { %3909 = vmatpush3.bf16.msra.mxu1 %v4118_v47  ;;  %3871 = vmatmul.mubr.msk.bf16.gmra.mxu0 %vm288_vm0, %v989_v60 }
  0x5e   : > { %3895 = vmatpush3.bf16.msra.mxu0 %v4119_v6  ;;  %3910 = vmatprep.subr.bf16.mxu1 %v4120_v3 }
  0x5f   : > { %3896 = vmatprep.subr.bf16.mxu0 %v4121_v7  ;;  %3898 = vmatprep.mubr.msk.bf16.mxu0 %vm288_vm0, %v4463_v54  ;;  %v4125_v54 = vld [vmem:[%s5169_s1 + $0x108] sm:$0xff]  }
  0x60   : > { %3887 = vmatmul.mubr.msk.bf16.gmra.mxu1 %vm288_vm0, %v1151_v20 }
  0x61   : > { %3911 = vmatpush3.bf16.msra.mxu1 %v4120_v3  ;;  %3914 = vmatprep.mubr.msk.bf16.mxu1 %vm288_vm0, %v4422_v37  ;;  %v1334_v37 = vsel %vm369_vm2, %v1332_v62, %v1333_v4 }
  0x62   : > { %3897 = vmatpush3.bf16.msra.mxu0 %v4121_v7  ;;  %3912 = vmatprep.subr.bf16.mxu1 %v4122_v28 }
  0x63   : > { %3922 = vmatprep.subr.bf16.mxu0 %v4123_v45 }
  0x65   : > { %3913 = vmatpush3.bf16.msra.mxu1 %v4122_v28  ;;  %3899 = vmatmul.mubr.msk.bf16.vlgmr.msra.gmra.mxu0 %vm288_vm0, %v4513_v19  ;;  %v1346_v19 = vpack.c.bf16 %v1334_v37, %v4597_v22  ;;  %v1609_v22 = vsel %vm637_vm3, %v4542_v35, %v1608_v16 }
  0x66   : > { %3923 = vmatpush3.bf16.msra.mxu0 %v4123_v45  ;;  %3902 = vmatprep.mubr.msk.bf16.mxu0 %vm288_vm0, %v4526_v27  ;;  %v4126_v27 = vld [vmem:[%s5169_s1 + $0x100] sm:$0xff]   ;;  %v1629_v33 = vpack.c.bf16 %v1612_v25, %v1609_v22 }
  0x67   : > { %3924 = vmatprep.subr.bf16.mxu0 %v4124_v29  ;;  %3938 = vmatprep.subr.bf16.mxu1 %v4127_v41 }
  0x68   : > { %3915 = vmatmul.mubr.msk.bf16.vlgmr.msra.gmra.mxu1 %vm288_vm0, %v4479_v5  ;;  %v1603_v5 = vsel %vm637_vm3, %v4507_v18, %v1602_v14  ;;  %v1615_v18 = vsel %vm637_vm3, %v1137_v44, %v1614_v21 }
  0x69   : > { %3918 = vmatprep.mubr.msk.bf16.mxu1 %vm288_vm0, %v4491_v13  ;;  %v1606_v13 = vsel %vm637_vm3, %v4523_v23, %v1605_v15  ;;  %v1618_v23 = vsel %vm637_vm3, %v1616_v11, %v1617_v34  ;;  %3939 = vmatpush3.bf16.msra.mxu1 %v4127_v41 }
  0x6a   : > { %3925 = vmatpush3.bf16.msra.mxu0 %v4124_v29  ;;  %v1628_v12 = vpack.c.bf16 %v1606_v13, %v1603_v5  ;;  %v1630_v35 = vpack.c.bf16 %v1618_v23, %v1615_v18  ;;  %3940 = vmatprep.subr.bf16.mxu1 %v4129_v9 }
  0x6b   : > { %3926 = vmatprep.subr.bf16.mxu0 %v4125_v54 }
  0x6d   : > { %3903 = vmatmul.mubr.msk.bf16.gmra.mxu0 %vm288_vm0, %v1346_v19  ;;  %3941 = vmatpush3.bf16.msra.mxu1 %v4129_v9 }
  0x6e   : > { %3927 = vmatpush3.bf16.msra.mxu0 %v4125_v54  ;;  %3930 = vmatprep.mubr.msk.bf16.mxu0 %vm288_vm0, %v1627_v32 }
  0x6f   : > { %3928 = vmatprep.subr.bf16.mxu0 %v4126_v27  ;;  %3942 = vmatprep.subr.bf16.mxu1 %v4131_v39 }
  0x70   : > { %3919 = vmatmul.mubr.msk.bf16.gmra.mxu1 %vm288_vm0, %v1468_v52 }
  0x71   : > { %3943 = vmatpush3.bf16.msra.mxu1 %v4131_v39 }
  0x72   : > { %3929 = vmatpush3.bf16.msra.mxu0 %v4126_v27  ;;  %3944 = vmatprep.subr.bf16.mxu1 %v4133_v42 }
  0x73   : > { %3954 = vmatprep.subr.bf16.mxu0 %v4128_v36 }
  0x75   : > { %3931 = vmatmul.mubr.msk.bf16.vlgmr.msra.gmra.mxu0 %vm288_vm0, %v1628_v12  ;;  %3945 = vmatpush3.bf16.msra.mxu1 %v4133_v42 }
  0x76   : > { %3934 = vmatprep.mubr.msk.bf16.mxu0 %vm288_vm0, %v1629_v33  ;;  %3955 = vmatpush3.bf16.msra.mxu0 %v4128_v36 }
  0x77   : > { %3956 = vmatprep.subr.bf16.mxu0 %v4130_v38  ;;  %3970 = vmatprep.subr.bf16.mxu1 %v4745_v63 }
  0x7a   : > { %3957 = vmatpush3.bf16.msra.mxu0 %v4130_v38 }
  0x7b   : > { %3958 = vmatprep.subr.bf16.mxu0 %v4132_v40 }
  0x7d   : > { %3935 = vmatmul.mubr.msk.bf16.gmra.mxu0 %vm288_vm0, %v1630_v35 }
  0x7e   : > { %3959 = vmatpush3.bf16.msra.mxu0 %v4132_v40 }
  0x7f   : > { %3960 = vmatprep.subr.bf16.mxu0 %v4134_v26 }
  0x82   : > { %3961 = vmatpush3.bf16.msra.mxu0 %v4134_v26 }
  0x83   : > { %3986 = vmatprep.subr.bf16.mxu0 %v4751_v43 }
  0xf5   : > { %v3804_v44 = vpop.f32.mrf.mxu0 }
  0xf7   : > { %v497_v46 = vpop.f32.mrf.mxu0 }
  0xf8   : > { %v3820_v47 = vpop.f32.mrf.mxu1 }
  0xf9   : > { %v3805_v49 = vpop.f32.mrf.mxu0  ;;  %v607_v13 = vadd.f32 %v3820_v47, %v3804_v44 }
  0xfa   : > { %v598_v50 = vpop.f32.mrf.mxu1 }
  0xfb   : > { %v500_v51 = vpop.f32.mrf.mxu0  ;;  %v599_v12 = vadd.f32 %v598_v50, %v497_v46 }
  0xfc   : > { %v3821_v55 = vpop.f32.mrf.mxu1 }
  0xfd   : > { %v3808_v56 = vpop.f32.mrf.mxu0  ;;  %v610_v18 = vadd.f32 %v3821_v55, %v3805_v49 }
  0xfe   : > { %v601_v57 = vpop.f32.mrf.mxu1 }
  0xff   : > { %v513_v0 = vpop.f32.mrf.mxu0  ;;  %v602_v36 = vadd.f32 %v601_v57, %v500_v51 }
 0x100   : > { %v3824_v6 = vpop.f32.mrf.mxu1 }
 0x101   : > { %v3809_v58 = vpop.f32.mrf.mxu0  ;;  %v623_v40 = vadd.f32 %v3824_v6, %v3808_v56 }
 0x102   : > { %v614_v59 = vpop.f32.mrf.mxu1 }
 0x103   : > { %v4754_v60 = vpop.f32.mrf.mxu0  ;;  %v615_v46 = vadd.f32 %v614_v59, %v513_v0 }
 0x104   : > { %v3825_v61 = vpop.f32.mrf.mxu1 }
 0x105   : > { %v3836_v48 = vpop.f32.mrf.mxu0  ;;  %v626_v55 = vadd.f32 %v3825_v61, %v3809_v58 }
 0x106   : > { %v617_v62 = vpop.f32.mrf.mxu1  ;;  %v786_v33 = vadd.f32 %v3836_v48, %v607_v13 }
 0x107   : > { %v753_v1 = vpop.f32.mrf.mxu0  ;;  %v618_v56 = vadd.f32 %v617_v62, %v4754_v60 }
 0x108   : > { %v3852_v2 = vpop.f32.mrf.mxu1  ;;  %v784_v23 = vadd.f32 %v753_v1, %v599_v12 }
 0x109   : > { %v3837_v3 = vpop.f32.mrf.mxu0  ;;  %v980_v9 = vadd.f32 %v3852_v2, %v786_v33 }
 0x10a   : > { %v947_v7 = vpop.f32.mrf.mxu1  ;;  %v787_v38 = vadd.f32 %v3837_v3, %v610_v18 }
 0x10b   : > { %v756_v4 = vpop.f32.mrf.mxu0  ;;  %v978_v26 = vadd.f32 %v947_v7, %v784_v23 }
 0x10c   : > { %v3853_v8 = vpop.f32.mrf.mxu1  ;;  %v785_v44 = vadd.f32 %v756_v4, %v602_v36 }
 0x10d   : > { %v3840_v10 = vpop.f32.mrf.mxu0  ;;  %v981_v13 = vadd.f32 %v3853_v8, %v787_v38 }
 0x10e   : > { %v950_v11 = vpop.f32.mrf.mxu1  ;;  %v790_v50 = vadd.f32 %v3840_v10, %v623_v40 }
 0x10f   : > { %v769_v14 = vpop.f32.mrf.mxu0 }
 0x110   : > { %v3856_v15 = vpop.f32.mrf.mxu1  ;;  %v788_v1 = vadd.f32 %v769_v14, %v615_v46 }
 0x111   : > { %v3841_v16 = vpop.f32.mrf.mxu0  ;;  %v984_v6 = vadd.f32 %v3856_v15, %v790_v50 }
 0x112   : > { %v963_v17 = vpop.f32.mrf.mxu1  ;;  %v791_v3 = vadd.f32 %v3841_v16, %v626_v55  ;;  %v4767_v16 = vld [vmem:[%s5170_s2] ss:$0 sm:$0xff] }
 0x113   : > { %v772_v20 = vpop.f32.mrf.mxu0  ;;  %v982_v59 = vadd.f32 %v963_v17, %v788_v1 }
 0x114   : > { %v3857_v28 = vpop.f32.mrf.mxu1  ;;  %v789_v10 = vadd.f32 %v772_v20, %v618_v56 }
 0x115   : > { %v3868_v45 = vpop.f32.mrf.mxu0  ;;  %v985_v14 = vadd.f32 %v3857_v28, %v791_v3 }
 0x116   : > { %v4756_v29 = vpop.f32.mrf.mxu1  ;;  %v1102_v47 = vadd.f32 %v3868_v45, %v980_v9 }
 0x117   : > { %v1069_v54 = vpop.f32.mrf.mxu0  ;;  %v983_v60 = vadd.f32 %v4756_v29, %v789_v10 }
 0x118   : > { %v3884_v37 = vpop.f32.mrf.mxu1  ;;  %v1100_v63 = vadd.f32 %v1069_v54, %v978_v26 }
 0x119   : > { %v3869_v30 = vpop.f32.mrf.mxu0  ;;  %v1264_v51 = vadd.f32 %v3884_v37, %v1102_v47 }
 0x11a   : > { %v1231_v31 = vpop.f32.mrf.mxu1  ;;  %v1103_v57 = vadd.f32 %v3869_v30, %v981_v13 }
 0x11b   : > { %v1072_v19 = vpop.f32.mrf.mxu0  ;;  %v1262_v4 = vadd.f32 %v1231_v31, %v1100_v63 }
 0x11c   : > { %v3885_v27 = vpop.f32.mrf.mxu1 }
 0x11d   : > { %v3872_v32 = vpop.f32.mrf.mxu0  ;;  %v1265_v33 = vadd.f32 %v3885_v27, %v1103_v57 }
 0x11e   : > { %v1234_v52 = vpop.f32.mrf.mxu1  ;;  %v1106_v8 = vadd.f32 %v3872_v32, %v984_v6 }
 0x11f   : > { %v1085_v53 = vpop.f32.mrf.mxu0 }
 0x120   : > { %v3888_v24 = vpop.f32.mrf.mxu1 }
 0x121   : > { %v3873_v5 = vpop.f32.mrf.mxu0  ;;  %v1268_v62 = vadd.f32 %v3888_v24, %v1106_v8 }
 0x122   : > { %v1247_v22 = vpop.f32.mrf.mxu1  ;;  %v1107_v15 = vadd.f32 %v3873_v5, %v985_v14  ;;  %v1829_v14 = vld [vmem:[#allocation3 + $0x18] sm:$0xff] }
 0x123   : > { %v1088_v25 = vpop.f32.mrf.mxu0 }
 0x124   : > { %v4758_v21 = vpop.f32.mrf.mxu1  ;;  %v1105_v27 = vadd.f32 %v1088_v25, %v983_v60 }
 0x125   : > { %v3900_v34 = vpop.f32.mrf.mxu0 }
 0x126   : > { %v4760_v35 = vpop.f32.mrf.mxu1  ;;  %v1459_v0 = vadd.f32 %v3900_v34, %v1264_v51  ;;  %v1269_v34 = vadd.f32 %v4758_v21, %v1107_v15 }
 0x127   : > { %5180 = vst [vmem:[#allocation6_spill] sm:$0xff] %v4760_v35  ;;  %v1426_v41 = vpop.f32.mrf.mxu0  ;;  %v979_v35 = vadd.f32 %v950_v11, %v785_v44  ;;  %v1104_v11 = vadd.f32 %v1085_v53, %v982_v59 }
 0x128   : > { %v3916_v39 = vpop.f32.mrf.mxu1  ;;  %v1457_v58 = vadd.f32 %v1426_v41, %v1262_v4  ;;  %v4787_v4 = vld [vmem:[#allocation3 + $0x8] sm:$0xff] }
 0x129   : > { %v3901_v42 = vpop.f32.mrf.mxu0  ;;  %v1101_v45 = vadd.f32 %v1072_v19, %v979_v35  ;;  %v1581_v18 = vadd.f32 %v3916_v39, %v1459_v0  ;;  %v1266_v28 = vadd.f32 %v1247_v22, %v1104_v11 }
 0x12a   : > { %v1548_v43 = vpop.f32.mrf.mxu1  ;;  %v1460_v23 = vadd.f32 %v3901_v42, %v1265_v33 }
 0x12b   : > { %v1429_v48 = vpop.f32.mrf.mxu0  ;;  %v1263_v30 = vadd.f32 %v1234_v52, %v1101_v45  ;;  %v1579_v17 = vadd.f32 %v1548_v43, %v1457_v58  ;;  %v4772_v52 = vld [vmem:[%s5171_s3] ss:$0 sm:$0xff]  ;;  %v1826_v45 = vld [vmem:[#allocation3] sm:$0xff] }
 0x12c   : > { %v3917_v49 = vpop.f32.mrf.mxu1  ;;  %v1866_v11 = vrot.slane %v1826_v45, 7 }
 0x12d   : > { %v3904_v12 = vpop.f32.mrf.mxu0  ;;  %v1458_v20 = vadd.f32 %v1429_v48, %v1263_v30  ;;  %v1582_v53 = vadd.f32 %v3917_v49, %v1460_v23 }
 0x12e   : > { %v1551_v2 = vpop.f32.mrf.mxu1  ;;  %v1463_v32 = vadd.f32 %v3904_v12, %v1268_v62  ;;  %v5181_v38 = vld [vmem:[#allocation6_spill] sm:$0xff] }
 0x12f   : > { %v1442_v7 = vpop.f32.mrf.mxu0  ;;  %v1580_v41 = vadd.f32 %v1551_v2, %v1458_v20  ;;  %v1267_v39 = vadd.f32 %v5181_v38, %v1105_v27  ;;  %v2133_v38 = vrot.slane %v4787_v4, 1 }
 0x130   : > { %v3920_v61 = vpop.f32.mrf.mxu1  ;;  %v1461_v35 = vadd.f32 %v1442_v7, %v1266_v28  ;;  %v1832_v28 = vld [vmem:[#allocation3 + $0x30] sm:$0xff] }
 0x131   : > { %v3905_v54 = vpop.f32.mrf.mxu0  ;;  %v1585_v40 = vadd.f32 %v3920_v61, %v1463_v32  ;;  %v1867_v61 = vrot.slane %v4787_v4, 7 }
 0x132   : > { %v1564_v31 = vpop.f32.mrf.mxu1  ;;  %v1464_v42 = vadd.f32 %v3905_v54, %v1269_v34 }
 0x133   : > { %v1445_v37 = vpop.f32.mrf.mxu0  ;;  %v1583_v50 = vadd.f32 %v1564_v31, %v1461_v35  ;;  %v1868_v31 = vsel %vm369_vm2, %v1866_v11, %v1867_v61 }
 0x134   : > { %v3921_v36 = vpop.f32.mrf.mxu1  ;;  %v1462_v48 = vadd.f32 %v1445_v37, %v1267_v39 }
 0x135   : > { %v3932_v63 = vpop.f32.mrf.mxu0  ;;  %v1586_v57 = vadd.f32 %v3921_v36, %v1464_v42  ;;  %v1841_v36 = vld [vmem:[#allocation3 + $0x78] sm:$0xff]  ;;  %v4137_v42 = vld [vmem:[%s5172_s4 + $0x50] sm:$0xff]  }
 0x136   : > { %v1743_v19 = vadd.f32 %v3932_v63, %v1581_v18  ;;  %v1567_v49 = vpop.f32.mrf.mxu1  ;;  %v1869_v63 = vrot.slane %v1829_v14, 7  ;;  %v1843_v14 = vld [vmem:[#allocation3 + $0x88] sm:$0x1] }
 0x137   : > { %v1710_v29 = vpop.f32.mrf.mxu0  ;;  %v1584_v0 = vadd.f32 %v1567_v49, %v1462_v48  ;;  %v1844_v49 = vld [vmem:[#allocation3 + $0x90] sm:$0xff] }
 0x138   : > { %v1758_v24 = vmul.f32 %v4767_v16, %v1743_v19  ;;  %v1741_v5 = vadd.f32 %v1710_v29, %v1579_v17  ;;  %v1835_v17 = vld [vmem:[#allocation3 + $0x48] sm:$0xff] }
 0x139   : > { %v3933_v43 = vpop.f32.mrf.mxu0 }
 0x13a   : > { %v1773_v22 = vadd.f32 %v4772_v52, %v1758_v24  ;;  %v1756_v25 = vmul.f32 %v4767_v16, %v1741_v5  ;;  %v1744_v9 = vadd.f32 %v3933_v43, %v1582_v53  ;;  %v1828_v24 = vld [vmem:[#allocation3 + $0x10] sm:$0x1]  ;;  %v1831_v5 = vld [vmem:[#allocation3 + $0x28] sm:$0x1] }
 0x13b   : > { %v1713_v26 = vpop.f32.mrf.mxu0 }
 0x13c   : > { %v1781_v44 = vmax.f32 %v1773_v22, 0.0  ;;  %v1771_v47 = vadd.f32 %v4772_v52, %v1756_v25  ;;  %v1759_v46 = vmul.f32 %v4767_v16, %v1744_v9  ;;  %v1742_v21 = vadd.f32 %v1713_v26, %v1580_v41 }
 0x13d   : > { %v3936_v13 = vpop.f32.mrf.mxu0  ;;  %v1872_v41 = vrot.slane %v1832_v28, 7 }
 0x13e   : > { %1820 = vst.msk [vmem:[#allocation3 + $0x50] sm:$0xff] %vm288_vm0, %v1781_v44  ;;  %v1779_v55 = vmax.f32 %v1771_v47, 0.0  ;;  %v1774_v1 = vadd.f32 %v4772_v52, %v1759_v46  ;;  %v1757_v12 = vmul.f32 %v4767_v16, %v1742_v21  ;;  %v1747_v51 = vadd.f32 %v3936_v13, %v1585_v40 }
 0x13f   : > { %v1726_v2 = vpop.f32.mrf.mxu0  ;;  %v1881_v44 = vrot.slane %v1841_v36, 7  ;;  %v2134_v47 = vrot.slane %v1828_v24, 1  ;;  %v2137_v46 = vrot.slane %v1831_v5, 1  ;;  %v1846_v36 = vld [vmem:[#allocation3 + $0xa0] sm:$0x1] }
 0x140   : > { %1818 = vst.msk [vmem:[#allocation3 + $0x20] sm:$0xff] %vm288_vm0, %v1779_v55  ;;  %v1782_v56 = vmax.f32 %v1774_v1, 0.0  ;;  %v1772_v6 = vadd.f32 %v4772_v52, %v1757_v12  ;;  %v1762_v3 = vmul.f32 %v4767_v16, %v1747_v51  ;;  %v1745_v7 = vadd.f32 %v1726_v2, %v1583_v50  ;;  %v1847_v55 = vld [vmem:[#allocation3 + $0xa8] sm:$0xff]  ;;  %v5182_v1 = vld [vmem:[#allocation4_spill] sm:$0xff] }
 0x141   : > { %v3937_v59 = vpop.f32.mrf.mxu0  ;;  %v1887_v45 = vrot.slane %v1847_v55, 7 }
 0x142   : > { %1821 = vst.msk [vmem:[#allocation3 + $0x68] sm:$0xff] %vm288_vm0, %v1782_v56  ;;  %v1780_v10 = vmax.f32 %v1772_v6, 0.0  ;;  %v1777_v8 = vadd.f32 %v4772_v52, %v1762_v3  ;;  %v1760_v54 = vmul.f32 %v4767_v16, %v1745_v7  ;;  %v1748_v33 = vadd.f32 %v3937_v59, %v1586_v57  ;;  %v4138_v57 = vld [vmem:[%s5172_s4 + $0x70] sm:$0xff]   ;;  %v4139_v3 = vld [vmem:[%s5172_s4 + $0x48] sm:$0xff]  }
 0x143   : > { %v1729_v58 = vpop.f32.mrf.mxu0  ;;  %v2135_v7 = vsel %vm637_vm3, %v2133_v38, %v2134_v47 }
 0x144   : > { %1819 = vst.msk [vmem:[#allocation3 + $0x38] sm:$0xff] %vm288_vm0, %v1780_v10  ;;  %v1785_v37 = vmax.f32 %v1777_v8, 0.0  ;;  %v1775_v30 = vadd.f32 %v4772_v52, %v1760_v54  ;;  %v1763_v18 = vmul.f32 %v4767_v16, %v1748_v33  ;;  %v1746_v23 = vadd.f32 %v1729_v58, %v1584_v0  ;;  %v5183_v0 = vld [vmem:[#allocation5_spill] sm:$0xff]  ;;  %v1834_v33 = vld [vmem:[#allocation3 + $0x40] sm:$0x1] }
 0x145   : > { %v4802_v19 = vld [vmem:[#allocation3 + $0x50] sm:$0xff] }
 0x146   : > { %1824 = vst.msk [vmem:[#allocation3 + $0xb0] sm:$0xff] %vm288_vm0, %v1785_v37  ;;  %v1783_v60 = vmax.f32 %v1775_v30, 0.0  ;;  %v1778_v62 = vadd.f32 %v4772_v52, %v1763_v18  ;;  %v1761_v15 = vmul.f32 %v4767_v16, %v1746_v23  ;;  %v1875_v16 = vrot.slane %v1835_v17, 7  ;;  %v4140_v30 = vld [vmem:[%s5172_s4 + $0x68] sm:$0xff]   ;;  %v4141_v18 = vld [vmem:[%s5172_s4 + $0x40] sm:$0xff]  }
 0x147   : > { %v4799_v20 = vld [vmem:[#allocation3 + $0x20] sm:$0xff]  ;;  %v1876_v43 = vrot.slane %v4802_v19, 7  ;;  %v1837_v23 = vld [vmem:[#allocation3 + $0x58] sm:$0x1] }
 0x148   : > { %1822 = vst.msk [vmem:[#allocation3 + $0x80] sm:$0xff] %vm288_vm0, %v1783_v60  ;;  %v1786_v27 = vmax.f32 %v1778_v62, 0.0  ;;  %v1776_v32 = vadd.f32 %v4772_v52, %v1761_v15  ;;  %v1870_v29 = vrot.slane %v4799_v20, 7  ;;  %v1910_v53 = vpack.c.bf16 %v4799_v20, %v4787_v4  ;;  %v1838_v52 = vld [vmem:[#allocation3 + $0x60] sm:$0xff] }
 0x149   : > { %v4818_v9 = vld [vmem:[#allocation3 + $0x68] sm:$0xff]  ;;  %v1878_v26 = vrot.slane %v1838_v52, 7  ;;  %v2136_v21 = vrot.slane %v4799_v20, 1  ;;  %v4838_v48 = vsel %vm369_vm2, %v1875_v16, %v1876_v43  ;;  %v1884_v4 = vrot.slane %v1844_v49, 7  ;;  %v2292_v49 = vld [vmem:[#allocation3 + $0x40] sm:$0x1] }
 0x14a   : > { %1825 = vst.msk [vmem:[#allocation3 + $0xc8] sm:$0xff] %vm288_vm0, %v1786_v27  ;;  %v1784_v34 = vmax.f32 %v1776_v32, 0.0  ;;  %3946 = vmatprep.mubr.msk.bf16.mxu1 %vm288_vm0, %v1910_v53  ;;  %v4812_v35 = vsel %vm369_vm2, %v1869_v63, %v1870_v29  ;;  %v1879_v13 = vrot.slane %v4818_v9, 7  ;;  %v2140_v15 = vrot.slane %v1834_v33, 1  ;;  %v1840_v63 = vld [vmem:[#allocation3 + $0x70] sm:$0x1] }
 0x14b   : > { %v1898_v22 = vpack.c.bf16 %v4812_v35, %v1868_v31  ;;  %v4816_v25 = vld [vmem:[#allocation3 + $0x38] sm:$0xff]  ;;  %v2138_v54 = vsel %vm637_vm3, %v2136_v21, %v2137_v46  ;;  %v2149_v27 = vrot.slane %v1843_v14, 1  ;;  %v4909_v32 = vrot.slane %v4802_v19, 1  ;;  %v4142_v53 = vld [vmem:[%s5172_s4 + $0x60] sm:$0xff]  }
 0x14c   : > { %1823 = vst.msk [vmem:[#allocation3 + $0x98] sm:$0xff] %vm288_vm0, %v1784_v34  ;;  %v1873_v39 = vrot.slane %v4816_v25, 7  ;;  %v4825_v40 = vpack.c.bf16 %v4802_v19, %v4816_v25  ;;  %v4868_v59 = vsel %vm369_vm2, %v1878_v26, %v1879_v13  ;;  %v4895_v60 = vrot.slane %v4816_v25, 1  ;;  %v4143_v34 = vld [vmem:[%s5172_s4 + $0x98] sm:$0xff]   ;;  %v1849_v26 = vld [vmem:[#allocation3 + $0xb8] sm:$0x1] }
 0x14d   : > { %3962 = vmatprep.mubr.msk.bf16.mxu0 %vm288_vm0, %v1898_v22  ;;  %v4851_v2 = vld [vmem:[#allocation3 + $0xb0] sm:$0xff]  ;;  %v2165_v62 = vpack.c.bf16 %v2138_v54, %v2135_v7  ;;  %v2143_v16 = vrot.slane %v1837_v23, 1  ;;  %v4919_v24 = vrot.slane %v4818_v9, 1  ;;  %v2146_v43 = vrot.slane %v1840_v63, 1  ;;  %v4147_v7 = vld [vmem:[%s5172_s4 + $0x88] sm:$0xff]  }
 0x14e   : > { %3947 = vmatmul.mubr.msk.bf16.vlgmr.msra.gmra.mxu1 %vm288_vm0, %v4825_v40  ;;  %v4835_v50 = vsel %vm369_vm2, %v1872_v41, %v1873_v39  ;;  %v1888_v8 = vrot.slane %v4851_v2, 7  ;;  %v2141_v41 = vsel %vm637_vm3, %v4895_v60, %v2140_v15  ;;  %v4144_v39 = vld [vmem:[%s5172_s4 + $0xb8] sm:$0xff]   ;;  %v2152_v46 = vrot.slane %v1846_v36, 1  ;;  %v4148_v14 = vld [vmem:[%s5172_s4 + $0xa8] sm:$0xff]   ;;  %v2298_v23 = vld [vmem:[#allocation3 + $0x70] sm:$0x1] }
 0x14f   : > { %3971 = vmatpush3.bf16.msra.mxu1 %v5182_v1  ;;  %v4844_v12 = vpack.c.bf16 %v4838_v48, %v4835_v50  ;;  %v4846_v51 = vld [vmem:[#allocation3 + $0x80] sm:$0xff]  ;;  %v2359_v5 = vpack.c.bf16 %v4835_v50, %v4812_v35  ;;  %v2144_v35 = vsel %vm637_vm3, %v4909_v32, %v2143_v16  ;;  %v2147_v38 = vsel %vm637_vm3, %v4919_v24, %v2146_v43 }
 0x150   : > { %v1882_v56 = vrot.slane %v4846_v51, 7  ;;  %v4856_v6 = vpack.c.bf16 %v4846_v51, %v4818_v9  ;;  %3972 = vmatprep.subr.bf16.mxu1 %v4137_v42  ;;  %v4900_v17 = vrot.slane %v4846_v51, 1  ;;  %v4906_v28 = vsel %vm369_vm2, %v1887_v45, %v1888_v8  ;;  %v2308_v50 = vld [vmem:[#allocation3 + $0xc0] sm:$0xff] }
 0x151   : > { %3963 = vmatmul.mubr.msk.bf16.vlgmr.msra.gmra.mxu0 %vm288_vm0, %v4844_v12  ;;  %v2166_v22 = vpack.c.bf16 %v2144_v35, %v2141_v41  ;;  %v4946_v13 = vld [vmem:[#allocation3 + $0xc8] sm:$0xff]  ;;  %v4950_v55 = vrot.slane %v4851_v2, 1  ;;  %v2360_v1 = vpack.c.bf16 %v4868_v59, %v4838_v48  ;;  %v2621_v16 = vrot.slane %v2298_v23, 1  ;;  %v2774_v23 = vld [vmem:[#allocation3 + $0x70] sm:$0x1] }
 0x152   : > { %3950 = vmatprep.mubr.msk.bf16.mxu1 %vm288_vm0, %v4856_v6  ;;  %3987 = vmatpush3.bf16.msra.mxu0 %v5183_v0  ;;  %v4871_v10 = vsel %vm369_vm2, %v1881_v44, %v1882_v56  ;;  %v2150_v52 = vsel %vm637_vm3, %v4900_v17, %v2149_v27  ;;  %v2155_v56 = vrot.slane %v1849_v26, 1  ;;  %v2349_v45 = vrot.slane %v4946_v13, 7  ;;  %v2289_v0 = vld [vmem:[#allocation3 + $0x28] sm:$0x1] }
 0x153   : > { %3973 = vmatpush3.bf16.msra.mxu1 %v4137_v42  ;;  %v4879_v58 = vpack.c.bf16 %v4871_v10, %v4868_v59  ;;  %3988 = vmatprep.subr.bf16.mxu0 %v4138_v57  ;;  %v4881_v61 = vld [vmem:[#allocation3 + $0x98] sm:$0xff]  ;;  %v4145_v42 = vld [vmem:[%s5172_s4 + $0x90] sm:$0xff]   ;;  %v2167_v47 = vpack.c.bf16 %v2150_v52, %v2147_v38  ;;  %v2615_v59 = vrot.slane %v2292_v49, 1  ;;  %v2612_v8 = vrot.slane %v2289_v0, 1  ;;  %v4152_v41 = vld [vmem:[%s5172_s4 + $0xf8] sm:$0xff]  }
 0x154   : > { %v1885_v11 = vrot.slane %v4881_v61, 7  ;;  %v4886_v37 = vpack.c.bf16 %v4851_v2, %v4881_v61  ;;  %3974 = vmatprep.subr.bf16.mxu1 %v4139_v3  ;;  %v4944_v44 = vrot.slane %v4881_v61, 1  ;;  %v2622_v43 = vsel %vm637_vm3, %v4919_v24, %v2621_v16  ;;  %v4153_v52 = vld [vmem:[%s5172_s4 + $0xd0] sm:$0xff]  }
 0x155   : > { %3966 = vmatprep.mubr.msk.bf16.mxu0 %vm288_vm0, %v4879_v58  ;;  %v2613_v63 = vsel %vm637_vm3, %v2136_v21, %v2612_v8  ;;  %v2483_v36 = vpack.c.bf16 %v4881_v61, %v4846_v51  ;;  %v4154_v51 = vld [vmem:[%s5172_s4 + $0xf0] sm:$0xff]   ;;  %v2307_v61 = vld [vmem:[#allocation3 + $0xb8] sm:$0x1]  ;;  %v2632_v26 = vrot.slane %v4946_v13, 1 }
 0x156   : > { %3951 = vmatmul.mubr.msk.bf16.gmra.mxu1 %vm288_vm0, %v4886_v37  ;;  %3989 = vmatpush3.bf16.msra.mxu0 %v4138_v57  ;;  %v1886_v31 = vsel %vm369_vm2, %v1884_v4, %v1885_v11  ;;  %v4146_v57 = vld [vmem:[%s5172_s4 + $0xb0] sm:$0xff]   ;;  %v2348_v4 = vrot.slane %v2308_v50, 7  ;;  %v2153_v48 = vsel %vm637_vm3, %v4944_v44, %v2152_v46  ;;  %v4149_v11 = vld [vmem:[%s5172_s4 + $0x80] sm:$0xff]   ;;  %v2630_v46 = vrot.slane %v2307_v61, 1 }
 0x157   : > { %3975 = vmatpush3.bf16.msra.mxu1 %v4139_v3  ;;  %3978 = vmatprep.mubr.msk.bf16.mxu1 %vm288_vm0, %v2165_v62  ;;  %v4913_v29 = vpack.c.bf16 %v4906_v28, %v1886_v31  ;;  %v2361_v3 = vpack.c.bf16 %v1886_v31, %v4871_v10  ;;  %v2156_v10 = vsel %vm637_vm3, %v4950_v55, %v2155_v56  ;;  %v2304_v62 = vld [vmem:[#allocation3 + $0xa0] sm:$0x1]  ;;  %v2295_v31 = vld [vmem:[#allocation3 + $0x58] sm:$0x1] }
 0x158   : > { %3990 = vmatprep.subr.bf16.mxu0 %v4140_v30  ;;  %3976 = vmatprep.subr.bf16.mxu1 %v4141_v18  ;;  %v2168_v54 = vpack.c.bf16 %v2156_v10, %v2153_v48  ;;  %v4970_v33 = vsel %vm369_vm2, %v2348_v4, %v2349_v45  ;;  %v2484_v50 = vpack.c.bf16 %v4946_v13, %v4851_v2  ;;  %v2787_v4 = vld [vmem:[#allocation3 + $0xd8] sm:$0xff]  ;;  %v2788_v45 = vld [vmem:[#allocation3 + $0xe0] sm:$0xff] }
 0x159   : > { %3967 = vmatmul.mubr.msk.bf16.gmra.mxu0 %vm288_vm0, %v4913_v29  ;;  %v2362_v15 = vpack.c.bf16 %v4970_v33, %v4906_v28  ;;  %v2627_v28 = vrot.slane %v2304_v62, 1  ;;  %v2631_v56 = vsel %vm637_vm3, %v4950_v55, %v2630_v46  ;;  %v4160_v0 = vld [vmem:[%s5172_s4 + $0x110] sm:$0xff]   ;;  %v2827_v48 = vrot.slane %v2787_v4, 7  ;;  %v2771_v10 = vld [vmem:[#allocation3 + $0x58] sm:$0x1] }
 0x15a   : > { %3991 = vmatpush3.bf16.msra.mxu0 %v4140_v30  ;;  %3994 = vmatprep.mubr.msk.bf16.mxu0 %vm288_vm0, %v2359_v5  ;;  %v2481_v30 = vpack.c.bf16 %v4816_v25, %v4799_v20  ;;  %v4150_v25 = vld [vmem:[%s5172_s4 + $0xa0] sm:$0xff]   ;;  %v2301_v5 = vld [vmem:[#allocation3 + $0x88] sm:$0x1]  ;;  %v2618_v20 = vrot.slane %v2295_v31, 1 }
 0x15b   : > { %3977 = vmatpush3.bf16.msra.mxu1 %v4141_v18  ;;  %3992 = vmatprep.subr.bf16.mxu0 %v4142_v53  ;;  %v2616_v18 = vsel %vm637_vm3, %v4895_v60, %v2615_v59  ;;  %v2624_v21 = vrot.slane %v2301_v5, 1  ;;  %v2628_v35 = vsel %vm637_vm3, %v4944_v44, %v2627_v28  ;;  %v2828_v59 = vrot.slane %v2788_v45, 7 }
 0x15c   : > { %4002 = vmatprep.subr.bf16.mxu1 %v4143_v34  ;;  %v2643_v27 = vpack.c.bf16 %v2616_v18, %v2613_v63  ;;  %v3097_v63 = vrot.slane %v2774_v23, 1 }
 0x15d   : > { %v2625_v38 = vsel %vm637_vm3, %v4900_v17, %v2624_v21 }
 0x15e   : > { %3979 = vmatmul.mubr.msk.bf16.vlgmr.msra.gmra.mxu1 %vm288_vm0, %v2166_v22  ;;  %3993 = vmatpush3.bf16.msra.mxu0 %v4142_v53  ;;  %v4151_v53 = vld [vmem:[%s5172_s4 + $0xd8] sm:$0xff]   ;;  %v2310_v22 = vld [vmem:[#allocation3 + $0xd0] sm:$0x1]  ;;  %v3098_v16 = vsel %vm637_vm3, %v4919_v24, %v3097_v63 }
 0x15f   : > { %3982 = vmatprep.mubr.msk.bf16.mxu1 %vm288_vm0, %v2167_v47  ;;  %4003 = vmatpush3.bf16.msra.mxu1 %v4143_v34  ;;  %v2482_v34 = vpack.c.bf16 %v4818_v9, %v4802_v19  ;;  %v2619_v19 = vsel %vm637_vm3, %v4909_v32, %v2618_v20  ;;  %v2633_v47 = vrot.slane %v2310_v22, 1 }
 0x160   : > { %4018 = vmatprep.subr.bf16.mxu0 %v4144_v39  ;;  %4004 = vmatprep.subr.bf16.mxu1 %v4145_v42  ;;  %v2644_v9 = vpack.c.bf16 %v2622_v43, %v2619_v19 }
 0x161   : > { %3995 = vmatmul.mubr.msk.bf16.vlgmr.msra.gmra.mxu0 %vm288_vm0, %v2360_v1  ;;  %v2634_v49 = vsel %vm637_vm3, %v2632_v26, %v2633_v47  ;;  %v4156_v1 = vld [vmem:[%s5172_s4 + $0xe8] sm:$0xff]  }
 0x162   : > { %3998 = vmatprep.mubr.msk.bf16.mxu0 %vm288_vm0, %v2361_v3  ;;  %4019 = vmatpush3.bf16.msra.mxu0 %v4144_v39  ;;  %v2645_v39 = vpack.c.bf16 %v2628_v35, %v2625_v38  ;;  %v2646_v2 = vpack.c.bf16 %v2634_v49, %v2631_v56  ;;  %v4158_v3 = vld [vmem:[%s5172_s4 + $0xe0] sm:$0xff]  }
 0x163   : > { %4005 = vmatpush3.bf16.msra.mxu1 %v4145_v42  ;;  %4020 = vmatprep.subr.bf16.mxu0 %v4146_v57  ;;  %v4155_v42 = vld [vmem:[%s5172_s4 + $0xc8] sm:$0xff]  }
 0x164   : > { %4006 = vmatprep.subr.bf16.mxu1 %v4147_v7 }
 0x166   : > { %3983 = vmatmul.mubr.msk.bf16.gmra.mxu1 %vm288_vm0, %v2168_v54  ;;  %4021 = vmatpush3.bf16.msra.mxu0 %v4146_v57  ;;  %v4157_v57 = vld [vmem:[%s5172_s4 + $0xc0] sm:$0xff]   ;;  %v3094_v54 = vrot.slane %v2771_v10, 1 }
 0x167   : > { %4007 = vmatpush3.bf16.msra.mxu1 %v4147_v7  ;;  %4010 = vmatprep.mubr.msk.bf16.mxu1 %vm288_vm0, %v2481_v30  ;;  %v4159_v7 = vld [vmem:[%s5172_s4 + $0x118] sm:$0xff]  }
 0x168   : > { %4022 = vmatprep.subr.bf16.mxu0 %v4148_v14  ;;  %4008 = vmatprep.subr.bf16.mxu1 %v4149_v11  ;;  %v3095_v18 = vsel %vm637_vm3, %v4909_v32, %v3094_v54 }
 0x169   : > { %3999 = vmatmul.mubr.msk.bf16.gmra.mxu0 %vm288_vm0, %v2362_v15 }
 0x16a   : > { %4023 = vmatpush3.bf16.msra.mxu0 %v4148_v14  ;;  %4026 = vmatprep.mubr.msk.bf16.mxu0 %vm288_vm0, %v2643_v27  ;;  %v2829_v14 = vsel %vm369_vm2, %v2827_v48, %v2828_v59  ;;  %v2786_v27 = vld [vmem:[#allocation3 + $0xd0] sm:$0x1] }
 0x16b   : > { %4009 = vmatpush3.bf16.msra.mxu1 %v4149_v11  ;;  %4024 = vmatprep.subr.bf16.mxu0 %v4150_v25  ;;  %v2777_v11 = vld [vmem:[#allocation3 + $0x88] sm:$0x1]  ;;  %v2841_v30 = vpack.c.bf16 %v2829_v14, %v4970_v33  ;;  %v2963_v33 = vpack.c.bf16 %v2788_v45, %v4946_v13  ;;  %v3109_v21 = vrot.slane %v2786_v27, 1 }
 0x16c   : > { %4034 = vmatprep.subr.bf16.mxu1 %v4151_v53  ;;  %v3100_v15 = vrot.slane %v2777_v11, 1 }
 0x16e   : > { %4011 = vmatmul.mubr.msk.bf16.vlgmr.msra.gmra.mxu1 %vm288_vm0, %v2482_v34  ;;  %4025 = vmatpush3.bf16.msra.mxu0 %v4150_v25  ;;  %v3101_v32 = vsel %vm637_vm3, %v4900_v17, %v3100_v15  ;;  %v3111_v34 = vrot.slane %v2788_v45, 1  ;;  %v3110_v17 = vsel %vm637_vm3, %v2632_v26, %v3109_v21 }
 0x16f   : > { %4014 = vmatprep.mubr.msk.bf16.mxu1 %vm288_vm0, %v2483_v36  ;;  %4035 = vmatpush3.bf16.msra.mxu1 %v4151_v53  ;;  %v2789_v53 = vld [vmem:[#allocation3 + $0xe8] sm:$0x1]  ;;  %v3123_v5 = vpack.c.bf16 %v3101_v32, %v3098_v16 }
 0x170   : > { %4050 = vmatprep.subr.bf16.mxu0 %v4152_v41  ;;  %4036 = vmatprep.subr.bf16.mxu1 %v4153_v52  ;;  %v3112_v43 = vrot.slane %v2789_v53, 1 }
 0x171   : > { %4027 = vmatmul.mubr.msk.bf16.vlgmr.msra.gmra.mxu0 %vm288_vm0, %v2644_v9 }
 0x172   : > { %4030 = vmatprep.mubr.msk.bf16.mxu0 %vm288_vm0, %v2645_v39  ;;  %4051 = vmatpush3.bf16.msra.mxu0 %v4152_v41 }
 0x173   : > { %4037 = vmatpush3.bf16.msra.mxu1 %v4153_v52  ;;  %4052 = vmatprep.subr.bf16.mxu0 %v4154_v51 }
 0x174   : > { %4038 = vmatprep.subr.bf16.mxu1 %v4155_v42 }
 0x176   : > { %4015 = vmatmul.mubr.msk.bf16.gmra.mxu1 %vm288_vm0, %v2484_v50  ;;  %4053 = vmatpush3.bf16.msra.mxu0 %v4154_v51 }
 0x177   : > { %4039 = vmatpush3.bf16.msra.mxu1 %v4155_v42  ;;  %4042 = vmatprep.mubr.msk.bf16.mxu1 %vm288_vm0, %v4844_v12  ;;  %v2768_v12 = vld [vmem:[#allocation3 + $0x40] sm:$0x1] }
 0x178   : > { %4054 = vmatprep.subr.bf16.mxu0 %v4156_v1  ;;  %4040 = vmatprep.subr.bf16.mxu1 %v4157_v57  ;;  %v3091_v8 = vrot.slane %v2768_v12, 1 }
 0x179   : > { %4031 = vmatmul.mubr.msk.bf16.gmra.mxu0 %vm288_vm0, %v2646_v2 }
 0x17a   : > { %4055 = vmatpush3.bf16.msra.mxu0 %v4156_v1  ;;  %4058 = vmatprep.mubr.msk.bf16.mxu0 %vm288_vm0, %v4825_v40  ;;  %v4161_v40 = vld [vmem:[%s5172_s4 + $0x108] sm:$0xff]  }
 0x17b   : > { %4041 = vmatpush3.bf16.msra.mxu1 %v4157_v57  ;;  %4056 = vmatprep.subr.bf16.mxu0 %v4158_v3 }
 0x17c   : > { %4066 = vmatprep.subr.bf16.mxu1 %v4159_v7 }
 0x17e   : > { %4043 = vmatmul.mubr.msk.bf16.vlgmr.msra.gmra.mxu1 %vm288_vm0, %v4879_v58  ;;  %4057 = vmatpush3.bf16.msra.mxu0 %v4158_v3  ;;  %v3092_v58 = vsel %vm637_vm3, %v4895_v60, %v3091_v8 }
 0x17f   : > { %4046 = vmatprep.mubr.msk.bf16.mxu1 %vm288_vm0, %v4913_v29  ;;  %4067 = vmatpush3.bf16.msra.mxu1 %v4159_v7  ;;  %v2780_v29 = vld [vmem:[#allocation3 + $0xa0] sm:$0x1]  ;;  %v3122_v62 = vpack.c.bf16 %v3095_v18, %v3092_v58 }
 0x180   : > { %4068 = vmatprep.subr.bf16.mxu1 %v4160_v0  ;;  %v3103_v60 = vrot.slane %v2780_v29, 1 }
 0x181   : > { %4059 = vmatmul.mubr.msk.bf16.vlgmr.msra.gmra.mxu0 %vm288_vm0, %v4856_v6  ;;  %v4162_v6 = vld [vmem:[%s5172_s4 + $0x100] sm:$0xff]  }
 0x182   : > { %4062 = vmatprep.mubr.msk.bf16.mxu0 %vm288_vm0, %v4886_v37  ;;  %v2783_v37 = vld [vmem:[#allocation3 + $0xb8] sm:$0x1]  ;;  %v3104_v31 = vsel %vm637_vm3, %v4944_v44, %v3103_v60  ;;  %v3113_v44 = vsel %vm637_vm3, %v3111_v34, %v3112_v43 }
 0x183   : > { %4069 = vmatpush3.bf16.msra.mxu1 %v4160_v0  ;;  %v3106_v25 = vrot.slane %v2783_v37, 1  ;;  %v3125_v41 = vpack.c.bf16 %v3113_v44, %v3110_v17 }
 0x184   : > { %4070 = vmatprep.subr.bf16.mxu1 %v4161_v40 }
 0x185   : > { %v3107_v28 = vsel %vm637_vm3, %v4950_v55, %v3106_v25 }
 0x186   : > { %4047 = vmatmul.mubr.msk.bf16.gmra.mxu1 %vm288_vm0, %v2841_v30  ;;  %v3124_v20 = vpack.c.bf16 %v3107_v28, %v3104_v31 }
 0x187   : > { %4071 = vmatpush3.bf16.msra.mxu1 %v4161_v40  ;;  %4074 = vmatprep.mubr.msk.bf16.mxu1 %vm288_vm0, %v3122_v62 }
 0x188   : > { %4072 = vmatprep.subr.bf16.mxu1 %v4162_v6 }
 0x189   : > { %4063 = vmatmul.mubr.msk.bf16.gmra.mxu0 %vm288_vm0, %v2963_v33 }
 0x18b   : > { %4073 = vmatpush3.bf16.msra.mxu1 %v4162_v6 }
 0x18e   : > { %4075 = vmatmul.mubr.msk.bf16.vlgmr.msra.gmra.mxu1 %vm288_vm0, %v3123_v5 }
 0x18f   : > { %4078 = vmatprep.mubr.msk.bf16.mxu1 %vm288_vm0, %v3124_v20 }
 0x196   : > { %4079 = vmatmul.mubr.msk.bf16.gmra.mxu1 %vm288_vm0, %v3125_v41 }
 0x20e   : > { %v3948_v24 = vpop.f32.mrf.mxu1 }
 0x210   : > { %v1993_v52 = vpop.f32.mrf.mxu1 }
 0x211   : > { %v3964_v55 = vpop.f32.mrf.mxu0 }
 0x212   : > { %v3949_v36 = vpop.f32.mrf.mxu1  ;;  %v2103_v15 = vadd.f32 %v3964_v55, %v3948_v24 }
 0x213   : > { %v2094_v35 = vpop.f32.mrf.mxu0 }
 0x214   : > { %v1996_v22 = vpop.f32.mrf.mxu1  ;;  %v2095_v33 = vadd.f32 %v2094_v35, %v1993_v52 }
 0x215   : > { %v3965_v19 = vpop.f32.mrf.mxu0 }
 0x216   : > { %v3952_v9 = vpop.f32.mrf.mxu1  ;;  %v2106_v31 = vadd.f32 %v3965_v19, %v3949_v36 }
 0x217   : > { %v2097_v38 = vpop.f32.mrf.mxu0 }
 0x218   : > { %v2009_v51 = vpop.f32.mrf.mxu1  ;;  %v2098_v5 = vadd.f32 %v2097_v38, %v1996_v22 }
 0x219   : > { %v3968_v61 = vpop.f32.mrf.mxu0 }
 0x21a   : > { %v3953_v39 = vpop.f32.mrf.mxu1  ;;  %v2119_v24 = vadd.f32 %v3968_v61, %v3952_v9 }
 0x21b   : > { %v2110_v13 = vpop.f32.mrf.mxu0 }
 0x21c   : > { %v5093_v42 = vpop.f32.mrf.mxu1  ;;  %v2111_v52 = vadd.f32 %v2110_v13, %v2009_v51 }
 0x21d   : > { %v3969_v26 = vpop.f32.mrf.mxu0 }
 0x21e   : > { %v3980_v47 = vpop.f32.mrf.mxu1  ;;  %v2122_v36 = vadd.f32 %v3969_v26, %v3953_v39 }
 0x21f   : > { %v2113_v46 = vpop.f32.mrf.mxu0  ;;  %v2281_v63 = vadd.f32 %v3980_v47, %v2103_v15 }
 0x220   : > { %v2248_v50 = vpop.f32.mrf.mxu1 }
 0x221   : > { %v3996_v49 = vpop.f32.mrf.mxu0  ;;  %v2279_v27 = vadd.f32 %v2248_v50, %v2095_v33 }
 0x222   : > { %v3981_v1 = vpop.f32.mrf.mxu1  ;;  %v2475_v28 = vadd.f32 %v3996_v49, %v2281_v63 }
 0x223   : > { %v2442_v57 = vpop.f32.mrf.mxu0  ;;  %v2282_v20 = vadd.f32 %v3981_v1, %v2106_v31  ;;  %v2114_v1 = vadd.f32 %v2113_v46, %v5093_v42 }
 0x224   : > { %v2251_v56 = vpop.f32.mrf.mxu1  ;;  %v2473_v43 = vadd.f32 %v2442_v57, %v2279_v27 }
 0x225   : > { %v3997_v2 = vpop.f32.mrf.mxu0  ;;  %v2280_v17 = vadd.f32 %v2251_v56, %v2098_v5 }
 0x226   : > { %v3984_v3 = vpop.f32.mrf.mxu1  ;;  %v2476_v35 = vadd.f32 %v3997_v2, %v2282_v20 }
 0x227   : > { %v2445_v7 = vpop.f32.mrf.mxu0  ;;  %v2285_v19 = vadd.f32 %v3984_v3, %v2119_v24 }
 0x228   : > { %v2264_v4 = vpop.f32.mrf.mxu1 }
 0x229   : > { %v4000_v45 = vpop.f32.mrf.mxu0  ;;  %v2283_v50 = vadd.f32 %v2264_v4, %v2111_v52 }
 0x22a   : > { %v3985_v12 = vpop.f32.mrf.mxu1  ;;  %v2479_v51 = vadd.f32 %v4000_v45, %v2285_v19  ;;  %v5108_v45 = vld [vmem:[%s5173_s5] ss:$0 sm:$0xff]  ;;  %v3277_v19 = vld [vmem:[%s4334_s18 + $0x18] sm:$0xff] }
 0x22b   : > { %v2458_v0 = vpop.f32.mrf.mxu0  ;;  %v2286_v57 = vadd.f32 %v3985_v12, %v2122_v36 }
 0x22c   : > { %v2267_v48 = vpop.f32.mrf.mxu1  ;;  %v2477_v61 = vadd.f32 %v2458_v0, %v2283_v50 }
 0x22d   : > { %v4001_v59 = vpop.f32.mrf.mxu0  ;;  %v2284_v13 = vadd.f32 %v2267_v48, %v2114_v1 }
 0x22e   : > { %v4012_v10 = vpop.f32.mrf.mxu1  ;;  %v2480_v3 = vadd.f32 %v4001_v59, %v2286_v57 }
 0x22f   : > { %v5095_v8 = vpop.f32.mrf.mxu0  ;;  %v2597_v44 = vadd.f32 %v4012_v10, %v2475_v28  ;;  %v3276_v28 = vld [vmem:[%s4334_s18 + $0x10] sm:$0xff] }
 0x230   : > { %v2564_v40 = vpop.f32.mrf.mxu1  ;;  %v2478_v42 = vadd.f32 %v5095_v8, %v2284_v13  ;;  %v5114_v8 = vld [vmem:[%s5174_s6] ss:$0 sm:$0xff] }
 0x231   : > { %v4028_v54 = vpop.f32.mrf.mxu0  ;;  %v2595_v47 = vadd.f32 %v2564_v40, %v2473_v43 }
 0x232   : > { %v4013_v14 = vpop.f32.mrf.mxu1  ;;  %v2759_v22 = vadd.f32 %v4028_v54, %v2597_v44 }
 0x233   : > { %v2726_v58 = vpop.f32.mrf.mxu0  ;;  %v2598_v38 = vadd.f32 %v4013_v14, %v2476_v35 }
 0x234   : > { %v2567_v11 = vpop.f32.mrf.mxu1  ;;  %v2757_v10 = vadd.f32 %v2726_v58, %v2595_v47 }
 0x235   : > { %v4029_v29 = vpop.f32.mrf.mxu0 }
 0x236   : > { %v4016_v30 = vpop.f32.mrf.mxu1  ;;  %v2760_v40 = vadd.f32 %v4029_v29, %v2598_v38 }
 0x237   : > { %v2729_v18 = vpop.f32.mrf.mxu0  ;;  %v2601_v4 = vadd.f32 %v4016_v30, %v2479_v51 }
 0x238   : > { %v2580_v6 = vpop.f32.mrf.mxu1 }
 0x239   : > { %v5097_v23 = vpop.f32.mrf.mxu0 }
 0x23a   : > { %v4017_v62 = vpop.f32.mrf.mxu1 }
 0x23b   : > { %v2742_v37 = vpop.f32.mrf.mxu0  ;;  %v2602_v46 = vadd.f32 %v4017_v62, %v2480_v3 }
 0x23c   : > { %v2583_v60 = vpop.f32.mrf.mxu1 }
 0x23d   : > { %v5099_v25 = vpop.f32.mrf.mxu0  ;;  %v2600_v30 = vadd.f32 %v2583_v60, %v2478_v42 }
 0x23e   : > { %v4044_v32 = vpop.f32.mrf.mxu1 }
 0x23f   : > { %v5101_v53 = vpop.f32.mrf.mxu0  ;;  %v2954_v9 = vadd.f32 %v4044_v32, %v2759_v22 }
 0x240   : > { %5184 = vst [vmem:[#allocation6_spill] sm:$0xff] %v5101_v53  ;;  %v2921_v16 = vpop.f32.mrf.mxu1  ;;  %v2474_v53 = vadd.f32 %v2445_v7, %v2280_v17  ;;  %v2599_v7 = vadd.f32 %v2580_v6, %v2477_v61 }
 0x241   : > { %v4060_v21 = vpop.f32.mrf.mxu0  ;;  %v2952_v39 = vadd.f32 %v2921_v16, %v2757_v10 }
 0x242   : > { %v4045_v34 = vpop.f32.mrf.mxu1  ;;  %v2596_v63 = vadd.f32 %v2567_v11, %v2474_v53  ;;  %v3076_v31 = vadd.f32 %v4060_v21, %v2954_v9  ;;  %v2763_v11 = vadd.f32 %v5097_v23, %v2601_v4  ;;  %v2761_v29 = vadd.f32 %v2742_v37, %v2599_v7  ;;  %v3280_v4 = vld [vmem:[%s4334_s18 + $0x30] sm:$0xff] }
 0x243   : > { %v3043_v41 = vpop.f32.mrf.mxu0  ;;  %v2955_v27 = vadd.f32 %v4045_v34, %v2760_v40  ;;  %v2764_v53 = vadd.f32 %v5099_v25, %v2602_v46 }
 0x244   : > { %v2924_v55 = vpop.f32.mrf.mxu1  ;;  %v2758_v14 = vadd.f32 %v2729_v18, %v2596_v63  ;;  %v3074_v0 = vadd.f32 %v3043_v41, %v2952_v39  ;;  %v3274_v41 = vld [vmem:[%s4334_s18] sm:$0xff] }
 0x245   : > { %v4061_v15 = vpop.f32.mrf.mxu0 }
 0x246   : > { %v4048_v33 = vpop.f32.mrf.mxu1  ;;  %v2953_v48 = vadd.f32 %v2924_v55, %v2758_v14  ;;  %v3077_v6 = vadd.f32 %v4061_v15, %v2955_v27 }
 0x247   : > { %v3046_v49 = vpop.f32.mrf.mxu0  ;;  %v2958_v16 = vadd.f32 %v4048_v33, %v2763_v11  ;;  %v5185_v43 = vld [vmem:[#allocation6_spill] sm:$0xff] }
 0x248   : > { %v2937_v56 = vpop.f32.mrf.mxu1  ;;  %v3075_v23 = vadd.f32 %v3046_v49, %v2953_v48  ;;  %v2762_v17 = vadd.f32 %v5185_v43, %v2600_v30 }
 0x249   : > { %v4064_v26 = vpop.f32.mrf.mxu0  ;;  %v2956_v5 = vadd.f32 %v2937_v56, %v2761_v29  ;;  %v3275_v56 = vld [vmem:[%s4334_s18 + $0x8] sm:$0xff] }
 0x24a   : > { %v4049_v2 = vpop.f32.mrf.mxu1  ;;  %v3080_v47 = vadd.f32 %v4064_v26, %v2958_v16 }
 0x24b   : > { %v3059_v58 = vpop.f32.mrf.mxu0  ;;  %v2959_v44 = vadd.f32 %v4049_v2, %v2764_v53 }
 0x24c   : > { %v2940_v54 = vpop.f32.mrf.mxu1  ;;  %v3078_v15 = vadd.f32 %v3059_v58, %v2956_v5  ;;  %v3281_v58 = vld [vmem:[%s4334_s18 + $0x38] sm:$0xff] }
 0x24d   : > { %v4065_v37 = vpop.f32.mrf.mxu0  ;;  %v2957_v36 = vadd.f32 %v2940_v54, %v2762_v17 }
 0x24e   : > { %v4076_v12 = vpop.f32.mrf.mxu1  ;;  %v3081_v57 = vadd.f32 %v4065_v37, %v2959_v44 }
 0x24f   : > { %v3238_v59 = vadd.f32 %v4076_v12, %v3076_v31  ;;  %v3062_v22 = vpop.f32.mrf.mxu0  ;;  %v3278_v31 = vld [vmem:[%s4334_s18 + $0x20] sm:$0xff] }
 0x250   : > { %v3205_v18 = vpop.f32.mrf.mxu1  ;;  %v3079_v2 = vadd.f32 %v3062_v22, %v2957_v36 }
 0x251   : > { %v3253_v62 = vmul.f32 %v5108_v45, %v3238_v59  ;;  %v3236_v32 = vadd.f32 %v3205_v18, %v3074_v0  ;;  %v3279_v18 = vld [vmem:[%s4334_s18 + $0x28] sm:$0xff] }
 0x252   : > { %v4077_v20 = vpop.f32.mrf.mxu1 }
 0x253   : > { %v3268_v60 = vadd.f32 %v5114_v8, %v3253_v62  ;;  %v3251_v21 = vmul.f32 %v5108_v45, %v3236_v32  ;;  %v3239_v34 = vadd.f32 %v4077_v20, %v3077_v6 }
 0x254   : > { %v3208_v24 = vpop.f32.mrf.mxu1 }
 0x255   : > { %v3284_v52 = vadd.f32 %v3276_v28, %v3268_v60  ;;  %v3266_v25 = vadd.f32 %v5114_v8, %v3251_v21  ;;  %v3254_v55 = vmul.f32 %v5108_v45, %v3239_v34  ;;  %v3237_v35 = vadd.f32 %v3208_v24, %v3075_v23 }
 0x256   : > { %v4080_v50 = vpop.f32.mrf.mxu1 }
 0x257   : > { %v3292_v33 = vmax.f32 %v3284_v52, 0.0  ;;  %v3282_v38 = vadd.f32 %v3274_v41, %v3266_v25  ;;  %v3269_v49 = vadd.f32 %v5114_v8, %v3254_v55  ;;  %v3252_v1 = vmul.f32 %v5108_v45, %v3237_v35 }
 0x258   : > { %v3242_v10 = vadd.f32 %v4080_v50, %v3080_v47  ;;  %v3221_v63 = vpop.f32.mrf.mxu1 }
 0x259   : > { %3300 = vst.msk [vmem:[%s5130_s30 + $0x10] sm:$0xff] %vm288_vm0, %v3292_v33  ;;  %v3290_v9 = vmax.f32 %v3282_v38, 0.0  ;;  %v3285_v51 = vadd.f32 %v3277_v19, %v3269_v49  ;;  %v3267_v61 = vadd.f32 %v5114_v8, %v3252_v1  ;;  %v3240_v13 = vadd.f32 %v3221_v63, %v3078_v15 }
 0x25a   : > { %v3257_v40 = vmul.f32 %v5108_v45, %v3242_v10  ;;  %v4081_v39 = vpop.f32.mrf.mxu1 }
 0x25b   : > { %3298 = vst.msk [vmem:[%s5130_s30] sm:$0xff] %vm288_vm0, %v3290_v9  ;;  %v3293_v26 = vmax.f32 %v3285_v51, 0.0  ;;  %v3283_v3 = vadd.f32 %v3275_v56, %v3267_v61  ;;  %v3255_v7 = vmul.f32 %v5108_v45, %v3240_v13  ;;  %v3243_v54 = vadd.f32 %v4081_v39, %v3081_v57 }
 0x25c   : > { %v3272_v14 = vadd.f32 %v5114_v8, %v3257_v40  ;;  %v3224_v27 = vpop.f32.mrf.mxu1 }
 0x25d   : > { %3301 = vst.msk [vmem:[%s5130_s30 + $0x18] sm:$0xff] %vm288_vm0, %v3293_v26  ;;  %v3291_v42 = vmax.f32 %v3283_v3, 0.0  ;;  %v3270_v46 = vadd.f32 %v5114_v8, %v3255_v7  ;;  %v3258_v12 = vmul.f32 %v5108_v45, %v3243_v54  ;;  %v3241_v0 = vadd.f32 %v3224_v27, %v3079_v2 }
 0x25e   : > { %v3288_v48 = vadd.f32 %v3280_v4, %v3272_v14 }
 0x25f   : > { %3299 = vst.msk [vmem:[%s5130_s30 + $0x8] sm:$0xff] %vm288_vm0, %v3291_v42  ;;  %v3286_v59 = vadd.f32 %v3278_v31, %v3270_v46  ;;  %v3273_v11 = vadd.f32 %v5114_v8, %v3258_v12  ;;  %v3256_v29 = vmul.f32 %v5108_v45, %v3241_v0 }
 0x260   : > { %v3296_v30 = vmax.f32 %v3288_v48, 0.0 }
 0x261   : > { %v3294_v6 = vmax.f32 %v3286_v59, 0.0  ;;  %v3289_v62 = vadd.f32 %v3281_v58, %v3273_v11  ;;  %v3271_v32 = vadd.f32 %v5114_v8, %v3256_v29 }
 0x262   : > { %3304 = vst.msk [vmem:[%s5130_s30 + $0x30] sm:$0xff] %vm288_vm0, %v3296_v30 }
 0x263   : > { %3302 = vst.msk [vmem:[%s5130_s30 + $0x20] sm:$0xff] %vm288_vm0, %v3294_v6  ;;  %v3297_v53 = vmax.f32 %v3289_v62, 0.0  ;;  %v3287_v16 = vadd.f32 %v3279_v18, %v3271_v32 }
 0x265   : > { %3305 = vst.msk [vmem:[%s5130_s30 + $0x38] sm:$0xff] %vm288_vm0, %v3297_v53  ;;  %v3295_v5 = vmax.f32 %v3287_v16, 0.0 }
 0x267   : > { %3303 = vst.msk [vmem:[%s5130_s30 + $0x28] sm:$0xff] %vm288_vm0, %v3295_v5 }
 0x268 PF: > { %s17_s24 = sadd.s32 1, %s4169_s24  }
 0x269   : > { %p14_p4 = scmp.ge.s32.totalorder %s17_s24, 4  }
 0x26b   :  { %16 = sbr.rel (!%p14_p4) target bundleno = 1 (0x1), region = 98 }

// kernel: resnet_front_forward.8
= control target key start
LH: loop header
LB: loop body
LE: loop exit
PB: predicated region body
PF: predicated region fallthrough
CT: control target
= control target key end

     0   :  { %s3518_s17 = smov 0   ;;  %s4343_s0 = inlined_call_operand.vmem [shape: f32[2,8,4,64], index: 0, kind: input, shape index: {}]   ;;  %s4344_s1 = inlined_call_operand.vmem [shape: f32[2,8,4,64], index: 1, kind: input, shape index: {}]   ;;  %s4345_s2 = inlined_call_operand.vmem [shape: bf16[3,3,64,128], index: 2, kind: input, shape index: {}]   ;;  %s4346_s3 = inlined_call_operand.vmem [shape: f32[1,128], index: 3, kind: input, shape index: {}]   ;;  %s4347_s4 = inlined_call_operand.vmem [shape: f32[1,128], index: 4, kind: input, shape index: {}]   ;;  %s4348_s5 = inlined_call_operand.vmem [shape: bf16[64,128], index: 5, kind: input, shape index: {}]   ;;  %s4349_s6 = inlined_call_operand.vmem [shape: f32[1,128], index: 6, kind: input, shape index: {}]   ;;  %s4350_s7 = inlined_call_operand.vmem [shape: f32[1,128], index: 7, kind: input, shape index: {}]   ;;  %s4351_s8 = inlined_call_operand.vmem [shape: bf16[3,3,128,128], index: 8, kind: input, shape index: {}]   ;;  %s4352_s9 = inlined_call_operand.vmem [shape: f32[1,128], index: 9, kind: input, shape index: {}]   ;;  %s4353_s10 = inlined_call_operand.vmem [shape: f32[1,128], index: 10, kind: input, shape index: {}]   ;;  %s4354_s11 = inlined_call_operand.vmem [shape: f32[2,4,4,128], index: 11, kind: output, shape index: {}]  }
   0x1 LB: > { %s2650_s18 = sadd.s32 4294967295, %s3454_s17   ;;  %p2654_p0 = scmp.ge.s32.totalorder %s3454_s17, 1  ;;  %s3454_s17 = sphi %s3518_s17, %s21_s17  }
   0x2   : > { %p347_p1 = scmp.lt.s32.totalorder %s3454_s17, 3 }
   0x4   : > { %p348_p2 = pnand %p2654_p0, %p347_p1 }
   0x5   : > { %p392_p3 = scmp.lt.s32.totalorder (!%p348_p2), %s2650_s18, 1 }
   0x6   : > { %351 = sbr.rel (%p348_p2) target bundleno = 613 (0x265), region = 64 }
   0xb   : > { %v3320_v0 = vld [vmem:[%s4345_s2 + $0x38] sm:$0xff]   ;;  %v3456_v1 = vmov 0.0   ;;  %v3322_v3 = vld [vmem:[%s4345_s2 + $0x30] sm:$0xff]   ;;  %vm3457_vm0 = vmmov 0   ;;  %vm408_vm1 = vcmask 519168   ;;  %s4358_s18 = smov (!%p392_p3, %s2650_s18), 1 }
   0xc   : > { %3130 = vmatprep.subr.bf16.mxu0 %v3456_v1  ;;  %1458 = vst [vmem:[#allocation4 + $0x30] sm:$0xff] %v3456_v1  ;;  %1459 = vst [vmem:[#allocation4] sm:$0x1f] %v3456_v1  ;;  %3142 = vmatprep.subr.bf16.mxu1 %v3456_v1  ;;  %v3321_v2 = vld [vmem:[%s4345_s2 + $0x18] sm:$0xff]   ;;  %v3323_v4 = vld [vmem:[%s4345_s2 + $0x10] sm:$0xff]   ;;  %vm436_vm2 = vcmask 523264  }
   0xd   : > { %1461 = vst [vmem:[#allocation4 + $0x18] sm:$0x1f] %v3456_v1  ;;  %1463 = vst [vmem:[#allocation4 + $0x20] sm:$0x1f] %v3456_v1  ;;  %3131 = vmatpush3.bf16.msra.mxu0 %v3320_v0  ;;  %3138 = vmatprep.mubr.msk.bf16.mxu0 %vm3457_vm0, %v3456_v1  ;;  %v3324_v5 = vld [vmem:[%s4345_s2 + $0x28] sm:$0xff]   ;;  %s2984_s29 = sshll.u32 %s4358_s18, 5 }
   0xe   : > { %1465 = vst [vmem:[#allocation4 + $0x38] sm:$0x1f] %v3456_v1  ;;  %1467 = vst [vmem:[#allocation4 + $0x48] sm:$0x1f] %v3456_v1  ;;  %3132 = vmatprep.subr.bf16.mxu0 %v3456_v1  ;;  %3143 = vmatpush3.bf16.msra.mxu1 %v3321_v2  ;;  %v3325_v6 = vld [vmem:[%s4345_s2 + $0x8] sm:$0xff]   ;;  %s3620_s15 = scalar_lea.vmem %s4343_s0, %s2984_s29  ;;  %s3625_s20 = scalar_lea.vmem %s4344_s1, %s2984_s29  ;;  %vm504_vm3 = vcmask 1040384  }
   0xf   : > { %1469 = vst [vmem:[#allocation4 + $0x40] sm:$0x1f] %v3456_v1  ;;  %3144 = vmatprep.subr.bf16.mxu1 %v3456_v1  ;;  %409 = vst.msk [vmem:[#allocation2] sm:$0xf] %vm408_vm1, %v3456_v1  ;;  %3150 = vmatprep.mubr.msk.bf16.mxu1 %vm3457_vm0, %v3456_v1  ;;  %v420_v7 = vld [vmem:[%s3620_s15 + $0x4] sm:$0xf] }
  0x10   : > { %411 = vst.msk [vmem:[#allocation2 + $0x8] sm:$0xf] %vm408_vm1, %v3456_v1  ;;  %413 = vst.msk [vmem:[#allocation2 + $0x10] sm:$0xf] %vm408_vm1, %v3456_v1  ;;  %v422_v8 = vld [vmem:[%s3620_s15 + $0xc] sm:$0xf] }
  0x11   : > { %415 = vst.msk [vmem:[#allocation2 + $0x18] sm:$0xf] %vm408_vm1, %v3456_v1  ;;  %417 = vst.msk [vmem:[#allocation2 + $0x20] sm:$0xf] %vm408_vm1, %v3456_v1  ;;  %3133 = vmatpush3.bf16.msra.mxu0 %v3322_v3  ;;  %v424_v9 = vld [vmem:[%s3620_s15 + $0x14] sm:$0xf] }
  0x12   : > { %410 = vst.msk [vmem:[#allocation2 + $0x4] sm:$0xf] %vm408_vm1, %v3456_v1  ;;  %412 = vst.msk [vmem:[#allocation2 + $0xc] sm:$0xf] %vm408_vm1, %v3456_v1  ;;  %3134 = vmatprep.subr.bf16.mxu0 %v3456_v1  ;;  %3145 = vmatpush3.bf16.msra.mxu1 %v3323_v4  ;;  %v426_v10 = vld [vmem:[%s3620_s15 + $0x1c] sm:$0xf] }
  0x13   : > { %414 = vst.msk [vmem:[#allocation2 + $0x14] sm:$0xf] %vm408_vm1, %v3456_v1  ;;  %416 = vst.msk [vmem:[#allocation2 + $0x1c] sm:$0xf] %vm408_vm1, %v3456_v1  ;;  %3146 = vmatprep.subr.bf16.mxu1 %v3456_v1  ;;  %v3326_v11 = vld [vmem:[%s4345_s2 + $0x20] sm:$0xff]   ;;  %vm505_vm4 = vcmask 1044484  }
  0x14   : > { %438 = vst.msk [vmem:[#allocation3 + $0x8] sm:$0xf] %vm408_vm1, %v3456_v1  ;;  %440 = vst.msk [vmem:[#allocation3 + $0x18] sm:$0xf] %vm408_vm1, %v3456_v1  ;;  %v458_v12 = vld [vmem:[%s3625_s20 + $0x4] sm:$0xf] }
  0x15   : > { %442 = vst.msk [vmem:[#allocation3 + $0x28] sm:$0xf] %vm408_vm1, %v3456_v1  ;;  %444 = vst.msk [vmem:[#allocation3 + $0x38] sm:$0xf] %vm408_vm1, %v3456_v1  ;;  %3135 = vmatpush3.bf16.msra.mxu0 %v3324_v5  ;;  %v460_v13 = vld [vmem:[%s3625_s20 + $0xc] sm:$0xf] }
  0x16   : > { %446 = vst.msk [vmem:[#allocation3 + $0x48] sm:$0xf] %vm408_vm1, %v3456_v1  ;;  %448 = vst.msk [vmem:[#allocation3 + $0x58] sm:$0xf] %vm408_vm1, %v3456_v1  ;;  %3136 = vmatprep.subr.bf16.mxu0 %v3456_v1  ;;  %3147 = vmatpush3.bf16.msra.mxu1 %v3325_v6  ;;  %v3327_v14 = vld [vmem:[%s4345_s2] sm:$0xff]   ;;  %v3332_v30 = vld [vmem:[%s4345_s2 + $0x58] sm:$0xff]  }
  0x17   : > { %450 = vst.msk [vmem:[#allocation3 + $0x68] sm:$0xf] %vm408_vm1, %v3456_v1  ;;  %452 = vst.msk [vmem:[#allocation3 + $0x78] sm:$0xf] %vm408_vm1, %v3456_v1  ;;  %v462_v15 = vld [vmem:[%s3625_s20 + $0x14] sm:$0xf]  ;;  %3148 = vmatprep.subr.bf16.mxu1 %v3456_v1 }
  0x18   : > { %454 = vst.msk [vmem:[#allocation3 + $0x88] sm:$0xf] %vm408_vm1, %v3456_v1  ;;  %429 = vst.msk [vmem:[#allocation2 + $0x8] sm:$0xf] %vm408_vm1, %v420_v7  ;;  %v464_v16 = vld [vmem:[%s3625_s20 + $0x1c] sm:$0xf] }
  0x19   : > { %437 = vst.msk [vmem:[#allocation3] sm:$0xff] %vm436_vm2, %v3456_v1  ;;  %439 = vst.msk [vmem:[#allocation3 + $0x10] sm:$0xff] %vm436_vm2, %v3456_v1  ;;  %v474_v17 = vld [vmem:[#allocation2] sm:$0xf]  ;;  %3137 = vmatpush3.bf16.msra.mxu0 %v3326_v11  ;;  %v3339_v47 = vld [vmem:[%s4345_s2 + $0x50] sm:$0xff]   ;;  %s2986_s25 = sshll.u32 %s4358_s18, 4 }
  0x1a   : > { %441 = vst.msk [vmem:[#allocation3 + $0x20] sm:$0xff] %vm436_vm2, %v3456_v1  ;;  %443 = vst.msk [vmem:[#allocation3 + $0x30] sm:$0xff] %vm436_vm2, %v3456_v1  ;;  %3149 = vmatpush3.bf16.msra.mxu1 %v3327_v14  ;;  %3154 = vmatprep.subr.bf16.mxu0 %v3456_v1  ;;  %v3338_v49 = vld [vmem:[%s4345_s2 + $0x78] sm:$0xff]   ;;  %v3341_v51 = vld [vmem:[%s4345_s2 + $0x48] sm:$0xff]   ;;  %s406_s28 = scalar_lea.vmem %s4354_s11, %s2986_s25 }
  0x1b   : > { %445 = vst.msk [vmem:[#allocation3 + $0x40] sm:$0xff] %vm436_vm2, %v3456_v1  ;;  %447 = vst.msk [vmem:[#allocation3 + $0x50] sm:$0xff] %vm436_vm2, %v3456_v1  ;;  %v3652_v18 = vld [vmem:[#allocation3 + $0x8] sm:$0xf]  ;;  %3166 = vmatprep.subr.bf16.mxu1 %v3456_v1  ;;  %v3343_v53 = vld [vmem:[%s4345_s2 + $0x40] sm:$0xff]  }
  0x1c   : > { %449 = vst.msk [vmem:[#allocation3 + $0x60] sm:$0xff] %vm436_vm2, %v3456_v1  ;;  %451 = vst.msk [vmem:[#allocation3 + $0x70] sm:$0xff] %vm436_vm2, %v3456_v1  ;;  %v509_v24 = vrot.slane %v3652_v18, 7  ;;  %v3340_v52 = vld [vmem:[%s4345_s2 + $0x70] sm:$0xff]   ;;  %v457_v54 = vld [vmem:[%s3625_s20] sm:$0xf] }
  0x1d   : > { %453 = vst.msk [vmem:[#allocation3 + $0x80] sm:$0xff] %vm436_vm2, %v3456_v1  ;;  %vm3655_vm5 = vmor %vm504_vm3, %vm505_vm4  ;;  %v459_v55 = vld [vmem:[%s3625_s20 + $0x8] sm:$0xf]  ;;  %v461_v56 = vld [vmem:[%s3625_s20 + $0x10] sm:$0xf] }
  0x1e   : > { %431 = vst.msk [vmem:[#allocation2 + $0x10] sm:$0xf] %vm408_vm1, %v422_v8  ;;  %433 = vst.msk [vmem:[#allocation2 + $0x18] sm:$0xf] %vm408_vm1, %v424_v9  ;;  %v463_v59 = vld [vmem:[%s3625_s20 + $0x18] sm:$0xf] }
  0x1f   : > { %435 = vst.msk [vmem:[#allocation2 + $0x20] sm:$0xf] %vm408_vm1, %v426_v10  ;;  %467 = vst.msk [vmem:[#allocation3 + $0x28] sm:$0xf] %vm408_vm1, %v458_v12  ;;  %v3661_v25 = vld [vmem:[#allocation2 + $0x8] sm:$0xf] }
  0x20   : > { %469 = vst.msk [vmem:[#allocation3 + $0x48] sm:$0xf] %vm408_vm1, %v460_v13  ;;  %471 = vst.msk [vmem:[#allocation3 + $0x68] sm:$0xf] %vm408_vm1, %v462_v15  ;;  %v3333_v20 = vld [vmem:[#allocation3 + $0x4] ss:$0 sps:$4 sm:$0xff]   ;;  %v540_v28 = vcombine.low %v474_v17, %v3661_v25 }
  0x21   : > { %473 = vst.msk [vmem:[#allocation3 + $0x88] sm:$0xf] %vm408_vm1, %v464_v16  ;;  %v3334_v21 = vld [vmem:[#allocation3 + $0x24] ss:$0 sps:$4 sm:$0xff]   ;;  %v2661_v31 = vrot.slane %v3333_v20, 11  ;;  %v3345_v3 = vld [vmem:[%s4345_s2 + $0x98] sm:$0xff]  }
  0x22   : > { %v3335_v22 = vld [vmem:[#allocation3 + $0x44] ss:$0 sps:$4 sm:$0xff]   ;;  %v2662_v34 = vrot.slane %v3334_v21, 11  ;;  %466 = vst.msk [vmem:[#allocation3 + $0x18] sm:$0xf] %vm408_vm1, %v457_v54  ;;  %v3344_v6 = vld [vmem:[%s4345_s2 + $0x60] sm:$0xff]  }
  0x23   : > { %v3336_v23 = vld [vmem:[#allocation3 + $0x64] ss:$0 sps:$4 sm:$0xff]   ;;  %v2663_v35 = vrot.slane %v3335_v22, 11  ;;  %v510_v38 = vsel %vm3655_vm5, %v2661_v31, %v509_v24  ;;  %468 = vst.msk [vmem:[#allocation3 + $0x38] sm:$0xf] %vm408_vm1, %v459_v55  ;;  %v3351_v17 = vld [vmem:[%s4345_s2 + $0x90] sm:$0xff]  }
  0x24   : > { %v2664_v41 = vrot.slane %v3336_v23, 11  ;;  %470 = vst.msk [vmem:[#allocation3 + $0x58] sm:$0xf] %vm408_vm1, %v461_v56  ;;  %472 = vst.msk [vmem:[#allocation3 + $0x78] sm:$0xf] %vm408_vm1, %v463_v59  ;;  %v3342_v0 = vld [vmem:[%s4345_s2 + $0x68] sm:$0xff]  }
  0x25   : > { %v3663_v26 = vld [vmem:[#allocation2 + $0x10] sm:$0xf]  ;;  %v3665_v27 = vld [vmem:[#allocation2 + $0x18] sm:$0xf]  ;;  %v3346_v60 = vld [vmem:[#allocation3 + $0x14] ss:$0 sps:$4 sm:$0xff]  }
  0x26   : > { %v541_v29 = vcombine.low %v3663_v26, %v3665_v27  ;;  %v3674_v32 = vld [vmem:[#allocation3 + $0x28] sm:$0xf]  ;;  %v3347_v61 = vld [vmem:[#allocation3 + $0x34] ss:$0 sps:$4 sm:$0xff]   ;;  %v2696_v4 = vrot.slane %v3346_v60, 11 }
  0x27   : > { %v3676_v33 = vld [vmem:[#allocation3 + $0x48] sm:$0xf]  ;;  %v513_v39 = vrot.slane %v3674_v32, 7  ;;  %v690_v57 = vcombine.low %v3652_v18, %v3674_v32  ;;  %v3348_v62 = vld [vmem:[#allocation3 + $0x54] ss:$0 sps:$4 sm:$0xff]   ;;  %v2697_v5 = vrot.slane %v3347_v61, 11 }
  0x28   : > { %v544_v36 = vpack.c.bf16 %v541_v29, %v540_v28  ;;  %v3678_v37 = vld [vmem:[#allocation3 + $0x68] sm:$0xf]  ;;  %v517_v40 = vrot.slane %v3676_v33, 7  ;;  %v3349_v63 = vld [vmem:[#allocation3 + $0x74] ss:$0 sps:$4 sm:$0xff]   ;;  %v2698_v7 = vrot.slane %v3348_v62, 11 }
  0x29   : > { %v521_v42 = vrot.slane %v3678_v37, 7  ;;  %v3688_v43 = vsel %vm3655_vm5, %v2662_v34, %v513_v39  ;;  %v691_v58 = vcombine.low %v3676_v33, %v3678_v37  ;;  %v2699_v8 = vrot.slane %v3349_v63, 11  ;;  %v3748_v9 = vld [vmem:[#allocation3 + $0x18] sm:$0xf]  ;;  %v3350_v24 = vld [vmem:[%s4345_s2 + $0xb8] sm:$0xff]   ;;  %v3361_v55 = vld [vmem:[%s4345_s2 + $0xd0] sm:$0xff]  }
  0x2a   : > { %3139 = vmatmul.mubr.msk.bf16.vlgmr.msra.gmra.mxu0 %vm436_vm2, %v544_v36  ;;  %v3692_v44 = vsel %vm3655_vm5, %v2663_v35, %v517_v40  ;;  %v523_v46 = vcombine.low %v510_v38, %v3688_v43  ;;  %v3750_v10 = vld [vmem:[#allocation3 + $0x38] sm:$0xf]  ;;  %v806_v13 = vrot.slane %v3748_v9, 7  ;;  %v421_v29 = vld [vmem:[%s3620_s15 + $0x8] sm:$0xf]  ;;  %v3352_v38 = vld [vmem:[%s4345_s2 + $0xb0] sm:$0xff]  }
  0x2b   : > { %3155 = vmatpush3.bf16.msra.mxu0 %v3332_v30  ;;  %v3696_v45 = vsel %vm3655_vm5, %v2664_v41, %v521_v42  ;;  %3162 = vmatprep.mubr.msk.bf16.mxu0 %vm3457_vm0, %v3456_v1  ;;  %v694_v2 = vpack.c.bf16 %v691_v58, %v690_v57  ;;  %v3752_v11 = vld [vmem:[#allocation3 + $0x58] sm:$0xf]  ;;  %v810_v14 = vrot.slane %v3750_v10, 7  ;;  %v423_v30 = vld [vmem:[%s3620_s15 + $0x10] sm:$0xf]  ;;  %v3353_v35 = vld [vmem:[%s4345_s2 + $0x88] sm:$0xff]   ;;  %v1088_v62 = vcombine.low %v3688_v43, %v3692_v44 }
  0x2c   : > { %v524_v48 = vcombine.low %v3692_v44, %v3696_v45  ;;  %3156 = vmatprep.subr.bf16.mxu0 %v3456_v1  ;;  %v3756_v12 = vld [vmem:[#allocation3 + $0x78] sm:$0xf]  ;;  %v814_v15 = vrot.slane %v3752_v11, 7  ;;  %v807_v18 = vsel %vm3655_vm5, %v2696_v4, %v806_v13  ;;  %v425_v34 = vld [vmem:[%s3620_s15 + $0x18] sm:$0xf]  ;;  %v3354_v41 = vld [vmem:[%s4345_s2 + $0xa8] sm:$0xff]   ;;  %v1173_v4 = vcombine.low %v3661_v25, %v3663_v26 }
  0x2d   : > { %v818_v16 = vrot.slane %v3756_v12, 7  ;;  %v811_v20 = vsel %vm3655_vm5, %v2697_v5, %v810_v14  ;;  %v419_v28 = vld [vmem:[%s3620_s15] sm:$0xf]  ;;  %430 = vst.msk [vmem:[#allocation2 + $0xc] sm:$0xf] %vm408_vm1, %v421_v29  ;;  %v3360_v56 = vld [vmem:[%s4345_s2 + $0xf8] sm:$0xff]   ;;  %v1257_v26 = vcombine.low %v3674_v32, %v3676_v33 }
  0x2e   : > { %v527_v50 = vpack.c.bf16 %v524_v48, %v523_v46  ;;  %v815_v21 = vsel %vm3655_vm5, %v2698_v7, %v814_v15  ;;  %v820_v23 = vcombine.low %v807_v18, %v811_v20  ;;  %428 = vst.msk [vmem:[#allocation2 + $0x4] sm:$0xf] %vm408_vm1, %v419_v28  ;;  %432 = vst.msk [vmem:[#allocation2 + $0x14] sm:$0xf] %vm408_vm1, %v423_v30  ;;  %v3355_v39 = vld [vmem:[%s4345_s2 + $0x80] sm:$0xff]   ;;  %v3363_v57 = vld [vmem:[%s4345_s2 + $0xc8] sm:$0xff]  }
  0x2f   : > { %3157 = vmatpush3.bf16.msra.mxu0 %v3339_v47  ;;  %v819_v22 = vsel %vm3655_vm5, %v2699_v8, %v818_v16  ;;  %434 = vst.msk [vmem:[#allocation2 + $0x1c] sm:$0xf] %vm408_vm1, %v425_v34  ;;  %v3337_v40 = vld [vmem:[#allocation3 + $0x84] ss:$0 sps:$4 sm:$0xff]   ;;  %v3359_v47 = vld [vmem:[%s4345_s2 + $0xd8] sm:$0xff]   ;;  %v3362_v60 = vld [vmem:[%s4345_s2 + $0xf0] sm:$0xff]  }
  0x30   : > { %3151 = vmatmul.mubr.msk.bf16.vlgmr.msra.gmra.mxu1 %vm436_vm2, %v527_v50  ;;  %3158 = vmatprep.subr.bf16.mxu0 %v3456_v1  ;;  %v821_v31 = vcombine.low %v815_v21, %v819_v22  ;;  %v3809_v48 = vld [vmem:[#allocation3 + $0x88] sm:$0xf]  ;;  %v2739_v50 = vrot.slane %v3337_v40, 11  ;;  %v3365_v61 = vld [vmem:[%s4345_s2 + $0xc0] sm:$0xff]   ;;  %v3381_v16 = vld [vmem:[%s4351_s8 + $0x128] sm:$0xff]  }
  0x31   : > { %3167 = vmatpush3.bf16.msra.mxu1 %v3338_v49  ;;  %3174 = vmatprep.mubr.msk.bf16.mxu1 %vm3457_vm0, %v3456_v1  ;;  %v1086_v54 = vrot.slane %v3809_v48, 7  ;;  %v3366_v44 = vld [vmem:[%s4345_s2 + $0xe0] sm:$0xff]   ;;  %v3372_v32 = vld [vmem:[%s4348_s5 + $0x10] sm:$0xff]   ;;  %v3383_v18 = vld [vmem:[%s4351_s8 + $0xe8] sm:$0xff]  }
  0x32   : > { %3168 = vmatprep.subr.bf16.mxu1 %v3456_v1  ;;  %v824_v36 = vpack.c.bf16 %v821_v31, %v820_v23  ;;  %v3370_v25 = vld [vmem:[%s4345_s2 + $0x100] sm:$0xff]   ;;  %v3378_v13 = vld [vmem:[%s4351_s8 + $0x130] sm:$0xff]   ;;  %v3387_v23 = vld [vmem:[%s4351_s8 + $0x118] sm:$0xff]  }
  0x33   : > { %3159 = vmatpush3.bf16.msra.mxu0 %v3341_v51  ;;  %v3358_v51 = vld [vmem:[%s4345_s2 + $0xa0] sm:$0xff]   ;;  %v1087_v59 = vsel %vm3655_vm5, %v2739_v50, %v1086_v54  ;;  %v3379_v14 = vld [vmem:[%s4351_s8 + $0x170] sm:$0xff]   ;;  %v3389_v28 = vld [vmem:[%s4351_s8 + $0xd8] sm:$0xff]  }
  0x34   : > { %3160 = vmatprep.subr.bf16.mxu0 %v3456_v1  ;;  %v1089_v63 = vcombine.low %v3696_v45, %v1087_v59  ;;  %v3368_v45 = vld [vmem:[%s4345_s2 + $0x110] sm:$0xff]   ;;  %v3374_v33 = vld [vmem:[%s4348_s5] sm:$0xff]   ;;  %v3393_v34 = vld [vmem:[%s4351_s8 + $0x108] sm:$0xff]  }
  0x35   : > { %3169 = vmatpush3.bf16.msra.mxu1 %v3340_v52  ;;  %v3356_v42 = vld [vmem:[#allocation2 + $0x4] ss:$8 sps:$4 sm:$0xff]   ;;  %v992_v52 = vcombine.low %v3748_v9, %v3750_v10  ;;  %v3371_v9 = vld [vmem:[%s4348_s5 + $0x18] sm:$0xff]   ;;  %v3380_v15 = vld [vmem:[%s4351_s8 + $0xf0] sm:$0xff]  }
  0x36   : > { %3170 = vmatprep.subr.bf16.mxu1 %v3456_v1  ;;  %v3357_v46 = vld [vmem:[#allocation2 + $0x14] ss:$8 sps:$4 sm:$0xff]   ;;  %v1092_v43 = vpack.c.bf16 %v1089_v63, %v1088_v62  ;;  %v3384_v20 = vld [vmem:[%s4351_s8 + $0x120] sm:$0xff]  }
  0x37   : > { %3161 = vmatpush3.bf16.msra.mxu0 %v3343_v53  ;;  %v3812_v49 = vpack.c.bf16 %v3357_v46, %v3356_v42  ;;  %v993_v53 = vcombine.low %v3752_v11, %v3756_v12  ;;  %v3898_v10 = vld [vmem:[#allocation4 + $0x30] sm:$0xff]  ;;  %v3385_v21 = vld [vmem:[%s4351_s8 + $0x160] sm:$0xff]   ;;  %v3390_v29 = vld [vmem:[%s4351_s8 + $0x110] sm:$0xff]  }
  0x38   : > { %3178 = vmatprep.subr.bf16.mxu0 %v3456_v1  ;;  %v3376_v11 = vld [vmem:[%s4351_s8 + $0x178] sm:$0xff]   ;;  %v3386_v22 = vld [vmem:[%s4351_s8 + $0xe0] sm:$0xff]   ;;  %v3391_v30 = vld [vmem:[%s4351_s8 + $0x150] sm:$0xff]  }
  0x39   : > { %3171 = vmatpush3.bf16.msra.mxu1 %v3342_v0  ;;  %v996_v58 = vpack.c.bf16 %v993_v53, %v992_v52  ;;  %v1077_v0 = vld [vmem:[#allocation2 + $0x20] sm:$0xf]  ;;  %v3377_v12 = vld [vmem:[%s4351_s8 + $0xf8] sm:$0xff]   ;;  %v3392_v31 = vld [vmem:[%s4351_s8 + $0xd0] sm:$0xff]  }
  0x3a   : > { %3172 = vmatprep.subr.bf16.mxu1 %v3456_v1  ;;  %3163 = vmatmul.mubr.msk.bf16.vlgmr.msra.gmra.mxu0 %vm436_vm2, %v694_v2  ;;  %v3364_v2 = vld [vmem:[%s4345_s2 + $0xe8] sm:$0xff]   ;;  %v1174_v5 = vcombine.low %v3665_v27, %v1077_v0  ;;  %v1258_v27 = vcombine.low %v3678_v37, %v3809_v48  ;;  %v3375_v37 = vld [vmem:[%s4351_s8 + $0x138] sm:$0xff]   ;;  %v3398_v40 = vld [vmem:[%s4351_s8 + $0xc0] sm:$0xff]  }
  0x3b   : > { %3179 = vmatpush3.bf16.msra.mxu0 %v3345_v3  ;;  %3186 = vmatprep.mubr.msk.bf16.mxu0 %vm3457_vm0, %v3456_v1  ;;  %v3367_v3 = vld [vmem:[%s4345_s2 + $0x118] sm:$0xff]  }
  0x3c   : > { %3180 = vmatprep.subr.bf16.mxu0 %v3456_v1  ;;  %v1177_v7 = vpack.c.bf16 %v1174_v5, %v1173_v4  ;;  %v1261_v8 = vpack.c.bf16 %v1258_v27, %v1257_v26 }
  0x3d   : > { %3173 = vmatpush3.bf16.msra.mxu1 %v3344_v6  ;;  %v3369_v6 = vld [vmem:[%s4345_s2 + $0x108] sm:$0xff]  }
  0x3e   : > { %3190 = vmatprep.subr.bf16.mxu1 %v3456_v1 }
  0x3f   : > { %3181 = vmatpush3.bf16.msra.mxu0 %v3351_v17  ;;  %v3382_v17 = vld [vmem:[%s4351_s8 + $0x168] sm:$0xff]  }
  0x40   : > { %3182 = vmatprep.subr.bf16.mxu0 %v3456_v1  ;;  %3175 = vmatmul.mubr.msk.bf16.vlgmr.msra.gmra.mxu1 %vm436_vm2, %v824_v36  ;;  %v3395_v36 = vld [vmem:[%s4351_s8 + $0xc8] sm:$0xff]  }
  0x41   : > { %3191 = vmatpush3.bf16.msra.mxu1 %v3350_v24  ;;  %3198 = vmatprep.mubr.msk.bf16.mxu1 %vm3457_vm0, %v3456_v1  ;;  %v3388_v24 = vld [vmem:[%s4351_s8 + $0x158] sm:$0xff]  }
  0x42   : > { %3192 = vmatprep.subr.bf16.mxu1 %v3456_v1 }
  0x43   : > { %3183 = vmatpush3.bf16.msra.mxu0 %v3353_v35  ;;  %v3394_v35 = vld [vmem:[%s4351_s8 + $0x148] sm:$0xff]  }
  0x44   : > { %3184 = vmatprep.subr.bf16.mxu0 %v3456_v1 }
  0x45   : > { %3193 = vmatpush3.bf16.msra.mxu1 %v3352_v38  ;;  %v3396_v38 = vld [vmem:[%s4351_s8 + $0x100] sm:$0xff]  }
  0x46   : > { %3194 = vmatprep.subr.bf16.mxu1 %v3456_v1 }
  0x47   : > { %3185 = vmatpush3.bf16.msra.mxu0 %v3355_v39  ;;  %v3397_v39 = vld [vmem:[%s4351_s8 + $0x140] sm:$0xff]  }
  0x48   : > { %3202 = vmatprep.subr.bf16.mxu0 %v3456_v1 }
  0x49   : > { %3195 = vmatpush3.bf16.msra.mxu1 %v3354_v41  ;;  %v3399_v41 = vld [vmem:[%s4351_s8 + $0x78] sm:$0xff]  }
  0x4a   : > { %3187 = vmatmul.mubr.msk.bf16.vlgmr.msra.gmra.mxu0 %vm436_vm2, %v3812_v49  ;;  %3196 = vmatprep.subr.bf16.mxu1 %v3456_v1 }
  0x4b   : > { %3203 = vmatpush3.bf16.msra.mxu0 %v3359_v47  ;;  %3210 = vmatprep.mubr.msk.bf16.mxu0 %vm3457_vm0, %v3456_v1 }
  0x4c   : > { %3204 = vmatprep.subr.bf16.mxu0 %v3456_v1 }
  0x4d   : > { %3197 = vmatpush3.bf16.msra.mxu1 %v3358_v51 }
  0x4e   : > { %3214 = vmatprep.subr.bf16.mxu1 %v3456_v1 }
  0x4f   : > { %3205 = vmatpush3.bf16.msra.mxu0 %v3361_v55 }
  0x50   : > { %3206 = vmatprep.subr.bf16.mxu0 %v3456_v1  ;;  %3199 = vmatmul.mubr.msk.bf16.vlgmr.msra.gmra.mxu1 %vm436_vm2, %v996_v58 }
  0x51   : > { %3215 = vmatpush3.bf16.msra.mxu1 %v3360_v56  ;;  %3222 = vmatprep.mubr.msk.bf16.mxu1 %vm3457_vm0, %v3456_v1 }
  0x52   : > { %3216 = vmatprep.subr.bf16.mxu1 %v3456_v1 }
  0x53   : > { %3207 = vmatpush3.bf16.msra.mxu0 %v3363_v57 }
  0x54   : > { %3208 = vmatprep.subr.bf16.mxu0 %v3456_v1 }
  0x55   : > { %3217 = vmatpush3.bf16.msra.mxu1 %v3362_v60 }
  0x56   : > { %3218 = vmatprep.subr.bf16.mxu1 %v3456_v1 }
  0x57   : > { %3209 = vmatpush3.bf16.msra.mxu0 %v3365_v61 }
  0x58   : > { %3226 = vmatprep.subr.bf16.mxu0 %v3456_v1 }
  0x59   : > { %3219 = vmatpush3.bf16.msra.mxu1 %v3364_v2 }
  0x5a   : > { %3211 = vmatmul.mubr.msk.bf16.vlgmr.msra.gmra.mxu0 %vm436_vm2, %v1092_v43  ;;  %3220 = vmatprep.subr.bf16.mxu1 %v3456_v1 }
  0x5b   : > { %3227 = vmatpush3.bf16.msra.mxu0 %v3367_v3  ;;  %3234 = vmatprep.mubr.msk.bf16.mxu0 %vm3457_vm0, %v3456_v1 }
  0x5c   : > { %3228 = vmatprep.subr.bf16.mxu0 %v3456_v1 }
  0x5d   : > { %3221 = vmatpush3.bf16.msra.mxu1 %v3366_v44 }
  0x5e   : > { %3238 = vmatprep.subr.bf16.mxu1 %v3456_v1 }
  0x5f   : > { %3229 = vmatpush3.bf16.msra.mxu0 %v3368_v45 }
  0x60   : > { %3230 = vmatprep.subr.bf16.mxu0 %v3456_v1  ;;  %3223 = vmatmul.mubr.msk.bf16.vlgmr.msra.gmra.mxu1 %vm436_vm2, %v1177_v7 }
  0x61   : > { %3246 = vmatprep.mubr.msk.bf16.mxu1 %vm3457_vm0, %v3456_v1  ;;  %3239 = vmatpush3.bf16.msra.mxu1 %v3371_v9 }
  0x62   : > { %3240 = vmatprep.subr.bf16.mxu1 %v3898_v10 }
  0x63   : > { %3231 = vmatpush3.bf16.msra.mxu0 %v3369_v6 }
  0x64   : > { %3232 = vmatprep.subr.bf16.mxu0 %v3456_v1  ;;  %v3373_v1 = vld [vmem:[%s4348_s5 + $0x8] sm:$0xff]  }
  0x65   : > { %3241 = vmatpush3.bf16.msra.mxu1 %v3372_v32 }
  0x66   : > { %3242 = vmatprep.subr.bf16.mxu1 %v3898_v10 }
  0x67   : > { %3233 = vmatpush3.bf16.msra.mxu0 %v3370_v25 }
  0x68   : > { %3037 = vmatprep.subr.bf16.mxu0 %v3375_v37 }
  0x69   : > { %3243 = vmatpush3.bf16.msra.mxu1 %v3373_v1 }
  0x6a   : > { %3235 = vmatmul.mubr.msk.bf16.vlgmr.msra.gmra.mxu0 %vm436_vm2, %v1261_v8  ;;  %3244 = vmatprep.subr.bf16.mxu1 %v3898_v10 }
  0x6b   : > { %3038 = vmatpush3.bf16.msra.mxu0 %v3377_v12 }
  0x6c   : > { %3039 = vmatprep.subr.bf16.mxu0 %v3378_v13 }
  0x6d   : > { %3245 = vmatpush3.bf16.msra.mxu1 %v3374_v33 }
  0x6e   : > { %3250 = vmatprep.subr.bf16.mxu1 %v3898_v10 }
  0x6f   : > { %3040 = vmatpush3.bf16.msra.mxu0 %v3380_v15 }
  0x70   : > { %3247 = vmatmul.mubr.msk.bf16.vlgmr.msra.gmra.mxu1 %vm436_vm2, %v3812_v49  ;;  %3041 = vmatprep.subr.bf16.mxu0 %v3381_v16 }
  0x71   : > { %3251 = vmatpush3.bf16.msra.mxu1 %v3376_v11  ;;  %3266 = vmatprep.mubr.msk.bf16.mxu1 %vm3457_vm0, %v3898_v10 }
  0x72   : > { %3252 = vmatprep.subr.bf16.mxu1 %v3898_v10 }
  0x73   : > { %3042 = vmatpush3.bf16.msra.mxu0 %v3383_v18 }
  0x74   : > { %3043 = vmatprep.subr.bf16.mxu0 %v3384_v20  ;;  %v2779_v20 = vld [vmem:[%s4346_s3] ss:$0 sm:$0xff] }
  0x75   : > { %3253 = vmatpush3.bf16.msra.mxu1 %v3379_v14 }
  0x76   : > { %3254 = vmatprep.subr.bf16.mxu1 %v3898_v10 }
  0x77   : > { %3044 = vmatpush3.bf16.msra.mxu0 %v3386_v22  ;;  %v2780_v22 = vld [vmem:[%s4347_s4] ss:$0 sm:$0xff] }
  0x78   : > { %3045 = vmatprep.subr.bf16.mxu0 %v3387_v23 }
  0x79   : > { %3255 = vmatpush3.bf16.msra.mxu1 %v3382_v17 }
  0x7a   : > { %3256 = vmatprep.subr.bf16.mxu1 %v3898_v10 }
  0x7b   : > { %3046 = vmatpush3.bf16.msra.mxu0 %v3389_v28 }
  0x7c   : > { %3047 = vmatprep.subr.bf16.mxu0 %v3390_v29 }
  0x7d   : > { %3257 = vmatpush3.bf16.msra.mxu1 %v3385_v21 }
  0x7e   : > { %3258 = vmatprep.subr.bf16.mxu1 %v3898_v10 }
  0x7f   : > { %3048 = vmatpush3.bf16.msra.mxu0 %v3392_v31 }
  0x80   : > { %3049 = vmatprep.subr.bf16.mxu0 %v3393_v34 }
  0x81   : > { %3259 = vmatpush3.bf16.msra.mxu1 %v3388_v24 }
  0x82   : > { %3260 = vmatprep.subr.bf16.mxu1 %v3898_v10 }
  0x83   : > { %3050 = vmatpush3.bf16.msra.mxu0 %v3395_v36 }
  0x84   : > { %3051 = vmatprep.subr.bf16.mxu0 %v3396_v38  ;;  %v4006_v38 = vld [vmem:[#allocation4] sm:$0x1f] }
  0x85   : > { %3261 = vmatpush3.bf16.msra.mxu1 %v3391_v30 }
  0x86   : > { %3262 = vmatprep.subr.bf16.mxu1 %v3898_v10 }
  0x87   : > { %3052 = vmatpush3.bf16.msra.mxu0 %v3398_v40 }
  0x88   : > { %3068 = vmatprep.subr.bf16.mxu0 %v3399_v41  ;;  %v1487_v41 = vrot.slane %v4006_v38, 1 }
  0x89   : > { %3263 = vmatpush3.bf16.msra.mxu1 %v3394_v35 }
  0x8a   : > { %3264 = vmatprep.subr.bf16.mxu1 %v3898_v10 }
  0x8d   : > { %3265 = vmatpush3.bf16.msra.mxu1 %v3397_v39 }
  0x8e   : > { %3270 = vmatprep.subr.bf16.mxu1 %v3898_v10 }
  0xea   : > { %v615_v42 = vpop.f32.mrf.mxu0 }
  0xec   : > { %v3140_v46 = vpop.f32.mrf.mxu0 }
  0xee   : > { %v618_v47 = vpop.f32.mrf.mxu0 }
  0xf0   : > { %v683_v48 = vpop.f32.mrf.mxu1  ;;  %v3141_v49 = vpop.f32.mrf.mxu0 }
  0xf1   : > { %v684_v44 = vadd.f32 %v683_v48, %v615_v42  ;;  %v4013_v48 = vcombine.low %v4006_v38, %v1487_v41 }
  0xf2   : > { %v3152_v50 = vpop.f32.mrf.mxu1 }
  0xf4   : > { %v686_v51 = vpop.f32.mrf.mxu1 }
  0xf5   : > { %v687_v6 = vadd.f32 %v686_v51, %v618_v47  ;;  %v4010_v47 = vcombine.high %v3898_v10, %v1487_v41 }
  0xf6   : > { %v3153_v52 = vpop.f32.mrf.mxu1 }
  0xfa   : > { %v765_v53 = vpop.f32.mrf.mxu0 }
  0xfb   : > { %v772_v4 = vadd.f32 %v765_v53, %v684_v44 }
  0xfc   : > { %v3164_v54 = vpop.f32.mrf.mxu0 }
  0xfe   : > { %v768_v55 = vpop.f32.mrf.mxu0 }
  0xff   : > { %v773_v26 = vadd.f32 %v768_v55, %v687_v6  ;;  %v2788_v55 = vrot.slane %v4010_v47, 11 }
 0x100   : > { %v3165_v56 = vpop.f32.mrf.mxu0  ;;  %v895_v57 = vpop.f32.mrf.mxu1 }
 0x101   : > { %v902_v25 = vadd.f32 %v895_v57, %v772_v4  ;;  %v1513_v56 = vrot.slane %v4013_v48, 7  ;;  %v3404_v48 = vld [vmem:[%s4351_s8 + $0x30] sm:$0xff]  }
 0x102   : > { %v3176_v58 = vpop.f32.mrf.mxu1 }
 0x104   : > { %v898_v59 = vpop.f32.mrf.mxu1 }
 0x105   : > { %v903_v32 = vadd.f32 %v898_v59, %v773_v26 }
 0x106   : > { %v3177_v60 = vpop.f32.mrf.mxu1 }
 0x10a   : > { %v983_v61 = vpop.f32.mrf.mxu0 }
 0x10b   : > { %v990_v8 = vadd.f32 %v983_v61, %v902_v25 }
 0x10c   : > { %v3188_v62 = vpop.f32.mrf.mxu0 }
 0x10e   : > { %v986_v63 = vpop.f32.mrf.mxu0 }
 0x10f   : > { %v991_v37 = vadd.f32 %v986_v63, %v903_v32 }
 0x110   : > { %v3189_v0 = vpop.f32.mrf.mxu0  ;;  %v1067_v2 = vpop.f32.mrf.mxu1 }
 0x111   : > { %v1074_v33 = vadd.f32 %v1067_v2, %v990_v8 }
 0x112   : > { %v3200_v3 = vpop.f32.mrf.mxu1 }
 0x114   : > { %v1070_v43 = vpop.f32.mrf.mxu1 }
 0x115   : > { %v1075_v14 = vadd.f32 %v1070_v43, %v991_v37 }
 0x116   : > { %v3201_v45 = vpop.f32.mrf.mxu1 }
 0x11a   : > { %v1163_v5 = vpop.f32.mrf.mxu0 }
 0x11b   : > { %v1170_v12 = vadd.f32 %v1163_v5, %v1074_v33 }
 0x11c   : > { %v3212_v7 = vpop.f32.mrf.mxu0 }
 0x11e   : > { %v1166_v27 = vpop.f32.mrf.mxu0 }
 0x11f   : > { %v1171_v17 = vadd.f32 %v1166_v27, %v1075_v14 }
 0x120   : > { %v3213_v9 = vpop.f32.mrf.mxu0  ;;  %v1248_v1 = vpop.f32.mrf.mxu1 }
 0x121   : > { %v1255_v16 = vadd.f32 %v1248_v1, %v1170_v12 }
 0x122   : > { %v3224_v11 = vpop.f32.mrf.mxu1 }
 0x124   : > { %v1251_v13 = vpop.f32.mrf.mxu1 }
 0x125   : > { %v1256_v24 = vadd.f32 %v1251_v13, %v1171_v17 }
 0x126   : > { %v3225_v15 = vpop.f32.mrf.mxu1 }
 0x12a   : > { %v1332_v18 = vpop.f32.mrf.mxu0 }
 0x12b   : > { %v1339_v21 = vadd.f32 %v1332_v18, %v1255_v16 }
 0x12c   : > { %v3236_v23 = vpop.f32.mrf.mxu0 }
 0x12d   : > { %v1348_v28 = vmul.f32 %v2779_v20, %v1339_v21 }
 0x12e   : > { %v1335_v29 = vpop.f32.mrf.mxu0 }
 0x12f   : > { %v1357_v30 = vadd.f32 %v2780_v22, %v1348_v28  ;;  %v1340_v31 = vadd.f32 %v1335_v29, %v1256_v24 }
 0x130   : > { %v3237_v34 = vpop.f32.mrf.mxu0 }
 0x131   : > { %v1359_v35 = vmax.f32 %v1357_v30, 0.0  ;;  %v1349_v36 = vmul.f32 %v2779_v20, %v1340_v31 }
 0x133   : > { %v1454_v39 = vcombine.high %v1359_v35, %v1359_v35  ;;  %1471 = vst [vmem:[#allocation4 + $0x18] sm:$0xf] %v1359_v35  ;;  %v1358_v40 = vadd.f32 %v2780_v22, %v1349_v36 }
 0x135   : > { %1472 = vst [vmem:[#allocation4 + $0x20] sm:$0xf] %v1454_v39  ;;  %v1360_v42 = vmax.f32 %v1358_v40, 0.0 }
 0x137   : > { %v1455_v46 = vcombine.high %v1360_v42, %v1360_v42  ;;  %1473 = vst [vmem:[#allocation4 + $0x38] sm:$0xf] %v1360_v42 }
 0x139   : > { %1474 = vst [vmem:[#allocation4 + $0x48] sm:$0xf] %v1455_v46 }
 0x13a   : > { %v1607_v49 = vld [vmem:[#allocation4 + $0x18] sm:$0x1f] }
 0x13b   : > { %v1618_v50 = vrot.slane %v1607_v49, 1  ;;  %v1622_v51 = vrot.slane %v1607_v49, 2  ;;  %v4015_v52 = vld [vmem:[#allocation4 + $0x18] sm:$0x1f] }
 0x13c   : > { %v1609_v53 = vld [vmem:[#allocation4 + $0x20] sm:$0x1f]  ;;  %v1488_v0 = vrot.slane %v4015_v52, 1 }
 0x13d   : > { %v4017_v54 = vld [vmem:[#allocation4 + $0x20] sm:$0x1f]  ;;  %v1619_v57 = vrot.slane %v1609_v53, 1  ;;  %v1623_v58 = vrot.slane %v1609_v53, 2  ;;  %v1630_v59 = vcombine.high %v3898_v10, %v1618_v50  ;;  %v1632_v60 = vcombine.low %v1607_v49, %v1618_v50 }
 0x13e   : > { %v1611_v61 = vld [vmem:[#allocation4 + $0x38] sm:$0x1f]  ;;  %v1631_v62 = vcombine.high %v1622_v51, %v1622_v51  ;;  %v1648_v63 = vrot.slane %v1622_v51, 7  ;;  %v1489_v2 = vrot.slane %v4017_v54, 1  ;;  %v1502_v37 = vcombine.high %v3898_v10, %v1488_v0 }
 0x13f   : > { %v1620_v3 = vrot.slane %v1611_v61, 1  ;;  %v1624_v43 = vrot.slane %v1611_v61, 2  ;;  %v1633_v44 = vcombine.high %v3898_v10, %v1619_v57  ;;  %v1635_v45 = vcombine.low %v1609_v53, %v1619_v57  ;;  %v4032_v20 = vld [vmem:[#allocation4 + $0x38] sm:$0x1f] }
 0x140   : > { %v1613_v4 = vld [vmem:[#allocation4 + $0x48] sm:$0x1f]  ;;  %v2796_v5 = vrot.slane %v1630_v59, 11  ;;  %v1644_v6 = vrot.slane %v1632_v60, 7  ;;  %v1634_v7 = vcombine.high %v1623_v58, %v1623_v58  ;;  %v2797_v25 = vrot.slane %v1631_v62, 11  ;;  %v3401_v59 = vld [vmem:[%s4351_s8 + $0x38] sm:$0xff]  }
 0x141   : > { %v1621_v26 = vrot.slane %v1613_v4, 1  ;;  %v1625_v27 = vrot.slane %v1613_v4, 2  ;;  %v1636_v8 = vcombine.high %v3898_v10, %v1620_v3  ;;  %v1638_v9 = vcombine.low %v1611_v61, %v1620_v3  ;;  %v3400_v61 = vld [vmem:[%s4351_s8 + $0xb8] sm:$0xff]  }
 0x142   : > { %v2798_v32 = vrot.slane %v1633_v44, 11  ;;  %v1652_v1 = vrot.slane %v1635_v45, 7  ;;  %v1637_v33 = vcombine.high %v1624_v43, %v1624_v43  ;;  %v1645_v15 = vsel %vm3655_vm5, %v2796_v5, %v1644_v6 }
 0x143   : > { %v1639_v11 = vcombine.high %v3898_v10, %v1621_v26  ;;  %v1641_v12 = vcombine.low %v1613_v4, %v1621_v26  ;;  %v2800_v13 = vrot.slane %v1636_v8, 11  ;;  %v1660_v14 = vrot.slane %v1638_v9, 7  ;;  %v3403_v26 = vld [vmem:[%s4351_s8 + $0xb0] sm:$0xff]  }
 0x144   : > { %v1653_v16 = vsel %vm3655_vm5, %v2798_v32, %v1652_v1  ;;  %v1640_v17 = vcombine.high %v1625_v27, %v1625_v27  ;;  %v2799_v18 = vrot.slane %v1634_v7, 11  ;;  %v1649_v24 = vsel %vm3655_vm5, %v2797_v25, %v1648_v63  ;;  %v3407_v1 = vld [vmem:[%s4351_s8 + $0x28] sm:$0xff]  }
 0x145   : > { %v1661_v21 = vsel %vm3655_vm5, %v2800_v13, %v1660_v14  ;;  %v2802_v22 = vrot.slane %v1639_v11, 11  ;;  %v1668_v23 = vrot.slane %v1641_v12, 7  ;;  %v1674_v28 = vcombine.low %v1645_v15, %v1653_v16  ;;  %v3410_v11 = vld [vmem:[%s4351_s8 + $0x20] sm:$0xff]   ;;  %v4110_v12 = vld [vmem:[#allocation4 + $0x40] sm:$0x1f]  ;;  %v3411_v14 = vld [vmem:[%s4351_s8 + $0x58] sm:$0xff]  }
 0x146   : > { %v1656_v29 = vrot.slane %v1623_v58, 7  ;;  %v2801_v30 = vrot.slane %v1637_v33, 11  ;;  %v1664_v31 = vrot.slane %v1624_v43, 7  ;;  %v2803_v35 = vrot.slane %v1640_v17, 11  ;;  %v3406_v33 = vld [vmem:[%s4351_s8 + $0xa8] sm:$0xff]   ;;  %v3409_v13 = vld [vmem:[%s4351_s8 + $0xa0] sm:$0xff]  }
 0x147   : > { %v1669_v34 = vsel %vm3655_vm5, %v2802_v22, %v1668_v23  ;;  %v1672_v36 = vrot.slane %v1625_v27, 7  ;;  %v1490_v39 = vrot.slane %v4032_v20, 1  ;;  %v1675_v40 = vcombine.high %v1645_v15, %v1653_v16  ;;  %v3405_v27 = vld [vmem:[%s4351_s8 + $0x68] sm:$0xff]   ;;  %v4118_v15 = vld [vmem:[#allocation4 + $0x48] sm:$0x1f]  ;;  %v3413_v22 = vld [vmem:[%s4351_s8 + $0x18] sm:$0xff]  }
 0x148   : > { %v1677_v41 = vcombine.low %v1661_v21, %v1669_v34  ;;  %v1678_v42 = vcombine.high %v1661_v21, %v1669_v34  ;;  %v1657_v46 = vsel %vm3655_vm5, %v2799_v18, %v1656_v29  ;;  %v1665_v49 = vsel %vm3655_vm5, %v2801_v30, %v1664_v31  ;;  %v4123_v18 = vld [vmem:[#allocation4 + $0x38] sm:$0x1f]  ;;  %v4142_v29 = vld [vmem:[#allocation4 + $0x20] sm:$0x1f] }
 0x149   : > { %v1673_v50 = vsel %vm3655_vm5, %v2803_v35, %v1672_v36  ;;  %v1676_v51 = vcombine.low %v1649_v24, %v1657_v46  ;;  %v1504_v60 = vcombine.low %v4015_v52, %v1488_v0  ;;  %v1505_v62 = vcombine.high %v3898_v10, %v1489_v2  ;;  %v3416_v35 = vld [vmem:[%s4351_s8 + $0x10] sm:$0xff]  }
 0x14a   : > { %v1687_v53 = vpack.c.bf16 %v1678_v42, %v1675_v40  ;;  %v1679_v57 = vcombine.low %v1665_v49, %v1673_v50  ;;  %v1686_v58 = vpack.c.bf16 %v1677_v41, %v1674_v28  ;;  %v1507_v63 = vcombine.low %v4017_v54, %v1489_v2  ;;  %v3402_v2 = vld [vmem:[%s4351_s8 + $0x70] sm:$0xff]   ;;  %v3417_v42 = vld [vmem:[%s4351_s8 + $0x48] sm:$0xff]  }
 0x14b   : > { %v1508_v3 = vcombine.high %v3898_v10, %v1490_v39  ;;  %v1510_v43 = vcombine.low %v4032_v20, %v1490_v39  ;;  %v4064_v0 = vsel %vm3655_vm5, %v2788_v55, %v1513_v56  ;;  %v2790_v45 = vrot.slane %v1502_v37, 11  ;;  %v3408_v37 = vld [vmem:[%s4351_s8 + $0x60] sm:$0xff]   ;;  %v3414_v28 = vld [vmem:[%s4351_s8 + $0x50] sm:$0xff]  }
 0x14c   : > { %1914 = vmatprep.mubr.bf16.mxu0 %v1687_v53  ;;  %v1688_v44 = vpack.c.bf16 %v1679_v57, %v1676_v51  ;;  %v1521_v4 = vrot.slane %v1504_v60, 7  ;;  %v2792_v5 = vrot.slane %v1505_v62, 11  ;;  %v1529_v6 = vrot.slane %v1507_v63, 7  ;;  %v3415_v41 = vld [vmem:[%s4351_s8 + $0x90] sm:$0xff]  }
 0x14d   : > { %1915 = vmatmul.mubr.bf16.vlgmr.msra.gmra.mxu0 %v1686_v58  ;;  %v2794_v7 = vrot.slane %v1508_v3, 11  ;;  %v1537_v25 = vrot.slane %v1510_v43, 7  ;;  %v1491_v16 = vrot.slane %v4006_v38, 2  ;;  %v1494_v17 = vrot.slane %v4032_v20, 2  ;;  %v3412_v20 = vld [vmem:[%s4351_s8 + $0x98] sm:$0xff]  }
 0x14e   : > { %3267 = vmatmul.mubr.bf16.vlgmr.msra.gmra.mxu1 %v1688_v44  ;;  %3069 = vmatpush3.bf16.msra.mxu0 %v3401_v59  ;;  %v4071_v47 = vsel %vm3655_vm5, %v2790_v45, %v1521_v4  ;;  %v4078_v55 = vsel %vm3655_vm5, %v2792_v5, %v1529_v6  ;;  %v2206_v21 = vrot.slane %v4110_v12, 1  ;;  %v2205_v23 = vrot.slane %v4118_v15, 1  ;;  %v3418_v44 = vld [vmem:[%s4351_s8 + $0x88] sm:$0xff]   ;;  %v3420_v45 = vld [vmem:[%s4351_s8 + $0x40] sm:$0xff]  }
 0x14f   : > { %3271 = vmatpush3.bf16.msra.mxu1 %v3400_v61  ;;  %v4082_v56 = vsel %vm3655_vm5, %v2794_v7, %v1537_v25  ;;  %v1544_v8 = vcombine.high %v4064_v0, %v4071_v47  ;;  %3070 = vmatprep.subr.bf16.mxu0 %v3402_v2  ;;  %v4131_v24 = vrot.slane %v4015_v52, 2  ;;  %v4134_v38 = vrot.slane %v4017_v54, 2  ;;  %v3419_v61 = vld [vmem:[%s4351_s8 + $0x8] sm:$0xff]  }
 0x150   : > { %v1547_v9 = vcombine.high %v4078_v55, %v4082_v56  ;;  %3272 = vmatprep.subr.bf16.mxu1 %v3898_v10  ;;  %3286 = vmatprep.mubr.msk.bf16.mxu1 %vm3457_vm0, %v3898_v10  ;;  %v1500_v30 = vcombine.high %v1491_v16, %v1491_v16  ;;  %v2204_v52 = vrot.slane %v4123_v18, 1  ;;  %v1509_v31 = vcombine.high %v1494_v17, %v1494_v17 }
 0x151   : > { %v2224_v54 = vcombine.high %v3898_v10, %v2206_v21  ;;  %v2226_v34 = vcombine.low %v4110_v12, %v2206_v21  ;;  %v2203_v36 = vrot.slane %v4142_v29, 1  ;;  %v2221_v39 = vcombine.high %v3898_v10, %v2205_v23 }
 0x152   : > { %v1556_v32 = vpack.c.bf16 %v1547_v9, %v1544_v8  ;;  %3071 = vmatpush3.bf16.msra.mxu0 %v3404_v48  ;;  %v2223_v40 = vcombine.low %v4118_v15, %v2205_v23  ;;  %v1503_v46 = vcombine.high %v4131_v24, %v4131_v24  ;;  %v1506_v49 = vcombine.high %v4134_v38, %v4134_v38  ;;  %v3422_v8 = vld [vmem:[%s4351_s8] sm:$0xff]   ;;  %v3425_v23 = vld [vmem:[%s4351_s8 + $0x1b8] sm:$0xff]  }
 0x153   : > { %3273 = vmatpush3.bf16.msra.mxu1 %v3403_v26  ;;  %3072 = vmatprep.subr.bf16.mxu0 %v3405_v27  ;;  %v2789_v50 = vrot.slane %v1500_v30, 11  ;;  %v2218_v51 = vcombine.high %v3898_v10, %v2204_v52  ;;  %v2220_v53 = vcombine.low %v4123_v18, %v2204_v52  ;;  %v1517_v57 = vrot.slane %v1491_v16, 7  ;;  %v3423_v16 = vld [vmem:[%s4351_s8 + $0x1f8] sm:$0xff]   ;;  %v3428_v52 = vld [vmem:[%s4351_s8 + $0x1b0] sm:$0xff]  }
 0x154   : > { %2140 = vmatprep.mubr.bf16.mxu0 %v1556_v32  ;;  %3274 = vmatprep.subr.bf16.mxu1 %v3898_v10  ;;  %v2795_v58 = vrot.slane %v1509_v31, 11  ;;  %v2906_v59 = vrot.slane %v2224_v54, 11  ;;  %v2253_v60 = vrot.slane %v2226_v34, 7  ;;  %v2215_v62 = vcombine.high %v3898_v10, %v2203_v36  ;;  %v3427_v31 = vld [vmem:[%s4351_s8 + $0x230] sm:$0xff]   ;;  %v3429_v54 = vld [vmem:[%s4351_s8 + $0x1e8] sm:$0xff]   ;;  %v4243_v34 = vpop.f32.mrf.mxu1 }
 0x155   : > { %v2217_v63 = vcombine.low %v4142_v29, %v2203_v36  ;;  %v2904_v3 = vrot.slane %v2221_v39, 11  ;;  %v2245_v43 = vrot.slane %v2223_v40, 7  ;;  %v2791_v4 = vrot.slane %v1503_v46, 11  ;;  %v3430_v39 = vld [vmem:[%s4351_s8 + $0x228] sm:$0xff]   ;;  %v3432_v40 = vld [vmem:[%s4351_s8 + $0x1e0] sm:$0xff]  }
 0x156   : > { %3073 = vmatpush3.bf16.msra.mxu0 %v3407_v1  ;;  %v2793_v2 = vrot.slane %v1506_v49, 11  ;;  %v1541_v5 = vrot.slane %v1494_v17, 7  ;;  %v2902_v6 = vrot.slane %v2218_v51, 11  ;;  %v2237_v7 = vrot.slane %v2220_v53, 7  ;;  %v3248_v36 = vpop.f32.mrf.mxu1  ;;  %v3433_v49 = vld [vmem:[%s4351_s8 + $0x220] sm:$0xff]  }
 0x157   : > { %3275 = vmatpush3.bf16.msra.mxu1 %v3406_v33  ;;  %3074 = vmatprep.subr.bf16.mxu0 %v3408_v37  ;;  %v1518_v25 = vsel %vm3655_vm5, %v2789_v50, %v1517_v57  ;;  %v1525_v48 = vrot.slane %v4131_v24, 7  ;;  %v1533_v26 = vrot.slane %v4134_v38, 7  ;;  %v2900_v9 = vrot.slane %v2215_v62, 11  ;;  %v3435_v50 = vld [vmem:[%s4351_s8 + $0x1d8] sm:$0xff]   ;;  %v3439_v62 = vld [vmem:[%s4351_s8 + $0x210] sm:$0xff]  }
 0x158   : > { %3276 = vmatprep.subr.bf16.mxu1 %v3898_v10  ;;  %v1542_v27 = vsel %vm3655_vm5, %v2795_v58, %v1541_v5  ;;  %v2229_v32 = vrot.slane %v2217_v63, 7  ;;  %v4190_v1 = vsel %vm3655_vm5, %v2904_v3, %v2245_v43  ;;  %v4194_v33 = vsel %vm3655_vm5, %v2906_v59, %v2253_v60  ;;  %v3437_v57 = vld [vmem:[%s4351_s8 + $0x198] sm:$0xff]   ;;  %v3438_v60 = vld [vmem:[%s4351_s8 + $0x1d0] sm:$0xff]   ;;  %v3441_v63 = vld [vmem:[%s4351_s8 + $0x1c8] sm:$0xff]  }
 0x159   : > { %v1546_v37 = vcombine.low %v4078_v55, %v4082_v56  ;;  %v4211_v55 = vsel %vm3655_vm5, %v2902_v6, %v2237_v7  ;;  %v1543_v56 = vcombine.low %v4064_v0, %v4071_v47  ;;  %v2263_v21 = vcombine.high %v4190_v1, %v4194_v33  ;;  %v3424_v0 = vld [vmem:[%s4351_s8 + $0x238] sm:$0xff]   ;;  %v3444_v5 = vld [vmem:[%s4351_s8 + $0x1c0] sm:$0xff]  }
 0x15a   : > { %3075 = vmatpush3.bf16.msra.mxu0 %v3410_v11  ;;  %v3421_v11 = vld [vmem:[%s4351_s8 + $0x80] sm:$0xff]   ;;  %v4222_v24 = vsel %vm3655_vm5, %v2900_v9, %v2229_v32  ;;  %v2209_v51 = vrot.slane %v4118_v15, 2  ;;  %v2210_v53 = vrot.slane %v4110_v12, 2  ;;  %v2208_v58 = vrot.slane %v4123_v18, 2  ;;  %v3436_v59 = vld [vmem:[%s4351_s8 + $0x218] sm:$0xff]   ;;  %v3440_v18 = vld [vmem:[%s4351_s8 + $0x190] sm:$0xff]  }
 0x15b   : > { %3277 = vmatpush3.bf16.msra.mxu1 %v3409_v13  ;;  %3076 = vmatprep.subr.bf16.mxu0 %v3411_v14  ;;  %v1526_v13 = vsel %vm3655_vm5, %v2791_v4, %v1525_v48  ;;  %v1534_v14 = vsel %vm3655_vm5, %v2793_v2, %v1533_v26  ;;  %v1555_v38 = vpack.c.bf16 %v1546_v37, %v1543_v56  ;;  %v2207_v12 = vrot.slane %v4142_v29, 2  ;;  %v3443_v4 = vld [vmem:[%s4351_s8 + $0x188] sm:$0xff]   ;;  %v3445_v32 = vld [vmem:[%s4351_s8 + $0x200] sm:$0xff]  }
 0x15c   : > { %3278 = vmatprep.subr.bf16.mxu1 %v3898_v10  ;;  %v1548_v17 = vcombine.low %v1534_v14, %v1542_v27  ;;  %v2260_v47 = vcombine.high %v4222_v24, %v4211_v55  ;;  %v2222_v15 = vcombine.high %v2209_v51, %v2209_v51  ;;  %v2219_v3 = vcombine.high %v2208_v58, %v2208_v58  ;;  %v3442_v2 = vld [vmem:[%s4351_s8 + $0x208] sm:$0xff]  }
 0x15d   : > { %v2216_v29 = vcombine.high %v2207_v12, %v2207_v12  ;;  %v2249_v7 = vrot.slane %v2209_v51, 7  ;;  %v2241_v48 = vrot.slane %v2208_v58, 7  ;;  %v2262_v9 = vcombine.low %v4190_v1, %v4194_v33  ;;  %v2786_v58 = vld [vmem:[%s4349_s6] ss:$0 sm:$0xff] }
 0x15e   : > { %3077 = vmatpush3.bf16.msra.mxu0 %v3413_v22  ;;  %v1545_v22 = vcombine.low %v1518_v25, %v1526_v13  ;;  %v2272_v30 = vpack.c.bf16 %v2263_v21, %v2260_v47  ;;  %v2905_v43 = vrot.slane %v2222_v15, 11  ;;  %v2903_v6 = vrot.slane %v2219_v3, 11 }
 0x15f   : > { %3279 = vmatpush3.bf16.msra.mxu1 %v3412_v20  ;;  %3078 = vmatprep.subr.bf16.mxu0 %v3414_v28  ;;  %v3426_v28 = vld [vmem:[%s4351_s8 + $0x1f0] sm:$0xff]   ;;  %v2901_v25 = vrot.slane %v2216_v29, 11  ;;  %v2233_v37 = vrot.slane %v2207_v12, 7  ;;  %v2259_v14 = vcombine.low %v4222_v24, %v4211_v55 }
 0x160   : > { %3280 = vmatprep.subr.bf16.mxu1 %v3898_v10  ;;  %v1557_v20 = vpack.c.bf16 %v1548_v17, %v1545_v22  ;;  %v2250_v26 = vsel %vm3655_vm5, %v2905_v43, %v2249_v7 }
 0x161   : > { %v2271_v33 = vpack.c.bf16 %v2262_v9, %v2259_v14 }
 0x162   : > { %3079 = vmatpush3.bf16.msra.mxu0 %v3416_v35  ;;  %v3431_v35 = vld [vmem:[%s4351_s8 + $0x1a8] sm:$0xff]  }
 0x163   : > { %3281 = vmatpush3.bf16.msra.mxu1 %v3415_v41  ;;  %3080 = vmatprep.subr.bf16.mxu0 %v3417_v42  ;;  %v4257_v41 = vpop.f32.mrf.mxu1  ;;  %v3434_v42 = vld [vmem:[%s4351_s8 + $0x1a0] sm:$0xff]  }
 0x164   : > { %3282 = vmatprep.subr.bf16.mxu1 %v3898_v10  ;;  %v1442_v7 = vmul.f32 %v2786_v58, %v4257_v41 }
 0x165   : > { %v3249_v46 = vpop.f32.mrf.mxu1 }
 0x166   : > { %3081 = vmatpush3.bf16.msra.mxu0 %v3419_v61  ;;  %v2225_v61 = vcombine.high %v2210_v53, %v2210_v53 }
 0x167   : > { %3283 = vmatpush3.bf16.msra.mxu1 %v3418_v44  ;;  %3082 = vmatprep.subr.bf16.mxu0 %v3420_v45  ;;  %v2257_v45 = vrot.slane %v2210_v53, 7 }
 0x168   : > { %3284 = vmatprep.subr.bf16.mxu1 %v3898_v10  ;;  %v2907_v44 = vrot.slane %v2225_v61, 11 }
 0x16a   : > { %3083 = vmatpush3.bf16.msra.mxu0 %v3422_v8  ;;  %v2258_v27 = vsel %vm3655_vm5, %v2907_v44, %v2257_v45  ;;  %v3446_v8 = vld [vmem:[%s4351_s8 + $0x180] sm:$0xff]  }
 0x16b   : > { %3285 = vmatpush3.bf16.msra.mxu1 %v3421_v11  ;;  %3099 = vmatprep.subr.bf16.mxu0 %v3423_v16  ;;  %v2242_v11 = vsel %vm3655_vm5, %v2903_v6, %v2241_v48  ;;  %v2264_v13 = vcombine.low %v2250_v26, %v2258_v27  ;;  %v2234_v16 = vsel %vm3655_vm5, %v2901_v25, %v2233_v37  ;;  %v2787_v44 = vld [vmem:[%s4350_s7] ss:$0 sm:$0xff] }
 0x16c   : > { %3290 = vmatprep.subr.bf16.mxu1 %v3898_v10  ;;  %v2261_v1 = vcombine.low %v2234_v16, %v2242_v11  ;;  %v2981_v45 = vld [vmem:[%s4353_s10] ss:$0 sm:$0xff]  ;;  %v1451_v27 = vadd.f32 %v2787_v44, %v1442_v7 }
 0x16d   : > { %2141 = vmatmul.mubr.bf16.vlgmr.msra.gmra.mxu0 %v1555_v38 }
 0x16e   : > { %3287 = vmatmul.mubr.bf16.vlgmr.msra.gmra.mxu1 %v1557_v20  ;;  %3100 = vmatpush3.bf16.msra.mxu0 %v3425_v23  ;;  %v2273_v17 = vpack.c.bf16 %v2264_v13, %v2261_v1 }
 0x16f   : > { %3291 = vmatpush3.bf16.msra.mxu1 %v3424_v0  ;;  %2499 = vmatprep.mubr.bf16.mxu0 %v2272_v30 }
 0x170   : > { %3292 = vmatprep.subr.bf16.mxu1 %v3898_v10  ;;  %3101 = vmatprep.subr.bf16.mxu0 %v3426_v28 }
 0x171   : > { %3306 = vmatprep.mubr.msk.bf16.mxu1 %vm3457_vm0, %v3898_v10 }
 0x172   : > { %3102 = vmatpush3.bf16.msra.mxu0 %v3428_v52 }
 0x173   : > { %3293 = vmatpush3.bf16.msra.mxu1 %v3427_v31  ;;  %3103 = vmatprep.subr.bf16.mxu0 %v3429_v54 }
 0x174   : > { %3294 = vmatprep.subr.bf16.mxu1 %v3898_v10 }
 0x176   : > { %3104 = vmatpush3.bf16.msra.mxu0 %v3431_v35 }
 0x177   : > { %3295 = vmatpush3.bf16.msra.mxu1 %v3430_v39  ;;  %3105 = vmatprep.subr.bf16.mxu0 %v3432_v40 }
 0x178   : > { %3296 = vmatprep.subr.bf16.mxu1 %v3898_v10 }
 0x17a   : > { %3106 = vmatpush3.bf16.msra.mxu0 %v3434_v42 }
 0x17b   : > { %3297 = vmatpush3.bf16.msra.mxu1 %v3433_v49  ;;  %3107 = vmatprep.subr.bf16.mxu0 %v3435_v50 }
 0x17c   : > { %3298 = vmatprep.subr.bf16.mxu1 %v3898_v10 }
 0x17e   : > { %3108 = vmatpush3.bf16.msra.mxu0 %v3437_v57 }
 0x17f   : > { %3299 = vmatpush3.bf16.msra.mxu1 %v3436_v59  ;;  %3109 = vmatprep.subr.bf16.mxu0 %v3438_v60 }
 0x180   : > { %3300 = vmatprep.subr.bf16.mxu1 %v3898_v10 }
 0x182   : > { %3110 = vmatpush3.bf16.msra.mxu0 %v3440_v18  ;;  %v2980_v18 = vld [vmem:[%s4352_s9] ss:$0 sm:$0xff] }
 0x183   : > { %3301 = vmatpush3.bf16.msra.mxu1 %v3439_v62  ;;  %3111 = vmatprep.subr.bf16.mxu0 %v3441_v63  ;;  %v1441_v63 = vmul.f32 %v2786_v58, %v4243_v34 }
 0x184   : > { %3302 = vmatprep.subr.bf16.mxu1 %v3898_v10 }
 0x185   : > { %v1450_v6 = vadd.f32 %v2787_v44, %v1441_v63 }
 0x186   : > { %3112 = vmatpush3.bf16.msra.mxu0 %v3443_v4 }
 0x187   : > { %3303 = vmatpush3.bf16.msra.mxu1 %v3442_v2  ;;  %3113 = vmatprep.subr.bf16.mxu0 %v3444_v5 }
 0x188   : > { %3304 = vmatprep.subr.bf16.mxu1 %v3898_v10 }
 0x18a   : > { %3114 = vmatpush3.bf16.msra.mxu0 %v3446_v8 }
 0x18b   : > { %3305 = vmatpush3.bf16.msra.mxu1 %v3445_v32 }
 0x18d   : > { %2500 = vmatmul.mubr.bf16.vlgmr.msra.gmra.mxu0 %v2271_v33 }
 0x18e   : > { %3307 = vmatmul.mubr.bf16.vlgmr.msra.gmra.mxu1 %v2273_v17 }
 0x20d   : > { %v3053_v0 = vpop.f32.mrf.mxu0 }
 0x20e   : > { %v1957_v56 = vpop.f32.mrf.mxu1 }
 0x20f   : > { %v3054_v55 = vpop.f32.mrf.mxu0 }
 0x210   : > { %v3268_v21 = vpop.f32.mrf.mxu1  ;;  %v3055_v31 = vadd.f32 %v3054_v55, %v3053_v0 }
 0x211   : > { %v3056_v24 = vpop.f32.mrf.mxu0 }
 0x212   : > { %v1960_v22 = vpop.f32.mrf.mxu1  ;;  %v1958_v36 = vadd.f32 %v3055_v31, %v1957_v56 }
 0x213   : > { %v3057_v19 = vpop.f32.mrf.mxu0 }
 0x214   : > { %v3269_v23 = vpop.f32.mrf.mxu1  ;;  %v3058_v39 = vadd.f32 %v3057_v19, %v3056_v24 }
 0x216   : > { %v1961_v51 = vadd.f32 %v3058_v39, %v1960_v22 }
 0x22d   : > { %v3084_v28 = vpop.f32.mrf.mxu0 }
 0x22e   : > { %v2183_v38 = vpop.f32.mrf.mxu1 }
 0x22f   : > { %v3085_v30 = vpop.f32.mrf.mxu0 }
 0x230   : > { %v3288_v10 = vpop.f32.mrf.mxu1  ;;  %v3086_v54 = vadd.f32 %v3085_v30, %v3084_v28 }
 0x231   : > { %v3087_v52 = vpop.f32.mrf.mxu0 }
 0x232   : > { %v2186_v47 = vpop.f32.mrf.mxu1  ;;  %v2143_v42 = vadd.f32 %v3086_v54, %v1958_v36 }
 0x233   : > { %v3088_v35 = vpop.f32.mrf.mxu0 }
 0x234   : > { %v3289_v20 = vpop.f32.mrf.mxu1  ;;  %v3089_v46 = vadd.f32 %v3088_v35, %v3087_v52  ;;  %v2184_v60 = vadd.f32 %v2183_v38, %v2143_v42 }
 0x236   : > { %v2146_v12 = vadd.f32 %v3089_v46, %v1961_v51 }
 0x238   : > { %v2187_v4 = vadd.f32 %v2186_v47, %v2146_v12 }
 0x24d   : > { %v3115_v40 = vpop.f32.mrf.mxu0 }
 0x24e   : > { %v2542_v49 = vpop.f32.mrf.mxu1 }
 0x24f   : > { %v3116_v50 = vpop.f32.mrf.mxu0 }
 0x250   : > { %v3308_v53 = vpop.f32.mrf.mxu1  ;;  %v3117_v57 = vadd.f32 %v3116_v50, %v3115_v40 }
 0x251   : > { %v3118_v59 = vpop.f32.mrf.mxu0 }
 0x252   : > { %v2543_v15 = vadd.f32 %v3117_v57, %v2542_v49  ;;  %v2545_v61 = vpop.f32.mrf.mxu1 }
 0x253   : > { %v3119_v62 = vpop.f32.mrf.mxu0 }
 0x254   : > { %v2549_v3 = vadd.f32 %v2543_v15, %v2184_v60  ;;  %v3309_v29 = vpop.f32.mrf.mxu1  ;;  %v3120_v43 = vadd.f32 %v3119_v62, %v3118_v59 }
 0x256   : > { %v2558_v2 = vmul.f32 %v2980_v18, %v2549_v3  ;;  %v2546_v5 = vadd.f32 %v3120_v43, %v2545_v61 }
 0x258   : > { %v2567_v25 = vadd.f32 %v2981_v45, %v2558_v2  ;;  %v2550_v34 = vadd.f32 %v2546_v5, %v2187_v4 }
 0x25a   : > { %v2569_v48 = vadd.f32 %v2567_v25, %v1450_v6  ;;  %v2559_v26 = vmul.f32 %v2980_v18, %v2550_v34 }
 0x25c   : > { %v2571_v8 = vmax.f32 %v2569_v48, 0.0  ;;  %v2568_v9 = vadd.f32 %v2981_v45, %v2559_v26 }
 0x25e   : > { %v2575_v32 = vcombine.high %v2571_v8, %v2571_v8  ;;  %2579 = vst [vmem:[%s406_s28] sm:$0xf] %v2571_v8  ;;  %v2570_v37 = vadd.f32 %v2568_v9, %v1451_v27 }
 0x260   : > { %2580 = vst [vmem:[%s406_s28 + $0x4] sm:$0xf] %v2575_v32  ;;  %v2572_v11 = vmax.f32 %v2570_v37, 0.0 }
 0x262   : > { %v2576_v13 = vcombine.high %v2572_v11, %v2572_v11  ;;  %2581 = vst [vmem:[%s406_s28 + $0x8] sm:$0xf] %v2572_v11 }
 0x264   : > { %2582 = vst [vmem:[%s406_s28 + $0xc] sm:$0xf] %v2576_v13 }
 0x265 PF: > { %s21_s17 = sadd.s32 1, %s3454_s17  }
 0x266   : > { %p18_p4 = scmp.ge.s32.totalorder %s21_s17, 4  }
 0x268   :  { %20 = sbr.rel (!%p18_p4) target bundleno = 1 (0x1), region = 125 }

// kernel: resnet_front_forward.9
= control target key start
LH: loop header
LB: loop body
LE: loop exit
PB: predicated region body
PF: predicated region fallthrough
CT: control target
= control target key end

     0   :  { %12 = vsyncpa [#allocation5], 0  ;;  %s4508_s0 = inlined_call_operand.vmem [shape: f32[2,4,4,128], index: 0, kind: input, shape index: {}]   ;;  %s4509_s1 = inlined_call_operand.vmem [shape: bf16[3,3,128,128], index: 1, kind: input, shape index: {}]   ;;  %s4510_s2 = inlined_call_operand.vmem [shape: f32[1,128], index: 2, kind: input, shape index: {}]   ;;  %s4511_s3 = inlined_call_operand.vmem [shape: f32[1,128], index: 3, kind: input, shape index: {}]   ;;  %s4512_s4 = inlined_call_operand.vmem [shape: bf16[3,3,128,128], index: 4, kind: input, shape index: {}]   ;;  %s4513_s5 = inlined_call_operand.vmem [shape: f32[1,128], index: 5, kind: input, shape index: {}]   ;;  %s4514_s6 = inlined_call_operand.vmem [shape: f32[1,128], index: 6, kind: input, shape index: {}]   ;;  %s4515_s7 = inlined_call_operand.hbm [shape: f32[2,4,4,128], index: 7, kind: output, shape index: {}]  }
   0x1   :  { %14 = vsyncpa [#allocation5 + $0x1], 0  ;;  %s3621_s24 = smov 0   ;;  %s3623_s25 = smov 0  }
   0x2   :  { %s3625_s26 = smov 0   ;;  %s3627_s27 = smov 0  }
   0x3 LB: > { %s3642_s28 = sadd.s32 4294967295, %s3574_s27   ;;  %s2615_s29 = sadd.s32 4294967294, %s3574_s27   ;;  %s3574_s27 = sphi %s3627_s27, %s4523_s27   ;;  %s3570_s26 = sphi %s3625_s26, %s4522_s26   ;;  %s3566_s25 = sphi %s3623_s25, %s4521_s25   ;;  %s3562_s24 = sphi %s3621_s24, %s4520_s24  }
   0x4   : > { %s3646_s30 = sadd.s32 1, %s3574_s27   ;;  %s179_s8 = sadd.s32 1, %s3570_s26 }
   0x5   : > { %s176_s9 = ssub.s32 %s3574_s27, %s3646_s30  ;;  %p189_p0 = scmp.ne.s32.totalorder %s3570_s26, %s3566_s25 }
   0x6   : > { %p177_p1 = scmp.eq.s32.totalorder %s176_s9, 0  ;;  %p190_p2 = scmp.eq.s32.totalorder %s3642_s28, 1 }
   0x7   : > { %p195_p3 = scmp.ne.s32.totalorder %s3566_s25, %s3562_s24  ;;  %p196_p4 = scmp.eq.s32.totalorder %s2615_s29, 1 }
   0x8   : > { %s3657_s10 = scalar_select %p177_p1, %s3570_s26, %s179_s8  }
   0x9   : > { %p3659_p5 = por %p190_p2, %p189_p0  ;;  %p3663_p6 = por %p196_p4, %p195_p3 }
   0xa   : > { %p2618_p7 = scmp.ge.s32.totalorder %s3574_s27, 1  ;;  %p240_p8 = scmp.lt.s32.totalorder %s3574_s27, 3 }
   0xc   : > { %p241_p9 = pnand %p2618_p7, %p240_p8 }
   0xd   : > { %p272_p10 = scmp.lt.s32.totalorder (!%p241_p9), %s3642_s28, 1  ;;  %s269_s21 = sand.u32 (!%p241_p9), 1, %s3566_s25  }
   0xe   : > { %244 = sbr.rel (%p241_p9) target bundleno = 641 (0x281), region = 48  ;;  %s2619_s13 = sshll.u32 (!%p241_p9), %s269_s21, 4 }
   0xf   : > { %s271_s14 = scalar_lea.vmem (!%p241_p9), [#allocation4], %s2619_s13  ;;  %s3016_s15 = sshll.u32 (!%p241_p9), %s3642_s28, 8 }
  0x10   : > { %s2553_s16 = sshll.u32 (!%p241_p9), %s271_s14, 4  ;;  %s4462_s19 = scalar_lea.hbm (!%p241_p9), %s4515_s7, %s3016_s15  ;;  %s4464_s16 = int_to_ptr.vmem [resolvable:$true] %s2553_s16 }
  0x11   : > { %s3578_s20 = smov (!%p241_p9), [#allocation4]  }
  0x12   : > { %s3518_s22 = sshll.u32 (!%p241_p9), %s3578_s20, 4  ;;  %s3519_s22 = int_to_ptr.vmem [resolvable:$false] %s3518_s22 }
  0x13   : > { %v3366_v0 = vld [vmem:[%s4509_s1 + $0x138] sm:$0xff]   ;;  %v3576_v1 = vmov 0.0   ;;  %vm3577_vm0 = vmmov 0   ;;  %v3369_v4 = vld [vmem:[%s4509_s1 + $0x130] sm:$0xff]   ;;  %v3372_v7 = vld [vmem:[%s4509_s1 + $0x128] sm:$0xff]   ;;  %s273_s8 = scalar_select %p272_p10, %s3642_s28, 1 }
  0x14   : > { %3203 = vmatprep.subr.bf16.mxu1 %v3576_v1  ;;  %282 = vst [vmem:[#allocation2 + $0x30] sm:$0xff] %v3576_v1  ;;  %283 = vst [vmem:[#allocation2] sm:$0x1f] %v3576_v1  ;;  %v3367_v2 = vld [vmem:[%s4509_s1 + $0x178] sm:$0xff]   ;;  %3017 = vmatprep.subr.bf16.mxu0 %v3366_v0  ;;  %v3370_v5 = vld [vmem:[%s4509_s1 + $0x170] sm:$0xff]   ;;  %vm335_vm1 = vcmask 1040384   ;;  %p3521_p0 = scmp.lt.s32.totalorder %s4464_s16, %s3519_s22 }
  0x15   : > { %285 = vst [vmem:[#allocation2 + $0x18] sm:$0x1f] %v3576_v1  ;;  %287 = vst [vmem:[#allocation2 + $0x20] sm:$0x1f] %v3576_v1  ;;  %v3368_v3 = vld [vmem:[%s4509_s1 + $0xf8] sm:$0xff]   ;;  %3219 = vmatprep.mubr.msk.bf16.mxu1 %vm3577_vm0, %v3576_v1  ;;  %3204 = vmatpush3.bf16.msra.mxu1 %v3367_v2  ;;  %v3371_v6 = vld [vmem:[%s4509_s1 + $0xf0] sm:$0xff]  }
  0x16   : > { %289 = vst [vmem:[#allocation2 + $0x38] sm:$0x1f] %v3576_v1  ;;  %291 = vst [vmem:[#allocation2 + $0x48] sm:$0x1f] %v3576_v1  ;;  %3018 = vmatpush3.bf16.msra.mxu0 %v3368_v3  ;;  %3205 = vmatprep.subr.bf16.mxu1 %v3576_v1  ;;  %v3373_v8 = vld [vmem:[%s4509_s1 + $0x168] sm:$0xff]   ;;  %v3375_v10 = vld [vmem:[%s4509_s1 + $0x120] sm:$0xff]  }
  0x17   : > { %293 = vst [vmem:[#allocation2 + $0x40] sm:$0x1f] %v3576_v1  ;;  %1405 = vst [vmem:[#allocation3] sm:$0x1f] %v3576_v1  ;;  %3019 = vmatprep.subr.bf16.mxu0 %v3369_v4  ;;  %v3374_v9 = vld [vmem:[%s4509_s1 + $0xe8] sm:$0xff]   ;;  %v3376_v11 = vld [vmem:[%s4509_s1 + $0x160] sm:$0xff]  }
  0x18   : > { %1407 = vst [vmem:[#allocation3 + $0x30] sm:$0x1f] %v3576_v1  ;;  %1409 = vst [vmem:[#allocation3 + $0x20] sm:$0x1f] %v3576_v1  ;;  %v3377_v12 = vld [vmem:[%s4509_s1 + $0xe0] sm:$0xff]   ;;  %v3378_v13 = vld [vmem:[%s4509_s1 + $0x118] sm:$0xff]  }
  0x19   : > { %1411 = vst [vmem:[#allocation3 + $0x40] sm:$0x1f] %v3576_v1  ;;  %1413 = vst [vmem:[#allocation3 + $0x28] sm:$0x1f] %v3576_v1  ;;  %3206 = vmatpush3.bf16.msra.mxu1 %v3370_v5  ;;  %v3379_v14 = vld [vmem:[%s4509_s1 + $0x158] sm:$0xff]   ;;  %v3381_v16 = vld [vmem:[%s4509_s1 + $0x110] sm:$0xff]  }
  0x1a   : > { %1415 = vst [vmem:[#allocation3 + $0x10] sm:$0x1f] %v3576_v1  ;;  %3020 = vmatpush3.bf16.msra.mxu0 %v3371_v6  ;;  %3207 = vmatprep.subr.bf16.mxu1 %v3576_v1  ;;  %v3380_v15 = vld [vmem:[%s4509_s1 + $0xd8] sm:$0xff]   ;;  %s3015_s18 = sshll.u32 %s273_s8, 4  ;;  %v3382_v17 = vld [vmem:[%s4509_s1 + $0x150] sm:$0xff]   ;;  %v3384_v19 = vld [vmem:[%s4509_s1 + $0x108] sm:$0xff]  }
  0x1b   : > { %3021 = vmatprep.subr.bf16.mxu0 %v3372_v7  ;;  %v3383_v18 = vld [vmem:[%s4509_s1 + $0xd0] sm:$0xff]   ;;  %s3752_s8 = scalar_lea.vmem %s4508_s0, %s3015_s18  ;;  %v3385_v20 = vld [vmem:[%s4509_s1 + $0x148] sm:$0xff]   ;;  %v3387_v25 = vld [vmem:[%s4509_s1 + $0x100] sm:$0xff]   ;;  %vm336_vm2 = vcmask 1044484   ;;  %s3514_s28 = scalar_lea.vmem %s4464_s16, 256 }
  0x1c   : > { %v3386_v21 = vld [vmem:[%s4509_s1 + $0xc8] sm:$0xff]   ;;  %v278_v22 = vld [vmem:[%s3752_s8] sm:$0xf]  ;;  %v279_v23 = vld [vmem:[%s3752_s8 + $0x4] sm:$0xf]  ;;  %p3515_p11 = scmp.ne.s32.totalorder %s4464_s16, %s3514_s28  ;;  %s3520_s23 = scalar_lea.vmem %s3519_s22, 512 }
  0x1d   : > { %3208 = vmatpush3.bf16.msra.mxu1 %v3373_v8  ;;  %v280_v24 = vld [vmem:[%s3752_s8 + $0x8] sm:$0xf]  ;;  %v281_v26 = vld [vmem:[%s3752_s8 + $0xc] sm:$0xf]  ;;  %295 = vst [vmem:[#allocation2 + $0x18] sm:$0xf] %v278_v22  ;;  %vm3783_vm3 = vmor %vm335_vm1, %vm336_vm2  ;;  %p3522_p1 = scmp.lt.s32.totalorder %s3520_s23, %s3514_s28 }
  0x1e   : > { %3022 = vmatpush3.bf16.msra.mxu0 %v3374_v9  ;;  %3209 = vmatprep.subr.bf16.mxu1 %v3576_v1  ;;  %296 = vst [vmem:[#allocation2 + $0x20] sm:$0xf] %v279_v23  ;;  %297 = vst [vmem:[#allocation2 + $0x38] sm:$0xf] %v280_v24  ;;  %v3388_v27 = vld [vmem:[%s4509_s1 + $0x140] sm:$0xff]   ;;  %v3390_v29 = vld [vmem:[%s4509_s1 + $0x78] sm:$0xff]   ;;  %p3516_p12 = pnand %p3515_p11, %p3659_p5 }
  0x1f   : > { %3023 = vmatprep.subr.bf16.mxu0 %v3375_v10  ;;  %298 = vst [vmem:[#allocation2 + $0x48] sm:$0xf] %v281_v26  ;;  %v3389_v28 = vld [vmem:[%s4509_s1 + $0xc0] sm:$0xff]   ;;  %p3523_p2 = por %p3522_p1, %p3521_p0 }
  0x20   : > { %p3517_p13 = pneg %p3516_p12 }
  0x21   : > { %3210 = vmatpush3.bf16.msra.mxu1 %v3376_v11 }
  0x22   : > { %3024 = vmatpush3.bf16.msra.mxu0 %v3377_v12  ;;  %3211 = vmatprep.subr.bf16.mxu1 %v3576_v1  ;;  %p3524_p3 = pnand %p3523_p2, %p3517_p13 }
  0x23   : > { %3025 = vmatprep.subr.bf16.mxu0 %v3378_v13 }
  0x24   : > { %v434_v30 = vld [vmem:[#allocation2 + $0x18] sm:$0x1f] }
  0x25   : > { %3212 = vmatpush3.bf16.msra.mxu1 %v3379_v14  ;;  %v436_v31 = vld [vmem:[#allocation2 + $0x20] sm:$0x1f]  ;;  %v438_v32 = vld [vmem:[#allocation2 + $0x38] sm:$0x1f]  ;;  %v445_v34 = vrot.slane %v434_v30, 1  ;;  %v449_v37 = vrot.slane %v434_v30, 2 }
  0x26   : > { %3026 = vmatpush3.bf16.msra.mxu0 %v3380_v15  ;;  %3213 = vmatprep.subr.bf16.mxu1 %v3576_v1  ;;  %v440_v33 = vld [vmem:[#allocation2 + $0x48] sm:$0x1f]  ;;  %v446_v35 = vrot.slane %v436_v31, 1  ;;  %v447_v36 = vrot.slane %v438_v32, 1  ;;  %v450_v39 = vrot.slane %v436_v31, 2  ;;  %v451_v40 = vrot.slane %v438_v32, 2 }
  0x27   : > { %3027 = vmatprep.subr.bf16.mxu0 %v3381_v16  ;;  %v448_v38 = vrot.slane %v440_v33, 1  ;;  %v452_v41 = vrot.slane %v440_v33, 2  ;;  %v457_v42 = vcombine.high %v3576_v1, %v445_v34  ;;  %v459_v43 = vcombine.low %v434_v30, %v445_v34  ;;  %v3392_v16 = vld [vmem:[%s4509_s1 + $0x38] sm:$0xff]   ;;  %v3394_v30 = vld [vmem:[%s4509_s1 + $0xb0] sm:$0xff]   ;;  %v3397_v34 = vld [vmem:[%s4509_s1 + $0xa8] sm:$0xff]  }
  0x28   : > { %v460_v44 = vcombine.high %v3576_v1, %v446_v35  ;;  %v462_v45 = vcombine.low %v436_v31, %v446_v35  ;;  %v463_v47 = vcombine.high %v3576_v1, %v447_v36  ;;  %v465_v48 = vcombine.low %v438_v32, %v447_v36  ;;  %v3398_v31 = vld [vmem:[%s4509_s1 + $0x28] sm:$0xff]   ;;  %v3399_v32 = vld [vmem:[%s4509_s1 + $0x60] sm:$0xff]   ;;  %v3402_v35 = vld [vmem:[%s4509_s1 + $0x58] sm:$0xff]  }
  0x29   : > { %3214 = vmatpush3.bf16.msra.mxu1 %v3382_v17  ;;  %v466_v49 = vcombine.high %v3576_v1, %v448_v38  ;;  %v468_v50 = vcombine.low %v440_v33, %v448_v38  ;;  %v2630_v51 = vrot.slane %v457_v42, 11  ;;  %v471_v52 = vrot.slane %v459_v43, 7  ;;  %v3401_v33 = vld [vmem:[%s4509_s1 + $0x20] sm:$0xff]  }
  0x2a   : > { %3028 = vmatpush3.bf16.msra.mxu0 %v3383_v18  ;;  %3215 = vmatprep.subr.bf16.mxu1 %v3576_v1  ;;  %v2632_v53 = vrot.slane %v460_v44, 11  ;;  %v479_v54 = vrot.slane %v462_v45, 7  ;;  %v2634_v55 = vrot.slane %v463_v47, 11  ;;  %v487_v56 = vrot.slane %v465_v48, 7  ;;  %v300_v36 = vld [vmem:[#allocation2] sm:$0x1f] }
  0x2b   : > { %3029 = vmatprep.subr.bf16.mxu0 %v3384_v19  ;;  %v2636_v57 = vrot.slane %v466_v49, 11  ;;  %v495_v58 = vrot.slane %v468_v50, 7  ;;  %v472_v59 = vsel %vm3783_vm3, %v2630_v51, %v471_v52  ;;  %v458_v61 = vcombine.high %v449_v37, %v449_v37  ;;  %v304_v38 = vld [vmem:[#allocation2 + $0x20] sm:$0x1f] }
  0x2c   : > { %v480_v60 = vsel %vm3783_vm3, %v2632_v53, %v479_v54  ;;  %v461_v62 = vcombine.high %v450_v39, %v450_v39  ;;  %v488_v63 = vsel %vm3783_vm3, %v2634_v55, %v487_v56  ;;  %v464_v6 = vcombine.high %v451_v40, %v451_v40  ;;  %v3404_v53 = vld [vmem:[%s4509_s1 + $0x18] sm:$0xff]  }
  0x2d   : > { %3216 = vmatpush3.bf16.msra.mxu1 %v3385_v20  ;;  %v496_v0 = vsel %vm3783_vm3, %v2636_v57, %v495_v58  ;;  %v501_v2 = vcombine.low %v472_v59, %v480_v60  ;;  %v502_v3 = vcombine.high %v472_v59, %v480_v60  ;;  %v467_v7 = vcombine.high %v452_v41, %v452_v41 }
  0x2e   : > { %3030 = vmatpush3.bf16.msra.mxu0 %v3386_v21  ;;  %3217 = vmatprep.subr.bf16.mxu1 %v3576_v1  ;;  %v504_v4 = vcombine.low %v488_v63, %v496_v0  ;;  %v505_v5 = vcombine.high %v488_v63, %v496_v0  ;;  %v2631_v8 = vrot.slane %v458_v61, 11  ;;  %v475_v9 = vrot.slane %v449_v37, 7  ;;  %v3393_v21 = vld [vmem:[%s4509_s1 + $0x70] sm:$0xff]   ;;  %v302_v37 = vld [vmem:[#allocation2 + $0x18] sm:$0x1f] }
  0x2f   : > { %3031 = vmatprep.subr.bf16.mxu0 %v3387_v25  ;;  %v2633_v10 = vrot.slane %v461_v62, 11  ;;  %v483_v11 = vrot.slane %v450_v39, 7  ;;  %v2635_v13 = vrot.slane %v464_v6, 11  ;;  %v491_v14 = vrot.slane %v451_v40, 7  ;;  %v3391_v25 = vld [vmem:[%s4509_s1 + $0xb8] sm:$0xff]   ;;  %v3400_v62 = vld [vmem:[%s4509_s1 + $0xa0] sm:$0xff]  }
  0x30   : > { %v514_v12 = vpack.c.bf16 %v505_v5, %v502_v3  ;;  %v2637_v15 = vrot.slane %v467_v7, 11  ;;  %v476_v17 = vsel %vm3783_vm3, %v2631_v8, %v475_v9  ;;  %v499_v19 = vrot.slane %v452_v41, 7  ;;  %v306_v39 = vld [vmem:[#allocation2 + $0x38] sm:$0x1f]  ;;  %v3405_v63 = vld [vmem:[%s4509_s1 + $0x50] sm:$0xff]  }
  0x31   : > { %3218 = vmatpush3.bf16.msra.mxu1 %v3388_v27  ;;  %v484_v18 = vsel %vm3783_vm3, %v2633_v10, %v483_v11  ;;  %v513_v20 = vpack.c.bf16 %v504_v4, %v501_v2  ;;  %v492_v22 = vsel %vm3783_vm3, %v2635_v13, %v491_v14  ;;  %v3395_v27 = vld [vmem:[%s4509_s1 + $0x30] sm:$0xff]   ;;  %v311_v40 = vrot.slane %v300_v36, 1 }
  0x32   : > { %3032 = vmatpush3.bf16.msra.mxu0 %v3389_v28  ;;  %3223 = vmatprep.subr.bf16.mxu1 %v3576_v1  ;;  %v503_v23 = vcombine.low %v476_v17, %v484_v18  ;;  %v500_v24 = vsel %vm3783_vm3, %v2637_v15, %v499_v19  ;;  %v3396_v28 = vld [vmem:[%s4509_s1 + $0x68] sm:$0xff]   ;;  %v312_v41 = vrot.slane %v302_v37, 1  ;;  %v313_v42 = vrot.slane %v304_v38, 1  ;;  %v3403_v15 = vld [vmem:[%s4509_s1 + $0x98] sm:$0xff]  }
  0x33   : > { %3048 = vmatprep.subr.bf16.mxu0 %v3390_v29  ;;  %741 = vmatprep.mubr.bf16.mxu0 %v514_v12  ;;  %v506_v26 = vcombine.low %v492_v22, %v500_v24  ;;  %v3841_v43 = vrot.slane %v300_v36, 2  ;;  %v314_v44 = vrot.slane %v306_v39, 1  ;;  %v3843_v45 = vrot.slane %v302_v37, 2  ;;  %v3407_v12 = vld [vmem:[%s4509_s1 + $0x10] sm:$0xff]   ;;  %v3410_v18 = vld [vmem:[%s4509_s1 + $0x8] sm:$0xff]  }
  0x34   : > { %v3845_v47 = vrot.slane %v304_v38, 2  ;;  %v3847_v48 = vrot.slane %v306_v39, 2  ;;  %v323_v49 = vcombine.high %v3576_v1, %v311_v40  ;;  %v325_v50 = vcombine.low %v300_v36, %v311_v40  ;;  %v3406_v22 = vld [vmem:[%s4509_s1 + $0x90] sm:$0xff]  }
  0x35   : > { %742 = vmatmul.mubr.bf16.vlgmr.msra.gmra.mxu0 %v513_v20  ;;  %v515_v29 = vpack.c.bf16 %v506_v26, %v503_v23  ;;  %v326_v51 = vcombine.high %v3576_v1, %v312_v41  ;;  %v328_v52 = vcombine.low %v302_v37, %v312_v41  ;;  %v329_v54 = vcombine.high %v3576_v1, %v313_v42  ;;  %v3411_v23 = vld [vmem:[%s4509_s1 + $0x40] sm:$0xff]  }
  0x36   : > { %3049 = vmatpush3.bf16.msra.mxu0 %v3392_v16  ;;  %v331_v55 = vcombine.low %v304_v38, %v313_v42  ;;  %v332_v56 = vcombine.high %v3576_v1, %v314_v44  ;;  %v334_v57 = vcombine.low %v306_v39, %v314_v44  ;;  %v2622_v58 = vrot.slane %v323_v49, 11  ;;  %v3408_v16 = vld [vmem:[%s4509_s1 + $0x48] sm:$0xff]   ;;  %v3414_v38 = vld [vmem:[%s4509_s1 + $0x1f8] sm:$0xff]   ;;  %v3412_v39 = vld [vmem:[%s4509_s1 + $0x80] sm:$0xff]  }
  0x37   : > { %3050 = vmatprep.subr.bf16.mxu0 %v3393_v21  ;;  %3220 = vmatmul.mubr.bf16.vlgmr.msra.gmra.mxu1 %v515_v29  ;;  %v340_v59 = vrot.slane %v325_v50, 7  ;;  %v2624_v60 = vrot.slane %v326_v51, 11  ;;  %v348_v61 = vrot.slane %v328_v52, 7  ;;  %v2626_v0 = vrot.slane %v329_v54, 11  ;;  %v3417_v44 = vld [vmem:[%s4509_s1 + $0x1f0] sm:$0xff]   ;;  %v3420_v49 = vld [vmem:[%s4509_s1 + $0x1e8] sm:$0xff]  }
  0x38   : > { %3224 = vmatpush3.bf16.msra.mxu1 %v3391_v25  ;;  %3239 = vmatprep.mubr.msk.bf16.mxu1 %vm3577_vm0, %v3576_v1  ;;  %v356_v2 = vrot.slane %v331_v55, 7  ;;  %v2628_v3 = vrot.slane %v332_v56, 11  ;;  %v364_v4 = vrot.slane %v334_v57, 7  ;;  %v324_v7 = vcombine.high %v3841_v43, %v3841_v43  ;;  %v3422_v50 = vld [vmem:[%s4509_s1 + $0x1a8] sm:$0xff]   ;;  %v3418_v51 = vld [vmem:[%s4509_s1 + $0x230] sm:$0xff]   ;;  %v3423_v52 = vld [vmem:[%s4509_s1 + $0x1e0] sm:$0xff]  }
  0x39   : > { %3225 = vmatprep.subr.bf16.mxu1 %v3576_v1  ;;  %v341_v5 = vsel %vm3783_vm3, %v2622_v58, %v340_v59  ;;  %v349_v6 = vsel %vm3783_vm3, %v2624_v60, %v348_v61  ;;  %v327_v11 = vcombine.high %v3843_v45, %v3843_v45  ;;  %v330_v14 = vcombine.high %v3845_v47, %v3845_v47  ;;  %v1021_v54 = vld [vmem:[#allocation2 + $0x38] sm:$0x1f]  ;;  %v1023_v55 = vld [vmem:[#allocation2 + $0x48] sm:$0x1f]  ;;  %v1025_v56 = vld [vmem:[#allocation2 + $0x40] sm:$0x1f] }
  0x3a   : > { %3051 = vmatpush3.bf16.msra.mxu0 %v3395_v27  ;;  %v357_v8 = vsel %vm3783_vm3, %v2626_v0, %v356_v2  ;;  %v365_v9 = vsel %vm3783_vm3, %v2628_v3, %v364_v4  ;;  %v371_v10 = vcombine.high %v341_v5, %v349_v6  ;;  %v333_v17 = vcombine.high %v3847_v48, %v3847_v48  ;;  %v3425_v61 = vld [vmem:[%s4509_s1 + $0x1a0] sm:$0xff]   ;;  %v3421_v3 = vld [vmem:[%s4509_s1 + $0x228] sm:$0xff]   ;;  %v3426_v4 = vld [vmem:[%s4509_s1 + $0x1d8] sm:$0xff]  }
  0x3b   : > { %3052 = vmatprep.subr.bf16.mxu0 %v3396_v28  ;;  %v374_v13 = vcombine.high %v357_v8, %v365_v9  ;;  %v2623_v20 = vrot.slane %v324_v7, 11  ;;  %v344_v21 = vrot.slane %v3841_v43, 7  ;;  %v2625_v24 = vrot.slane %v327_v11, 11  ;;  %v3416_v43 = vld [vmem:[%s4509_s1 + $0x1b8] sm:$0xff]  }
  0x3c   : > { %3226 = vmatpush3.bf16.msra.mxu1 %v3394_v30  ;;  %v352_v25 = vrot.slane %v3843_v45, 7  ;;  %v2627_v26 = vrot.slane %v330_v14, 11  ;;  %v360_v27 = vrot.slane %v3845_v47, 7  ;;  %v2629_v28 = vrot.slane %v333_v17, 11  ;;  %v3409_v30 = vld [vmem:[%s4509_s1 + $0x88] sm:$0xff]   ;;  %v3415_v45 = vld [vmem:[%s4509_s1 + $0x238] sm:$0xff]  }
  0x3d   : > { %3227 = vmatprep.subr.bf16.mxu1 %v3576_v1  ;;  %v383_v19 = vpack.c.bf16 %v374_v13, %v371_v10  ;;  %v368_v29 = vrot.slane %v3847_v48, 7  ;;  %v3419_v48 = vld [vmem:[%s4509_s1 + $0x1b0] sm:$0xff]   ;;  %v1031_v58 = vrot.slane %v1021_v54, 1  ;;  %v1032_v59 = vrot.slane %v1023_v55, 1  ;;  %v3428_v17 = vld [vmem:[%s4509_s1 + $0x198] sm:$0xff]  }
  0x3e   : > { %3053 = vmatpush3.bf16.msra.mxu0 %v3398_v31  ;;  %v370_v31 = vcombine.low %v341_v5, %v349_v6  ;;  %v361_v36 = vsel %vm3783_vm3, %v2627_v26, %v360_v27  ;;  %v1033_v60 = vrot.slane %v1025_v56, 1  ;;  %v3961_v0 = vrot.slane %v1023_v55, 2 }
  0x3f   : > { %3054 = vmatprep.subr.bf16.mxu0 %v3399_v32  ;;  %967 = vmatprep.mubr.bf16.mxu0 %v383_v19  ;;  %v373_v32 = vcombine.low %v357_v8, %v365_v9  ;;  %v369_v37 = vsel %vm3783_vm3, %v2629_v28, %v368_v29  ;;  %v3963_v2 = vrot.slane %v1025_v56, 2  ;;  %v1045_v7 = vcombine.high %v3576_v1, %v1031_v58 }
  0x40   : > { %3228 = vmatpush3.bf16.msra.mxu1 %v3397_v34  ;;  %v345_v34 = vsel %vm3783_vm3, %v2623_v20, %v344_v21  ;;  %v375_v42 = vcombine.low %v361_v36, %v369_v37  ;;  %v1047_v8 = vcombine.low %v1021_v54, %v1031_v58  ;;  %v1048_v9 = vcombine.high %v3576_v1, %v1032_v59  ;;  %v3436_v58 = vld [vmem:[%s4509_s1 + $0x200] sm:$0xff]  }
  0x41   : > { %3229 = vmatprep.subr.bf16.mxu1 %v3576_v1  ;;  %v382_v40 = vpack.c.bf16 %v373_v32, %v370_v31  ;;  %v1050_v10 = vcombine.low %v1023_v55, %v1032_v59  ;;  %v1051_v11 = vcombine.high %v3576_v1, %v1033_v60  ;;  %v1049_v32 = vcombine.high %v3961_v0, %v3961_v0 }
  0x42   : > { %3055 = vmatpush3.bf16.msra.mxu0 %v3401_v33  ;;  %v3413_v33 = vld [vmem:[%s4509_s1] sm:$0xff]  }
  0x43   : > { %3056 = vmatprep.subr.bf16.mxu0 %v3402_v35  ;;  %v353_v35 = vsel %vm3783_vm3, %v2625_v24, %v352_v25  ;;  %v1072_v19 = vrot.slane %v1050_v10, 7  ;;  %v2740_v20 = vrot.slane %v1051_v11, 11  ;;  %v3448_v10 = vld [vmem:[%s4512_s4 + $0x160] sm:$0xff]  }
  0x44   : > { %3230 = vmatpush3.bf16.msra.mxu1 %v3400_v62  ;;  %v372_v41 = vcombine.low %v345_v34, %v353_v35  ;;  %v1052_v34 = vcombine.high %v3963_v2, %v3963_v2  ;;  %v3449_v11 = vld [vmem:[%s4512_s4 + $0xe0] sm:$0xff]  }
  0x45   : > { %3231 = vmatprep.subr.bf16.mxu1 %v3576_v1 }
  0x46   : > { %3057 = vmatpush3.bf16.msra.mxu0 %v3404_v53  ;;  %v384_v47 = vpack.c.bf16 %v375_v42, %v372_v41  ;;  %v1019_v53 = vld [vmem:[#allocation2 + $0x20] sm:$0x1f]  ;;  %v2739_v41 = vrot.slane %v1049_v32, 11  ;;  %v1076_v42 = vrot.slane %v3961_v0, 7  ;;  %v3439_v0 = vld [vmem:[%s4512_s4 + $0x178] sm:$0xff]  }
  0x47   : > { %3058 = vmatprep.subr.bf16.mxu0 %v3405_v63  ;;  %v1030_v57 = vrot.slane %v1019_v53, 1  ;;  %v3957_v62 = vrot.slane %v1019_v53, 2  ;;  %v3959_v63 = vrot.slane %v1021_v54, 2 }
  0x48   : > { %3232 = vmatpush3.bf16.msra.mxu1 %v3403_v15  ;;  %v2736_v15 = vrot.slane %v1045_v7, 11  ;;  %v3445_v7 = vld [vmem:[%s4512_s4 + $0x168] sm:$0xff]  }
  0x49   : > { %3233 = vmatprep.subr.bf16.mxu1 %v3576_v1  ;;  %v1042_v5 = vcombine.high %v3576_v1, %v1030_v57  ;;  %v1044_v6 = vcombine.low %v1019_v53, %v1030_v57  ;;  %v1043_v25 = vcombine.high %v3957_v62, %v3957_v62  ;;  %v1046_v26 = vcombine.high %v3959_v63, %v3959_v63 }
  0x4a   : > { %3059 = vmatpush3.bf16.msra.mxu0 %v3407_v12  ;;  %v1053_v12 = vcombine.low %v1025_v56, %v1033_v60  ;;  %v1060_v36 = vrot.slane %v3957_v62, 7  ;;  %v1077_v56 = vsel %vm3783_vm3, %v2739_v41, %v1076_v42 }
  0x4b   : > { %3060 = vmatprep.subr.bf16.mxu0 %v3408_v16  ;;  %v2734_v13 = vrot.slane %v1042_v5, 11  ;;  %v1056_v14 = vrot.slane %v1044_v6, 7  ;;  %v1064_v16 = vrot.slane %v1047_v8, 7  ;;  %v2735_v35 = vrot.slane %v1043_v25, 11  ;;  %v3443_v5 = vld [vmem:[%s4512_s4 + $0xf0] sm:$0xff]   ;;  %v3444_v6 = vld [vmem:[%s4512_s4 + $0x128] sm:$0xff]  }
  0x4c   : > { %3234 = vmatpush3.bf16.msra.mxu1 %v3406_v22  ;;  %v1080_v21 = vrot.slane %v1053_v12, 7  ;;  %v3424_v22 = vld [vmem:[%s4509_s1 + $0x220] sm:$0xff]   ;;  %v2737_v37 = vrot.slane %v1046_v26, 11  ;;  %v3446_v8 = vld [vmem:[%s4512_s4 + $0xe8] sm:$0xff]   ;;  %v3450_v12 = vld [vmem:[%s4512_s4 + $0x118] sm:$0xff]  }
  0x4d   : > { %3235 = vmatprep.subr.bf16.mxu1 %v3576_v1  ;;  %v1065_v24 = vsel %vm3783_vm3, %v2736_v15, %v1064_v16  ;;  %v1061_v54 = vsel %vm3783_vm3, %v2735_v35, %v1060_v36  ;;  %v3453_v15 = vld [vmem:[%s4512_s4 + $0x110] sm:$0xff]  }
  0x4e   : > { %3061 = vmatpush3.bf16.msra.mxu0 %v3410_v18  ;;  %v2738_v18 = vrot.slane %v1048_v9, 11  ;;  %v1081_v28 = vsel %vm3783_vm3, %v2740_v20, %v1080_v21  ;;  %v3447_v9 = vld [vmem:[%s4512_s4 + $0x120] sm:$0xff]   ;;  %v3454_v16 = vld [vmem:[%s4512_s4 + $0x150] sm:$0xff]   ;;  %v3458_v20 = vld [vmem:[%s4512_s4 + $0xc8] sm:$0xff]  }
  0x4f   : > { %3062 = vmatprep.subr.bf16.mxu0 %v3411_v23  ;;  %v1057_v23 = vsel %vm3783_vm3, %v2734_v13, %v1056_v14  ;;  %v3451_v13 = vld [vmem:[%s4512_s4 + $0x158] sm:$0xff]   ;;  %v3459_v21 = vld [vmem:[%s4512_s4 + $0x100] sm:$0xff]  }
  0x50   : > { %3236 = vmatpush3.bf16.msra.mxu1 %v3409_v30  ;;  %v1073_v27 = vsel %vm3783_vm3, %v2738_v18, %v1072_v19  ;;  %v1087_v29 = vcombine.high %v1057_v23, %v1065_v24  ;;  %v3429_v30 = vld [vmem:[%s4509_s1 + $0x1d0] sm:$0xff]   ;;  %v3452_v14 = vld [vmem:[%s4512_s4 + $0xd8] sm:$0xff]   ;;  %v3456_v18 = vld [vmem:[%s4512_s4 + $0x108] sm:$0xff]  }
  0x51   : > { %3237 = vmatprep.subr.bf16.mxu1 %v3576_v1  ;;  %v1090_v31 = vcombine.high %v1073_v27, %v1081_v28  ;;  %v1089_v53 = vcombine.low %v1073_v27, %v1081_v28  ;;  %v3457_v19 = vld [vmem:[%s4512_s4 + $0x148] sm:$0xff]  }
  0x52   : > { %3063 = vmatpush3.bf16.msra.mxu0 %v3413_v33  ;;  %v3431_v33 = vld [vmem:[%s4509_s1 + $0x190] sm:$0xff]  }
  0x53   : > { %3079 = vmatprep.subr.bf16.mxu0 %v3414_v38  ;;  %v3427_v38 = vld [vmem:[%s4509_s1 + $0x218] sm:$0xff]  }
  0x54   : > { %3238 = vmatpush3.bf16.msra.mxu1 %v3412_v39  ;;  %v3432_v39 = vld [vmem:[%s4509_s1 + $0x1c8] sm:$0xff]  }
  0x55   : > { %968 = vmatmul.mubr.bf16.vlgmr.msra.gmra.mxu0 %v382_v40  ;;  %3243 = vmatprep.subr.bf16.mxu1 %v3576_v1  ;;  %v1068_v40 = vrot.slane %v3959_v63, 7  ;;  %v3438_v63 = vld [vmem:[%s4512_s4 + $0x138] sm:$0xff]  }
  0x56   : > { %3080 = vmatpush3.bf16.msra.mxu0 %v3416_v43  ;;  %v2741_v43 = vrot.slane %v1052_v34, 11 }
  0x57   : > { %3081 = vmatprep.subr.bf16.mxu0 %v3417_v44  ;;  %3240 = vmatmul.mubr.bf16.vlgmr.msra.gmra.mxu1 %v384_v47  ;;  %v1084_v44 = vrot.slane %v3963_v2, 7  ;;  %v3434_v47 = vld [vmem:[%s4509_s1 + $0x188] sm:$0xff]   ;;  %v1069_v55 = vsel %vm3783_vm3, %v2737_v37, %v1068_v40  ;;  %v3440_v2 = vld [vmem:[%s4512_s4 + $0xf8] sm:$0xff]  }
  0x58   : > { %3244 = vmatpush3.bf16.msra.mxu1 %v3415_v45  ;;  %3259 = vmatprep.mubr.msk.bf16.mxu1 %vm3577_vm0, %v3576_v1  ;;  %v4015_v45 = vld [vmem:[#allocation2 + $0x30] sm:$0xff]  ;;  %v1088_v60 = vcombine.low %v1061_v54, %v1069_v55 }
  0x59   : > { %3245 = vmatprep.subr.bf16.mxu1 %v3576_v1  ;;  %v1085_v57 = vsel %vm3783_vm3, %v2741_v43, %v1084_v44 }
  0x5a   : > { %3082 = vmatpush3.bf16.msra.mxu0 %v3419_v48  ;;  %v3430_v48 = vld [vmem:[%s4509_s1 + $0x210] sm:$0xff]  }
  0x5b   : > { %3083 = vmatprep.subr.bf16.mxu0 %v3420_v49  ;;  %v3435_v49 = vld [vmem:[%s4509_s1 + $0x1c0] sm:$0xff]  }
  0x5c   : > { %3246 = vmatpush3.bf16.msra.mxu1 %v3418_v51  ;;  %v3433_v51 = vld [vmem:[%s4509_s1 + $0x208] sm:$0xff]  }
  0x5d   : > { %3247 = vmatprep.subr.bf16.mxu1 %v3576_v1 }
  0x5e   : > { %3084 = vmatpush3.bf16.msra.mxu0 %v3422_v50  ;;  %v3437_v50 = vld [vmem:[%s4509_s1 + $0x180] sm:$0xff]  }
  0x5f   : > { %3085 = vmatprep.subr.bf16.mxu0 %v3423_v52  ;;  %v1086_v52 = vcombine.low %v1057_v23, %v1065_v24  ;;  %v3461_v23 = vld [vmem:[%s4512_s4 + $0xc0] sm:$0xff]   ;;  %v3462_v24 = vld [vmem:[%s4512_s4 + $0x78] sm:$0xff]  }
  0x60   : > { %3248 = vmatpush3.bf16.msra.mxu1 %v3421_v3  ;;  %v3441_v3 = vld [vmem:[%s4512_s4 + $0x130] sm:$0xff]  }
  0x61   : > { %3249 = vmatprep.subr.bf16.mxu1 %v3576_v1  ;;  %v1099_v1 = vpack.c.bf16 %v1090_v31, %v1087_v29  ;;  %v1098_v59 = vpack.c.bf16 %v1089_v53, %v1086_v52 }
  0x62   : > { %3086 = vmatpush3.bf16.msra.mxu0 %v3425_v61  ;;  %v1091_v61 = vcombine.low %v1077_v56, %v1085_v57 }
  0x63   : > { %3087 = vmatprep.subr.bf16.mxu0 %v3426_v4  ;;  %1326 = vmatprep.mubr.bf16.mxu0 %v1099_v1  ;;  %v3442_v4 = vld [vmem:[%s4512_s4 + $0x170] sm:$0xff]  }
  0x64   : > { %3250 = vmatpush3.bf16.msra.mxu1 %v3424_v22  ;;  %v1100_v62 = vpack.c.bf16 %v1091_v61, %v1088_v60  ;;  %v3460_v22 = vld [vmem:[%s4512_s4 + $0x140] sm:$0xff]  }
  0x65   : > { %3251 = vmatprep.subr.bf16.mxu1 %v4015_v45 }
  0x66   : > { %3088 = vmatpush3.bf16.msra.mxu0 %v3428_v17  ;;  %v3455_v17 = vld [vmem:[%s4512_s4 + $0xd0] sm:$0xff]  }
  0x67   : > { %3089 = vmatprep.subr.bf16.mxu0 %v3429_v30 }
  0x68   : > { %3252 = vmatpush3.bf16.msra.mxu1 %v3427_v38 }
  0x69   : > { %3253 = vmatprep.subr.bf16.mxu1 %v4015_v45 }
  0x6a   : > { %3090 = vmatpush3.bf16.msra.mxu0 %v3431_v33 }
  0x6b   : > { %3091 = vmatprep.subr.bf16.mxu0 %v3432_v39 }
  0x6c   : > { %3254 = vmatpush3.bf16.msra.mxu1 %v3430_v48 }
  0x6d   : > { %3255 = vmatprep.subr.bf16.mxu1 %v4015_v45 }
  0x6e   : > { %3092 = vmatpush3.bf16.msra.mxu0 %v3434_v47 }
  0x6f   : > { %3093 = vmatprep.subr.bf16.mxu0 %v3435_v49 }
  0x70   : > { %3256 = vmatpush3.bf16.msra.mxu1 %v3433_v51 }
  0x71   : > { %3257 = vmatprep.subr.bf16.mxu1 %v4015_v45 }
  0x72   : > { %3094 = vmatpush3.bf16.msra.mxu0 %v3437_v50 }
  0x73   : > { %3110 = vmatprep.subr.bf16.mxu0 %v3438_v63 }
  0x74   : > { %3258 = vmatpush3.bf16.msra.mxu1 %v3436_v58 }
  0x75   : > { %1327 = vmatmul.mubr.bf16.vlgmr.msra.gmra.mxu0 %v1098_v59  ;;  %3263 = vmatprep.subr.bf16.mxu1 %v4015_v45  ;;  %v2814_v59 = vld [vmem:[%s4510_s2] ss:$0 sm:$0xff] }
  0x76   : > { %3111 = vmatpush3.bf16.msra.mxu0 %v3440_v2 }
  0x77   : > { %3260 = vmatmul.mubr.bf16.vlgmr.msra.gmra.mxu1 %v1100_v62  ;;  %3112 = vmatprep.subr.bf16.mxu0 %v3441_v3  ;;  %v2815_v62 = vld [vmem:[%s4511_s3] ss:$0 sm:$0xff] }
  0x78   : > { %3279 = vmatprep.mubr.msk.bf16.mxu1 %vm3577_vm0, %v4015_v45  ;;  %3264 = vmatpush3.bf16.msra.mxu1 %v3439_v0 }
  0x79   : > { %3265 = vmatprep.subr.bf16.mxu1 %v4015_v45 }
  0x7a   : > { %3113 = vmatpush3.bf16.msra.mxu0 %v3443_v5 }
  0x7b   : > { %3114 = vmatprep.subr.bf16.mxu0 %v3444_v6 }
  0x7c   : > { %3266 = vmatpush3.bf16.msra.mxu1 %v3442_v4 }
  0x7d   : > { %3267 = vmatprep.subr.bf16.mxu1 %v4015_v45 }
  0x7e   : > { %3115 = vmatpush3.bf16.msra.mxu0 %v3446_v8 }
  0x7f   : > { %3116 = vmatprep.subr.bf16.mxu0 %v3447_v9  ;;  %v4139_v9 = vld [vmem:[#allocation3] sm:$0x1f] }
  0x80   : > { %3268 = vmatpush3.bf16.msra.mxu1 %v3445_v7 }
  0x81   : > { %3269 = vmatprep.subr.bf16.mxu1 %v4015_v45 }
  0x82   : > { %3117 = vmatpush3.bf16.msra.mxu0 %v3449_v11 }
  0x83   : > { %3118 = vmatprep.subr.bf16.mxu0 %v3450_v12  ;;  %v1433_v12 = vrot.slane %v4139_v9, 1 }
  0x84   : > { %3270 = vmatpush3.bf16.msra.mxu1 %v3448_v10 }
  0x85   : > { %3271 = vmatprep.subr.bf16.mxu1 %v4015_v45 }
  0x86   : > { %3119 = vmatpush3.bf16.msra.mxu0 %v3452_v14 }
  0x87   : > { %3120 = vmatprep.subr.bf16.mxu0 %v3453_v15  ;;  %v4143_v15 = vcombine.high %v4015_v45, %v1433_v12 }
  0x88   : > { %3272 = vmatpush3.bf16.msra.mxu1 %v3451_v13 }
  0x89   : > { %3273 = vmatprep.subr.bf16.mxu1 %v4015_v45 }
  0x8a   : > { %3121 = vmatpush3.bf16.msra.mxu0 %v3455_v17 }
  0x8b   : > { %3122 = vmatprep.subr.bf16.mxu0 %v3456_v18 }
  0x8c   : > { %3274 = vmatpush3.bf16.msra.mxu1 %v3454_v16  ;;  %v4146_v16 = vcombine.low %v4139_v9, %v1433_v12 }
  0x8d   : > { %3275 = vmatprep.subr.bf16.mxu1 %v4015_v45 }
  0x8e   : > { %3123 = vmatpush3.bf16.msra.mxu0 %v3458_v20 }
  0x8f   : > { %3124 = vmatprep.subr.bf16.mxu0 %v3459_v21 }
  0x90   : > { %3276 = vmatpush3.bf16.msra.mxu1 %v3457_v19 }
  0x91   : > { %3277 = vmatprep.subr.bf16.mxu1 %v4015_v45 }
  0x92   : > { %3125 = vmatpush3.bf16.msra.mxu0 %v3461_v23  ;;  %v2816_v23 = vrot.slane %v4143_v15, 11 }
  0x93   : > { %3141 = vmatprep.subr.bf16.mxu0 %v3462_v24  ;;  %v1459_v24 = vrot.slane %v4146_v16, 7  ;;  %v3467_v16 = vld [vmem:[%s4512_s4 + $0x30] sm:$0xff]  }
  0x94   : > { %3278 = vmatpush3.bf16.msra.mxu1 %v3460_v22 }
  0x95   : > { %3283 = vmatprep.subr.bf16.mxu1 %v4015_v45 }
  0xf5   : > { %v3033_v29 = vpop.f32.mrf.mxu0 }
  0xf7   : > { %v784_v25 = vpop.f32.mrf.mxu1  ;;  %v3034_v32 = vpop.f32.mrf.mxu0 }
  0xf8   : > { %v3035_v1 = vadd.f32 %v3034_v32, %v3033_v29 }
  0xf9   : > { %v3221_v26 = vpop.f32.mrf.mxu1  ;;  %v3036_v35 = vpop.f32.mrf.mxu0 }
  0xfa   : > { %v785_v42 = vadd.f32 %v3035_v1, %v784_v25 }
  0xfb   : > { %v787_v27 = vpop.f32.mrf.mxu1  ;;  %v3037_v36 = vpop.f32.mrf.mxu0 }
  0xfc   : > { %v3038_v43 = vadd.f32 %v3037_v36, %v3036_v35 }
  0xfd   : > { %v3222_v28 = vpop.f32.mrf.mxu1 }
  0xfe   : > { %v788_v51 = vadd.f32 %v3038_v43, %v787_v27 }
 0x115   : > { %v3064_v37 = vpop.f32.mrf.mxu0 }
 0x117   : > { %v1010_v30 = vpop.f32.mrf.mxu1  ;;  %v3065_v38 = vpop.f32.mrf.mxu0 }
 0x118   : > { %v3066_v40 = vadd.f32 %v3065_v38, %v3064_v37 }
 0x119   : > { %v3241_v31 = vpop.f32.mrf.mxu1  ;;  %v3067_v39 = vpop.f32.mrf.mxu0 }
 0x11a   : > { %v970_v47 = vadd.f32 %v3066_v40, %v785_v42 }
 0x11b   : > { %v1013_v33 = vpop.f32.mrf.mxu1  ;;  %v3068_v41 = vpop.f32.mrf.mxu0 }
 0x11c   : > { %v3069_v48 = vadd.f32 %v3068_v41, %v3067_v39  ;;  %v1011_v54 = vadd.f32 %v1010_v30, %v970_v47 }
 0x11d   : > { %v3242_v34 = vpop.f32.mrf.mxu1 }
 0x11e   : > { %v973_v55 = vadd.f32 %v3069_v48, %v788_v51 }
 0x120   : > { %v1014_v0 = vadd.f32 %v1013_v33, %v973_v55 }
 0x135   : > { %v3095_v44 = vpop.f32.mrf.mxu0 }
 0x137   : > { %v3096_v49 = vpop.f32.mrf.mxu0  ;;  %v1369_v53 = vpop.f32.mrf.mxu1 }
 0x138   : > { %v3097_v50 = vadd.f32 %v3096_v49, %v3095_v44 }
 0x139   : > { %v3098_v52 = vpop.f32.mrf.mxu0  ;;  %v3261_v58 = vpop.f32.mrf.mxu1 }
 0x13a   : > { %v1370_v56 = vadd.f32 %v3097_v50, %v1369_v53 }
 0x13b   : > { %v3099_v57 = vpop.f32.mrf.mxu0  ;;  %v1372_v63 = vpop.f32.mrf.mxu1 }
 0x13c   : > { %v3100_v60 = vadd.f32 %v3099_v57, %v3098_v52  ;;  %v1376_v61 = vadd.f32 %v1370_v56, %v1011_v54 }
 0x13d   : > { %v3262_v4 = vpop.f32.mrf.mxu1 }
 0x13e   : > { %v1385_v2 = vmul.f32 %v2814_v59, %v1376_v61  ;;  %v1373_v3 = vadd.f32 %v3100_v60, %v1372_v63 }
 0x140   : > { %v1394_v5 = vadd.f32 %v2815_v62, %v1385_v2  ;;  %v1377_v6 = vadd.f32 %v1373_v3, %v1014_v0 }
 0x142   : > { %v1396_v7 = vmax.f32 %v1394_v5, 0.0  ;;  %v1386_v8 = vmul.f32 %v2814_v59, %v1377_v6 }
 0x144   : > { %v1400_v10 = vcombine.high %v1396_v7, %v1396_v7  ;;  %1417 = vst [vmem:[#allocation3 + $0x30] sm:$0xf] %v1396_v7  ;;  %v1395_v11 = vadd.f32 %v2815_v62, %v1386_v8 }
 0x146   : > { %1418 = vst [vmem:[#allocation3 + $0x20] sm:$0xf] %v1400_v10  ;;  %v1397_v13 = vmax.f32 %v1395_v11, 0.0 }
 0x148   : > { %v1401_v14 = vcombine.high %v1397_v13, %v1397_v13  ;;  %1419 = vst [vmem:[#allocation3 + $0x40] sm:$0xf] %v1397_v13 }
 0x14a   : > { %1420 = vst [vmem:[#allocation3 + $0x28] sm:$0xf] %v1401_v14 }
 0x14b   : > { %v1553_v17 = vld [vmem:[#allocation3 + $0x30] sm:$0x1f] }
 0x14c   : > { %v1564_v18 = vrot.slane %v1553_v17, 1  ;;  %v1568_v19 = vrot.slane %v1553_v17, 2  ;;  %v4148_v20 = vld [vmem:[#allocation3 + $0x30] sm:$0x1f] }
 0x14d   : > { %v1555_v21 = vld [vmem:[#allocation3 + $0x20] sm:$0x1f]  ;;  %v1434_v32 = vrot.slane %v4148_v20, 1 }
 0x14e   : > { %v4150_v22 = vld [vmem:[#allocation3 + $0x20] sm:$0x1f]  ;;  %v1565_v25 = vrot.slane %v1555_v21, 1  ;;  %v1569_v26 = vrot.slane %v1555_v21, 2  ;;  %v1576_v27 = vcombine.high %v4015_v45, %v1564_v18  ;;  %v1578_v28 = vcombine.low %v1553_v17, %v1564_v18 }
 0x14f   : > { %v1557_v29 = vld [vmem:[#allocation3 + $0x40] sm:$0x1f]  ;;  %v1577_v30 = vcombine.high %v1568_v19, %v1568_v19  ;;  %v1594_v31 = vrot.slane %v1568_v19, 7  ;;  %v1435_v33 = vrot.slane %v4150_v22, 1  ;;  %v1448_v51 = vcombine.high %v4015_v45, %v1434_v32 }
 0x150   : > { %v1566_v34 = vrot.slane %v1557_v29, 1  ;;  %v1570_v35 = vrot.slane %v1557_v29, 2  ;;  %v1579_v36 = vcombine.high %v4015_v45, %v1565_v25  ;;  %v1581_v37 = vcombine.low %v1555_v21, %v1565_v25  ;;  %v4165_v60 = vld [vmem:[#allocation3 + $0x40] sm:$0x1f] }
 0x151   : > { %v1559_v38 = vld [vmem:[#allocation3 + $0x28] sm:$0x1f]  ;;  %v2824_v39 = vrot.slane %v1576_v27, 11  ;;  %v1590_v1 = vrot.slane %v1578_v28, 7  ;;  %v1580_v40 = vcombine.high %v1569_v26, %v1569_v26  ;;  %v2825_v41 = vrot.slane %v1577_v30, 11  ;;  %v3464_v27 = vld [vmem:[%s4512_s4 + $0x38] sm:$0xff]  }
 0x152   : > { %v1567_v42 = vrot.slane %v1559_v38, 1  ;;  %v1571_v43 = vrot.slane %v1559_v38, 2  ;;  %v1582_v44 = vcombine.high %v4015_v45, %v1566_v34  ;;  %v1584_v47 = vcombine.low %v1557_v29, %v1566_v34  ;;  %v3463_v29 = vld [vmem:[%s4512_s4 + $0xb8] sm:$0xff]  }
 0x153   : > { %v2826_v48 = vrot.slane %v1579_v36, 11  ;;  %v1598_v49 = vrot.slane %v1581_v37, 7  ;;  %v1583_v50 = vcombine.high %v1570_v35, %v1570_v35  ;;  %v1591_v56 = vsel %vm3783_vm3, %v2824_v39, %v1590_v1 }
 0x154   : > { %v1585_v52 = vcombine.high %v4015_v45, %v1567_v42  ;;  %v1587_v53 = vcombine.low %v1559_v38, %v1567_v42  ;;  %v2828_v54 = vrot.slane %v1582_v44, 11  ;;  %v1606_v55 = vrot.slane %v1584_v47, 7  ;;  %v3466_v42 = vld [vmem:[%s4512_s4 + $0xb0] sm:$0xff]  }
 0x155   : > { %v1599_v57 = vsel %vm3783_vm3, %v2826_v48, %v1598_v49  ;;  %v1586_v58 = vcombine.high %v1571_v43, %v1571_v43  ;;  %v2827_v59 = vrot.slane %v1580_v40, 11  ;;  %v1595_v0 = vsel %vm3783_vm3, %v2825_v41, %v1594_v31  ;;  %v3470_v49 = vld [vmem:[%s4512_s4 + $0x28] sm:$0xff]  }
 0x156   : > { %v1607_v61 = vsel %vm3783_vm3, %v2828_v54, %v1606_v55  ;;  %v2830_v62 = vrot.slane %v1585_v52, 11  ;;  %v1614_v63 = vrot.slane %v1587_v53, 7  ;;  %v1620_v2 = vcombine.low %v1591_v56, %v1599_v57  ;;  %v3473_v52 = vld [vmem:[%s4512_s4 + $0x20] sm:$0xff]   ;;  %v4243_v53 = vld [vmem:[#allocation3 + $0x10] sm:$0x1f]  ;;  %v3474_v55 = vld [vmem:[%s4512_s4 + $0x58] sm:$0xff]  }
 0x157   : > { %v1602_v3 = vrot.slane %v1569_v26, 7  ;;  %v2829_v4 = vrot.slane %v1583_v50, 11  ;;  %v1610_v5 = vrot.slane %v1570_v35, 7  ;;  %v2831_v7 = vrot.slane %v1586_v58, 11  ;;  %v3469_v50 = vld [vmem:[%s4512_s4 + $0xa8] sm:$0xff]   ;;  %v3472_v54 = vld [vmem:[%s4512_s4 + $0xa0] sm:$0xff]  }
 0x158   : > { %v1615_v6 = vsel %vm3783_vm3, %v2830_v62, %v1614_v63  ;;  %v1618_v8 = vrot.slane %v1571_v43, 7  ;;  %v1436_v10 = vrot.slane %v4165_v60, 1  ;;  %v1621_v11 = vcombine.high %v1591_v56, %v1599_v57  ;;  %v3468_v43 = vld [vmem:[%s4512_s4 + $0x68] sm:$0xff]   ;;  %v3476_v62 = vld [vmem:[%s4512_s4 + $0x18] sm:$0xff]  }
 0x159   : > { %v1623_v12 = vcombine.low %v1607_v61, %v1615_v6  ;;  %v1624_v13 = vcombine.high %v1607_v61, %v1615_v6  ;;  %v1603_v14 = vsel %vm3783_vm3, %v2827_v59, %v1602_v3  ;;  %v1611_v17 = vsel %vm3783_vm3, %v2829_v4, %v1610_v5  ;;  %v4251_v56 = vld [vmem:[#allocation3 + $0x28] sm:$0x1f]  ;;  %v4256_v59 = vld [vmem:[#allocation3 + $0x40] sm:$0x1f] }
 0x15a   : > { %v1619_v18 = vsel %vm3783_vm3, %v2831_v7, %v1618_v8  ;;  %v1622_v19 = vcombine.low %v1595_v0, %v1603_v14  ;;  %v1450_v28 = vcombine.low %v4148_v20, %v1434_v32  ;;  %v1451_v30 = vcombine.high %v4015_v45, %v1435_v33  ;;  %v4275_v3 = vld [vmem:[#allocation3 + $0x20] sm:$0x1f]  ;;  %v3479_v7 = vld [vmem:[%s4512_s4 + $0x10] sm:$0xff]  }
 0x15b   : > { %v1633_v21 = vpack.c.bf16 %v1624_v13, %v1621_v11  ;;  %v1625_v25 = vcombine.low %v1611_v17, %v1619_v18  ;;  %v1632_v26 = vpack.c.bf16 %v1623_v12, %v1620_v2  ;;  %v1453_v31 = vcombine.low %v4150_v22, %v1435_v33  ;;  %v3465_v33 = vld [vmem:[%s4512_s4 + $0x70] sm:$0xff]   ;;  %v3480_v13 = vld [vmem:[%s4512_s4 + $0x48] sm:$0xff]  }
 0x15c   : > { %v1454_v34 = vcombine.high %v4015_v45, %v1436_v10  ;;  %v1456_v35 = vcombine.low %v4165_v60, %v1436_v10  ;;  %v4197_v32 = vsel %vm3783_vm3, %v2816_v23, %v1459_v24  ;;  %v2818_v37 = vrot.slane %v1448_v51, 11  ;;  %v3471_v51 = vld [vmem:[%s4512_s4 + $0x60] sm:$0xff]   ;;  %v3477_v2 = vld [vmem:[%s4512_s4 + $0x50] sm:$0xff]  }
 0x15d   : > { %1860 = vmatprep.mubr.bf16.mxu0 %v1633_v21  ;;  %v1634_v36 = vpack.c.bf16 %v1625_v25, %v1622_v19  ;;  %v1467_v38 = vrot.slane %v1450_v28, 7  ;;  %v2820_v39 = vrot.slane %v1451_v30, 11  ;;  %v1475_v1 = vrot.slane %v1453_v31, 7  ;;  %v3478_v12 = vld [vmem:[%s4512_s4 + $0x90] sm:$0xff]  }
 0x15e   : > { %1861 = vmatmul.mubr.bf16.vlgmr.msra.gmra.mxu0 %v1632_v26  ;;  %v2822_v40 = vrot.slane %v1454_v34, 11  ;;  %v1483_v41 = vrot.slane %v1456_v35, 7  ;;  %v1437_v57 = vrot.slane %v4139_v9, 2  ;;  %v1440_v58 = vrot.slane %v4165_v60, 2  ;;  %v3475_v60 = vld [vmem:[%s4512_s4 + $0x98] sm:$0xff]  }
 0x15f   : > { %3280 = vmatmul.mubr.bf16.vlgmr.msra.gmra.mxu1 %v1634_v36  ;;  %3142 = vmatpush3.bf16.msra.mxu0 %v3464_v27  ;;  %v4204_v15 = vsel %vm3783_vm3, %v2818_v37, %v1467_v38  ;;  %v4211_v23 = vsel %vm3783_vm3, %v2820_v39, %v1475_v1  ;;  %v2152_v61 = vrot.slane %v4243_v53, 1  ;;  %v2151_v63 = vrot.slane %v4251_v56, 1  ;;  %v3481_v36 = vld [vmem:[%s4512_s4 + $0x88] sm:$0xff]   ;;  %v3483_v37 = vld [vmem:[%s4512_s4 + $0x40] sm:$0xff]  }
 0x160   : > { %3284 = vmatpush3.bf16.msra.mxu1 %v3463_v29  ;;  %v4215_v24 = vsel %vm3783_vm3, %v2822_v40, %v1483_v41  ;;  %v1490_v44 = vcombine.high %v4197_v32, %v4204_v15  ;;  %3143 = vmatprep.subr.bf16.mxu0 %v3465_v33  ;;  %v4264_v0 = vrot.slane %v4148_v20, 2  ;;  %v4267_v9 = vrot.slane %v4150_v22, 2  ;;  %v3482_v29 = vld [vmem:[%s4512_s4 + $0x8] sm:$0xff]  }
 0x161   : > { %v1493_v47 = vcombine.high %v4211_v23, %v4215_v24  ;;  %3285 = vmatprep.subr.bf16.mxu1 %v4015_v45  ;;  %3299 = vmatprep.mubr.msk.bf16.mxu1 %vm3577_vm0, %v4015_v45  ;;  %v1446_v4 = vcombine.high %v1437_v57, %v1437_v57  ;;  %v2150_v20 = vrot.slane %v4256_v59, 1  ;;  %v1455_v5 = vcombine.high %v1440_v58, %v1440_v58 }
 0x162   : > { %v2170_v22 = vcombine.high %v4015_v45, %v2152_v61  ;;  %v2172_v6 = vcombine.low %v4243_v53, %v2152_v61  ;;  %v2149_v8 = vrot.slane %v4275_v3, 1  ;;  %v2167_v10 = vcombine.high %v4015_v45, %v2151_v63 }
 0x163   : > { %v1502_v48 = vpack.c.bf16 %v1493_v47, %v1490_v44  ;;  %3144 = vmatpush3.bf16.msra.mxu0 %v3467_v16  ;;  %v2169_v11 = vcombine.low %v4251_v56, %v2151_v63  ;;  %v1449_v14 = vcombine.high %v4264_v0, %v4264_v0  ;;  %v1452_v17 = vcombine.high %v4267_v9, %v4267_v9  ;;  %v3485_v44 = vld [vmem:[%s4512_s4] sm:$0xff]   ;;  %v3488_v63 = vld [vmem:[%s4512_s4 + $0x1b8] sm:$0xff]  }
 0x164   : > { %3286 = vmatpush3.bf16.msra.mxu1 %v3466_v42  ;;  %3145 = vmatprep.subr.bf16.mxu0 %v3468_v43  ;;  %v2817_v18 = vrot.slane %v1446_v4, 11  ;;  %v2164_v19 = vcombine.high %v4015_v45, %v2150_v20  ;;  %v2166_v21 = vcombine.low %v4256_v59, %v2150_v20  ;;  %v1463_v25 = vrot.slane %v1437_v57, 7  ;;  %v3486_v57 = vld [vmem:[%s4512_s4 + $0x1f8] sm:$0xff]   ;;  %v3491_v20 = vld [vmem:[%s4512_s4 + $0x1b0] sm:$0xff]  }
 0x165   : > { %2086 = vmatprep.mubr.bf16.mxu0 %v1502_v48  ;;  %3287 = vmatprep.subr.bf16.mxu1 %v4015_v45  ;;  %v2823_v26 = vrot.slane %v1455_v5, 11  ;;  %v2934_v27 = vrot.slane %v2170_v22, 11  ;;  %v2199_v28 = vrot.slane %v2172_v6, 7  ;;  %v2161_v30 = vcombine.high %v4015_v45, %v2149_v8  ;;  %v3490_v5 = vld [vmem:[%s4512_s4 + $0x230] sm:$0xff]   ;;  %v3492_v22 = vld [vmem:[%s4512_s4 + $0x1e8] sm:$0xff]  }
 0x166   : > { %v2163_v31 = vcombine.low %v4275_v3, %v2149_v8  ;;  %v2932_v34 = vrot.slane %v2167_v10, 11  ;;  %v2191_v35 = vrot.slane %v2169_v11, 7  ;;  %v2819_v38 = vrot.slane %v1449_v14, 11  ;;  %v3494_v6 = vld [vmem:[%s4512_s4 + $0x1a8] sm:$0xff]   ;;  %v3495_v8 = vld [vmem:[%s4512_s4 + $0x1e0] sm:$0xff]  }
 0x167   : > { %3146 = vmatpush3.bf16.msra.mxu0 %v3470_v49  ;;  %v2821_v33 = vrot.slane %v1452_v17, 11  ;;  %v1487_v39 = vrot.slane %v1440_v58, 7  ;;  %v2930_v1 = vrot.slane %v2164_v19, 11  ;;  %v2183_v40 = vrot.slane %v2166_v21, 7  ;;  %v3497_v10 = vld [vmem:[%s4512_s4 + $0x1a0] sm:$0xff]   ;;  %v3500_v17 = vld [vmem:[%s4512_s4 + $0x198] sm:$0xff]  }
 0x168   : > { %3288 = vmatpush3.bf16.msra.mxu1 %v3469_v50  ;;  %3147 = vmatprep.subr.bf16.mxu0 %v3471_v51  ;;  %v1464_v41 = vsel %vm3783_vm3, %v2817_v18, %v1463_v25  ;;  %v1471_v16 = vrot.slane %v4264_v0, 7  ;;  %v1479_v42 = vrot.slane %v4267_v9, 7  ;;  %v2928_v47 = vrot.slane %v2161_v30, 11  ;;  %v3496_v11 = vld [vmem:[%s4512_s4 + $0x220] sm:$0xff]   ;;  %v3499_v19 = vld [vmem:[%s4512_s4 + $0x218] sm:$0xff]  }
 0x169   : > { %3289 = vmatprep.subr.bf16.mxu1 %v4015_v45  ;;  %v1488_v43 = vsel %vm3783_vm3, %v2823_v26, %v1487_v39  ;;  %v2175_v48 = vrot.slane %v2163_v31, 7  ;;  %v4323_v49 = vsel %vm3783_vm3, %v2932_v34, %v2191_v35  ;;  %v4327_v50 = vsel %vm3783_vm3, %v2934_v27, %v2199_v28  ;;  %v3502_v26 = vld [vmem:[%s4512_s4 + $0x210] sm:$0xff]   ;;  %v3504_v27 = vld [vmem:[%s4512_s4 + $0x1c8] sm:$0xff]  }
 0x16a   : > { %v1492_v51 = vcombine.low %v4211_v23, %v4215_v24  ;;  %v4344_v23 = vsel %vm3783_vm3, %v2930_v1, %v2183_v40  ;;  %v1489_v24 = vcombine.low %v4197_v32, %v4204_v15  ;;  %v2209_v61 = vcombine.high %v4323_v49, %v4327_v50  ;;  %v3487_v32 = vld [vmem:[%s4512_s4 + $0x238] sm:$0xff]   ;;  %v3506_v34 = vld [vmem:[%s4512_s4 + $0x188] sm:$0xff]  }
 0x16b   : > { %3148 = vmatpush3.bf16.msra.mxu0 %v3473_v52  ;;  %v3484_v52 = vld [vmem:[%s4512_s4 + $0x80] sm:$0xff]   ;;  %v4355_v0 = vsel %vm3783_vm3, %v2928_v47, %v2175_v48  ;;  %v2156_v14 = vrot.slane %v4243_v53, 2  ;;  %v2154_v18 = vrot.slane %v4256_v59, 2  ;;  %v2153_v53 = vrot.slane %v4275_v3, 2  ;;  %v3503_v59 = vld [vmem:[%s4512_s4 + $0x190] sm:$0xff]   ;;  %v3505_v35 = vld [vmem:[%s4512_s4 + $0x208] sm:$0xff]  }
 0x16c   : > { %3290 = vmatpush3.bf16.msra.mxu1 %v3472_v54  ;;  %3149 = vmatprep.subr.bf16.mxu0 %v3474_v55  ;;  %v1472_v54 = vsel %vm3783_vm3, %v2819_v38, %v1471_v16  ;;  %v1480_v55 = vsel %vm3783_vm3, %v2821_v33, %v1479_v42  ;;  %v1501_v9 = vpack.c.bf16 %v1492_v51, %v1489_v24  ;;  %v3508_v42 = vld [vmem:[%s4512_s4 + $0x200] sm:$0xff]  }
 0x16d   : > { %3291 = vmatprep.subr.bf16.mxu1 %v4015_v45  ;;  %v1494_v58 = vcombine.low %v1480_v55, %v1488_v43  ;;  %v2206_v15 = vcombine.high %v4355_v0, %v4344_v23  ;;  %v2171_v25 = vcombine.high %v2156_v14, %v2156_v14  ;;  %v2165_v28 = vcombine.high %v2154_v18, %v2154_v18 }
 0x16e   : > { %v2162_v3 = vcombine.high %v2153_v53, %v2153_v53  ;;  %v2203_v31 = vrot.slane %v2156_v14, 7  ;;  %v2187_v39 = vrot.slane %v2154_v18, 7  ;;  %v2208_v16 = vcombine.low %v4323_v49, %v4327_v50 }
 0x16f   : > { %3150 = vmatpush3.bf16.msra.mxu0 %v3476_v62  ;;  %v1491_v62 = vcombine.low %v1464_v41, %v1472_v54  ;;  %v2218_v4 = vpack.c.bf16 %v2209_v61, %v2206_v15  ;;  %v2935_v30 = vrot.slane %v2171_v25, 11  ;;  %v3509_v41 = vld [vmem:[%s4512_s4 + $0x180] sm:$0xff]   ;;  %v2179_v43 = vrot.slane %v2153_v53, 7 }
 0x170   : > { %3292 = vmatpush3.bf16.msra.mxu1 %v3475_v60  ;;  %3151 = vmatprep.subr.bf16.mxu0 %v3477_v2  ;;  %v3489_v2 = vld [vmem:[%s4512_s4 + $0x1f0] sm:$0xff]   ;;  %v2929_v33 = vrot.slane %v2162_v3, 11  ;;  %v2205_v48 = vcombine.low %v4355_v0, %v4344_v23  ;;  %v3008_v53 = vld [vmem:[%s4513_s5] ss:$0 sm:$0xff] }
 0x171   : > { %3293 = vmatprep.subr.bf16.mxu1 %v4015_v45  ;;  %v1503_v60 = vpack.c.bf16 %v1494_v58, %v1491_v62  ;;  %v2204_v40 = vsel %vm3783_vm3, %v2935_v30, %v2203_v31 }
 0x172   : > { %v2180_v51 = vsel %vm3783_vm3, %v2929_v33, %v2179_v43  ;;  %v2217_v50 = vpack.c.bf16 %v2208_v16, %v2205_v48 }
 0x173   : > { %3152 = vmatpush3.bf16.msra.mxu0 %v3479_v7  ;;  %v3493_v7 = vld [vmem:[%s4512_s4 + $0x228] sm:$0xff]  }
 0x174   : > { %3294 = vmatpush3.bf16.msra.mxu1 %v3478_v12  ;;  %3153 = vmatprep.subr.bf16.mxu0 %v3480_v13  ;;  %v3498_v12 = vld [vmem:[%s4512_s4 + $0x1d8] sm:$0xff]   ;;  %v2155_v13 = vrot.slane %v4251_v56, 2  ;;  %v3513_v56 = vld [vmem:[#allocation2 + $0x30] sm:$0xff] }
 0x175   : > { %3295 = vmatprep.subr.bf16.mxu1 %v4015_v45 }
 0x176   : > { %v2168_v21 = vcombine.high %v2155_v13, %v2155_v13  ;;  %v2195_v38 = vrot.slane %v2155_v13, 7 }
 0x177   : > { %3154 = vmatpush3.bf16.msra.mxu0 %v3482_v29 }
 0x178   : > { %3296 = vmatpush3.bf16.msra.mxu1 %v3481_v36  ;;  %3155 = vmatprep.subr.bf16.mxu0 %v3483_v37  ;;  %v2933_v29 = vrot.slane %v2168_v21, 11  ;;  %v3507_v36 = vld [vmem:[%s4512_s4 + $0x1c0] sm:$0xff]   ;;  %v2931_v37 = vrot.slane %v2165_v28, 11 }
 0x179   : > { %3297 = vmatprep.subr.bf16.mxu1 %v4015_v45 }
 0x17a   : > { %v2196_v1 = vsel %vm3783_vm3, %v2933_v29, %v2195_v38  ;;  %v3510_v29 = vld [vmem:[%s3752_s8] sm:$0xff]  }
 0x17b   : > { %3156 = vmatpush3.bf16.msra.mxu0 %v3485_v44  ;;  %v2188_v44 = vsel %vm3783_vm3, %v2931_v37, %v2187_v39  ;;  %v2210_v47 = vcombine.low %v2196_v1, %v2204_v40  ;;  %v3511_v37 = vld [vmem:[%s3752_s8 + $0x8] sm:$0xff]   ;;  %s4468_s8 = scalar_lea.sflag [#allocation5], %s269_s21 }
 0x17c   : > { %3298 = vmatpush3.bf16.msra.mxu1 %v3484_v52  ;;  %3172 = vmatprep.subr.bf16.mxu0 %v3486_v57  ;;  %v2207_v49 = vcombine.low %v2180_v51, %v2188_v44 }
 0x17d   : > { %3303 = vmatprep.subr.bf16.mxu1 %v4015_v45 }
 0x17e   : > { %2087 = vmatmul.mubr.bf16.vlgmr.msra.gmra.mxu0 %v1501_v9  ;;  %v2219_v52 = vpack.c.bf16 %v2210_v47, %v2207_v49 }
 0x17f   : > { %3300 = vmatmul.mubr.bf16.vlgmr.msra.gmra.mxu1 %v1503_v60  ;;  %3173 = vmatpush3.bf16.msra.mxu0 %v3488_v63 }
 0x180   : > { %3304 = vmatpush3.bf16.msra.mxu1 %v3487_v32  ;;  %2445 = vmatprep.mubr.bf16.mxu0 %v2218_v4 }
 0x181   : > { %3305 = vmatprep.subr.bf16.mxu1 %v4015_v45  ;;  %3174 = vmatprep.subr.bf16.mxu0 %v3489_v2 }
 0x182   : > { %3319 = vmatprep.mubr.msk.bf16.mxu1 %vm3577_vm0, %v4015_v45 }
 0x183   : > { %3175 = vmatpush3.bf16.msra.mxu0 %v3491_v20 }
 0x184   : > { %3306 = vmatpush3.bf16.msra.mxu1 %v3490_v5  ;;  %3176 = vmatprep.subr.bf16.mxu0 %v3492_v22 }
 0x185   : > { %3307 = vmatprep.subr.bf16.mxu1 %v4015_v45 }
 0x187   : > { %3177 = vmatpush3.bf16.msra.mxu0 %v3494_v6 }
 0x188   : > { %3308 = vmatpush3.bf16.msra.mxu1 %v3493_v7  ;;  %3178 = vmatprep.subr.bf16.mxu0 %v3495_v8 }
 0x189   : > { %3309 = vmatprep.subr.bf16.mxu1 %v4015_v45  ;;  %v3501_v45 = vld [vmem:[%s4512_s4 + $0x1d0] sm:$0xff]  }
 0x18b   : > { %3179 = vmatpush3.bf16.msra.mxu0 %v3497_v10 }
 0x18c   : > { %3310 = vmatpush3.bf16.msra.mxu1 %v3496_v11  ;;  %3180 = vmatprep.subr.bf16.mxu0 %v3498_v12 }
 0x18d   : > { %3311 = vmatprep.subr.bf16.mxu1 %v3513_v56 }
 0x18f   : > { %3181 = vmatpush3.bf16.msra.mxu0 %v3500_v17 }
 0x190   : > { %3312 = vmatpush3.bf16.msra.mxu1 %v3499_v19  ;;  %3182 = vmatprep.subr.bf16.mxu0 %v3501_v45 }
 0x191   : > { %3313 = vmatprep.subr.bf16.mxu1 %v3513_v56 }
 0x193   : > { %3183 = vmatpush3.bf16.msra.mxu0 %v3503_v59 }
 0x194   : > { %3314 = vmatpush3.bf16.msra.mxu1 %v3502_v26  ;;  %3184 = vmatprep.subr.bf16.mxu0 %v3504_v27  ;;  %v3009_v27 = vld [vmem:[%s4514_s6] ss:$0 sm:$0xff] }
 0x195   : > { %3315 = vmatprep.subr.bf16.mxu1 %v3513_v56 }
 0x197   : > { %3185 = vmatpush3.bf16.msra.mxu0 %v3506_v34 }
 0x198   : > { %3316 = vmatpush3.bf16.msra.mxu1 %v3505_v35  ;;  %3186 = vmatprep.subr.bf16.mxu0 %v3507_v36 }
 0x199   : > { %3317 = vmatprep.subr.bf16.mxu1 %v3513_v56 }
 0x19b   : > { %3187 = vmatpush3.bf16.msra.mxu0 %v3509_v41 }
 0x19c   : > { %3318 = vmatpush3.bf16.msra.mxu1 %v3508_v42 }
 0x19e   : > { %2446 = vmatmul.mubr.bf16.vlgmr.msra.gmra.mxu0 %v2217_v50 }
 0x19f   : > { %3320 = vmatmul.mubr.bf16.vlgmr.msra.gmra.mxu1 %v2219_v52 }
 0x21e   : > { %v3126_v62 = vpop.f32.mrf.mxu0 }
 0x21f   : > { %v1903_v54 = vpop.f32.mrf.mxu1 }
 0x220   : > { %v3127_v23 = vpop.f32.mrf.mxu0 }
 0x221   : > { %v3281_v55 = vpop.f32.mrf.mxu1  ;;  %v3128_v2 = vadd.f32 %v3127_v23, %v3126_v62 }
 0x222   : > { %v3129_v0 = vpop.f32.mrf.mxu0 }
 0x223   : > { %v1906_v57 = vpop.f32.mrf.mxu1  ;;  %v1904_v5 = vadd.f32 %v3128_v2, %v1903_v54 }
 0x224   : > { %v3130_v46 = vpop.f32.mrf.mxu0 }
 0x225   : > { %v3282_v58 = vpop.f32.mrf.mxu1  ;;  %v3131_v22 = vadd.f32 %v3130_v46, %v3129_v0 }
 0x227   : > { %v1907_v12 = vadd.f32 %v3131_v22, %v1906_v57 }
 0x23e   : > { %v3157_v32 = vpop.f32.mrf.mxu0 }
 0x23f   : > { %v2129_v24 = vpop.f32.mrf.mxu1 }
 0x240   : > { %v3158_v15 = vpop.f32.mrf.mxu0 }
 0x241   : > { %v3301_v61 = vpop.f32.mrf.mxu1  ;;  %v3159_v4 = vadd.f32 %v3158_v15, %v3157_v32 }
 0x242   : > { %v3160_v60 = vpop.f32.mrf.mxu0 }
 0x243   : > { %v2132_v63 = vpop.f32.mrf.mxu1  ;;  %v2089_v7 = vadd.f32 %v3159_v4, %v1904_v5 }
 0x244   : > { %v3161_v20 = vpop.f32.mrf.mxu0 }
 0x245   : > { %v3302_v9 = vpop.f32.mrf.mxu1  ;;  %v3162_v8 = vadd.f32 %v3161_v20, %v3160_v60  ;;  %v2130_v18 = vadd.f32 %v2129_v24, %v2089_v7 }
 0x247   : > { %v2092_v19 = vadd.f32 %v3162_v8, %v1907_v12 }
 0x249   : > { %v2133_v28 = vadd.f32 %v2132_v63, %v2092_v19 }
 0x25e   : > { %v3188_v6 = vpop.f32.mrf.mxu0 }
 0x25f   : > { %v2488_v10 = vpop.f32.mrf.mxu1 }
 0x260   : > { %v3189_v11 = vpop.f32.mrf.mxu0 }
 0x261   : > { %v3321_v13 = vpop.f32.mrf.mxu1  ;;  %v3190_v14 = vadd.f32 %v3189_v11, %v3188_v6 }
 0x262   : > { %v3191_v17 = vpop.f32.mrf.mxu0 }
 0x263   : > { %v2489_v45 = vadd.f32 %v3190_v14, %v2488_v10  ;;  %v2491_v56 = vpop.f32.mrf.mxu1 }
 0x264   : > { %v3192_v21 = vpop.f32.mrf.mxu0 }
 0x265   : > { %v2495_v25 = vadd.f32 %v2489_v45, %v2130_v18  ;;  %v3322_v59 = vpop.f32.mrf.mxu1  ;;  %v3193_v26 = vadd.f32 %v3192_v21, %v3191_v17 }
 0x267   : > { %v2504_v3 = vmul.f32 %v3008_v53, %v2495_v25  ;;  %v2492_v30 = vadd.f32 %v3193_v26, %v2491_v56 }
 0x269   : > { %v2513_v31 = vadd.f32 %v3009_v27, %v2504_v3  ;;  %v2496_v34 = vadd.f32 %v2492_v30, %v2133_v28 }
 0x26b   : > { %v2527_v35 = vadd.f32 %v3510_v29, %v2513_v31  ;;  %v2505_v36 = vmul.f32 %v3008_v53, %v2496_v34 }
 0x26d   : > { %v2531_v38 = vcombine.high %v2527_v35, %v2527_v35  ;;  %2535 = vst [vmem:[%s271_s14] sm:$0xf] %v2527_v35  ;;  %v2514_v33 = vadd.f32 %v3009_v27, %v2505_v36 }
 0x26f   : > { %2536 = vst [vmem:[%s271_s14 + $0x4] sm:$0xf] %v2531_v38  ;;  %v2528_v39 = vadd.f32 %v3511_v37, %v2514_v33 }
 0x271   : > { %v2532_v1 = vcombine.high %v2528_v39, %v2528_v39  ;;  %2537 = vst [vmem:[%s271_s14 + $0x8] sm:$0xf] %v2528_v39 }
 0x273   : > { %2538 = vst [vmem:[%s271_s14 + $0xc] sm:$0xf] %v2532_v1 }
 0x274   : > { %3527 = shalt.err (!%p3524_p3)
}
 0x275   : > { %s3528_s21 = scalar_lea.hbm %s4462_s19, 256  ;;  %s3532_s13 = scalar_lea.hbm %s4515_s7, 512 }
 0x276   : > { %p3529_p4 = scmp.ne.s32.totalorder %s4462_s19, %s3528_s21  ;;  %p3533_p9 = scmp.lt.s32.totalorder %s4462_s19, %s4515_s7 }
 0x277   : > { %p3534_p10 = scmp.lt.s32.totalorder %s3532_s13, %s3528_s21 }
 0x278   : > { %p3530_p7 = pnand %p3529_p4, %p3659_p5 }
 0x279   : > { %p3535_p11 = por %p3534_p10, %p3533_p9 }
 0x27a   : > { %p3531_p8 = pneg %p3530_p7 }
 0x27c   : > { %p3536_p12 = pnand %p3535_p11, %p3531_p8 }
 0x27e   : > { %3539 = shalt.err (!%p3536_p12)
}
 0x27f   : > { %s3579_s17 = smov 64   ;;  %s3580_s18 = smov 4  }
 0x280   : > { %3323 = dma.vmem_to_hbm [thread:$0]  (%p3659_p5), %s4464_s16, 256, %s4462_s19, %s4468_s8, %s3579_s17, %s3579_s17, %s3580_s18  }
 0x281 PF: > { %p3329_p13 = scmp.ge.s32.totalorder %s3574_s27, 2  ;;  %s2568_s28 = sand.u32 1, %s3562_s24  }
 0x282   : > { %s2569_s20 = scalar_lea.sflag [#allocation5], %s2568_s28 }
 0x283   : > { %p3326_p0 = pnand %p3329_p13, %p3663_p6 }
 0x285   : > { %p3327_p1 = pneg %p3326_p0 }
 0x287   : > { %3557 = dma.done.wait (%p3327_p1), %s2569_s20, 256  }
 0x288   : > { %3559 = vsyncadd (%p3327_p1), %s2569_s20, 4294967040  ;;  %p17_p2 = scmp.ge.s32.totalorder %s3646_s30, 4   ;;  %s4520_s24 = smov %s3566_s25 }
 0x289   : > { %s4521_s25 = smov %s3570_s26  ;;  %s4522_s26 = smov %s3657_s10 }
 0x28a   : > { %s4523_s27 = smov %s3646_s30  ;;  %19 = sbr.rel (!%p17_p2) target bundleno = 3 (0x3), region = 91 }
 0x28f   :  { %2574 = vsyncpa [#allocation5], 1 }
 0x290   :  { %2576 = vsyncpa [#allocation5 + $0x1], 1 }

</bundles_post_ra>
